<compile_context>
chip_gen: v5e
topology: v5e:2x2
jax: 0.10.0
libtpu: 0.0.40
codegen_flags: <defaults>
</compile_context>

<pallas_src>
import functools

import jax
import jax.numpy as jnp
from jax.experimental import pallas as pl
from jax.experimental.pallas import tpu as pltpu

EPS = 1e-5          # nn.BatchNorm2d default
LANES = 128

_COMPILER_PARAMS = pltpu.CompilerParams(
    dimension_semantics=("parallel",),        # batch tiles are independent
    vmem_limit_bytes=64 * 1024 * 1024,
)


# ------------------------------------------------------------ kernel helpers
def _accumulate_taps(window, w_ref, h, w, cout):
    """3x3 conv as nine shifted-window matmuls (no materialized im2col)."""
    acc = jnp.zeros((h * w, cout), jnp.float32)
    for dh in range(3):
        for dw in range(3):
            tap = window(dh, dw)                             # (h, w, cin)
            acc = acc + jnp.dot(tap.reshape(h * w, tap.shape[-1]),
                                w_ref[dh * 3 + dw],
                                preferred_element_type=jnp.float32)
    return acc


def _channel_stats(y2d):
    """Per-channel [sum; sum-of-squares] of a (M, C) tile -> (2, C)."""
    return jnp.concatenate(
        [jnp.sum(y2d, axis=0, keepdims=True),
         jnp.sum(y2d * y2d, axis=0, keepdims=True)], axis=0)


# ------------------------------------------------------------------ kernels
def _conv1_kernel(*refs, h, w, project):
    """Pass 1: conv1 (3x3) [+ 1x1 shortcut conv] on one image; raw outputs plus
    per-channel BN statistics (phase 1 of the two-phase BatchNorm)."""
    if project:
        xp_ref, w1_ref, ws_ref, y1_ref, ys_ref, st1_ref, sts_ref = refs
    else:
        xp_ref, w1_ref, y1_ref, st1_ref = refs

    cout = w1_ref.shape[-1]
    acc = _accumulate_taps(lambda dh, dw: xp_ref[0, dh:dh + h, dw:dw + w, :],
                           w1_ref, h, w, cout)
    y1_ref[0] = acc.reshape(h, w, cout)
    st1_ref[0] = _channel_stats(acc)

    if project:
        xin = xp_ref[0, 1:h + 1, 1:w + 1, :].reshape(h * w, xp_ref.shape[-1])
        ys = jnp.dot(xin, ws_ref[...], preferred_element_type=jnp.float32)
        ys_ref[0] = ys.reshape(h, w, cout)
        sts_ref[0] = _channel_stats(ys)


def _bn_relu_conv2_kernel(y1_ref, w2_ref, a1_ref, y2_ref, st2_ref, pad_ref,
                          *, h, w):
    """Pass 2: out1 = relu(bn1(y1)) as one FMA, then conv2 (3x3) on the same
    VMEM-resident tile (halo via a zeroed VMEM scratch); raw conv2 output plus
    BN2 statistics."""
    scale = a1_ref[0:1, :]
    shift = a1_ref[1:2, :]
    out1 = jnp.maximum(y1_ref[0] * scale + shift, 0.0)        # (h, w, cp)

    pad_ref[...] = jnp.zeros_like(pad_ref)                    # zero halo ring
    pad_ref[1:h + 1, 1:w + 1, :] = out1

    cp = y1_ref.shape[-1]
    acc = _accumulate_taps(lambda dh, dw: pad_ref[dh:dh + h, dw:dw + w, :],
                           w2_ref, h, w, cp)
    y2_ref[0] = acc.reshape(h, w, cp)
    st2_ref[0] = _channel_stats(acc)


def _finalize_kernel(*refs, project):
    """Pass 3: bn2(y2) + shortcut (bn_s(conv_s(x)) or identity), add, ReLU.
    a2_ref carries [scale2 ; shift2 + shift_shortcut] (shifts pre-folded)."""
    if project:
        y2_ref, r_ref, a2_ref, ss_ref, o_ref = refs
        out = (y2_ref[0] * a2_ref[0:1, :]
               + r_ref[0] * ss_ref[...]
               + a2_ref[1:2, :])
    else:
        y2_ref, r_ref, a2_ref, o_ref = refs
        out = y2_ref[0] * a2_ref[0:1, :] + r_ref[0] + a2_ref[1:2, :]
    o_ref[0] = jnp.maximum(out, 0.0)


# --------------------------------------------------------------- pallas_call
def _image_spec(h, w, c):
    return pl.BlockSpec((1, h, w, c), lambda i: (i, 0, 0, 0))


def _stats_spec(c):
    return pl.BlockSpec((1, 2, c), lambda i: (i, 0, 0))


def conv1_pass(xp, w1, ws, *, h, w):
    n, _, _, cin = xp.shape
    cout = w1.shape[-1]
    project = ws is not None

    in_specs = [pl.BlockSpec((1, h + 2, w + 2, cin), lambda i: (i, 0, 0, 0)),
                pl.BlockSpec((9, cin, cout), lambda i: (0, 0, 0))]
    args = [xp, w1]
    out_shape = [jax.ShapeDtypeStruct((n, h, w, cout), jnp.float32)]
    out_specs = [_image_spec(h, w, cout)]
    if project:
        in_specs.append(pl.BlockSpec((cin, cout), lambda i: (0, 0)))
        args.append(ws)
        out_shape.append(jax.ShapeDtypeStruct((n, h, w, cout), jnp.float32))
        out_specs.append(_image_spec(h, w, cout))
    out_shape.append(jax.ShapeDtypeStruct((n, 2, cout), jnp.float32))
    out_specs.append(_stats_spec(cout))
    if project:
        out_shape.append(jax.ShapeDtypeStruct((n, 2, cout), jnp.float32))
        out_specs.append(_stats_spec(cout))

    kern = functools.partial(_conv1_kernel, h=h, w=w, project=project)
    return pl.pallas_call(
        kern,
        grid=(n,),
        in_specs=in_specs,
        out_specs=out_specs,
        out_shape=out_shape,
        compiler_params=_COMPILER_PARAMS,
    )(*args)


def conv2_pass(y1, w2, affine1, *, h, w):
    n, _, _, cp = y1.shape
    kern = functools.partial(_bn_relu_conv2_kernel, h=h, w=w)
    return pl.pallas_call(
        kern,
        grid=(n,),
        in_specs=[_image_spec(h, w, cp),
                  pl.BlockSpec((9, cp, cp), lambda i: (0, 0, 0)),
                  pl.BlockSpec((2, cp), lambda i: (0, 0))],
        out_specs=[_image_spec(h, w, cp), _stats_spec(cp)],
        out_shape=[jax.ShapeDtypeStruct((n, h, w, cp), jnp.float32),
                   jax.ShapeDtypeStruct((n, 2, cp), jnp.float32)],
        scratch_shapes=[pltpu.VMEM((h + 2, w + 2, cp), jnp.float32)],
        compiler_params=_COMPILER_PARAMS,
    )(y1, w2, affine1)


def finalize_pass(y2, resid, affine2c, scale_s, *, h, w, project):
    n, _, _, cp = y2.shape
    in_specs = [_image_spec(h, w, cp), _image_spec(h, w, cp),
                pl.BlockSpec((2, cp), lambda i: (0, 0))]
    args = [y2, resid, affine2c]
    if project:
        in_specs.append(pl.BlockSpec((1, cp), lambda i: (0, 0)))
        args.append(scale_s)
    kern = functools.partial(_finalize_kernel, project=project)
    return pl.pallas_call(
        kern,
        grid=(n,),
        in_specs=in_specs,
        out_specs=_image_spec(h, w, cp),
        out_shape=jax.ShapeDtypeStruct((n, h, w, cp), jnp.float32),
        compiler_params=_COMPILER_PARAMS,
    )(*args)


# --------------------------------------------------------------------- glue
def _round_up(c, m=LANES):
    return ((c + m - 1) // m) * m


def _pad_last(x, cp):
    c = x.shape[-1]
    if c == cp:
        return x
    return jnp.pad(x, [(0, 0)] * (x.ndim - 1) + [(0, cp - c)])


def _conv3x3_weight(w_oihw, cin_p, cout_p):
    """torch (Cout,Cin,3,3) -> (9, Cin_p, Cout_p), tap-major (dh*3+dw)."""
    cout, cin, kh, kw = w_oihw.shape
    w = jnp.transpose(w_oihw, (2, 3, 1, 0)).reshape(kh * kw, cin, cout)
    return jnp.pad(w, ((0, 0), (0, cin_p - cin),
                       (0, cout_p - cout))).astype(jnp.float32)


def _conv1x1_weight(w_oihw, cin_p, cout_p):
    cout, cin = w_oihw.shape[:2]
    w = jnp.transpose(w_oihw[:, :, 0, 0], (1, 0))
    return jnp.pad(w, ((0, cin_p - cin), (0, cout_p - cout))).astype(jnp.float32)


def _bn_affine(stats, gamma, beta, count, cp):
    """Per-channel scale/shift from accumulated (sum, sumsq).  Tiny (2,Cp)
    arrays -> plain XLA glue; the consuming kernel then does a single FMA."""
    s = jnp.sum(stats[:, 0, :], axis=0)
    q = jnp.sum(stats[:, 1, :], axis=0)
    mean = s / count
    var = jnp.maximum(q / count - mean * mean, 0.0)
    g = _pad_last(gamma.astype(jnp.float32), cp)
    b = _pad_last(beta.astype(jnp.float32), cp)
    scale = g * jax.lax.rsqrt(var + EPS)
    shift = b - mean * scale
    return jnp.stack([scale, shift], axis=0)                  # (2, Cp)


def residual_block_forward(x_nchw, params):
    """ResidualBlock.forward with training-mode (batch-statistics) BatchNorm."""
    n, cin, h, w = x_nchw.shape
    cout = params["w1"].shape[0]
    # TODO(synk): generic widths need padding W to a multiple of 8 plus stats
    # masking; every realistic feature-map width already satisfies this.
    assert w % 8 == 0, "kernel assumes the image width is a multiple of 8"
    cin_p, cout_p = _round_up(cin), _round_up(cout)
    project = cin != cout

    x_nhwc = jnp.transpose(x_nchw, (0, 2, 3, 1)).astype(jnp.float32)
    xc = _pad_last(x_nhwc, cin_p)                             # lane-dense channels
    xp = jnp.pad(xc, ((0, 0), (1, 1), (1, 1), (0, 0)))        # 1-pixel spatial halo

    w1 = _conv3x3_weight(params["w1"], cin_p, cout_p)
    w2 = _conv3x3_weight(params["w2"], cout_p, cout_p)
    count = n * h * w
    # NOTE: conv biases (b1/b2/bs) are an exact no-op under batch-statistics
    # BatchNorm (the mean subtraction removes them) -> intentionally dropped.

    if project:
        ws = _conv1x1_weight(params["ws"], cin_p, cout_p)
        y1, ys, st1, sts = conv1_pass(xp, w1, ws, h=h, w=w)
        affine_s = _bn_affine(sts, params["gs"], params["bts"], count, cout_p)
        resid = ys
    else:
        y1, st1 = conv1_pass(xp, w1, None, h=h, w=w)
        affine_s = None
        resid = xc                                            # identity shortcut

    affine1 = _bn_affine(st1, params["g1"], params["bt1"], count, cout_p)
    y2, st2 = conv2_pass(y1, w2, affine1, h=h, w=w)
    affine2 = _bn_affine(st2, params["g2"], params["bt2"], count, cout_p)

    if project:
        # Fold the shortcut-BN shift into the BN2 shift (tiny XLA glue) so the
        # finalize kernel does one fewer vector add per output element.
        affine2c = jnp.stack([affine2[0], affine2[1] + affine_s[1]], axis=0)
        scale_s = affine_s[0:1]                               # (1, Cp)
    else:
        affine2c = affine2
        scale_s = None

    out = finalize_pass(y2, resid, affine2c, scale_s, h=h, w=w, project=project)
    return jnp.transpose(out[..., :cout], (0, 3, 1, 2))       # -> NCHW


# ---------------------------------------------------------------- reference
def _ref_conv(x, w, b, pad):
    y = jax.lax.conv_general_dilated(
        x, w, window_strides=(1, 1), padding=[(pad, pad), (pad, pad)],
        dimension_numbers=("NCHW", "OIHW", "NCHW"))
    return y + b[None, :, None, None]


def _ref_bn(y, gamma, beta):
    mean = y.mean(axis=(0, 2, 3), keepdims=True)
    var = ((y - mean) ** 2).mean(axis=(0, 2, 3), keepdims=True)
    return ((y - mean) * jax.lax.rsqrt(var + EPS)
            * gamma[None, :, None, None] + beta[None, :, None, None])


def residual_block_reference(x, p):
    cin, cout = x.shape[1], p["w1"].shape[0]
    if cin != cout:
        residual = _ref_bn(_ref_conv(x, p["ws"], p["bs"], 0), p["gs"], p["bts"])
    else:
        residual = x
    out = jnp.maximum(_ref_bn(_ref_conv(x, p["w1"], p["b1"], 1),
                              p["g1"], p["bt1"]), 0.0)
    out = _ref_bn(_ref_conv(out, p["w2"], p["b2"], 1), p["g2"], p["bt2"])
    return jnp.maximum(out + residual, 0.0)


# --------------------------------------------------------------------- main
def _make_params(key, cin, cout):
    ks = jax.random.split(key, 6)
    p = {
        "w1": 0.1 * jax.random.normal(ks[0], (cout, cin, 3, 3), jnp.float32),
        "b1": 0.1 * jax.random.normal(ks[1], (cout,), jnp.float32),
        "w2": 0.1 * jax.random.normal(ks[2], (cout, cout, 3, 3), jnp.float32),
        "b2": 0.1 * jax.random.normal(ks[3], (cout,), jnp.float32),
        "g1": jnp.ones((cout,), jnp.float32), "bt1": jnp.zeros((cout,), jnp.float32),
        "g2": jnp.ones((cout,), jnp.float32), "bt2": jnp.zeros((cout,), jnp.float32),
    }
    if cin != cout:
        p["ws"] = 0.1 * jax.random.normal(ks[4], (cout, cin, 1, 1), jnp.float32)
        p["bs"] = 0.1 * jax.random.normal(ks[5], (cout,), jnp.float32)
        p["gs"] = jnp.ones((cout,), jnp.float32)
        p["bts"] = jnp.zeros((cout,), jnp.float32)
    return p


if __name__ == "__main__":
    fwd = jax.jit(residual_block_forward)
    key = jax.random.PRNGKey(0)
    k1, k2, k3, k4 = jax.random.split(key, 4)

    # 1) projection-shortcut case (in_channels != out_channels)
    N, CIN, COUT, H, W = 2, 4, 8, 16, 16
    params = _make_params(k1, CIN, COUT)
    x = jax.random.normal(k2, (N, CIN, H, W), jnp.float32)
    out = jax.block_until_ready(fwd(x, params))
    ref = jax.block_until_ready(residual_block_reference(x, params))
    assert out.shape == (N, COUT, H, W)
    err = float(jnp.max(jnp.abs(out - ref)))
    assert err < 1e-3, f"projection-path mismatch vs reference: {err}"

    # 2) identity-shortcut case (in_channels == out_channels)
    params2 = _make_params(k3, COUT, COUT)
    x2 = jax.random.normal(k4, (N, COUT, H, W), jnp.float32)
    out2 = jax.block_until_ready(fwd(x2, params2))
    ref2 = jax.block_until_ready(residual_block_reference(x2, params2))
    assert out2.shape == (N, COUT, H, W)
    err2 = float(jnp.max(jnp.abs(out2 - ref2)))
    assert err2 < 1e-3, f"identity-path mismatch vs reference: {err2}"

    print("KERNEL_OK")
</pallas_src>

<mosaic_0001>
module attributes {stable_mosaic.version = 11 : i64} {
  func.func @_conv1_kernel(%arg0: i32, %arg1: memref<1x18x18x128xf32, #tpu.memory_space<vmem>>, %arg2: memref<9x128x128xf32, #tpu.memory_space<vmem>>, %arg3: memref<128x128xf32, #tpu.memory_space<vmem>>, %arg4: memref<1x16x16x128xf32, #tpu.memory_space<vmem>>, %arg5: memref<1x16x16x128xf32, #tpu.memory_space<vmem>>, %arg6: memref<1x2x128xf32, #tpu.memory_space<vmem>>, %arg7: memref<1x2x128xf32, #tpu.memory_space<vmem>>) attributes {dimension_semantics = [#tpu.dimension_semantics<parallel>], iteration_bounds = array<i64: 2>, scalar_prefetch = 0 : i64, scratch_operands = 0 : i64, tpu.core_type = #tpu.core_type<tc>, window_params = [{transform_indices = @transform_0, window_bounds = array<i64: 1, 18, 18, 128>}, {pipeline_mode = #tpu.pipeline_mode<synchronous>, transform_indices = @transform_1, window_bounds = array<i64: 9, 128, 128>}, {pipeline_mode = #tpu.pipeline_mode<synchronous>, transform_indices = @transform_2, window_bounds = array<i64: 128, 128>}, {transform_indices = @transform_3, window_bounds = array<i64: 1, 16, 16, 128>}, {transform_indices = @transform_4, window_bounds = array<i64: 1, 16, 16, 128>}, {transform_indices = @transform_5, window_bounds = array<i64: 1, 2, 128>}, {transform_indices = @transform_6, window_bounds = array<i64: 1, 2, 128>}]} {
    %cst = arith.constant 0.000000e+00 : f32
    %0 = vector.broadcast %cst : f32 to vector<256x128xf32>
    %c0 = arith.constant 0 : index
    %c0_0 = arith.constant 0 : index
    %c0_1 = arith.constant 0 : index
    %c0_2 = arith.constant 0 : index
    %1 = vector.load %arg1[%c0, %c0_0, %c0_1, %c0_2] : memref<1x18x18x128xf32, #tpu.memory_space<vmem>>, vector<1x16x16x128xf32>
    %2 = vector.shape_cast %1 : vector<1x16x16x128xf32> to vector<16x16x128xf32>
    %3 = vector.shape_cast %2 : vector<16x16x128xf32> to vector<256x128xf32>
    %c0_3 = arith.constant 0 : index
    %c0_4 = arith.constant 0 : index
    %c0_5 = arith.constant 0 : index
    %4 = vector.load %arg2[%c0_3, %c0_4, %c0_5] : memref<9x128x128xf32, #tpu.memory_space<vmem>>, vector<1x128x128xf32>
    %5 = vector.shape_cast %4 : vector<1x128x128xf32> to vector<128x128xf32>
    %cst_6 = arith.constant dense<0.000000e+00> : vector<256x128xf32>
    %6 = tpu.matmul %3, %5, %cst_6 {dimension_numbers = #tpu.dot_dimension_numbers<[1], [0], [0], [1], [0, 0, 1, 1], [], []>} : vector<256x128xf32>, vector<128x128xf32>, vector<256x128xf32> -> vector<256x128xf32>
    %7 = arith.addf %0, %6 : vector<256x128xf32>
    %c0_7 = arith.constant 0 : index
    %c0_8 = arith.constant 0 : index
    %c1 = arith.constant 1 : index
    %c0_9 = arith.constant 0 : index
    %8 = vector.load %arg1[%c0_7, %c0_8, %c1, %c0_9] : memref<1x18x18x128xf32, #tpu.memory_space<vmem>>, vector<1x16x16x128xf32>
    %9 = vector.shape_cast %8 : vector<1x16x16x128xf32> to vector<16x16x128xf32>
    %10 = vector.shape_cast %9 : vector<16x16x128xf32> to vector<256x128xf32>
    %c1_10 = arith.constant 1 : index
    %c0_11 = arith.constant 0 : index
    %c0_12 = arith.constant 0 : index
    %11 = vector.load %arg2[%c1_10, %c0_11, %c0_12] : memref<9x128x128xf32, #tpu.memory_space<vmem>>, vector<1x128x128xf32>
    %12 = vector.shape_cast %11 : vector<1x128x128xf32> to vector<128x128xf32>
    %cst_13 = arith.constant dense<0.000000e+00> : vector<256x128xf32>
    %13 = tpu.matmul %10, %12, %cst_13 {dimension_numbers = #tpu.dot_dimension_numbers<[1], [0], [0], [1], [0, 0, 1, 1], [], []>} : vector<256x128xf32>, vector<128x128xf32>, vector<256x128xf32> -> vector<256x128xf32>
    %14 = arith.addf %7, %13 : vector<256x128xf32>
    %c0_14 = arith.constant 0 : index
    %c0_15 = arith.constant 0 : index
    %c2 = arith.constant 2 : index
    %c0_16 = arith.constant 0 : index
    %15 = vector.load %arg1[%c0_14, %c0_15, %c2, %c0_16] : memref<1x18x18x128xf32, #tpu.memory_space<vmem>>, vector<1x16x16x128xf32>
    %16 = vector.shape_cast %15 : vector<1x16x16x128xf32> to vector<16x16x128xf32>
    %17 = vector.shape_cast %16 : vector<16x16x128xf32> to vector<256x128xf32>
    %c2_17 = arith.constant 2 : index
    %c0_18 = arith.constant 0 : index
    %c0_19 = arith.constant 0 : index
    %18 = vector.load %arg2[%c2_17, %c0_18, %c0_19] : memref<9x128x128xf32, #tpu.memory_space<vmem>>, vector<1x128x128xf32>
    %19 = vector.shape_cast %18 : vector<1x128x128xf32> to vector<128x128xf32>
    %cst_20 = arith.constant dense<0.000000e+00> : vector<256x128xf32>
    %20 = tpu.matmul %17, %19, %cst_20 {dimension_numbers = #tpu.dot_dimension_numbers<[1], [0], [0], [1], [0, 0, 1, 1], [], []>} : vector<256x128xf32>, vector<128x128xf32>, vector<256x128xf32> -> vector<256x128xf32>
    %21 = arith.addf %14, %20 : vector<256x128xf32>
    %c0_21 = arith.constant 0 : index
    %c1_22 = arith.constant 1 : index
    %c0_23 = arith.constant 0 : index
    %c0_24 = arith.constant 0 : index
    %22 = vector.load %arg1[%c0_21, %c1_22, %c0_23, %c0_24] : memref<1x18x18x128xf32, #tpu.memory_space<vmem>>, vector<1x16x16x128xf32>
    %23 = vector.shape_cast %22 : vector<1x16x16x128xf32> to vector<16x16x128xf32>
    %24 = vector.shape_cast %23 : vector<16x16x128xf32> to vector<256x128xf32>
    %c3 = arith.constant 3 : index
    %c0_25 = arith.constant 0 : index
    %c0_26 = arith.constant 0 : index
    %25 = vector.load %arg2[%c3, %c0_25, %c0_26] : memref<9x128x128xf32, #tpu.memory_space<vmem>>, vector<1x128x128xf32>
    %26 = vector.shape_cast %25 : vector<1x128x128xf32> to vector<128x128xf32>
    %cst_27 = arith.constant dense<0.000000e+00> : vector<256x128xf32>
    %27 = tpu.matmul %24, %26, %cst_27 {dimension_numbers = #tpu.dot_dimension_numbers<[1], [0], [0], [1], [0, 0, 1, 1], [], []>} : vector<256x128xf32>, vector<128x128xf32>, vector<256x128xf32> -> vector<256x128xf32>
    %28 = arith.addf %21, %27 : vector<256x128xf32>
    %c0_28 = arith.constant 0 : index
    %c1_29 = arith.constant 1 : index
    %c1_30 = arith.constant 1 : index
    %c0_31 = arith.constant 0 : index
    %29 = vector.load %arg1[%c0_28, %c1_29, %c1_30, %c0_31] : memref<1x18x18x128xf32, #tpu.memory_space<vmem>>, vector<1x16x16x128xf32>
    %30 = vector.shape_cast %29 : vector<1x16x16x128xf32> to vector<16x16x128xf32>
    %31 = vector.shape_cast %30 : vector<16x16x128xf32> to vector<256x128xf32>
    %c4 = arith.constant 4 : index
    %c0_32 = arith.constant 0 : index
    %c0_33 = arith.constant 0 : index
    %32 = vector.load %arg2[%c4, %c0_32, %c0_33] : memref<9x128x128xf32, #tpu.memory_space<vmem>>, vector<1x128x128xf32>
    %33 = vector.shape_cast %32 : vector<1x128x128xf32> to vector<128x128xf32>
    %cst_34 = arith.constant dense<0.000000e+00> : vector<256x128xf32>
    %34 = tpu.matmul %31, %33, %cst_34 {dimension_numbers = #tpu.dot_dimension_numbers<[1], [0], [0], [1], [0, 0, 1, 1], [], []>} : vector<256x128xf32>, vector<128x128xf32>, vector<256x128xf32> -> vector<256x128xf32>
    %35 = arith.addf %28, %34 : vector<256x128xf32>
    %c0_35 = arith.constant 0 : index
    %c1_36 = arith.constant 1 : index
    %c2_37 = arith.constant 2 : index
    %c0_38 = arith.constant 0 : index
    %36 = vector.load %arg1[%c0_35, %c1_36, %c2_37, %c0_38] : memref<1x18x18x128xf32, #tpu.memory_space<vmem>>, vector<1x16x16x128xf32>
    %37 = vector.shape_cast %36 : vector<1x16x16x128xf32> to vector<16x16x128xf32>
    %38 = vector.shape_cast %37 : vector<16x16x128xf32> to vector<256x128xf32>
    %c5 = arith.constant 5 : index
    %c0_39 = arith.constant 0 : index
    %c0_40 = arith.constant 0 : index
    %39 = vector.load %arg2[%c5, %c0_39, %c0_40] : memref<9x128x128xf32, #tpu.memory_space<vmem>>, vector<1x128x128xf32>
    %40 = vector.shape_cast %39 : vector<1x128x128xf32> to vector<128x128xf32>
    %cst_41 = arith.constant dense<0.000000e+00> : vector<256x128xf32>
    %41 = tpu.matmul %38, %40, %cst_41 {dimension_numbers = #tpu.dot_dimension_numbers<[1], [0], [0], [1], [0, 0, 1, 1], [], []>} : vector<256x128xf32>, vector<128x128xf32>, vector<256x128xf32> -> vector<256x128xf32>
    %42 = arith.addf %35, %41 : vector<256x128xf32>
    %c0_42 = arith.constant 0 : index
    %c2_43 = arith.constant 2 : index
    %c0_44 = arith.constant 0 : index
    %c0_45 = arith.constant 0 : index
    %43 = vector.load %arg1[%c0_42, %c2_43, %c0_44, %c0_45] : memref<1x18x18x128xf32, #tpu.memory_space<vmem>>, vector<1x16x16x128xf32>
    %44 = vector.shape_cast %43 : vector<1x16x16x128xf32> to vector<16x16x128xf32>
    %45 = vector.shape_cast %44 : vector<16x16x128xf32> to vector<256x128xf32>
    %c6 = arith.constant 6 : index
    %c0_46 = arith.constant 0 : index
    %c0_47 = arith.constant 0 : index
    %46 = vector.load %arg2[%c6, %c0_46, %c0_47] : memref<9x128x128xf32, #tpu.memory_space<vmem>>, vector<1x128x128xf32>
    %47 = vector.shape_cast %46 : vector<1x128x128xf32> to vector<128x128xf32>
    %cst_48 = arith.constant dense<0.000000e+00> : vector<256x128xf32>
    %48 = tpu.matmul %45, %47, %cst_48 {dimension_numbers = #tpu.dot_dimension_numbers<[1], [0], [0], [1], [0, 0, 1, 1], [], []>} : vector<256x128xf32>, vector<128x128xf32>, vector<256x128xf32> -> vector<256x128xf32>
    %49 = arith.addf %42, %48 : vector<256x128xf32>
    %c0_49 = arith.constant 0 : index
    %c2_50 = arith.constant 2 : index
    %c1_51 = arith.constant 1 : index
    %c0_52 = arith.constant 0 : index
    %50 = vector.load %arg1[%c0_49, %c2_50, %c1_51, %c0_52] : memref<1x18x18x128xf32, #tpu.memory_space<vmem>>, vector<1x16x16x128xf32>
    %51 = vector.shape_cast %50 : vector<1x16x16x128xf32> to vector<16x16x128xf32>
    %52 = vector.shape_cast %51 : vector<16x16x128xf32> to vector<256x128xf32>
    %c7 = arith.constant 7 : index
    %c0_53 = arith.constant 0 : index
    %c0_54 = arith.constant 0 : index
    %53 = vector.load %arg2[%c7, %c0_53, %c0_54] : memref<9x128x128xf32, #tpu.memory_space<vmem>>, vector<1x128x128xf32>
    %54 = vector.shape_cast %53 : vector<1x128x128xf32> to vector<128x128xf32>
    %cst_55 = arith.constant dense<0.000000e+00> : vector<256x128xf32>
    %55 = tpu.matmul %52, %54, %cst_55 {dimension_numbers = #tpu.dot_dimension_numbers<[1], [0], [0], [1], [0, 0, 1, 1], [], []>} : vector<256x128xf32>, vector<128x128xf32>, vector<256x128xf32> -> vector<256x128xf32>
    %56 = arith.addf %49, %55 : vector<256x128xf32>
    %c0_56 = arith.constant 0 : index
    %c2_57 = arith.constant 2 : index
    %c2_58 = arith.constant 2 : index
    %c0_59 = arith.constant 0 : index
    %57 = vector.load %arg1[%c0_56, %c2_57, %c2_58, %c0_59] : memref<1x18x18x128xf32, #tpu.memory_space<vmem>>, vector<1x16x16x128xf32>
    %58 = vector.shape_cast %57 : vector<1x16x16x128xf32> to vector<16x16x128xf32>
    %59 = vector.shape_cast %58 : vector<16x16x128xf32> to vector<256x128xf32>
    %c8 = arith.constant 8 : index
    %c0_60 = arith.constant 0 : index
    %c0_61 = arith.constant 0 : index
    %60 = vector.load %arg2[%c8, %c0_60, %c0_61] : memref<9x128x128xf32, #tpu.memory_space<vmem>>, vector<1x128x128xf32>
    %61 = vector.shape_cast %60 : vector<1x128x128xf32> to vector<128x128xf32>
    %cst_62 = arith.constant dense<0.000000e+00> : vector<256x128xf32>
    %62 = tpu.matmul %59, %61, %cst_62 {dimension_numbers = #tpu.dot_dimension_numbers<[1], [0], [0], [1], [0, 0, 1, 1], [], []>} : vector<256x128xf32>, vector<128x128xf32>, vector<256x128xf32> -> vector<256x128xf32>
    %63 = arith.addf %56, %62 : vector<256x128xf32>
    %64 = vector.shape_cast %63 : vector<256x128xf32> to vector<16x16x128xf32>
    %c0_63 = arith.constant 0 : index
    %c0_64 = arith.constant 0 : index
    %c0_65 = arith.constant 0 : index
    %c0_66 = arith.constant 0 : index
    %65 = vector.load %arg4[%c0_63, %c0_64, %c0_65, %c0_66] : memref<1x16x16x128xf32, #tpu.memory_space<vmem>>, vector<1x16x16x128xf32>
    %66 = vector.shape_cast %65 : vector<1x16x16x128xf32> to vector<16x16x128xf32>
    %67 = vector.shape_cast %64 : vector<16x16x128xf32> to vector<1x16x16x128xf32>
    tpu.vector_store %arg4[%c0_63, %c0_64, %c0_65, %c0_66], %67 {strides = array<i32>} : memref<1x16x16x128xf32, #tpu.memory_space<vmem>>, vector<1x16x16x128xf32>,
    %cst_67 = arith.constant dense<0.000000e+00> : vector<128xf32>
    %68 = vector.multi_reduction <add>, %63, %cst_67 [0] : vector<256x128xf32> to vector<128xf32>
    %69 = vector.shape_cast %68 : vector<128xf32> to vector<1x128xf32>
    %70 = arith.mulf %63, %63 : vector<256x128xf32>
    %cst_68 = arith.constant dense<0.000000e+00> : vector<128xf32>
    %71 = vector.multi_reduction <add>, %70, %cst_68 [0] : vector<256x128xf32> to vector<128xf32>
    %72 = vector.shape_cast %71 : vector<128xf32> to vector<1x128xf32>
    %73 = tpu.concatenate %69, %72 in 0 : vector<1x128xf32>, vector<1x128xf32> -> vector<2x128xf32>
    %c0_69 = arith.constant 0 : index
    %c0_70 = arith.constant 0 : index
    %c0_71 = arith.constant 0 : index
    %74 = vector.load %arg6[%c0_69, %c0_70, %c0_71] : memref<1x2x128xf32, #tpu.memory_space<vmem>>, vector<1x2x128xf32>
    %75 = vector.shape_cast %74 : vector<1x2x128xf32> to vector<2x128xf32>
    %76 = vector.shape_cast %73 : vector<2x128xf32> to vector<1x2x128xf32>
    tpu.vector_store %arg6[%c0_69, %c0_70, %c0_71], %76 {strides = array<i32>} : memref<1x2x128xf32, #tpu.memory_space<vmem>>, vector<1x2x128xf32>,
    %c0_72 = arith.constant 0 : index
    %c1_73 = arith.constant 1 : index
    %c1_74 = arith.constant 1 : index
    %c0_75 = arith.constant 0 : index
    %77 = vector.load %arg1[%c0_72, %c1_73, %c1_74, %c0_75] : memref<1x18x18x128xf32, #tpu.memory_space<vmem>>, vector<1x16x16x128xf32>
    %78 = vector.shape_cast %77 : vector<1x16x16x128xf32> to vector<16x16x128xf32>
    %79 = vector.shape_cast %78 : vector<16x16x128xf32> to vector<256x128xf32>
    %c0_76 = arith.constant 0 : index
    %c0_77 = arith.constant 0 : index
    %80 = vector.load %arg3[%c0_76, %c0_77] : memref<128x128xf32, #tpu.memory_space<vmem>>, vector<128x128xf32>
    %cst_78 = arith.constant dense<0.000000e+00> : vector<256x128xf32>
    %81 = tpu.matmul %79, %80, %cst_78 {dimension_numbers = #tpu.dot_dimension_numbers<[1], [0], [0], [1], [0, 0, 1, 1], [], []>} : vector<256x128xf32>, vector<128x128xf32>, vector<256x128xf32> -> vector<256x128xf32>
    %82 = vector.shape_cast %81 : vector<256x128xf32> to vector<16x16x128xf32>
    %c0_79 = arith.constant 0 : index
    %c0_80 = arith.constant 0 : index
    %c0_81 = arith.constant 0 : index
    %c0_82 = arith.constant 0 : index
    %83 = vector.load %arg5[%c0_79, %c0_80, %c0_81, %c0_82] : memref<1x16x16x128xf32, #tpu.memory_space<vmem>>, vector<1x16x16x128xf32>
    %84 = vector.shape_cast %83 : vector<1x16x16x128xf32> to vector<16x16x128xf32>
    %85 = vector.shape_cast %82 : vector<16x16x128xf32> to vector<1x16x16x128xf32>
    tpu.vector_store %arg5[%c0_79, %c0_80, %c0_81, %c0_82], %85 {strides = array<i32>} : memref<1x16x16x128xf32, #tpu.memory_space<vmem>>, vector<1x16x16x128xf32>,
    %cst_83 = arith.constant dense<0.000000e+00> : vector<128xf32>
    %86 = vector.multi_reduction <add>, %81, %cst_83 [0] : vector<256x128xf32> to vector<128xf32>
    %87 = vector.shape_cast %86 : vector<128xf32> to vector<1x128xf32>
    %88 = arith.mulf %81, %81 : vector<256x128xf32>
    %cst_84 = arith.constant dense<0.000000e+00> : vector<128xf32>
    %89 = vector.multi_reduction <add>, %88, %cst_84 [0] : vector<256x128xf32> to vector<128xf32>
    %90 = vector.shape_cast %89 : vector<128xf32> to vector<1x128xf32>
    %91 = tpu.concatenate %87, %90 in 0 : vector<1x128xf32>, vector<1x128xf32> -> vector<2x128xf32>
    %c0_85 = arith.constant 0 : index
    %c0_86 = arith.constant 0 : index
    %c0_87 = arith.constant 0 : index
    %92 = vector.load %arg7[%c0_85, %c0_86, %c0_87] : memref<1x2x128xf32, #tpu.memory_space<vmem>>, vector<1x2x128xf32>
    %93 = vector.shape_cast %92 : vector<1x2x128xf32> to vector<2x128xf32>
    %94 = vector.shape_cast %91 : vector<2x128xf32> to vector<1x2x128xf32>
    tpu.vector_store %arg7[%c0_85, %c0_86, %c0_87], %94 {strides = array<i32>} : memref<1x2x128xf32, #tpu.memory_space<vmem>>, vector<1x2x128xf32>,
    return
  }
  func.func @transform_0(%arg0: i32) -> (i32, i32, i32, i32) {
    %c0_i32 = arith.constant 0 : i32
    %c0_i32_0 = arith.constant 0 : i32
    %c0_i32_1 = arith.constant 0 : i32
    %c0_i32_2 = arith.constant 0 : i32
    return %arg0, %c0_i32, %c0_i32_0, %c0_i32_1 : i32, i32, i32, i32
  }
  func.func @transform_1(%arg0: i32) -> (i32, i32, i32) {
    %c0_i32 = arith.constant 0 : i32
    %c0_i32_0 = arith.constant 0 : i32
    %c0_i32_1 = arith.constant 0 : i32
    %c0_i32_2 = arith.constant 0 : i32
    return %c0_i32, %c0_i32_0, %c0_i32_1 : i32, i32, i32
  }
  func.func @transform_2(%arg0: i32) -> (i32, i32) {
    %c0_i32 = arith.constant 0 : i32
    %c0_i32_0 = arith.constant 0 : i32
    %c0_i32_1 = arith.constant 0 : i32
    return %c0_i32, %c0_i32_0 : i32, i32
  }
  func.func @transform_3(%arg0: i32) -> (i32, i32, i32, i32) {
    %c0_i32 = arith.constant 0 : i32
    %c0_i32_0 = arith.constant 0 : i32
    %c0_i32_1 = arith.constant 0 : i32
    %c0_i32_2 = arith.constant 0 : i32
    return %arg0, %c0_i32, %c0_i32_0, %c0_i32_1 : i32, i32, i32, i32
  }
  func.func @transform_4(%arg0: i32) -> (i32, i32, i32, i32) {
    %c0_i32 = arith.constant 0 : i32
    %c0_i32_0 = arith.constant 0 : i32
    %c0_i32_1 = arith.constant 0 : i32
    %c0_i32_2 = arith.constant 0 : i32
    return %arg0, %c0_i32, %c0_i32_0, %c0_i32_1 : i32, i32, i32, i32
  }
  func.func @transform_5(%arg0: i32) -> (i32, i32, i32) {
    %c0_i32 = arith.constant 0 : i32
    %c0_i32_0 = arith.constant 0 : i32
    %c0_i32_1 = arith.constant 0 : i32
    return %arg0, %c0_i32, %c0_i32_0 : i32, i32, i32
  }
  func.func @transform_6(%arg0: i32) -> (i32, i32, i32) {
    %c0_i32 = arith.constant 0 : i32
    %c0_i32_0 = arith.constant 0 : i32
    %c0_i32_1 = arith.constant 0 : i32
    return %arg0, %c0_i32, %c0_i32_0 : i32, i32, i32
  }
}

module attributes {stable_mosaic.version = 11 : i64} {
  func.func @_finalize_kernel(%arg0: i32, %arg1: memref<1x16x16x128xf32, #tpu.memory_space<vmem>>, %arg2: memref<1x16x16x128xf32, #tpu.memory_space<vmem>>, %arg3: memref<2x128xf32, #tpu.memory_space<vmem>>, %arg4: memref<1x128xf32, #tpu.memory_space<vmem>>, %arg5: memref<1x16x16x128xf32, #tpu.memory_space<vmem>>) attributes {dimension_semantics = [#tpu.dimension_semantics<parallel>], iteration_bounds = array<i64: 2>, scalar_prefetch = 0 : i64, scratch_operands = 0 : i64, tpu.core_type = #tpu.core_type<tc>, window_params = [{transform_indices = @transform_0, window_bounds = array<i64: 1, 16, 16, 128>}, {transform_indices = @transform_1, window_bounds = array<i64: 1, 16, 16, 128>}, {pipeline_mode = #tpu.pipeline_mode<synchronous>, transform_indices = @transform_2, window_bounds = array<i64: 2, 128>}, {pipeline_mode = #tpu.pipeline_mode<synchronous>, transform_indices = @transform_3, window_bounds = array<i64: 1, 128>}, {transform_indices = @transform_4, window_bounds = array<i64: 1, 16, 16, 128>}]} {
    %c0 = arith.constant 0 : index
    %c0_0 = arith.constant 0 : index
    %c0_1 = arith.constant 0 : index
    %c0_2 = arith.constant 0 : index
    %0 = vector.load %arg1[%c0, %c0_0, %c0_1, %c0_2] : memref<1x16x16x128xf32, #tpu.memory_space<vmem>>, vector<1x16x16x128xf32>
    %1 = vector.shape_cast %0 : vector<1x16x16x128xf32> to vector<16x16x128xf32>
    %c0_3 = arith.constant 0 : index
    %c0_4 = arith.constant 0 : index
    %2 = vector.load %arg3[%c0_3, %c0_4] : memref<2x128xf32, #tpu.memory_space<vmem>>, vector<1x128xf32>
    %3 = vector.shape_cast %2 : vector<1x128xf32> to vector<1x1x128xf32>
    %4 = vector.broadcast %3 : vector<1x1x128xf32> to vector<16x16x128xf32>
    %5 = arith.mulf %1, %4 : vector<16x16x128xf32>
    %c0_5 = arith.constant 0 : index
    %c0_6 = arith.constant 0 : index
    %c0_7 = arith.constant 0 : index
    %c0_8 = arith.constant 0 : index
    %6 = vector.load %arg2[%c0_5, %c0_6, %c0_7, %c0_8] : memref<1x16x16x128xf32, #tpu.memory_space<vmem>>, vector<1x16x16x128xf32>
    %7 = vector.shape_cast %6 : vector<1x16x16x128xf32> to vector<16x16x128xf32>
    %c0_9 = arith.constant 0 : index
    %c0_10 = arith.constant 0 : index
    %8 = vector.load %arg4[%c0_9, %c0_10] : memref<1x128xf32, #tpu.memory_space<vmem>>, vector<1x128xf32>
    %9 = vector.shape_cast %8 : vector<1x128xf32> to vector<1x1x128xf32>
    %10 = vector.broadcast %9 : vector<1x1x128xf32> to vector<16x16x128xf32>
    %11 = arith.mulf %7, %10 : vector<16x16x128xf32>
    %12 = arith.addf %5, %11 : vector<16x16x128xf32>
    %c1 = arith.constant 1 : index
    %c0_11 = arith.constant 0 : index
    %13 = vector.load %arg3[%c1, %c0_11] : memref<2x128xf32, #tpu.memory_space<vmem>>, vector<1x128xf32>
    %14 = vector.shape_cast %13 : vector<1x128xf32> to vector<1x1x128xf32>
    %15 = vector.broadcast %14 : vector<1x1x128xf32> to vector<16x16x128xf32>
    %16 = arith.addf %12, %15 : vector<16x16x128xf32>
    %cst = arith.constant 0.000000e+00 : f32
    %17 = vector.broadcast %cst : f32 to vector<16x16x128xf32>
    %18 = arith.maximumf %16, %17 : vector<16x16x128xf32>
    %c0_12 = arith.constant 0 : index
    %c0_13 = arith.constant 0 : index
    %c0_14 = arith.constant 0 : index
    %c0_15 = arith.constant 0 : index
    %19 = vector.load %arg5[%c0_12, %c0_13, %c0_14, %c0_15] : memref<1x16x16x128xf32, #tpu.memory_space<vmem>>, vector<1x16x16x128xf32>
    %20 = vector.shape_cast %19 : vector<1x16x16x128xf32> to vector<16x16x128xf32>
    %21 = vector.shape_cast %18 : vector<16x16x128xf32> to vector<1x16x16x128xf32>
    tpu.vector_store %arg5[%c0_12, %c0_13, %c0_14, %c0_15], %21 {strides = array<i32>} : memref<1x16x16x128xf32, #tpu.memory_space<vmem>>, vector<1x16x16x128xf32>,
    return
  }
  func.func @transform_0(%arg0: i32) -> (i32, i32, i32, i32) {
    %c0_i32 = arith.constant 0 : i32
    %c0_i32_0 = arith.constant 0 : i32
    %c0_i32_1 = arith.constant 0 : i32
    %c0_i32_2 = arith.constant 0 : i32
    return %arg0, %c0_i32, %c0_i32_0, %c0_i32_1 : i32, i32, i32, i32
  }
  func.func @transform_1(%arg0: i32) -> (i32, i32, i32, i32) {
    %c0_i32 = arith.constant 0 : i32
    %c0_i32_0 = arith.constant 0 : i32
    %c0_i32_1 = arith.constant 0 : i32
    %c0_i32_2 = arith.constant 0 : i32
    return %arg0, %c0_i32, %c0_i32_0, %c0_i32_1 : i32, i32, i32, i32
  }
  func.func @transform_2(%arg0: i32) -> (i32, i32) {
    %c0_i32 = arith.constant 0 : i32
    %c0_i32_0 = arith.constant 0 : i32
    %c0_i32_1 = arith.constant 0 : i32
    return %c0_i32, %c0_i32_0 : i32, i32
  }
  func.func @transform_3(%arg0: i32) -> (i32, i32) {
    %c0_i32 = arith.constant 0 : i32
    %c0_i32_0 = arith.constant 0 : i32
    %c0_i32_1 = arith.constant 0 : i32
    return %c0_i32, %c0_i32_0 : i32, i32
  }
  func.func @transform_4(%arg0: i32) -> (i32, i32, i32, i32) {
    %c0_i32 = arith.constant 0 : i32
    %c0_i32_0 = arith.constant 0 : i32
    %c0_i32_1 = arith.constant 0 : i32
    %c0_i32_2 = arith.constant 0 : i32
    return %arg0, %c0_i32, %c0_i32_0, %c0_i32_1 : i32, i32, i32, i32
  }
}

module attributes {stable_mosaic.version = 11 : i64} {
  func.func @_bn_relu_conv2_kernel(%arg0: i32, %arg1: memref<1x16x16x128xf32, #tpu.memory_space<vmem>>, %arg2: memref<9x128x128xf32, #tpu.memory_space<vmem>>, %arg3: memref<2x128xf32, #tpu.memory_space<vmem>>, %arg4: memref<1x16x16x128xf32, #tpu.memory_space<vmem>>, %arg5: memref<1x2x128xf32, #tpu.memory_space<vmem>>, %arg6: memref<18x18x128xf32, #tpu.memory_space<vmem>>) attributes {dimension_semantics = [#tpu.dimension_semantics<parallel>], iteration_bounds = array<i64: 2>, scalar_prefetch = 0 : i64, scratch_operands = 1 : i64, tpu.core_type = #tpu.core_type<tc>, window_params = [{transform_indices = @transform_0, window_bounds = array<i64: 1, 16, 16, 128>}, {pipeline_mode = #tpu.pipeline_mode<synchronous>, transform_indices = @transform_1, window_bounds = array<i64: 9, 128, 128>}, {pipeline_mode = #tpu.pipeline_mode<synchronous>, transform_indices = @transform_2, window_bounds = array<i64: 2, 128>}, {transform_indices = @transform_3, window_bounds = array<i64: 1, 16, 16, 128>}, {transform_indices = @transform_4, window_bounds = array<i64: 1, 2, 128>}]} {
    %c0 = arith.constant 0 : index
    %c0_0 = arith.constant 0 : index
    %0 = vector.load %arg3[%c0, %c0_0] : memref<2x128xf32, #tpu.memory_space<vmem>>, vector<1x128xf32>
    %c1 = arith.constant 1 : index
    %c0_1 = arith.constant 0 : index
    %1 = vector.load %arg3[%c1, %c0_1] : memref<2x128xf32, #tpu.memory_space<vmem>>, vector<1x128xf32>
    %c0_2 = arith.constant 0 : index
    %c0_3 = arith.constant 0 : index
    %c0_4 = arith.constant 0 : index
    %c0_5 = arith.constant 0 : index
    %2 = vector.load %arg1[%c0_2, %c0_3, %c0_4, %c0_5] : memref<1x16x16x128xf32, #tpu.memory_space<vmem>>, vector<1x16x16x128xf32>
    %3 = vector.shape_cast %2 : vector<1x16x16x128xf32> to vector<16x16x128xf32>
    %4 = vector.shape_cast %0 : vector<1x128xf32> to vector<1x1x128xf32>
    %5 = vector.broadcast %4 : vector<1x1x128xf32> to vector<16x16x128xf32>
    %6 = arith.mulf %3, %5 : vector<16x16x128xf32>
    %7 = vector.shape_cast %1 : vector<1x128xf32> to vector<1x1x128xf32>
    %8 = vector.broadcast %7 : vector<1x1x128xf32> to vector<16x16x128xf32>
    %9 = arith.addf %6, %8 : vector<16x16x128xf32>
    %cst = arith.constant 0.000000e+00 : f32
    %10 = vector.broadcast %cst : f32 to vector<16x16x128xf32>
    %11 = arith.maximumf %9, %10 : vector<16x16x128xf32>
    %cst_6 = arith.constant 0.000000e+00 : f32
    %12 = vector.broadcast %cst_6 : f32 to vector<18x18x128xf32>
    %c0_7 = arith.constant 0 : index
    %c0_8 = arith.constant 0 : index
    %c0_9 = arith.constant 0 : index
    %13 = vector.load %arg6[%c0_7, %c0_8, %c0_9] : memref<18x18x128xf32, #tpu.memory_space<vmem>>, vector<18x18x128xf32>
    tpu.vector_store %arg6[%c0_7, %c0_8, %c0_9], %12 {strides = array<i32>} : memref<18x18x128xf32, #tpu.memory_space<vmem>>, vector<18x18x128xf32>,
    %c1_10 = arith.constant 1 : index
    %c1_11 = arith.constant 1 : index
    %c0_12 = arith.constant 0 : index
    %14 = vector.load %arg6[%c1_10, %c1_11, %c0_12] : memref<18x18x128xf32, #tpu.memory_space<vmem>>, vector<16x16x128xf32>
    tpu.vector_store %arg6[%c1_10, %c1_11, %c0_12], %11 {strides = array<i32>} : memref<18x18x128xf32, #tpu.memory_space<vmem>>, vector<16x16x128xf32>,
    %cst_13 = arith.constant 0.000000e+00 : f32
    %15 = vector.broadcast %cst_13 : f32 to vector<256x128xf32>
    %c0_14 = arith.constant 0 : index
    %c0_15 = arith.constant 0 : index
    %c0_16 = arith.constant 0 : index
    %16 = vector.load %arg6[%c0_14, %c0_15, %c0_16] : memref<18x18x128xf32, #tpu.memory_space<vmem>>, vector<16x16x128xf32>
    %17 = vector.shape_cast %16 : vector<16x16x128xf32> to vector<256x128xf32>
    %c0_17 = arith.constant 0 : index
    %c0_18 = arith.constant 0 : index
    %c0_19 = arith.constant 0 : index
    %18 = vector.load %arg2[%c0_17, %c0_18, %c0_19] : memref<9x128x128xf32, #tpu.memory_space<vmem>>, vector<1x128x128xf32>
    %19 = vector.shape_cast %18 : vector<1x128x128xf32> to vector<128x128xf32>
    %cst_20 = arith.constant dense<0.000000e+00> : vector<256x128xf32>
    %20 = tpu.matmul %17, %19, %cst_20 {dimension_numbers = #tpu.dot_dimension_numbers<[1], [0], [0], [1], [0, 0, 1, 1], [], []>} : vector<256x128xf32>, vector<128x128xf32>, vector<256x128xf32> -> vector<256x128xf32>
    %21 = arith.addf %15, %20 : vector<256x128xf32>
    %c0_21 = arith.constant 0 : index
    %c1_22 = arith.constant 1 : index
    %c0_23 = arith.constant 0 : index
    %22 = vector.load %arg6[%c0_21, %c1_22, %c0_23] : memref<18x18x128xf32, #tpu.memory_space<vmem>>, vector<16x16x128xf32>
    %23 = vector.shape_cast %22 : vector<16x16x128xf32> to vector<256x128xf32>
    %c1_24 = arith.constant 1 : index
    %c0_25 = arith.constant 0 : index
    %c0_26 = arith.constant 0 : index
    %24 = vector.load %arg2[%c1_24, %c0_25, %c0_26] : memref<9x128x128xf32, #tpu.memory_space<vmem>>, vector<1x128x128xf32>
    %25 = vector.shape_cast %24 : vector<1x128x128xf32> to vector<128x128xf32>
    %cst_27 = arith.constant dense<0.000000e+00> : vector<256x128xf32>
    %26 = tpu.matmul %23, %25, %cst_27 {dimension_numbers = #tpu.dot_dimension_numbers<[1], [0], [0], [1], [0, 0, 1, 1], [], []>} : vector<256x128xf32>, vector<128x128xf32>, vector<256x128xf32> -> vector<256x128xf32>
    %27 = arith.addf %21, %26 : vector<256x128xf32>
    %c0_28 = arith.constant 0 : index
    %c2 = arith.constant 2 : index
    %c0_29 = arith.constant 0 : index
    %28 = vector.load %arg6[%c0_28, %c2, %c0_29] : memref<18x18x128xf32, #tpu.memory_space<vmem>>, vector<16x16x128xf32>
    %29 = vector.shape_cast %28 : vector<16x16x128xf32> to vector<256x128xf32>
    %c2_30 = arith.constant 2 : index
    %c0_31 = arith.constant 0 : index
    %c0_32 = arith.constant 0 : index
    %30 = vector.load %arg2[%c2_30, %c0_31, %c0_32] : memref<9x128x128xf32, #tpu.memory_space<vmem>>, vector<1x128x128xf32>
    %31 = vector.shape_cast %30 : vector<1x128x128xf32> to vector<128x128xf32>
    %cst_33 = arith.constant dense<0.000000e+00> : vector<256x128xf32>
    %32 = tpu.matmul %29, %31, %cst_33 {dimension_numbers = #tpu.dot_dimension_numbers<[1], [0], [0], [1], [0, 0, 1, 1], [], []>} : vector<256x128xf32>, vector<128x128xf32>, vector<256x128xf32> -> vector<256x128xf32>
    %33 = arith.addf %27, %32 : vector<256x128xf32>
    %c1_34 = arith.constant 1 : index
    %c0_35 = arith.constant 0 : index
    %c0_36 = arith.constant 0 : index
    %34 = vector.load %arg6[%c1_34, %c0_35, %c0_36] : memref<18x18x128xf32, #tpu.memory_space<vmem>>, vector<16x16x128xf32>
    %35 = vector.shape_cast %34 : vector<16x16x128xf32> to vector<256x128xf32>
    %c3 = arith.constant 3 : index
    %c0_37 = arith.constant 0 : index
    %c0_38 = arith.constant 0 : index
    %36 = vector.load %arg2[%c3, %c0_37, %c0_38] : memref<9x128x128xf32, #tpu.memory_space<vmem>>, vector<1x128x128xf32>
    %37 = vector.shape_cast %36 : vector<1x128x128xf32> to vector<128x128xf32>
    %cst_39 = arith.constant dense<0.000000e+00> : vector<256x128xf32>
    %38 = tpu.matmul %35, %37, %cst_39 {dimension_numbers = #tpu.dot_dimension_numbers<[1], [0], [0], [1], [0, 0, 1, 1], [], []>} : vector<256x128xf32>, vector<128x128xf32>, vector<256x128xf32> -> vector<256x128xf32>
    %39 = arith.addf %33, %38 : vector<256x128xf32>
    %c1_40 = arith.constant 1 : index
    %c1_41 = arith.constant 1 : index
    %c0_42 = arith.constant 0 : index
    %40 = vector.load %arg6[%c1_40, %c1_41, %c0_42] : memref<18x18x128xf32, #tpu.memory_space<vmem>>, vector<16x16x128xf32>
    %41 = vector.shape_cast %40 : vector<16x16x128xf32> to vector<256x128xf32>
    %c4 = arith.constant 4 : index
    %c0_43 = arith.constant 0 : index
    %c0_44 = arith.constant 0 : index
    %42 = vector.load %arg2[%c4, %c0_43, %c0_44] : memref<9x128x128xf32, #tpu.memory_space<vmem>>, vector<1x128x128xf32>
    %43 = vector.shape_cast %42 : vector<1x128x128xf32> to vector<128x128xf32>
    %cst_45 = arith.constant dense<0.000000e+00> : vector<256x128xf32>
    %44 = tpu.matmul %41, %43, %cst_45 {dimension_numbers = #tpu.dot_dimension_numbers<[1], [0], [0], [1], [0, 0, 1, 1], [], []>} : vector<256x128xf32>, vector<128x128xf32>, vector<256x128xf32> -> vector<256x128xf32>
    %45 = arith.addf %39, %44 : vector<256x128xf32>
    %c1_46 = arith.constant 1 : index
    %c2_47 = arith.constant 2 : index
    %c0_48 = arith.constant 0 : index
    %46 = vector.load %arg6[%c1_46, %c2_47, %c0_48] : memref<18x18x128xf32, #tpu.memory_space<vmem>>, vector<16x16x128xf32>
    %47 = vector.shape_cast %46 : vector<16x16x128xf32> to vector<256x128xf32>
    %c5 = arith.constant 5 : index
    %c0_49 = arith.constant 0 : index
    %c0_50 = arith.constant 0 : index
    %48 = vector.load %arg2[%c5, %c0_49, %c0_50] : memref<9x128x128xf32, #tpu.memory_space<vmem>>, vector<1x128x128xf32>
    %49 = vector.shape_cast %48 : vector<1x128x128xf32> to vector<128x128xf32>
    %cst_51 = arith.constant dense<0.000000e+00> : vector<256x128xf32>
    %50 = tpu.matmul %47, %49, %cst_51 {dimension_numbers = #tpu.dot_dimension_numbers<[1], [0], [0], [1], [0, 0, 1, 1], [], []>} : vector<256x128xf32>, vector<128x128xf32>, vector<256x128xf32> -> vector<256x128xf32>
    %51 = arith.addf %45, %50 : vector<256x128xf32>
    %c2_52 = arith.constant 2 : index
    %c0_53 = arith.constant 0 : index
    %c0_54 = arith.constant 0 : index
    %52 = vector.load %arg6[%c2_52, %c0_53, %c0_54] : memref<18x18x128xf32, #tpu.memory_space<vmem>>, vector<16x16x128xf32>
    %53 = vector.shape_cast %52 : vector<16x16x128xf32> to vector<256x128xf32>
    %c6 = arith.constant 6 : index
    %c0_55 = arith.constant 0 : index
    %c0_56 = arith.constant 0 : index
    %54 = vector.load %arg2[%c6, %c0_55, %c0_56] : memref<9x128x128xf32, #tpu.memory_space<vmem>>, vector<1x128x128xf32>
    %55 = vector.shape_cast %54 : vector<1x128x128xf32> to vector<128x128xf32>
    %cst_57 = arith.constant dense<0.000000e+00> : vector<256x128xf32>
    %56 = tpu.matmul %53, %55, %cst_57 {dimension_numbers = #tpu.dot_dimension_numbers<[1], [0], [0], [1], [0, 0, 1, 1], [], []>} : vector<256x128xf32>, vector<128x128xf32>, vector<256x128xf32> -> vector<256x128xf32>
    %57 = arith.addf %51, %56 : vector<256x128xf32>
    %c2_58 = arith.constant 2 : index
    %c1_59 = arith.constant 1 : index
    %c0_60 = arith.constant 0 : index
    %58 = vector.load %arg6[%c2_58, %c1_59, %c0_60] : memref<18x18x128xf32, #tpu.memory_space<vmem>>, vector<16x16x128xf32>
    %59 = vector.shape_cast %58 : vector<16x16x128xf32> to vector<256x128xf32>
    %c7 = arith.constant 7 : index
    %c0_61 = arith.constant 0 : index
    %c0_62 = arith.constant 0 : index
    %60 = vector.load %arg2[%c7, %c0_61, %c0_62] : memref<9x128x128xf32, #tpu.memory_space<vmem>>, vector<1x128x128xf32>
    %61 = vector.shape_cast %60 : vector<1x128x128xf32> to vector<128x128xf32>
    %cst_63 = arith.constant dense<0.000000e+00> : vector<256x128xf32>
    %62 = tpu.matmul %59, %61, %cst_63 {dimension_numbers = #tpu.dot_dimension_numbers<[1], [0], [0], [1], [0, 0, 1, 1], [], []>} : vector<256x128xf32>, vector<128x128xf32>, vector<256x128xf32> -> vector<256x128xf32>
    %63 = arith.addf %57, %62 : vector<256x128xf32>
    %c2_64 = arith.constant 2 : index
    %c2_65 = arith.constant 2 : index
    %c0_66 = arith.constant 0 : index
    %64 = vector.load %arg6[%c2_64, %c2_65, %c0_66] : memref<18x18x128xf32, #tpu.memory_space<vmem>>, vector<16x16x128xf32>
    %65 = vector.shape_cast %64 : vector<16x16x128xf32> to vector<256x128xf32>
    %c8 = arith.constant 8 : index
    %c0_67 = arith.constant 0 : index
    %c0_68 = arith.constant 0 : index
    %66 = vector.load %arg2[%c8, %c0_67, %c0_68] : memref<9x128x128xf32, #tpu.memory_space<vmem>>, vector<1x128x128xf32>
    %67 = vector.shape_cast %66 : vector<1x128x128xf32> to vector<128x128xf32>
    %cst_69 = arith.constant dense<0.000000e+00> : vector<256x128xf32>
    %68 = tpu.matmul %65, %67, %cst_69 {dimension_numbers = #tpu.dot_dimension_numbers<[1], [0], [0], [1], [0, 0, 1, 1], [], []>} : vector<256x128xf32>, vector<128x128xf32>, vector<256x128xf32> -> vector<256x128xf32>
    %69 = arith.addf %63, %68 : vector<256x128xf32>
    %70 = vector.shape_cast %69 : vector<256x128xf32> to vector<16x16x128xf32>
    %c0_70 = arith.constant 0 : index
    %c0_71 = arith.constant 0 : index
    %c0_72 = arith.constant 0 : index
    %c0_73 = arith.constant 0 : index
    %71 = vector.load %arg4[%c0_70, %c0_71, %c0_72, %c0_73] : memref<1x16x16x128xf32, #tpu.memory_space<vmem>>, vector<1x16x16x128xf32>
    %72 = vector.shape_cast %71 : vector<1x16x16x128xf32> to vector<16x16x128xf32>
    %73 = vector.shape_cast %70 : vector<16x16x128xf32> to vector<1x16x16x128xf32>
    tpu.vector_store %arg4[%c0_70, %c0_71, %c0_72, %c0_73], %73 {strides = array<i32>} : memref<1x16x16x128xf32, #tpu.memory_space<vmem>>, vector<1x16x16x128xf32>,
    %cst_74 = arith.constant dense<0.000000e+00> : vector<128xf32>
    %74 = vector.multi_reduction <add>, %69, %cst_74 [0] : vector<256x128xf32> to vector<128xf32>
    %75 = vector.shape_cast %74 : vector<128xf32> to vector<1x128xf32>
    %76 = arith.mulf %69, %69 : vector<256x128xf32>
    %cst_75 = arith.constant dense<0.000000e+00> : vector<128xf32>
    %77 = vector.multi_reduction <add>, %76, %cst_75 [0] : vector<256x128xf32> to vector<128xf32>
    %78 = vector.shape_cast %77 : vector<128xf32> to vector<1x128xf32>
    %79 = tpu.concatenate %75, %78 in 0 : vector<1x128xf32>, vector<1x128xf32> -> vector<2x128xf32>
    %c0_76 = arith.constant 0 : index
    %c0_77 = arith.constant 0 : index
    %c0_78 = arith.constant 0 : index
    %80 = vector.load %arg5[%c0_76, %c0_77, %c0_78] : memref<1x2x128xf32, #tpu.memory_space<vmem>>, vector<1x2x128xf32>
    %81 = vector.shape_cast %80 : vector<1x2x128xf32> to vector<2x128xf32>
    %82 = vector.shape_cast %79 : vector<2x128xf32> to vector<1x2x128xf32>
    tpu.vector_store %arg5[%c0_76, %c0_77, %c0_78], %82 {strides = array<i32>} : memref<1x2x128xf32, #tpu.memory_space<vmem>>, vector<1x2x128xf32>,
    return
  }
  func.func @transform_0(%arg0: i32) -> (i32, i32, i32, i32) {
    %c0_i32 = arith.constant 0 : i32
    %c0_i32_0 = arith.constant 0 : i32
    %c0_i32_1 = arith.constant 0 : i32
    %c0_i32_2 = arith.constant 0 : i32
    return %arg0, %c0_i32, %c0_i32_0, %c0_i32_1 : i32, i32, i32, i32
  }
  func.func @transform_1(%arg0: i32) -> (i32, i32, i32) {
    %c0_i32 = arith.constant 0 : i32
    %c0_i32_0 = arith.constant 0 : i32
    %c0_i32_1 = arith.constant 0 : i32
    %c0_i32_2 = arith.constant 0 : i32
    return %c0_i32, %c0_i32_0, %c0_i32_1 : i32, i32, i32
  }
  func.func @transform_2(%arg0: i32) -> (i32, i32) {
    %c0_i32 = arith.constant 0 : i32
    %c0_i32_0 = arith.constant 0 : i32
    %c0_i32_1 = arith.constant 0 : i32
    return %c0_i32, %c0_i32_0 : i32, i32
  }
  func.func @transform_3(%arg0: i32) -> (i32, i32, i32, i32) {
    %c0_i32 = arith.constant 0 : i32
    %c0_i32_0 = arith.constant 0 : i32
    %c0_i32_1 = arith.constant 0 : i32
    %c0_i32_2 = arith.constant 0 : i32
    return %arg0, %c0_i32, %c0_i32_0, %c0_i32_1 : i32, i32, i32, i32
  }
  func.func @transform_4(%arg0: i32) -> (i32, i32, i32) {
    %c0_i32 = arith.constant 0 : i32
    %c0_i32_0 = arith.constant 0 : i32
    %c0_i32_1 = arith.constant 0 : i32
    return %arg0, %c0_i32, %c0_i32_0 : i32, i32, i32
  }
}

</mosaic_0001>

<bundles_post_ra>
// kernel: residual_block_forward.5
= control target key start
LH: loop header
LB: loop body
LE: loop exit
PB: predicated region body
PF: predicated region fallthrough
CT: control target
= control target key end

     0   :  { %s609_s15 = smov 0   ;;  %s847_s0 = inlined_call_operand.vmem [shape: f32[2,16,16,128], index: 0, kind: input, shape index: {}]   ;;  %s848_s1 = inlined_call_operand.vmem [shape: f32[2,16,16,128], index: 1, kind: input, shape index: {}]   ;;  %s849_s2 = inlined_call_operand.vmem [shape: f32[2,128], index: 2, kind: input, shape index: {}]   ;;  %s850_s3 = inlined_call_operand.vmem [shape: f32[1,128], index: 3, kind: input, shape index: {}]   ;;  %s851_s4 = inlined_call_operand.vmem [shape: f32[2,16,16,128], index: 4, kind: output, shape index: {}]  }
   0x1 LB: > { %s549_s16 = sadd.s32 4294967295, %s582_s15   ;;  %p553_p0 = scmp.ge.s32.totalorder %s582_s15, 1  ;;  %s582_s15 = sphi %s609_s15, %s14_s15  }
   0x2   : > { %p172_p1 = scmp.lt.s32.totalorder %s582_s15, 3 }
   0x4   : > { %p173_p2 = pnand %p553_p0, %p172_p1 }
   0x5   : > { %p203_p3 = scmp.lt.s32.totalorder (!%p173_p2), %s549_s16, 1 }
   0x6   : > { %176 = sbr.rel (%p173_p2) target bundleno = 62 (0x3e), region = 36 }
   0xb   : > { %s853_s16 = smov (!%p203_p3, %s549_s16), 1  ;;  %v620_v0 = vld [vmem:[%s849_s2] ss:$0 sm:$0xff]  ;;  %v644_v2 = vld [vmem:[%s849_s2 + $0x1] ss:$0 sm:$0xff] }
   0xc   : > { %v625_v1 = vld [vmem:[%s850_s3] ss:$0 sm:$0xff]  ;;  %s627_s21 = sshll.u32 %s853_s16, 8 }
   0xd   : > { %s633_s24 = scalar_lea.vmem %s847_s0, %s627_s21  ;;  %s639_s27 = scalar_lea.vmem %s848_s1, %s627_s21 }
   0xe   : > { %v218_v3 = vld [vmem:[%s633_s24] sm:$0xff]  ;;  %v219_v5 = vld [vmem:[%s633_s24 + $0x8] sm:$0xff]  ;;  %v220_v10 = vld [vmem:[%s633_s24 + $0x10] sm:$0xff]  ;;  %s679_s6 = scalar_lea.vmem %s851_s4, %s627_s21 }
   0xf   : > { %v284_v4 = vld [vmem:[%s639_s27] sm:$0xff]  ;;  %v252_v6 = vmul.f32 %v620_v0, %v218_v3  ;;  %v253_v8 = vmul.f32 %v620_v0, %v219_v5  ;;  %v285_v9 = vld [vmem:[%s639_s27 + $0x8] sm:$0xff]  ;;  %v286_v11 = vld [vmem:[%s639_s27 + $0x10] sm:$0xff]  ;;  %v254_v13 = vmul.f32 %v620_v0, %v220_v10 }
  0x10   : > { %v320_v7 = vmul.f32 %v625_v1, %v284_v4  ;;  %v321_v12 = vmul.f32 %v625_v1, %v285_v9  ;;  %v322_v14 = vmul.f32 %v625_v1, %v286_v11  ;;  %v221_v15 = vld [vmem:[%s633_s24 + $0x18] sm:$0xff]  ;;  %v222_v17 = vld [vmem:[%s633_s24 + $0x20] sm:$0xff]  ;;  %v223_v23 = vld [vmem:[%s633_s24 + $0x28] sm:$0xff] }
  0x11   : > { %v287_v16 = vld [vmem:[%s639_s27 + $0x18] sm:$0xff]  ;;  %v255_v19 = vmul.f32 %v620_v0, %v221_v15  ;;  %v256_v21 = vmul.f32 %v620_v0, %v222_v17  ;;  %v288_v22 = vld [vmem:[%s639_s27 + $0x20] sm:$0xff]  ;;  %v289_v24 = vld [vmem:[%s639_s27 + $0x28] sm:$0xff]  ;;  %v257_v28 = vmul.f32 %v620_v0, %v223_v23 }
  0x12   : > { %v352_v18 = vadd.f32 %v320_v7, %v252_v6  ;;  %v323_v20 = vmul.f32 %v625_v1, %v287_v16  ;;  %v353_v25 = vadd.f32 %v321_v12, %v253_v8  ;;  %v354_v26 = vadd.f32 %v322_v14, %v254_v13  ;;  %v224_v29 = vld [vmem:[%s633_s24 + $0x30] sm:$0xff]  ;;  %v225_v31 = vld [vmem:[%s633_s24 + $0x38] sm:$0xff]  ;;  %v226_v41 = vld [vmem:[%s633_s24 + $0x40] sm:$0xff] }
  0x13   : > { %v324_v27 = vmul.f32 %v625_v1, %v288_v22  ;;  %v290_v30 = vld [vmem:[%s639_s27 + $0x30] sm:$0xff]  ;;  %v325_v34 = vmul.f32 %v625_v1, %v289_v24  ;;  %v258_v35 = vmul.f32 %v620_v0, %v224_v29  ;;  %v291_v40 = vld [vmem:[%s639_s27 + $0x38] sm:$0xff]  ;;  %v259_v45 = vmul.f32 %v620_v0, %v225_v31  ;;  %v292_v46 = vld [vmem:[%s639_s27 + $0x40] sm:$0xff] }
  0x14   : > { %v386_v32 = vadd.f32 %v644_v2, %v352_v18  ;;  %v355_v33 = vadd.f32 %v323_v20, %v255_v19  ;;  %v387_v36 = vadd.f32 %v644_v2, %v353_v25  ;;  %v388_v37 = vadd.f32 %v644_v2, %v354_v26  ;;  %v227_v47 = vld [vmem:[%s633_s24 + $0x48] sm:$0xff]  ;;  %v228_v53 = vld [vmem:[%s633_s24 + $0x50] sm:$0xff]  ;;  %v229_v59 = vld [vmem:[%s633_s24 + $0x58] sm:$0xff] }
  0x15   : > { %v356_v38 = vadd.f32 %v324_v27, %v256_v21  ;;  %v326_v39 = vmul.f32 %v625_v1, %v290_v30  ;;  %v357_v44 = vadd.f32 %v325_v34, %v257_v28  ;;  %v293_v52 = vld [vmem:[%s639_s27 + $0x48] sm:$0xff]  ;;  %v327_v56 = vmul.f32 %v625_v1, %v291_v40  ;;  %v294_v58 = vld [vmem:[%s639_s27 + $0x50] sm:$0xff]  ;;  %v295_v3 = vld [vmem:[%s639_s27 + $0x58] sm:$0xff] }
  0x16   : > { %v418_v42 = vmax.f32 %v386_v32, 0.0  ;;  %v389_v43 = vadd.f32 %v644_v2, %v355_v33  ;;  %v419_v48 = vmax.f32 %v387_v36, 0.0  ;;  %v420_v49 = vmax.f32 %v388_v37, 0.0  ;;  %v230_v4 = vld [vmem:[%s633_s24 + $0x60] sm:$0xff]  ;;  %v231_v10 = vld [vmem:[%s633_s24 + $0x68] sm:$0xff]  ;;  %v232_v20 = vld [vmem:[%s633_s24 + $0x70] sm:$0xff] }
  0x17   : > { %v390_v50 = vadd.f32 %v644_v2, %v356_v38  ;;  %v358_v51 = vadd.f32 %v326_v39, %v258_v35  ;;  %v391_v55 = vadd.f32 %v644_v2, %v357_v44  ;;  %v260_v57 = vmul.f32 %v620_v0, %v226_v41  ;;  %v296_v9 = vld [vmem:[%s639_s27 + $0x60] sm:$0xff]  ;;  %v297_v15 = vld [vmem:[%s639_s27 + $0x68] sm:$0xff]  ;;  %v298_v25 = vld [vmem:[%s639_s27 + $0x70] sm:$0xff] }
  0x18   : > { %450 = vst [vmem:[%s679_s6] sm:$0xff] %v418_v42  ;;  %v421_v54 = vmax.f32 %v389_v43, 0.0  ;;  %v328_v62 = vmul.f32 %v625_v1, %v292_v46  ;;  %v261_v63 = vmul.f32 %v620_v0, %v227_v47  ;;  %v359_v6 = vadd.f32 %v327_v56, %v259_v45  ;;  %v233_v30 = vld [vmem:[%s633_s24 + $0x78] sm:$0xff]  ;;  %v234_v36 = vld [vmem:[%s633_s24 + $0x80] sm:$0xff]  ;;  %v235_v42 = vld [vmem:[%s633_s24 + $0x88] sm:$0xff] }
  0x19   : > { %451 = vst [vmem:[%s679_s6 + $0x8] sm:$0xff] %v419_v48  ;;  %v422_v60 = vmax.f32 %v390_v50, 0.0  ;;  %v392_v61 = vadd.f32 %v644_v2, %v358_v51  ;;  %v423_v5 = vmax.f32 %v391_v55, 0.0  ;;  %v329_v7 = vmul.f32 %v625_v1, %v293_v52  ;;  %v299_v31 = vld [vmem:[%s639_s27 + $0x78] sm:$0xff]  ;;  %v300_v41 = vld [vmem:[%s639_s27 + $0x80] sm:$0xff]  ;;  %v301_v47 = vld [vmem:[%s639_s27 + $0x88] sm:$0xff] }
  0x1a   : > { %452 = vst [vmem:[%s679_s6 + $0x10] sm:$0xff] %v420_v49  ;;  %v262_v8 = vmul.f32 %v620_v0, %v228_v53  ;;  %v360_v12 = vadd.f32 %v328_v62, %v260_v57  ;;  %v330_v13 = vmul.f32 %v625_v1, %v294_v58  ;;  %v263_v14 = vmul.f32 %v620_v0, %v229_v59  ;;  %v236_v48 = vld [vmem:[%s633_s24 + $0x90] sm:$0xff]  ;;  %v303_v59 = vld [vmem:[%s639_s27 + $0x98] sm:$0xff] }
  0x1b   : > { %453 = vst [vmem:[%s679_s6 + $0x18] sm:$0xff] %v421_v54  ;;  %v424_v11 = vmax.f32 %v392_v61, 0.0  ;;  %v393_v16 = vadd.f32 %v644_v2, %v359_v6  ;;  %v361_v17 = vadd.f32 %v329_v7, %v261_v63  ;;  %v331_v18 = vmul.f32 %v625_v1, %v295_v3  ;;  %v302_v53 = vld [vmem:[%s639_s27 + $0x90] sm:$0xff]  ;;  %v237_v54 = vld [vmem:[%s633_s24 + $0x98] sm:$0xff] }
  0x1c   : > { %454 = vst [vmem:[%s679_s6 + $0x20] sm:$0xff] %v422_v60  ;;  %v264_v19 = vmul.f32 %v620_v0, %v230_v4  ;;  %v394_v21 = vadd.f32 %v644_v2, %v360_v12  ;;  %v362_v22 = vadd.f32 %v330_v13, %v262_v8  ;;  %v332_v23 = vmul.f32 %v625_v1, %v296_v9  ;;  %v238_v60 = vld [vmem:[%s633_s24 + $0xa0] sm:$0xff]  ;;  %v239_v9 = vld [vmem:[%s633_s24 + $0xa8] sm:$0xff] }
  0x1d   : > { %455 = vst [vmem:[%s679_s6 + $0x28] sm:$0xff] %v423_v5  ;;  %v265_v24 = vmul.f32 %v620_v0, %v231_v10  ;;  %v425_v26 = vmax.f32 %v393_v16, 0.0  ;;  %v395_v27 = vadd.f32 %v644_v2, %v361_v17  ;;  %v363_v28 = vadd.f32 %v331_v18, %v263_v14  ;;  %v304_v4 = vld [vmem:[%s639_s27 + $0xa0] sm:$0xff]  ;;  %v305_v10 = vld [vmem:[%s639_s27 + $0xa8] sm:$0xff] }
  0x1e   : > { %456 = vst [vmem:[%s679_s6 + $0x30] sm:$0xff] %v424_v11  ;;  %v333_v29 = vmul.f32 %v625_v1, %v297_v15  ;;  %v426_v32 = vmax.f32 %v394_v21, 0.0  ;;  %v396_v33 = vadd.f32 %v644_v2, %v362_v22  ;;  %v364_v34 = vadd.f32 %v332_v23, %v264_v19  ;;  %v240_v15 = vld [vmem:[%s633_s24 + $0xb0] sm:$0xff] }
  0x1f   : > { %v266_v35 = vmul.f32 %v620_v0, %v232_v20  ;;  %457 = vst [vmem:[%s679_s6 + $0x38] sm:$0xff] %v425_v26  ;;  %v427_v37 = vmax.f32 %v395_v27, 0.0  ;;  %v397_v38 = vadd.f32 %v644_v2, %v363_v28  ;;  %v334_v40 = vmul.f32 %v625_v1, %v298_v25  ;;  %v306_v20 = vld [vmem:[%s639_s27 + $0xb0] sm:$0xff]  ;;  %v241_v25 = vld [vmem:[%s633_s24 + $0xb8] sm:$0xff] }
  0x20   : > { %v365_v39 = vadd.f32 %v333_v29, %v265_v24  ;;  %458 = vst [vmem:[%s679_s6 + $0x40] sm:$0xff] %v426_v32  ;;  %v428_v43 = vmax.f32 %v396_v33, 0.0  ;;  %v398_v44 = vadd.f32 %v644_v2, %v364_v34  ;;  %v267_v45 = vmul.f32 %v620_v0, %v233_v30  ;;  %v307_v26 = vld [vmem:[%s639_s27 + $0xb8] sm:$0xff] }
  0x21   : > { %v335_v46 = vmul.f32 %v625_v1, %v299_v31  ;;  %459 = vst [vmem:[%s679_s6 + $0x48] sm:$0xff] %v427_v37  ;;  %v429_v49 = vmax.f32 %v397_v38, 0.0  ;;  %v366_v51 = vadd.f32 %v334_v40, %v266_v35  ;;  %v268_v52 = vmul.f32 %v620_v0, %v234_v36  ;;  %v242_v31 = vld [vmem:[%s633_s24 + $0xc0] sm:$0xff]  ;;  %v243_v37 = vld [vmem:[%s633_s24 + $0xc8] sm:$0xff] }
  0x22   : > { %v399_v50 = vadd.f32 %v644_v2, %v365_v39  ;;  %460 = vst [vmem:[%s679_s6 + $0x50] sm:$0xff] %v428_v43  ;;  %v430_v55 = vmax.f32 %v398_v44, 0.0  ;;  %v336_v57 = vmul.f32 %v625_v1, %v300_v41  ;;  %v269_v58 = vmul.f32 %v620_v0, %v235_v42  ;;  %v308_v36 = vld [vmem:[%s639_s27 + $0xc0] sm:$0xff]  ;;  %v309_v42 = vld [vmem:[%s639_s27 + $0xc8] sm:$0xff]  ;;  %v244_v43 = vld [vmem:[%s633_s24 + $0xd0] sm:$0xff] }
  0x23   : > { %v367_v56 = vadd.f32 %v335_v46, %v267_v45  ;;  %461 = vst [vmem:[%s679_s6 + $0x58] sm:$0xff] %v429_v49  ;;  %v400_v62 = vadd.f32 %v644_v2, %v366_v51  ;;  %v337_v63 = vmul.f32 %v625_v1, %v301_v47  ;;  %v270_v3 = vmul.f32 %v620_v0, %v236_v48  ;;  %v310_v48 = vld [vmem:[%s639_s27 + $0xd0] sm:$0xff]  ;;  %v245_v49 = vld [vmem:[%s633_s24 + $0xd8] sm:$0xff] }
  0x24   : > { %v431_v61 = vmax.f32 %v399_v50, 0.0  ;;  %462 = vst [vmem:[%s679_s6 + $0x60] sm:$0xff] %v430_v55  ;;  %v368_v6 = vadd.f32 %v336_v57, %v268_v52  ;;  %v338_v7 = vmul.f32 %v625_v1, %v302_v53  ;;  %v271_v8 = vmul.f32 %v620_v0, %v237_v54  ;;  %v311_v54 = vld [vmem:[%s639_s27 + $0xd8] sm:$0xff]  ;;  %v246_v55 = vld [vmem:[%s633_s24 + $0xe0] sm:$0xff] }
  0x25   : > { %v401_v5 = vadd.f32 %v644_v2, %v367_v56  ;;  %v432_v11 = vmax.f32 %v400_v62, 0.0  ;;  %v369_v12 = vadd.f32 %v337_v63, %v269_v58  ;;  %v339_v13 = vmul.f32 %v625_v1, %v303_v59 }
  0x26   : > { %463 = vst [vmem:[%s679_s6 + $0x68] sm:$0xff] %v431_v61  ;;  %v272_v14 = vmul.f32 %v620_v0, %v238_v60  ;;  %v402_v17 = vadd.f32 %v644_v2, %v368_v6  ;;  %v370_v18 = vadd.f32 %v338_v7, %v270_v3  ;;  %v340_v19 = vmul.f32 %v625_v1, %v304_v4  ;;  %v312_v60 = vld [vmem:[%s639_s27 + $0xe0] sm:$0xff]  ;;  %v247_v4 = vld [vmem:[%s633_s24 + $0xe8] sm:$0xff] }
  0x27   : > { %v433_v16 = vmax.f32 %v401_v5, 0.0  ;;  %464 = vst [vmem:[%s679_s6 + $0x70] sm:$0xff] %v432_v11  ;;  %v403_v21 = vadd.f32 %v644_v2, %v369_v12  ;;  %v371_v22 = vadd.f32 %v339_v13, %v271_v8  ;;  %v273_v23 = vmul.f32 %v620_v0, %v239_v9  ;;  %v313_v5 = vld [vmem:[%s639_s27 + $0xe8] sm:$0xff] }
  0x28   : > { %v341_v24 = vmul.f32 %v625_v1, %v305_v10  ;;  %v434_v27 = vmax.f32 %v402_v17, 0.0  ;;  %v404_v28 = vadd.f32 %v644_v2, %v370_v18  ;;  %v372_v29 = vadd.f32 %v340_v19, %v272_v14  ;;  %v248_v10 = vld [vmem:[%s633_s24 + $0xf0] sm:$0xff] }
  0x29   : > { %465 = vst [vmem:[%s679_s6 + $0x78] sm:$0xff] %v433_v16  ;;  %v274_v30 = vmul.f32 %v620_v0, %v240_v15  ;;  %v435_v32 = vmax.f32 %v403_v21, 0.0  ;;  %v405_v33 = vadd.f32 %v644_v2, %v371_v22  ;;  %v342_v35 = vmul.f32 %v625_v1, %v306_v20  ;;  %v314_v15 = vld [vmem:[%s639_s27 + $0xf0] sm:$0xff]  ;;  %v249_v20 = vld [vmem:[%s633_s24 + $0xf8] sm:$0xff] }
  0x2a   : > { %v373_v34 = vadd.f32 %v341_v24, %v273_v23  ;;  %466 = vst [vmem:[%s679_s6 + $0x80] sm:$0xff] %v434_v27  ;;  %v436_v38 = vmax.f32 %v404_v28, 0.0  ;;  %v406_v39 = vadd.f32 %v644_v2, %v372_v29  ;;  %v275_v40 = vmul.f32 %v620_v0, %v241_v25  ;;  %v315_v21 = vld [vmem:[%s639_s27 + $0xf8] sm:$0xff] }
  0x2b   : > { %v343_v41 = vmul.f32 %v625_v1, %v307_v26  ;;  %467 = vst [vmem:[%s679_s6 + $0x88] sm:$0xff] %v435_v32  ;;  %v437_v44 = vmax.f32 %v405_v33, 0.0  ;;  %v374_v46 = vadd.f32 %v342_v35, %v274_v30  ;;  %v276_v47 = vmul.f32 %v620_v0, %v242_v31 }
  0x2c   : > { %v407_v45 = vadd.f32 %v644_v2, %v373_v34  ;;  %468 = vst [vmem:[%s679_s6 + $0x90] sm:$0xff] %v436_v38  ;;  %v438_v50 = vmax.f32 %v406_v39, 0.0  ;;  %v344_v52 = vmul.f32 %v625_v1, %v308_v36  ;;  %v277_v53 = vmul.f32 %v620_v0, %v243_v37 }
  0x2d   : > { %v375_v51 = vadd.f32 %v343_v41, %v275_v40  ;;  %469 = vst [vmem:[%s679_s6 + $0x98] sm:$0xff] %v437_v44  ;;  %v408_v57 = vadd.f32 %v644_v2, %v374_v46  ;;  %v345_v58 = vmul.f32 %v625_v1, %v309_v42  ;;  %v278_v59 = vmul.f32 %v620_v0, %v244_v43 }
  0x2e   : > { %v439_v56 = vmax.f32 %v407_v45, 0.0  ;;  %470 = vst [vmem:[%s679_s6 + $0xa0] sm:$0xff] %v438_v50  ;;  %v376_v62 = vadd.f32 %v344_v52, %v276_v47  ;;  %v346_v63 = vmul.f32 %v625_v1, %v310_v48  ;;  %v279_v3 = vmul.f32 %v620_v0, %v245_v49 }
  0x2f   : > { %v409_v61 = vadd.f32 %v644_v2, %v375_v51  ;;  %v440_v6 = vmax.f32 %v408_v57, 0.0  ;;  %v377_v7 = vadd.f32 %v345_v58, %v277_v53  ;;  %v347_v8 = vmul.f32 %v625_v1, %v311_v54 }
  0x30   : > { %471 = vst [vmem:[%s679_s6 + $0xa8] sm:$0xff] %v439_v56  ;;  %v280_v9 = vmul.f32 %v620_v0, %v246_v55  ;;  %v410_v12 = vadd.f32 %v644_v2, %v376_v62  ;;  %v378_v13 = vadd.f32 %v346_v63, %v278_v59  ;;  %v348_v14 = vmul.f32 %v625_v1, %v312_v60 }
  0x31   : > { %v441_v11 = vmax.f32 %v409_v61, 0.0  ;;  %472 = vst [vmem:[%s679_s6 + $0xb0] sm:$0xff] %v440_v6  ;;  %v411_v16 = vadd.f32 %v644_v2, %v377_v7  ;;  %v379_v17 = vadd.f32 %v347_v8, %v279_v3  ;;  %v281_v18 = vmul.f32 %v620_v0, %v247_v4 }
  0x32   : > { %v349_v19 = vmul.f32 %v625_v1, %v313_v5  ;;  %v442_v22 = vmax.f32 %v410_v12, 0.0  ;;  %v412_v23 = vadd.f32 %v644_v2, %v378_v13  ;;  %v380_v24 = vadd.f32 %v348_v14, %v280_v9 }
  0x33   : > { %473 = vst [vmem:[%s679_s6 + $0xb8] sm:$0xff] %v441_v11  ;;  %v282_v25 = vmul.f32 %v620_v0, %v248_v10  ;;  %v443_v26 = vmax.f32 %v411_v16, 0.0  ;;  %v413_v27 = vadd.f32 %v644_v2, %v379_v17  ;;  %v350_v29 = vmul.f32 %v625_v1, %v314_v15 }
  0x34   : > { %v381_v28 = vadd.f32 %v349_v19, %v281_v18  ;;  %474 = vst [vmem:[%s679_s6 + $0xc0] sm:$0xff] %v442_v22  ;;  %v444_v30 = vmax.f32 %v412_v23, 0.0  ;;  %v414_v31 = vadd.f32 %v644_v2, %v380_v24  ;;  %v283_v32 = vmul.f32 %v620_v0, %v249_v20 }
  0x35   : > { %v351_v33 = vmul.f32 %v625_v1, %v315_v21  ;;  %475 = vst [vmem:[%s679_s6 + $0xc8] sm:$0xff] %v443_v26  ;;  %v445_v34 = vmax.f32 %v413_v27, 0.0  ;;  %v382_v36 = vadd.f32 %v350_v29, %v282_v25 }
  0x36   : > { %v415_v35 = vadd.f32 %v644_v2, %v381_v28  ;;  %476 = vst [vmem:[%s679_s6 + $0xd0] sm:$0xff] %v444_v30  ;;  %v446_v37 = vmax.f32 %v414_v31, 0.0 }
  0x37   : > { %v383_v38 = vadd.f32 %v351_v33, %v283_v32  ;;  %477 = vst [vmem:[%s679_s6 + $0xd8] sm:$0xff] %v445_v34  ;;  %v416_v40 = vadd.f32 %v644_v2, %v382_v36 }
  0x38   : > { %v447_v39 = vmax.f32 %v415_v35, 0.0  ;;  %478 = vst [vmem:[%s679_s6 + $0xe0] sm:$0xff] %v446_v37 }
  0x39   : > { %v417_v41 = vadd.f32 %v644_v2, %v383_v38  ;;  %v448_v0 = vmax.f32 %v416_v40, 0.0 }
  0x3a   : > { %479 = vst [vmem:[%s679_s6 + $0xe8] sm:$0xff] %v447_v39 }
  0x3b   : > { %v449_v1 = vmax.f32 %v417_v41, 0.0  ;;  %480 = vst [vmem:[%s679_s6 + $0xf0] sm:$0xff] %v448_v0 }
  0x3d   : > { %481 = vst [vmem:[%s679_s6 + $0xf8] sm:$0xff] %v449_v1 }
  0x3e PF: > { %s14_s15 = sadd.s32 1, %s582_s15  }
  0x3f   : > { %p11_p4 = scmp.ge.s32.totalorder %s14_s15, 4  }
  0x41   :  { %13 = sbr.rel (!%p11_p4) target bundleno = 1 (0x1), region = 69 }

// kernel: residual_block_forward.3
= control target key start
LH: loop header
LB: loop body
LE: loop exit
PB: predicated region body
PF: predicated region fallthrough
CT: control target
= control target key end

     0   :  { %s3015_s21 = smov 0   ;;  %s4311_s0 = inlined_call_operand.vmem [shape: f32[2,18,18,128], index: 0, kind: input, shape index: {}]   ;;  %s4312_s1 = inlined_call_operand.vmem [shape: f32[9,128,128], index: 1, kind: input, shape index: {}]   ;;  %s4313_s2 = inlined_call_operand.vmem [shape: f32[128,128], index: 2, kind: input, shape index: {}]   ;;  %s4314_s3 = inlined_call_operand.vmem [shape: f32[2,16,16,128], index: 3, kind: output, shape index: {0}]   ;;  %s4315_s4 = inlined_call_operand.vmem [shape: f32[2,16,16,128], index: 4, kind: output, shape index: {1}]   ;;  %s4316_s5 = inlined_call_operand.vmem [shape: f32[2,2,128], index: 5, kind: output, shape index: {2}]   ;;  %s4317_s6 = inlined_call_operand.vmem [shape: f32[2,2,128], index: 6, kind: output, shape index: {3}]  }
   0x1 LB: > { %s2560_s22 = sadd.s32 4294967295, %s2978_s21   ;;  %p2564_p0 = scmp.ge.s32.totalorder %s2978_s21, 1  ;;  %s2978_s21 = sphi %s3015_s21, %s17_s21  }
   0x2   : > { %p219_p1 = scmp.lt.s32.totalorder %s2978_s21, 3 }
   0x4   : > { %p220_p2 = pnand %p2564_p0, %p219_p1 }
   0x6   : > { %223 = sbr.rel (%p220_p2) target bundleno = 832 (0x340), region = 32 }
   0xb   : > { %v2587_v0 = vld [vmem:[%s4312_s1 + $0xf8] sm:$0xff]  ;;  %v2586_v2 = vld [vmem:[%s4312_s1 + $0xf0] sm:$0xff]  ;;  %v2585_v4 = vld [vmem:[%s4312_s1 + $0xe8] sm:$0xff]  ;;  %p262_p3 = scmp.lt.s32.totalorder %s2560_s22, 1  ;;  %vm2106_vm0 = vcmask 1040384  }
   0xc   : > { %v332_v1 = vld [vmem:[%s4312_s1 + $0x78] sm:$0xff]  ;;  %2928 = vmatpush.msra.mxu2 %v2587_v0  ;;  %v331_v3 = vld [vmem:[%s4312_s1 + $0x70] sm:$0xff]  ;;  %v330_v5 = vld [vmem:[%s4312_s1 + $0x68] sm:$0xff]  ;;  %382 = vmatpush.msra.mxu0 %v2587_v0 }
   0xd   : > { %495 = vmatpush.msra.mxu1 %v332_v1  ;;  %2944 = vmatpush.msra.mxu3 %v332_v1  ;;  %v2584_v6 = vld [vmem:[%s4312_s1 + $0xe0] sm:$0xff]  ;;  %v2583_v8 = vld [vmem:[%s4312_s1 + $0xd8] sm:$0xff]  ;;  %v2582_v10 = vld [vmem:[%s4312_s1 + $0xd0] sm:$0xff]  ;;  %s4331_s22 = smov (!%p262_p3, %s2560_s22), 1 }
   0xe   : > { %2929 = vmatpush.msra.mxu2 %v2586_v2  ;;  %v329_v7 = vld [vmem:[%s4312_s1 + $0x60] sm:$0xff]  ;;  %383 = vmatpush.msra.mxu0 %v2586_v2  ;;  %v328_v9 = vld [vmem:[%s4312_s1 + $0x58] sm:$0xff]  ;;  %v327_v11 = vld [vmem:[%s4312_s1 + $0x50] sm:$0xff]  ;;  %s2960_s7 = smul.u32 432, %s4331_s22  ;;  %s2926_s29 = sshll.u32 %s4331_s22, 8 }
   0xf   : > { %496 = vmatpush.msra.mxu1 %v331_v3  ;;  %2945 = vmatpush.msra.mxu3 %v331_v3  ;;  %v2581_v12 = vld [vmem:[%s4312_s1 + $0xc8] sm:$0xff]  ;;  %v2580_v14 = vld [vmem:[%s4312_s1 + $0xc0] sm:$0xff]  ;;  %v2579_v16 = vld [vmem:[%s4312_s1 + $0xb8] sm:$0xff]  ;;  %s4056_s8 = scalar_lea.vmem %s4315_s4, %s2926_s29  ;;  %s4077_s11 = scalar_lea.vmem %s4314_s3, %s2926_s29 }
  0x10   : > { %2930 = vmatpush.msra.mxu2 %v2585_v4  ;;  %384 = vmatpush.msra.mxu0 %v2585_v4  ;;  %v326_v13 = vld [vmem:[%s4312_s1 + $0x48] sm:$0xff]  ;;  %v325_v15 = vld [vmem:[%s4312_s1 + $0x40] sm:$0xff]  ;;  %v324_v17 = vld [vmem:[%s4312_s1 + $0x38] sm:$0xff]  ;;  %s3123_s18 = scalar_lea.vmem %s4311_s0, %s2960_s7 }
  0x11   : > { %497 = vmatpush.msra.mxu1 %v330_v5  ;;  %2946 = vmatpush.msra.mxu3 %v330_v5  ;;  %v2578_v18 = vld [vmem:[%s4312_s1 + $0xb0] sm:$0xff]  ;;  %v2577_v20 = vld [vmem:[%s4312_s1 + $0xa8] sm:$0xff]  ;;  %v2576_v22 = vld [vmem:[%s4312_s1 + $0xa0] sm:$0xff] }
  0x12   : > { %2931 = vmatpush.msra.mxu2 %v2584_v6  ;;  %385 = vmatpush.msra.mxu0 %v2584_v6  ;;  %v323_v19 = vld [vmem:[%s4312_s1 + $0x30] sm:$0xff]  ;;  %v322_v21 = vld [vmem:[%s4312_s1 + $0x28] sm:$0xff]  ;;  %v321_v23 = vld [vmem:[%s4312_s1 + $0x20] sm:$0xff] }
  0x13   : > { %498 = vmatpush.msra.mxu1 %v329_v7  ;;  %2947 = vmatpush.msra.mxu3 %v329_v7  ;;  %v2575_v24 = vld [vmem:[%s4312_s1 + $0x98] sm:$0xff]  ;;  %v2574_v26 = vld [vmem:[%s4312_s1 + $0x90] sm:$0xff]  ;;  %v2573_v28 = vld [vmem:[%s4312_s1 + $0x88] sm:$0xff] }
  0x14   : > { %2932 = vmatpush.msra.mxu2 %v2583_v8  ;;  %386 = vmatpush.msra.mxu0 %v2583_v8  ;;  %v320_v25 = vld [vmem:[%s4312_s1 + $0x18] sm:$0xff]  ;;  %v319_v27 = vld [vmem:[%s4312_s1 + $0x10] sm:$0xff]  ;;  %v318_v29 = vld [vmem:[%s4312_s1 + $0x8] sm:$0xff] }
  0x15   : > { %499 = vmatpush.msra.mxu1 %v328_v9  ;;  %2948 = vmatpush.msra.mxu3 %v328_v9  ;;  %v2572_v30 = vld [vmem:[%s4312_s1 + $0x80] sm:$0xff]  ;;  %v2603_v35 = vld [vmem:[%s4312_s1 + $0x178] sm:$0xff]  ;;  %v2602_v38 = vld [vmem:[%s4312_s1 + $0x170] sm:$0xff] }
  0x16   : > { %2933 = vmatpush.msra.mxu2 %v2582_v10  ;;  %387 = vmatpush.msra.mxu0 %v2582_v10  ;;  %v317_v31 = vld [vmem:[%s4312_s1] sm:$0xff]  ;;  %v2651_v36 = vld [vmem:[%s4312_s1 + $0x1f8] sm:$0xff]  ;;  %v2650_v40 = vld [vmem:[%s4312_s1 + $0x1f0] sm:$0xff] }
  0x17   : > { %500 = vmatpush.msra.mxu1 %v327_v11  ;;  %2949 = vmatpush.msra.mxu3 %v327_v11  ;;  %v349_v32 = vld [vmem:[%s3123_s18 + $0xc1] sm:$0xff]  ;;  %v2747_v37 = vld [vmem:[%s4312_s1 + $0x2f8] sm:$0xff]  ;;  %v2746_v43 = vld [vmem:[%s4312_s1 + $0x2f0] sm:$0xff] }
  0x18   : > { %2934 = vmatpush.msra.mxu2 %v2581_v12  ;;  %388 = vmatpush.msra.mxu0 %v2581_v12  ;;  %v285_v33 = vld [vmem:[%s3123_s18] sm:$0xff]  ;;  %v2699_v41 = vld [vmem:[%s4312_s1 + $0x278] sm:$0xff]  ;;  %v2601_v42 = vld [vmem:[%s4312_s1 + $0x168] sm:$0xff] }
  0x19   : > { %501 = vmatpush.msra.mxu1 %v326_v13  ;;  %2950 = vmatpush.msra.mxu3 %v326_v13  ;;  %v301_v34 = vld [vmem:[%s3123_s18 + $0xc0] sm:$0xff]  ;;  %v2649_v44 = vld [vmem:[%s4312_s1 + $0x1e8] sm:$0xff]  ;;  %v2698_v45 = vld [vmem:[%s4312_s1 + $0x270] sm:$0xff] }
  0x1a   : > { %2935 = vmatpush.msra.mxu2 %v2580_v14  ;;  %389 = vmatpush.msra.mxu0 %v2580_v14  ;;  %v333_v39 = vld [vmem:[%s3123_s18 + $0x1] sm:$0xff]  ;;  %v350_v46 = vld [vmem:[%s3123_s18 + $0xc9] sm:$0xff]  ;;  %v2599_v55 = vld [vmem:[%s4312_s1 + $0x158] sm:$0xff] }
  0x1b   : > { %502 = vmatpush.msra.mxu1 %v325_v15  ;;  %2951 = vmatpush.msra.mxu3 %v325_v15  ;;  %v2745_v47 = vld [vmem:[%s4312_s1 + $0x2e8] sm:$0xff]  ;;  %v2600_v50 = vld [vmem:[%s4312_s1 + $0x160] sm:$0xff]  ;;  %v2647_v56 = vld [vmem:[%s4312_s1 + $0x1d8] sm:$0xff] }
  0x1c   : > { %2936 = vmatpush.msra.mxu2 %v2579_v16  ;;  %390 = vmatpush.msra.mxu0 %v2579_v16  ;;  %v286_v48 = vld [vmem:[%s3123_s18 + $0x8] sm:$0xff]  ;;  %v2648_v51 = vld [vmem:[%s4312_s1 + $0x1e0] sm:$0xff]  ;;  %v2598_v58 = vld [vmem:[%s4312_s1 + $0x150] sm:$0xff] }
  0x1d   : > { %503 = vmatpush.msra.mxu1 %v324_v17  ;;  %2952 = vmatpush.msra.mxu3 %v324_v17  ;;  %v302_v49 = vld [vmem:[%s3123_s18 + $0xc8] sm:$0xff]  ;;  %v2744_v53 = vld [vmem:[%s4312_s1 + $0x2e0] sm:$0xff]  ;;  %v2743_v59 = vld [vmem:[%s4312_s1 + $0x2d8] sm:$0xff] }
  0x1e   : > { %2937 = vmatpush.msra.mxu2 %v2578_v18  ;;  %391 = vmatpush.msra.mxu0 %v2578_v18  ;;  %v2697_v52 = vld [vmem:[%s4312_s1 + $0x268] sm:$0xff]  ;;  %v2696_v57 = vld [vmem:[%s4312_s1 + $0x260] sm:$0xff]  ;;  %v2646_v60 = vld [vmem:[%s4312_s1 + $0x1d0] sm:$0xff] }
  0x1f   : > { %504 = vmatpush.msra.mxu1 %v323_v19  ;;  %2953 = vmatpush.msra.mxu3 %v323_v19  ;;  %v334_v54 = vld [vmem:[%s3123_s18 + $0x9] sm:$0xff]  ;;  %v2695_v61 = vld [vmem:[%s4312_s1 + $0x258] sm:$0xff]  ;;  %v352_v6 = vld [vmem:[%s3123_s18 + $0xe1] sm:$0xff] }
  0x20   : > { %2938 = vmatpush.msra.mxu2 %v2577_v20  ;;  %392 = vmatpush.msra.mxu0 %v2577_v20  ;;  %v351_v62 = vld [vmem:[%s3123_s18 + $0xd9] sm:$0xff]  ;;  %v2597_v2 = vld [vmem:[%s4312_s1 + $0x148] sm:$0xff]  ;;  %v2694_v4 = vld [vmem:[%s4312_s1 + $0x250] sm:$0xff] }
  0x21   : > { %505 = vmatpush.msra.mxu1 %v322_v21  ;;  %2954 = vmatpush.msra.mxu3 %v322_v21  ;;  %v3207_v63 = vld [vmem:[%s3123_s18 + $0x18] sm:$0xff]  ;;  %v2645_v3 = vld [vmem:[%s4312_s1 + $0x1c8] sm:$0xff]  ;;  %v2742_v5 = vld [vmem:[%s4312_s1 + $0x2d0] sm:$0xff] }
  0x22   : > { %2939 = vmatpush.msra.mxu2 %v2576_v22  ;;  %393 = vmatpush.msra.mxu0 %v2576_v22  ;;  %v303_v0 = vld [vmem:[%s3123_s18 + $0xd8] sm:$0xff]  ;;  %v3229_v7 = vld [vmem:[%s3123_s18 + $0x20] sm:$0xff]  ;;  %v2693_v12 = vld [vmem:[%s4312_s1 + $0x248] sm:$0xff] }
  0x23   : > { %506 = vmatpush.msra.mxu1 %v321_v23  ;;  %2955 = vmatpush.msra.mxu3 %v321_v23  ;;  %v3212_v1 = vld [vmem:[%s3123_s18 + $0x19] sm:$0xff]  ;;  %v3234_v9 = vld [vmem:[%s3123_s18 + $0x21] sm:$0xff]  ;;  %v353_v14 = vld [vmem:[%s3123_s18 + $0xf1] sm:$0xff] }
  0x24   : > { %2940 = vmatpush.msra.mxu2 %v2575_v24  ;;  %394 = vmatpush.msra.mxu0 %v2575_v24  ;;  %v304_v8 = vld [vmem:[%s3123_s18 + $0xe0] sm:$0xff]  ;;  %v2741_v13 = vld [vmem:[%s4312_s1 + $0x2c8] sm:$0xff]  ;;  %v3251_v15 = vld [vmem:[%s3123_s18 + $0x30] sm:$0xff] }
  0x25   : > { %507 = vmatpush.msra.mxu1 %v320_v25  ;;  %2956 = vmatpush.msra.mxu3 %v320_v25  ;;  %v2596_v10 = vld [vmem:[%s4312_s1 + $0x140] sm:$0xff]  ;;  %v305_v16 = vld [vmem:[%s3123_s18 + $0xf0] sm:$0xff]  ;;  %v2595_v18 = vld [vmem:[%s4312_s1 + $0x138] sm:$0xff] }
  0x26   : > { %2941 = vmatpush.msra.mxu2 %v2574_v26  ;;  %395 = vmatpush.msra.mxu0 %v2574_v26  ;;  %v2644_v11 = vld [vmem:[%s4312_s1 + $0x1c0] sm:$0xff]  ;;  %v3256_v17 = vld [vmem:[%s3123_s18 + $0x31] sm:$0xff] }
  0x27   : > { %508 = vmatpush.msra.mxu1 %v319_v27  ;;  %2957 = vmatpush.msra.mxu3 %v319_v27  ;;  %v2643_v19 = vld [vmem:[%s4312_s1 + $0x1b8] sm:$0xff]  ;;  %v2692_v20 = vld [vmem:[%s4312_s1 + $0x240] sm:$0xff]  ;;  %v2594_v26 = vld [vmem:[%s4312_s1 + $0x130] sm:$0xff] }
  0x28   : > { %2942 = vmatpush.msra.mxu2 %v2573_v28  ;;  %396 = vmatpush.msra.mxu0 %v2573_v28  ;;  %v2740_v21 = vld [vmem:[%s4312_s1 + $0x2c0] sm:$0xff]  ;;  %v3273_v23 = vld [vmem:[%s3123_s18 + $0x38] sm:$0xff]  ;;  %v2642_v27 = vld [vmem:[%s4312_s1 + $0x1b0] sm:$0xff] }
  0x29   : > { %509 = vmatpush.msra.mxu1 %v318_v29  ;;  %2958 = vmatpush.msra.mxu3 %v318_v29  ;;  %v354_v22 = vld [vmem:[%s3123_s18 + $0xf9] sm:$0xff] }
  0x2a   : > { %2943 = vmatpush.msra.mxu2 %v2572_v30  ;;  %397 = vmatpush.msra.mxu0 %v2572_v30  ;;  %v306_v24 = vld [vmem:[%s3123_s18 + $0xf8] sm:$0xff]  ;;  %v355_v30 = vld [vmem:[%s3123_s18 + $0x109] sm:$0xff] }
  0x2b   : > { %510 = vmatpush.msra.mxu1 %v317_v31  ;;  %2959 = vmatpush.msra.mxu3 %v317_v31  ;;  %v3278_v25 = vld [vmem:[%s3123_s18 + $0x39] sm:$0xff]  ;;  %v3295_v31 = vld [vmem:[%s3123_s18 + $0x48] sm:$0xff] }
  0x2c   : > { %446 = vmatmul.f32.vlgmr.msra.gmra.mxu2 %v349_v32  ;;  %511 = vmatmul.f32.vlgmr.msra.gmra.mxu1 %v285_v33  ;;  %v2691_v28 = vld [vmem:[%s4312_s1 + $0x238] sm:$0xff]  ;;  %v307_v32 = vld [vmem:[%s3123_s18 + $0x108] sm:$0xff] }
  0x2d   : > { %559 = vmatmul.f32.vlgmr.msra.gmra.mxu3 %v301_v34  ;;  %657 = vmatpush.msrb.mxu2 %v2603_v35  ;;  %v2739_v29 = vld [vmem:[%s4312_s1 + $0x2b8] sm:$0xff]  ;;  %v3300_v33 = vld [vmem:[%s3123_s18 + $0x49] sm:$0xff] }
  0x2e   : > { %852 = vmatpush.msrb.mxu3 %v2651_v36  ;;  %1240 = vmatpush.msrb.mxu1 %v2747_v37  ;;  %v2593_v34 = vld [vmem:[%s4312_s1 + $0x128] sm:$0xff]  ;;  %v2690_v36 = vld [vmem:[%s4312_s1 + $0x230] sm:$0xff] }
  0x2f   : > { %658 = vmatpush.msrb.mxu2 %v2602_v38  ;;  %398 = vmatmul.f32.vlgmr.msra.gmra.mxu0 %v333_v39  ;;  %v2641_v35 = vld [vmem:[%s4312_s1 + $0x1a8] sm:$0xff]  ;;  %v2738_v37 = vld [vmem:[%s4312_s1 + $0x2b0] sm:$0xff] }
  0x30   : > { %853 = vmatpush.msrb.mxu3 %v2650_v40  ;;  %1046 = vmatpush.msrb.mxu0 %v2699_v41  ;;  %v356_v38 = vld [vmem:[%s3123_s18 + $0x111] sm:$0xff] }
  0x31   : > { %659 = vmatpush.msrb.mxu2 %v2601_v42  ;;  %1241 = vmatpush.msrb.mxu1 %v2746_v43  ;;  %v3317_v39 = vld [vmem:[%s3123_s18 + $0x50] sm:$0xff]  ;;  %v2592_v42 = vld [vmem:[%s4312_s1 + $0x120] sm:$0xff] }
  0x32   : > { %854 = vmatpush.msrb.mxu3 %v2649_v44  ;;  %1047 = vmatpush.msrb.mxu0 %v2698_v45  ;;  %v308_v40 = vld [vmem:[%s3123_s18 + $0x110] sm:$0xff]  ;;  %v2640_v43 = vld [vmem:[%s4312_s1 + $0x1a0] sm:$0xff]  ;;  %v2689_v44 = vld [vmem:[%s4312_s1 + $0x228] sm:$0xff] }
  0x33   : > { %1242 = vmatpush.msrb.mxu1 %v2745_v47  ;;  %660 = vmatpush.msrb.mxu2 %v2600_v50  ;;  %v3322_v41 = vld [vmem:[%s3123_s18 + $0x51] sm:$0xff]  ;;  %v2737_v45 = vld [vmem:[%s4312_s1 + $0x2a8] sm:$0xff]  ;;  %v3339_v47 = vld [vmem:[%s3123_s18 + $0x60] sm:$0xff] }
  0x34   : > { %449 = vmatmul.f32.gmra.mxu2 %v350_v46  ;;  %514 = vmatmul.f32.gmra.mxu1 %v286_v48  ;;  %v357_v46 = vld [vmem:[%s3123_s18 + $0x121] sm:$0xff]  ;;  %v2591_v50 = vld [vmem:[%s4312_s1 + $0x118] sm:$0xff] }
  0x35   : > { %562 = vmatmul.f32.gmra.mxu3 %v302_v49  ;;  %1048 = vmatpush.msrb.mxu0 %v2697_v52  ;;  %v309_v48 = vld [vmem:[%s3123_s18 + $0x120] sm:$0xff] }
  0x36   : > { %855 = vmatpush.msrb.mxu3 %v2648_v51  ;;  %1243 = vmatpush.msrb.mxu1 %v2744_v53  ;;  %v3344_v49 = vld [vmem:[%s3123_s18 + $0x61] sm:$0xff]  ;;  %v2639_v51 = vld [vmem:[%s4312_s1 + $0x198] sm:$0xff] }
  0x37   : > { %401 = vmatmul.f32.gmra.mxu0 %v334_v54  ;;  %661 = vmatpush.msrb.mxu2 %v2599_v55  ;;  %v2688_v52 = vld [vmem:[%s4312_s1 + $0x220] sm:$0xff]  ;;  %v358_v54 = vld [vmem:[%s3123_s18 + $0x129] sm:$0xff] }
  0x38   : > { %856 = vmatpush.msrb.mxu3 %v2647_v56  ;;  %1049 = vmatpush.msrb.mxu0 %v2696_v57  ;;  %v2736_v53 = vld [vmem:[%s4312_s1 + $0x2a0] sm:$0xff]  ;;  %v3361_v55 = vld [vmem:[%s3123_s18 + $0x68] sm:$0xff] }
  0x39   : > { %662 = vmatpush.msrb.mxu2 %v2598_v58  ;;  %1244 = vmatpush.msrb.mxu1 %v2743_v59  ;;  %v310_v56 = vld [vmem:[%s3123_s18 + $0x128] sm:$0xff]  ;;  %v2590_v58 = vld [vmem:[%s4312_s1 + $0x110] sm:$0xff] }
  0x3a   : > { %857 = vmatpush.msrb.mxu3 %v2646_v60  ;;  %1050 = vmatpush.msrb.mxu0 %v2695_v61  ;;  %v3366_v57 = vld [vmem:[%s3123_s18 + $0x69] sm:$0xff]  ;;  %v2687_v60 = vld [vmem:[%s4312_s1 + $0x218] sm:$0xff] }
  0x3b   : > { %663 = vmatpush.msrb.mxu2 %v2597_v2  ;;  %1245 = vmatpush.msrb.mxu1 %v2742_v5  ;;  %v2638_v59 = vld [vmem:[%s4312_s1 + $0x190] sm:$0xff]  ;;  %v2735_v61 = vld [vmem:[%s4312_s1 + $0x298] sm:$0xff]  ;;  %v2637_v5 = vld [vmem:[%s4312_s1 + $0x188] sm:$0xff] }
  0x3c   : > { %452 = vmatmul.f32.gmra.mxu2 %v351_v62  ;;  %517 = vmatmul.f32.gmra.mxu1 %v3207_v63  ;;  %v359_v62 = vld [vmem:[%s3123_s18 + $0x139] sm:$0xff] }
  0x3d   : > { %565 = vmatmul.f32.gmra.mxu3 %v303_v0  ;;  %1051 = vmatpush.msrb.mxu0 %v2694_v4  ;;  %v3383_v0 = vld [vmem:[%s3123_s18 + $0x78] sm:$0xff]  ;;  %v2589_v4 = vld [vmem:[%s4312_s1 + $0x108] sm:$0xff] }
  0x3e   : > { %858 = vmatpush.msrb.mxu3 %v2645_v3  ;;  %664 = vmatpush.msrb.mxu2 %v2596_v10  ;;  %v311_v2 = vld [vmem:[%s3123_s18 + $0x138] sm:$0xff]  ;;  %v360_v10 = vld [vmem:[%s3123_s18 + $0x141] sm:$0xff] }
  0x3f   : > { %404 = vmatmul.f32.gmra.mxu0 %v3212_v1  ;;  %1246 = vmatpush.msrb.mxu1 %v2741_v13  ;;  %v3388_v3 = vld [vmem:[%s3123_s18 + $0x79] sm:$0xff]  ;;  %v3410_v13 = vld [vmem:[%s3123_s18 + $0x81] sm:$0xff] }
  0x40   : > { %859 = vmatpush.msrb.mxu3 %v2644_v11  ;;  %1052 = vmatpush.msrb.mxu0 %v2693_v12  ;;  %v3405_v11 = vld [vmem:[%s3123_s18 + $0x80] sm:$0xff] }
  0x41   : > { %665 = vmatpush.msrb.mxu2 %v2595_v18  ;;  %1247 = vmatpush.msrb.mxu1 %v2740_v21  ;;  %v312_v12 = vld [vmem:[%s3123_s18 + $0x140] sm:$0xff]  ;;  %v2685_v18 = vld [vmem:[%s4312_s1 + $0x208] sm:$0xff]  ;;  %v3427_v21 = vld [vmem:[%s3123_s18 + $0x90] sm:$0xff] }
  0x42   : > { %860 = vmatpush.msrb.mxu3 %v2643_v19  ;;  %1053 = vmatpush.msrb.mxu0 %v2692_v20  ;;  %v2733_v19 = vld [vmem:[%s4312_s1 + $0x288] sm:$0xff]  ;;  %v361_v20 = vld [vmem:[%s3123_s18 + $0x151] sm:$0xff] }
  0x43   : > { %666 = vmatpush.msrb.mxu2 %v2594_v26  ;;  %1248 = vmatpush.msrb.mxu1 %v2739_v29  ;;  %v3435_v26 = vld [vmem:[%s3123_s18 + $0x91] sm:$0xff] }
  0x44   : > { %455 = vmatmul.f32.gmra.mxu2 %v352_v6  ;;  %520 = vmatmul.f32.gmra.mxu1 %v3229_v7  ;;  %v2686_v6 = vld [vmem:[%s4312_s1 + $0x210] sm:$0xff]  ;;  %v2843_v29 = vld [vmem:[%s4312_s1 + $0x3f8] sm:$0xff] }
  0x45   : > { %568 = vmatmul.f32.gmra.mxu3 %v304_v8  ;;  %1054 = vmatpush.msrb.mxu0 %v2691_v28  ;;  %v2734_v8 = vld [vmem:[%s4312_s1 + $0x290] sm:$0xff]  ;;  %v2684_v28 = vld [vmem:[%s4312_s1 + $0x200] sm:$0xff] }
  0x46   : > { %861 = vmatpush.msrb.mxu3 %v2642_v27  ;;  %667 = vmatpush.msrb.mxu2 %v2593_v34  ;;  %v2795_v27 = vld [vmem:[%s4312_s1 + $0x378] sm:$0xff] }
  0x47   : > { %407 = vmatmul.f32.gmra.mxu0 %v3234_v9  ;;  %1249 = vmatpush.msrb.mxu1 %v2738_v37  ;;  %v314_v34 = vld [vmem:[%s3123_s18 + $0x158] sm:$0xff]  ;;  %v363_v37 = vld [vmem:[%s3123_s18 + $0x169] sm:$0xff] }
  0x48   : > { %862 = vmatpush.msrb.mxu3 %v2641_v35  ;;  %1055 = vmatpush.msrb.mxu0 %v2690_v36  ;;  %v3454_v35 = vld [vmem:[%s3123_s18 + $0x99] sm:$0xff] }
  0x49   : > { %668 = vmatpush.msrb.mxu2 %v2592_v42  ;;  %1250 = vmatpush.msrb.mxu1 %v2737_v45  ;;  %v2891_v36 = vld [vmem:[%s4312_s1 + $0x478] sm:$0xff]  ;;  %v315_v42 = vld [vmem:[%s3123_s18 + $0x168] sm:$0xff]  ;;  %v2842_v45 = vld [vmem:[%s4312_s1 + $0x3f0] sm:$0xff] }
  0x4a   : > { %863 = vmatpush.msrb.mxu3 %v2640_v43  ;;  %1056 = vmatpush.msrb.mxu0 %v2689_v44  ;;  %v3470_v43 = vld [vmem:[%s3123_s18 + $0xa9] sm:$0xff] }
  0x4b   : > { %669 = vmatpush.msrb.mxu2 %v2591_v50  ;;  %1251 = vmatpush.msrb.mxu1 %v2736_v53  ;;  %v2794_v44 = vld [vmem:[%s4312_s1 + $0x370] sm:$0xff]  ;;  %v608_v53 = vld [vmem:[%s3123_s18 + $0x2] sm:$0xff] }
  0x4c   : > { %458 = vmatmul.f32.gmra.mxu2 %v353_v14  ;;  %523 = vmatmul.f32.gmra.mxu1 %v3251_v15  ;;  %v2588_v14 = vld [vmem:[%s4312_s1 + $0x100] sm:$0xff]  ;;  %v316_v50 = vld [vmem:[%s3123_s18 + $0x170] sm:$0xff] }
  0x4d   : > { %571 = vmatmul.f32.gmra.mxu3 %v305_v16  ;;  %1057 = vmatpush.msrb.mxu0 %v2688_v52  ;;  %v2636_v16 = vld [vmem:[%s4312_s1 + $0x180] sm:$0xff]  ;;  %v2890_v52 = vld [vmem:[%s4312_s1 + $0x470] sm:$0xff] }
  0x4e   : > { %864 = vmatpush.msrb.mxu3 %v2639_v51  ;;  %670 = vmatpush.msrb.mxu2 %v2590_v58  ;;  %v3486_v51 = vld [vmem:[%s3123_s18 + $0xb1] sm:$0xff]  ;;  %v2700_v58 = vld [vmem:[%s3123_s18 + $0x1a] sm:$0xff] }
  0x4f   : > { %410 = vmatmul.f32.gmra.mxu0 %v3256_v17  ;;  %1252 = vmatpush.msrb.mxu1 %v2735_v61  ;;  %v2841_v61 = vld [vmem:[%s4312_s1 + $0x3e8] sm:$0xff] }
  0x50   : > { %865 = vmatpush.msrb.mxu3 %v2638_v59  ;;  %1058 = vmatpush.msrb.mxu0 %v2687_v60  ;;  %v2793_v60 = vld [vmem:[%s4312_s1 + $0x368] sm:$0xff] }
  0x51   : > { %671 = vmatpush.msrb.mxu2 %v2589_v4  ;;  %1253 = vmatpush.msrb.mxu1 %v2734_v8 }
  0x52   : > { %866 = vmatpush.msrb.mxu3 %v2637_v5  ;;  %1059 = vmatpush.msrb.mxu0 %v2686_v6  ;;  %v2701_v6 = vld [vmem:[%s3123_s18 + $0x22] sm:$0xff] }
  0x53   : > { %672 = vmatpush.msrb.mxu2 %v2588_v14  ;;  %1254 = vmatpush.msrb.mxu1 %v2733_v19 }
  0x54   : > { %461 = vmatmul.f32.gmra.mxu2 %v354_v22  ;;  %526 = vmatmul.f32.gmra.mxu1 %v3273_v23  ;;  %v313_v22 = vld [vmem:[%s3123_s18 + $0x150] sm:$0xff] }
  0x55   : > { %574 = vmatmul.f32.gmra.mxu3 %v306_v24  ;;  %1060 = vmatpush.msrb.mxu0 %v2685_v18  ;;  %v2732_v24 = vld [vmem:[%s4312_s1 + $0x280] sm:$0xff] }
  0x56   : > { %867 = vmatpush.msrb.mxu3 %v2636_v16  ;;  %1255 = vmatpush.msrb.mxu1 %v2732_v24  ;;  %v2154_v16 = vld [vmem:[%s4313_s2 + $0x68] sm:$0xff] }
  0x57   : > { %413 = vmatmul.f32.gmra.mxu0 %v3278_v25  ;;  %1435 = vmatpush.msra.mxu2 %v2795_v27 }
  0x58   : > { %1061 = vmatpush.msrb.mxu0 %v2684_v28  ;;  %1629 = vmatpush.msra.mxu3 %v2843_v29  ;;  %v2703_v28 = vld [vmem:[%s3123_s18 + $0x3a] sm:$0xff] }
  0x59   : > { %1436 = vmatpush.msra.mxu2 %v2794_v44  ;;  %v2839_v44 = vld [vmem:[%s4312_s1 + $0x3d8] sm:$0xff] }
  0x5a   : > { %1823 = vmatpush.msra.mxu0 %v2891_v36  ;;  %1630 = vmatpush.msra.mxu3 %v2842_v45 }
  0x5b   : > { %1437 = vmatpush.msra.mxu2 %v2793_v60 }
  0x5c   : > { %464 = vmatmul.f32.gmra.mxu2 %v355_v30  ;;  %529 = vmatmul.f32.gmra.mxu1 %v3295_v31  ;;  %v362_v30 = vld [vmem:[%s3123_s18 + $0x159] sm:$0xff] }
  0x5d   : > { %577 = vmatmul.f32.gmra.mxu3 %v307_v32  ;;  %v3449_v32 = vld [vmem:[%s3123_s18 + $0x98] sm:$0xff]  ;;  %1824 = vmatpush.msra.mxu0 %v2890_v52 }
  0x5e   : > { %1631 = vmatpush.msra.mxu3 %v2841_v61  ;;  %v2705_v52 = vld [vmem:[%s3123_s18 + $0x52] sm:$0xff] }
  0x5f   : > { %416 = vmatmul.f32.gmra.mxu0 %v3300_v33  ;;  %v2152_v61 = vld [vmem:[%s4313_s2 + $0x58] sm:$0xff] }
  0x64   : > { %467 = vmatmul.f32.gmra.mxu2 %v356_v38  ;;  %532 = vmatmul.f32.gmra.mxu1 %v3317_v39  ;;  %v2156_v38 = vld [vmem:[%s4313_s2 + $0x78] sm:$0xff] }
  0x65   : > { %580 = vmatmul.f32.gmra.mxu3 %v308_v40  ;;  %v3465_v40 = vld [vmem:[%s3123_s18 + $0xa8] sm:$0xff]  ;;  %2157 = vmatpush.msra.mxu1 %v2156_v38 }
  0x67   : > { %419 = vmatmul.f32.gmra.mxu0 %v3322_v41 }
  0x6c   : > { %470 = vmatmul.f32.gmra.mxu2 %v357_v46  ;;  %535 = vmatmul.f32.gmra.mxu1 %v3339_v47  ;;  %v364_v46 = vld [vmem:[%s3123_s18 + $0x171] sm:$0xff] }
  0x6d   : > { %583 = vmatmul.f32.gmra.mxu3 %v309_v48  ;;  %v3481_v48 = vld [vmem:[%s3123_s18 + $0xb0] sm:$0xff] }
  0x6f   : > { %422 = vmatmul.f32.gmra.mxu0 %v3344_v49 }
  0x74   : > { %473 = vmatmul.f32.gmra.mxu2 %v358_v54  ;;  %538 = vmatmul.f32.gmra.mxu1 %v3361_v55  ;;  %v2155_v54 = vld [vmem:[%s4313_s2 + $0x70] sm:$0xff] }
  0x75   : > { %586 = vmatmul.f32.gmra.mxu3 %v310_v56  ;;  %2158 = vmatpush.msra.mxu1 %v2155_v54  ;;  %v2887_v54 = vld [vmem:[%s4312_s1 + $0x458] sm:$0xff] }
  0x77   : > { %425 = vmatmul.f32.gmra.mxu0 %v3366_v57  ;;  %2159 = vmatpush.msra.mxu1 %v2154_v16 }
  0x7c   : > { %476 = vmatmul.f32.gmra.mxu2 %v359_v62  ;;  %541 = vmatmul.f32.gmra.mxu1 %v3383_v0 }
  0x7d   : > { %589 = vmatmul.f32.gmra.mxu3 %v311_v2 }
  0x7f   : > { %428 = vmatmul.f32.gmra.mxu0 %v3388_v3 }
  0x84   : > { %479 = vmatmul.f32.gmra.mxu2 %v360_v10  ;;  %544 = vmatmul.f32.gmra.mxu1 %v3405_v11  ;;  %v2889_v10 = vld [vmem:[%s4312_s1 + $0x468] sm:$0xff] }
  0x85   : > { %592 = vmatmul.f32.gmra.mxu3 %v312_v12  ;;  %1825 = vmatpush.msra.mxu0 %v2889_v10 }
  0x87   : > { %431 = vmatmul.f32.gmra.mxu0 %v3410_v13 }
  0x8c   : > { %482 = vmatmul.f32.gmra.mxu2 %v361_v20  ;;  %547 = vmatmul.f32.gmra.mxu1 %v3427_v21  ;;  %v2840_v20 = vld [vmem:[%s4312_s1 + $0x3e0] sm:$0xff] }
  0x8d   : > { %595 = vmatmul.f32.gmra.mxu3 %v313_v22 }
  0x8e   : > { %1632 = vmatpush.msra.mxu3 %v2840_v20 }
  0x8f   : > { %434 = vmatmul.f32.gmra.mxu0 %v3435_v26 }
  0x90   : > { %1633 = vmatpush.msra.mxu3 %v2839_v44  ;;  %v2885_v44 = vld [vmem:[%s4312_s1 + $0x448] sm:$0xff] }
  0x94   : > { %485 = vmatmul.f32.gmra.mxu2 %v362_v30  ;;  %550 = vmatmul.f32.gmra.mxu1 %v3449_v32  ;;  %v2888_v30 = vld [vmem:[%s4312_s1 + $0x460] sm:$0xff] }
  0x95   : > { %598 = vmatmul.f32.gmra.mxu3 %v314_v34  ;;  %1826 = vmatpush.msra.mxu0 %v2888_v30  ;;  %v2837_v30 = vld [vmem:[%s4312_s1 + $0x3c8] sm:$0xff] }
  0x97   : > { %437 = vmatmul.f32.gmra.mxu0 %v3454_v35 }
  0x98   : > { %1827 = vmatpush.msra.mxu0 %v2887_v54 }
  0x9c   : > { %488 = vmatmul.f32.gmra.mxu2 %v363_v37  ;;  %553 = vmatmul.f32.gmra.mxu1 %v3465_v40  ;;  %v2153_v37 = vld [vmem:[%s4313_s2 + $0x60] sm:$0xff] }
  0x9d   : > { %601 = vmatmul.f32.gmra.mxu3 %v315_v42  ;;  %2160 = vmatpush.msra.mxu1 %v2153_v37 }
  0x9f   : > { %440 = vmatmul.f32.gmra.mxu0 %v3470_v43  ;;  %2161 = vmatpush.msra.mxu1 %v2152_v61 }
  0xa4   : > { %491 = vmatmul.f32.gmra.mxu2 %v364_v46  ;;  %556 = vmatmul.f32.gmra.mxu1 %v3481_v48 }
  0xa5   : > { %604 = vmatmul.f32.gmra.mxu3 %v316_v50 }
  0xa7   : > { %443 = vmatmul.f32.gmra.mxu0 %v3486_v51 }
  0xa9   : > { %v3496_v56 = vpop.f32.mrf.mxu1 }
  0xac   : > { %673 = vmatmul.f32.vlgmr.msrb.gmra.mxu2 %v608_v53  ;;  %1256 = vmatmul.f32.vlgmr.msrb.gmra.mxu1 %v2700_v58  ;;  %v3500_v59 = vpop.f32.mrf.mxu0 }
  0xad   : > { %868 = vmatmul.f32.vlgmr.msrb.gmra.mxu3 %v3207_v63  ;;  %v609_v63 = vld [vmem:[%s3123_s18 + $0xa] sm:$0xff] }
  0xaf   : > { %v447_v62 = vpop.f32.mrf.mxu2  ;;  %1062 = vmatmul.f32.vlgmr.msrb.gmra.mxu0 %v3212_v1 }
  0xb0   : > { %v560_v2 = vpop.f32.mrf.mxu3 }
  0xb1   : > { %v3509_v4 = vadd.f32 %v560_v2, %v447_v62  ;;  %v3512_v5 = vpop.f32.mrf.mxu1 }
  0xb4   : > { %676 = vmatmul.f32.gmra.mxu2 %v609_v63  ;;  %1259 = vmatmul.f32.gmra.mxu1 %v2701_v6  ;;  %v3516_v8 = vpop.f32.mrf.mxu0  ;;  %v2838_v63 = vld [vmem:[%s4312_s1 + $0x3d0] sm:$0xff] }
  0xb5   : > { %871 = vmatmul.f32.gmra.mxu3 %v3229_v7  ;;  %v2702_v7 = vld [vmem:[%s3123_s18 + $0x32] sm:$0xff] }
  0xb6   : > { %1634 = vmatpush.msra.mxu3 %v2838_v63  ;;  %v2711_v63 = vld [vmem:[%s3123_s18 + $0x9a] sm:$0xff] }
  0xb7   : > { %v450_v12 = vpop.f32.mrf.mxu2  ;;  %1065 = vmatmul.f32.gmra.mxu0 %v3234_v9  ;;  %v2792_v9 = vld [vmem:[%s4312_s1 + $0x360] sm:$0xff] }
  0xb8   : > { %v563_v1 = vpop.f32.mrf.mxu3  ;;  %1438 = vmatpush.msra.mxu2 %v2792_v9  ;;  %1635 = vmatpush.msra.mxu3 %v2837_v30 }
  0xb9   : > { %v3522_v14 = vadd.f32 %v563_v1, %v450_v12  ;;  %v3527_v18 = vpop.f32.mrf.mxu1  ;;  %v2707_v1 = vld [vmem:[%s3123_s18 + $0x6a] sm:$0xff] }
  0xbc   : > { %679 = vmatmul.f32.gmra.mxu2 %v2700_v58  ;;  %1262 = vmatmul.f32.gmra.mxu1 %v2702_v7  ;;  %v3531_v19 = vpop.f32.mrf.mxu0 }
  0xbd   : > { %874 = vmatmul.f32.gmra.mxu3 %v3251_v15 }
  0xbf   : > { %v453_v22 = vpop.f32.mrf.mxu2  ;;  %1068 = vmatmul.f32.gmra.mxu0 %v3256_v17 }
  0xc0   : > { %v566_v24 = vpop.f32.mrf.mxu3 }
  0xc1   : > { %v3540_v27 = vadd.f32 %v566_v24, %v453_v22  ;;  %v3542_v15 = vpop.f32.mrf.mxu1  ;;  %v2151_v22 = vld [vmem:[%s4313_s2 + $0x50] sm:$0xff] }
  0xc2   : > { %2162 = vmatpush.msra.mxu1 %v2151_v22 }
  0xc4   : > { %682 = vmatmul.f32.gmra.mxu2 %v2701_v6  ;;  %1265 = vmatmul.f32.gmra.mxu1 %v2703_v28  ;;  %v3546_v29 = vpop.f32.mrf.mxu0 }
  0xc5   : > { %877 = vmatmul.f32.gmra.mxu3 %v3273_v23  ;;  %v2704_v23 = vld [vmem:[%s3123_s18 + $0x4a] sm:$0xff] }
  0xc7   : > { %v456_v34 = vpop.f32.mrf.mxu2  ;;  %1071 = vmatmul.f32.gmra.mxu0 %v3278_v25  ;;  %v2791_v25 = vld [vmem:[%s4312_s1 + $0x358] sm:$0xff] }
  0xc8   : > { %v569_v36 = vpop.f32.mrf.mxu3  ;;  %1439 = vmatpush.msra.mxu2 %v2791_v25 }
  0xc9   : > { %v3552_v17 = vadd.f32 %v569_v36, %v456_v34  ;;  %v3557_v38 = vpop.f32.mrf.mxu1 }
  0xcc   : > { %685 = vmatmul.f32.gmra.mxu2 %v2702_v7  ;;  %1268 = vmatmul.f32.gmra.mxu1 %v2704_v23  ;;  %v3561_v42 = vpop.f32.mrf.mxu0  ;;  %v2886_v7 = vld [vmem:[%s4312_s1 + $0x450] sm:$0xff] }
  0xcd   : > { %880 = vmatmul.f32.gmra.mxu3 %v3295_v31  ;;  %1828 = vmatpush.msra.mxu0 %v2886_v7 }
  0xcf   : > { %v459_v45 = vpop.f32.mrf.mxu2  ;;  %1074 = vmatmul.f32.gmra.mxu0 %v3300_v33 }
  0xd0   : > { %v572_v46 = vpop.f32.mrf.mxu3  ;;  %1829 = vmatpush.msra.mxu0 %v2885_v44  ;;  %v2883_v44 = vld [vmem:[%s4312_s1 + $0x438] sm:$0xff] }
  0xd1   : > { %v3570_v50 = vadd.f32 %v572_v46, %v459_v45  ;;  %v3572_v31 = vpop.f32.mrf.mxu1 }
  0xd4   : > { %688 = vmatmul.f32.gmra.mxu2 %v2703_v28  ;;  %1271 = vmatmul.f32.gmra.mxu1 %v2705_v52  ;;  %v3576_v53 = vpop.f32.mrf.mxu0 }
  0xd5   : > { %883 = vmatmul.f32.gmra.mxu3 %v3317_v39  ;;  %v2706_v39 = vld [vmem:[%s3123_s18 + $0x62] sm:$0xff] }
  0xd7   : > { %v462_v58 = vpop.f32.mrf.mxu2  ;;  %1077 = vmatmul.f32.gmra.mxu0 %v3322_v41  ;;  %v2790_v41 = vld [vmem:[%s4312_s1 + $0x350] sm:$0xff] }
  0xd8   : > { %v575_v60 = vpop.f32.mrf.mxu3  ;;  %1440 = vmatpush.msra.mxu2 %v2790_v41 }
  0xd9   : > { %v3582_v33 = vadd.f32 %v575_v60, %v462_v58  ;;  %v3587_v62 = vpop.f32.mrf.mxu1  ;;  %v2836_v60 = vld [vmem:[%s4312_s1 + $0x3c0] sm:$0xff] }
  0xda   : > { %1636 = vmatpush.msra.mxu3 %v2836_v60 }
  0xdc   : > { %691 = vmatmul.f32.gmra.mxu2 %v2704_v23  ;;  %1274 = vmatmul.f32.gmra.mxu1 %v2706_v39  ;;  %v3591_v2 = vpop.f32.mrf.mxu0  ;;  %v2709_v23 = vld [vmem:[%s3123_s18 + $0x82] sm:$0xff] }
  0xdd   : > { %886 = vmatmul.f32.gmra.mxu3 %v3339_v47 }
  0xdf   : > { %v465_v6 = vpop.f32.mrf.mxu2  ;;  %1080 = vmatmul.f32.gmra.mxu0 %v3344_v49 }
  0xe0   : > { %v578_v10 = vpop.f32.mrf.mxu3 }
  0xe1   : > { %v3600_v12 = vadd.f32 %v578_v10, %v465_v6  ;;  %v3602_v47 = vpop.f32.mrf.mxu1  ;;  %v2884_v10 = vld [vmem:[%s4312_s1 + $0x440] sm:$0xff] }
  0xe2   : > { %1830 = vmatpush.msra.mxu0 %v2884_v10 }
  0xe4   : > { %694 = vmatmul.f32.gmra.mxu2 %v2705_v52  ;;  %1277 = vmatmul.f32.gmra.mxu1 %v2707_v1  ;;  %v3606_v16 = vpop.f32.mrf.mxu0  ;;  %v2150_v52 = vld [vmem:[%s4313_s2 + $0x48] sm:$0xff] }
  0xe5   : > { %889 = vmatmul.f32.gmra.mxu3 %v3361_v55  ;;  %v2708_v55 = vld [vmem:[%s3123_s18 + $0x7a] sm:$0xff]  ;;  %2163 = vmatpush.msra.mxu1 %v2150_v52 }
  0xe6   : > { %1831 = vmatpush.msra.mxu0 %v2883_v44 }
  0xe7   : > { %v468_v9 = vpop.f32.mrf.mxu2  ;;  %1083 = vmatmul.f32.gmra.mxu0 %v3366_v57  ;;  %v2789_v57 = vld [vmem:[%s4312_s1 + $0x348] sm:$0xff] }
  0xe8   : > { %v581_v20 = vpop.f32.mrf.mxu3  ;;  %1441 = vmatpush.msra.mxu2 %v2789_v57 }
  0xe9   : > { %v3612_v49 = vadd.f32 %v581_v20, %v468_v9  ;;  %v3617_v24 = vpop.f32.mrf.mxu1  ;;  %v2149_v9 = vld [vmem:[%s4313_s2 + $0x40] sm:$0xff] }
  0xea   : > { %2164 = vmatpush.msra.mxu1 %v2149_v9  ;;  %v2715_v9 = vld [vmem:[%s3123_s18 + $0xca] sm:$0xff] }
  0xec   : > { %697 = vmatmul.f32.gmra.mxu2 %v2706_v39  ;;  %1280 = vmatmul.f32.gmra.mxu1 %v2708_v55  ;;  %v3621_v28 = vpop.f32.mrf.mxu0 }
  0xed   : > { %892 = vmatmul.f32.gmra.mxu3 %v3383_v0 }
  0xef   : > { %v471_v34 = vpop.f32.mrf.mxu2  ;;  %1086 = vmatmul.f32.gmra.mxu0 %v3388_v3 }
  0xf0   : > { %v584_v36 = vpop.f32.mrf.mxu3 }
  0xf1   : > { %v3630_v37 = vadd.f32 %v584_v36, %v471_v34  ;;  %v3632_v0 = vpop.f32.mrf.mxu1  ;;  %v2713_v36 = vld [vmem:[%s3123_s18 + $0xb2] sm:$0xff] }
  0xf4   : > { %700 = vmatmul.f32.gmra.mxu2 %v2707_v1  ;;  %1283 = vmatmul.f32.gmra.mxu1 %v2709_v23  ;;  %v3636_v25 = vpop.f32.mrf.mxu0 }
  0xf5   : > { %895 = vmatmul.f32.gmra.mxu3 %v3405_v11  ;;  %v2710_v11 = vld [vmem:[%s3123_s18 + $0x92] sm:$0xff] }
  0xf7   : > { %v474_v45 = vpop.f32.mrf.mxu2  ;;  %1089 = vmatmul.f32.gmra.mxu0 %v3410_v13  ;;  %v2788_v13 = vld [vmem:[%s4312_s1 + $0x340] sm:$0xff] }
  0xf8   : > { %v587_v46 = vpop.f32.mrf.mxu3  ;;  %1442 = vmatpush.msra.mxu2 %v2788_v13  ;;  %v2618_v13 = vld [vmem:[%s3123_s18 + $0xc0] sm:$0xff] }
  0xf9   : > { %v3642_v3 = vadd.f32 %v587_v46, %v474_v45  ;;  %v3647_v54 = vpop.f32.mrf.mxu1  ;;  %v2148_v46 = vld [vmem:[%s4313_s2 + $0x38] sm:$0xff] }
  0xfa   : > { %2165 = vmatpush.msra.mxu1 %v2148_v46  ;;  %v2716_v46 = vld [vmem:[%s3123_s18 + $0xda] sm:$0xff] }
  0xfc   : > { %703 = vmatmul.f32.gmra.mxu2 %v2708_v55  ;;  %1286 = vmatmul.f32.gmra.mxu1 %v2710_v11  ;;  %v3651_v58 = vpop.f32.mrf.mxu0  ;;  %v2835_v55 = vld [vmem:[%s4312_s1 + $0x3b8] sm:$0xff] }
  0xfd   : > { %898 = vmatmul.f32.gmra.mxu3 %v3427_v21 }
  0xfe   : > { %1637 = vmatpush.msra.mxu3 %v2835_v55  ;;  %v2667_v55 = vld [vmem:[%s3123_s18 + $0xc9] sm:$0xff] }
  0xff   : > { %v477_v61 = vpop.f32.mrf.mxu2  ;;  %1092 = vmatmul.f32.gmra.mxu0 %v3435_v26 }
 0x100   : > { %v590_v39 = vpop.f32.mrf.mxu3 }
 0x101   : > { %v3660_v41 = vadd.f32 %v590_v39, %v477_v61  ;;  %v3662_v21 = vpop.f32.mrf.mxu1  ;;  %v2666_v61 = vld [vmem:[%s3123_s18 + $0xc1] sm:$0xff]  ;;  %v2834_v39 = vld [vmem:[%s4312_s1 + $0x3b0] sm:$0xff] }
 0x102   : > { %1638 = vmatpush.msra.mxu3 %v2834_v39  ;;  %v2785_v39 = vld [vmem:[%s4312_s1 + $0x328] sm:$0xff] }
 0x104   : > { %706 = vmatmul.f32.gmra.mxu2 %v2709_v23  ;;  %1289 = vmatmul.f32.gmra.mxu1 %v2711_v63  ;;  %v3666_v6 = vpop.f32.mrf.mxu0 }
 0x105   : > { %901 = vmatmul.f32.gmra.mxu3 %v3449_v32  ;;  %v2712_v32 = vld [vmem:[%s3123_s18 + $0xaa] sm:$0xff] }
 0x107   : > { %v480_v1 = vpop.f32.mrf.mxu2  ;;  %1095 = vmatmul.f32.gmra.mxu0 %v3454_v35  ;;  %v2787_v35 = vld [vmem:[%s4312_s1 + $0x338] sm:$0xff] }
 0x108   : > { %v593_v7 = vpop.f32.mrf.mxu3  ;;  %1443 = vmatpush.msra.mxu2 %v2787_v35 }
 0x109   : > { %v3672_v26 = vadd.f32 %v593_v7, %v480_v1  ;;  %v3677_v20 = vpop.f32.mrf.mxu1 }
 0x10c   : > { %709 = vmatmul.f32.gmra.mxu2 %v2710_v11  ;;  %1292 = vmatmul.f32.gmra.mxu1 %v2712_v32  ;;  %v3681_v22 = vpop.f32.mrf.mxu0  ;;  %v2714_v11 = vld [vmem:[%s3123_s18 + $0xc2] sm:$0xff] }
 0x10d   : > { %904 = vmatmul.f32.gmra.mxu3 %v3465_v40 }
 0x10f   : > { %v483_v57 = vpop.f32.mrf.mxu2  ;;  %1098 = vmatmul.f32.gmra.mxu0 %v3470_v43 }
 0x110   : > { %v596_v30 = vpop.f32.mrf.mxu3 }
 0x111   : > { %v3690_v34 = vadd.f32 %v596_v30, %v483_v57  ;;  %v3692_v40 = vpop.f32.mrf.mxu1  ;;  %v2882_v57 = vld [vmem:[%s4312_s1 + $0x430] sm:$0xff] }
 0x112   : > { %1832 = vmatpush.msra.mxu0 %v2882_v57 }
 0x114   : > { %712 = vmatmul.f32.gmra.mxu2 %v2711_v63  ;;  %1295 = vmatmul.f32.gmra.mxu1 %v2713_v36  ;;  %v3696_v23 = vpop.f32.mrf.mxu0 }
 0x115   : > { %907 = vmatmul.f32.gmra.mxu3 %v3481_v48 }
 0x117   : > { %v486_v43 = vpop.f32.mrf.mxu2  ;;  %1101 = vmatmul.f32.gmra.mxu0 %v3486_v51  ;;  %v2786_v51 = vld [vmem:[%s4312_s1 + $0x330] sm:$0xff] }
 0x118   : > { %v599_v45 = vpop.f32.mrf.mxu3  ;;  %1444 = vmatpush.msra.mxu2 %v2786_v51  ;;  %v3740_v51 = vld [vmem:[%s3123_s18 + $0xd9] sm:$0xff] }
 0x119   : > { %v3705_v52 = vadd.f32 %v599_v45, %v486_v43  ;;  %v3707_v48 = vpop.f32.mrf.mxu1  ;;  %v2147_v43 = vld [vmem:[%s4313_s2 + $0x30] sm:$0xff] }
 0x11a   : > { %2166 = vmatpush.msra.mxu1 %v2147_v43  ;;  %1445 = vmatpush.msra.mxu2 %v2785_v39  ;;  %v3753_v43 = vld [vmem:[%s3123_s18 + $0xe0] sm:$0xff]  ;;  %v2881_v39 = vld [vmem:[%s4312_s1 + $0x428] sm:$0xff] }
 0x11b   : > { %4321 = vst [vmem:[#allocation3_spill] sm:$0xff] %v3753_v43  ;;  %1833 = vmatpush.msra.mxu0 %v2881_v39  ;;  %v519_v39 = vadd.f32 %v3527_v18, %v3531_v19 }
 0x11c   : > { %715 = vmatmul.f32.gmra.mxu2 %v2712_v32  ;;  %1298 = vmatmul.f32.gmra.mxu1 %v2714_v11  ;;  %v3711_v60 = vpop.f32.mrf.mxu0  ;;  %v2619_v32 = vld [vmem:[%s3123_s18 + $0xc8] sm:$0xff] }
 0x11d   : > { %910 = vmatmul.f32.gmra.mxu3 %v2618_v13  ;;  %v2620_v13 = vld [vmem:[%s3123_s18 + $0xd8] sm:$0xff] }
 0x11f   : > { %v489_v63 = vpop.f32.mrf.mxu2  ;;  %1104 = vmatmul.f32.gmra.mxu0 %v2666_v61 }
 0x120   : > { %v602_v10 = vpop.f32.mrf.mxu3 }
 0x121   : > { %v3720_v1 = vadd.f32 %v602_v10, %v489_v63  ;;  %v3722_v7 = vpop.f32.mrf.mxu1  ;;  %v513_v63 = vadd.f32 %v3496_v56, %v3500_v59  ;;  %v3757_v59 = vld [vmem:[%s3123_s18 + $0xe1] sm:$0xff] }
 0x124   : > { %718 = vmatmul.f32.gmra.mxu2 %v2713_v36  ;;  %1301 = vmatmul.f32.gmra.mxu1 %v2715_v9  ;;  %v3726_v35 = vpop.f32.mrf.mxu0 }
 0x125   : > { %913 = vmatmul.f32.gmra.mxu3 %v2619_v32 }
 0x127   : > { %v492_v30 = vpop.f32.mrf.mxu2  ;;  %1107 = vmatmul.f32.gmra.mxu0 %v2667_v55 }
 0x128   : > { %v605_v44 = vpop.f32.mrf.mxu3 }
 0x129   : > { %v3735_v45 = vadd.f32 %v605_v44, %v492_v30  ;;  %v1257_v36 = vpop.f32.mrf.mxu1  ;;  %v2717_v44 = vld [vmem:[%s3123_s18 + $0xe2] sm:$0xff] }
 0x12b   : > { %4320 = vst [vmem:[#allocation2_spill] sm:$0xff] %v3735_v45  ;;  %v2718_v45 = vld [vmem:[%s3123_s18 + $0xf2] sm:$0xff] }
 0x12c   : > { %721 = vmatmul.f32.gmra.mxu2 %v2714_v11  ;;  %1304 = vmatmul.f32.gmra.mxu1 %v2716_v46  ;;  %v1063_v61 = vpop.f32.mrf.mxu0  ;;  %v2833_v11 = vld [vmem:[%s4312_s1 + $0x3a8] sm:$0xff] }
 0x12d   : > { %916 = vmatmul.f32.gmra.mxu3 %v2620_v13 }
 0x12e   : > { %1639 = vmatpush.msra.mxu3 %v2833_v11 }
 0x12f   : > { %v674_v10 = vpop.f32.mrf.mxu2  ;;  %1110 = vmatmul.f32.gmra.mxu0 %v3740_v51 }
 0x130   : > { %v770_v32 = vadd.f32 %v674_v10, %v513_v63  ;;  %v869_v55 = vpop.f32.mrf.mxu3  ;;  %v516_v63 = vadd.f32 %v3512_v5, %v3516_v8 }
 0x131   : > { %v1260_v30 = vpop.f32.mrf.mxu1 }
 0x132   : > { %v965_v57 = vadd.f32 %v869_v55, %v770_v32  ;;  %v2146_v32 = vld [vmem:[%s4313_s2 + $0x28] sm:$0xff] }
 0x133   : > { %2167 = vmatpush.msra.mxu1 %v2146_v32 }
 0x134   : > { %v1159_v13 = vadd.f32 %v1063_v61, %v965_v57  ;;  %724 = vmatmul.f32.gmra.mxu2 %v2715_v9  ;;  %1307 = vmatmul.f32.gmra.mxu1 %v2717_v44  ;;  %v1066_v56 = vpop.f32.mrf.mxu0 }
 0x135   : > { %919 = vmatmul.f32.gmra.mxu3 %v3753_v43  ;;  %v3772_v43 = vld [vmem:[%s3123_s18 + $0xf0] sm:$0xff] }
 0x136   : > { %v3764_v11 = vadd.f32 %v1257_v36, %v1159_v13  ;;  %v3776_v36 = vld [vmem:[%s3123_s18 + $0xf1] sm:$0xff]  ;;  %v2784_v13 = vld [vmem:[%s4312_s1 + $0x320] sm:$0xff] }
 0x137   : > { %v677_v9 = vpop.f32.mrf.mxu2  ;;  %1113 = vmatmul.f32.gmra.mxu0 %v3757_v59  ;;  %1446 = vmatpush.msra.mxu2 %v2784_v13  ;;  %v522_v13 = vadd.f32 %v3542_v15, %v3546_v29  ;;  %v3811_v29 = vld [vmem:[%s3123_s18 + $0x109] sm:$0xff] }
 0x138   : > { %4322 = vst [vmem:[#allocation4_spill] sm:$0xff] %v3764_v11  ;;  %v771_v61 = vadd.f32 %v677_v9, %v516_v63  ;;  %v872_v10 = vpop.f32.mrf.mxu3  ;;  %v3791_v11 = vld [vmem:[%s3123_s18 + $0xf8] sm:$0xff] }
 0x139   : > { %v1263_v57 = vpop.f32.mrf.mxu1  ;;  %4324 = vst [vmem:[#allocation6_spill] sm:$0xff] %v3791_v11 }
 0x13a   : > { %v966_v55 = vadd.f32 %v872_v10, %v771_v61 }
 0x13c   : > { %v1160_v5 = vadd.f32 %v1066_v56, %v966_v55  ;;  %727 = vmatmul.f32.gmra.mxu2 %v2716_v46  ;;  %1310 = vmatmul.f32.gmra.mxu1 %v2718_v45  ;;  %v1069_v8 = vpop.f32.mrf.mxu0  ;;  %v2832_v46 = vld [vmem:[%s4312_s1 + $0x3a0] sm:$0xff] }
 0x13d   : > { %922 = vmatmul.f32.gmra.mxu3 %v3772_v43  ;;  %v2719_v55 = vld [vmem:[%s3123_s18 + $0xfa] sm:$0xff] }
 0x13e   : > { %v3786_v56 = vadd.f32 %v1260_v30, %v1160_v5  ;;  %1640 = vmatpush.msra.mxu3 %v2832_v46  ;;  %v3795_v30 = vld [vmem:[%s3123_s18 + $0xf9] sm:$0xff] }
 0x13f   : > { %v680_v63 = vpop.f32.mrf.mxu2  ;;  %1116 = vmatmul.f32.gmra.mxu0 %v3776_v36  ;;  %v2880_v5 = vld [vmem:[%s4312_s1 + $0x420] sm:$0xff] }
 0x140   : > { %4323 = vst [vmem:[#allocation5_spill] sm:$0xff] %v3786_v56  ;;  %v772_v9 = vadd.f32 %v680_v63, %v519_v39  ;;  %v875_v61 = vpop.f32.mrf.mxu3  ;;  %1834 = vmatpush.msra.mxu0 %v2880_v5  ;;  %v2145_v63 = vld [vmem:[%s4313_s2 + $0x20] sm:$0xff]  ;;  %v2624_v56 = vld [vmem:[%s3123_s18 + $0x108] sm:$0xff] }
 0x141   : > { %v1266_v32 = vpop.f32.mrf.mxu1  ;;  %2168 = vmatpush.msra.mxu1 %v2145_v63  ;;  %v2625_v63 = vld [vmem:[%s3123_s18 + $0x110] sm:$0xff] }
 0x142   : > { %v967_v10 = vadd.f32 %v875_v61, %v772_v9 }
 0x144   : > { %v1161_v18 = vadd.f32 %v1069_v8, %v967_v10  ;;  %730 = vmatmul.f32.gmra.mxu2 %v2717_v44  ;;  %1313 = vmatmul.f32.gmra.mxu1 %v2719_v55  ;;  %v1072_v19 = vpop.f32.mrf.mxu0  ;;  %v2720_v10 = vld [vmem:[%s3123_s18 + $0x10a] sm:$0xff] }
 0x145   : > { %925 = vmatmul.f32.gmra.mxu3 %v3791_v11 }
 0x146   : > { %v3802_v39 = vadd.f32 %v1263_v57, %v1161_v18  ;;  %v2783_v57 = vld [vmem:[%s4312_s1 + $0x318] sm:$0xff]  ;;  %v525_v18 = vadd.f32 %v3557_v38, %v3561_v42 }
 0x147   : > { %v683_v44 = vpop.f32.mrf.mxu2  ;;  %1119 = vmatmul.f32.gmra.mxu0 %v3795_v30  ;;  %1447 = vmatpush.msra.mxu2 %v2783_v57  ;;  %v3827_v42 = vld [vmem:[%s3123_s18 + $0x111] sm:$0xff] }
 0x148   : > { %v773_v8 = vadd.f32 %v683_v44, %v522_v13  ;;  %v878_v46 = vpop.f32.mrf.mxu3 }
 0x149   : > { %v1269_v61 = vpop.f32.mrf.mxu1 }
 0x14a   : > { %v968_v9 = vadd.f32 %v878_v46, %v773_v8  ;;  %v2721_v46 = vld [vmem:[%s3123_s18 + $0x112] sm:$0xff] }
 0x14c   : > { %v1162_v11 = vadd.f32 %v1072_v19, %v968_v9  ;;  %733 = vmatmul.f32.gmra.mxu2 %v2718_v45  ;;  %1316 = vmatmul.f32.gmra.mxu1 %v2720_v10  ;;  %v1075_v15 = vpop.f32.mrf.mxu0  ;;  %v2831_v19 = vld [vmem:[%s4312_s1 + $0x398] sm:$0xff] }
 0x14d   : > { %928 = vmatmul.f32.gmra.mxu3 %v2624_v56 }
 0x14e   : > { %v3821_v45 = vadd.f32 %v1266_v32, %v1162_v11  ;;  %1641 = vmatpush.msra.mxu3 %v2831_v19  ;;  %v2879_v11 = vld [vmem:[%s4312_s1 + $0x418] sm:$0xff]  ;;  %v528_v32 = vadd.f32 %v3572_v31, %v3576_v53  ;;  %v3843_v53 = vld [vmem:[%s3123_s18 + $0x121] sm:$0xff] }
 0x14f   : > { %v686_v56 = vpop.f32.mrf.mxu2  ;;  %1122 = vmatmul.f32.gmra.mxu0 %v3811_v29  ;;  %v2144_v19 = vld [vmem:[%s4313_s2 + $0x18] sm:$0xff] }
 0x150   : > { %v774_v5 = vadd.f32 %v686_v56, %v525_v18  ;;  %v881_v13 = vpop.f32.mrf.mxu3  ;;  %1835 = vmatpush.msra.mxu0 %v2879_v11  ;;  %2169 = vmatpush.msra.mxu1 %v2144_v19  ;;  %v2723_v19 = vld [vmem:[%s3123_s18 + $0x12a] sm:$0xff] }
 0x151   : > { %v1272_v8 = vpop.f32.mrf.mxu1 }
 0x152   : > { %v969_v44 = vadd.f32 %v881_v13, %v774_v5  ;;  %v2722_v13 = vld [vmem:[%s3123_s18 + $0x122] sm:$0xff] }
 0x154   : > { %v1163_v9 = vadd.f32 %v1075_v15, %v969_v44  ;;  %736 = vmatmul.f32.gmra.mxu2 %v2719_v55  ;;  %1319 = vmatmul.f32.gmra.mxu1 %v2721_v46  ;;  %v1078_v38 = vpop.f32.mrf.mxu0  ;;  %v2626_v44 = vld [vmem:[%s3123_s18 + $0x120] sm:$0xff] }
 0x155   : > { %931 = vmatmul.f32.gmra.mxu3 %v2625_v63 }
 0x156   : > { %v3834_v57 = vadd.f32 %v1269_v61, %v1163_v9  ;;  %v2782_v61 = vld [vmem:[%s4312_s1 + $0x310] sm:$0xff]  ;;  %v531_v9 = vadd.f32 %v3587_v62, %v3591_v2 }
 0x157   : > { %v689_v15 = vpop.f32.mrf.mxu2  ;;  %1125 = vmatmul.f32.gmra.mxu0 %v3827_v42  ;;  %1448 = vmatpush.msra.mxu2 %v2782_v61  ;;  %v3859_v2 = vld [vmem:[%s3123_s18 + $0x129] sm:$0xff] }
 0x158   : > { %v775_v55 = vadd.f32 %v689_v15, %v528_v32  ;;  %v884_v18 = vpop.f32.mrf.mxu3 }
 0x159   : > { %v1275_v5 = vpop.f32.mrf.mxu1 }
 0x15a   : > { %v970_v56 = vadd.f32 %v884_v18, %v775_v55 }
 0x15c   : > { %v1164_v63 = vadd.f32 %v1078_v38, %v970_v56  ;;  %739 = vmatmul.f32.gmra.mxu2 %v2720_v10  ;;  %1322 = vmatmul.f32.gmra.mxu1 %v2722_v13  ;;  %v1081_v31 = vpop.f32.mrf.mxu0  ;;  %v2830_v38 = vld [vmem:[%s4312_s1 + $0x390] sm:$0xff]  ;;  %v2627_v56 = vld [vmem:[%s3123_s18 + $0x128] sm:$0xff] }
 0x15d   : > { %934 = vmatmul.f32.gmra.mxu3 %v2626_v44 }
 0x15e   : > { %v3853_v10 = vadd.f32 %v1272_v8, %v1164_v63  ;;  %1642 = vmatpush.msra.mxu3 %v2830_v38  ;;  %v2878_v8 = vld [vmem:[%s4312_s1 + $0x410] sm:$0xff]  ;;  %v534_v63 = vadd.f32 %v3602_v47, %v3606_v16  ;;  %v2676_v16 = vld [vmem:[%s3123_s18 + $0x139] sm:$0xff] }
 0x15f   : > { %v692_v11 = vpop.f32.mrf.mxu2  ;;  %1128 = vmatmul.f32.gmra.mxu0 %v3843_v53  ;;  %v2143_v38 = vld [vmem:[%s4313_s2 + $0x10] sm:$0xff] }
 0x160   : > { %v776_v32 = vadd.f32 %v692_v11, %v531_v9  ;;  %v887_v15 = vpop.f32.mrf.mxu3  ;;  %1836 = vmatpush.msra.mxu0 %v2878_v8  ;;  %2170 = vmatpush.msra.mxu1 %v2143_v38  ;;  %v2829_v8 = vld [vmem:[%s4312_s1 + $0x388] sm:$0xff] }
 0x161   : > { %v1278_v18 = vpop.f32.mrf.mxu1  ;;  %1643 = vmatpush.msra.mxu3 %v2829_v8  ;;  %v2725_v38 = vld [vmem:[%s3123_s18 + $0x142] sm:$0xff] }
 0x162   : > { %v971_v55 = vadd.f32 %v887_v15, %v776_v32  ;;  %v2724_v15 = vld [vmem:[%s3123_s18 + $0x13a] sm:$0xff] }
 0x164   : > { %v1165_v44 = vadd.f32 %v1081_v31, %v971_v55  ;;  %742 = vmatmul.f32.gmra.mxu2 %v2721_v46  ;;  %1325 = vmatmul.f32.gmra.mxu1 %v2723_v19  ;;  %v1084_v62 = vpop.f32.mrf.mxu0  ;;  %v2628_v55 = vld [vmem:[%s3123_s18 + $0x138] sm:$0xff] }
 0x165   : > { %937 = vmatmul.f32.gmra.mxu3 %v2627_v56 }
 0x166   : > { %v3866_v61 = vadd.f32 %v1275_v5, %v1165_v44  ;;  %v2781_v5 = vld [vmem:[%s4312_s1 + $0x308] sm:$0xff]  ;;  %v537_v44 = vadd.f32 %v3617_v24, %v3621_v28 }
 0x167   : > { %v695_v31 = vpop.f32.mrf.mxu2  ;;  %1131 = vmatmul.f32.gmra.mxu0 %v3859_v2  ;;  %1449 = vmatpush.msra.mxu2 %v2781_v5  ;;  %v2677_v28 = vld [vmem:[%s3123_s18 + $0x141] sm:$0xff] }
 0x168   : > { %v777_v46 = vadd.f32 %v695_v31, %v534_v63  ;;  %v890_v9 = vpop.f32.mrf.mxu3 }
 0x169   : > { %v1281_v32 = vpop.f32.mrf.mxu1 }
 0x16a   : > { %v972_v11 = vadd.f32 %v890_v9, %v777_v46 }
 0x16c   : > { %v1166_v56 = vadd.f32 %v1084_v62, %v972_v11  ;;  %745 = vmatmul.f32.gmra.mxu2 %v2722_v13  ;;  %1328 = vmatmul.f32.gmra.mxu1 %v2724_v15  ;;  %v1087_v47 = vpop.f32.mrf.mxu0  ;;  %v2629_v11 = vld [vmem:[%s3123_s18 + $0x140] sm:$0xff] }
 0x16d   : > { %940 = vmatmul.f32.gmra.mxu3 %v2628_v55 }
 0x16e   : > { %v3883_v13 = vadd.f32 %v1278_v18, %v1166_v56  ;;  %v2877_v18 = vld [vmem:[%s4312_s1 + $0x408] sm:$0xff]  ;;  %v540_v56 = vadd.f32 %v3632_v0, %v3636_v25  ;;  %v2678_v25 = vld [vmem:[%s3123_s18 + $0x151] sm:$0xff] }
 0x16f   : > { %v698_v62 = vpop.f32.mrf.mxu2  ;;  %1134 = vmatmul.f32.gmra.mxu0 %v2676_v16 }
 0x170   : > { %v778_v63 = vadd.f32 %v698_v62, %v537_v44  ;;  %v893_v31 = vpop.f32.mrf.mxu3  ;;  %1837 = vmatpush.msra.mxu0 %v2877_v18  ;;  %v2142_v44 = vld [vmem:[%s4313_s2 + $0x8] sm:$0xff] }
 0x171   : > { %v1284_v9 = vpop.f32.mrf.mxu1  ;;  %2171 = vmatpush.msra.mxu1 %v2142_v44 }
 0x172   : > { %v973_v46 = vadd.f32 %v893_v31, %v778_v63  ;;  %v2726_v63 = vld [vmem:[%s3123_s18 + $0x152] sm:$0xff] }
 0x173   : > { %v2630_v31 = vld [vmem:[%s3123_s18 + $0x150] sm:$0xff] }
 0x174   : > { %v1167_v55 = vadd.f32 %v1087_v47, %v973_v46  ;;  %748 = vmatmul.f32.gmra.mxu2 %v2723_v19  ;;  %1331 = vmatmul.f32.gmra.mxu1 %v2725_v38  ;;  %v1090_v24 = vpop.f32.mrf.mxu0 }
 0x175   : > { %943 = vmatmul.f32.gmra.mxu3 %v2629_v11  ;;  %v543_v11 = vadd.f32 %v3647_v54, %v3651_v58  ;;  %v2679_v58 = vld [vmem:[%s3123_s18 + $0x159] sm:$0xff] }
 0x176   : > { %v3893_v16 = vadd.f32 %v1281_v32, %v1167_v55  ;;  %v2780_v32 = vld [vmem:[%s4312_s1 + $0x300] sm:$0xff] }
 0x177   : > { %v701_v5 = vpop.f32.mrf.mxu2  ;;  %1137 = vmatmul.f32.gmra.mxu0 %v2677_v28  ;;  %1450 = vmatpush.msra.mxu2 %v2780_v32  ;;  %v2828_v55 = vld [vmem:[%s4312_s1 + $0x380] sm:$0xff] }
 0x178   : > { %v779_v47 = vadd.f32 %v701_v5, %v540_v56  ;;  %v896_v19 = vpop.f32.mrf.mxu3  ;;  %1644 = vmatpush.msra.mxu3 %v2828_v55  ;;  %v2728_v55 = vld [vmem:[%s3123_s18 + $0x16a] sm:$0xff] }
 0x179   : > { %v1287_v62 = vpop.f32.mrf.mxu1 }
 0x17a   : > { %v974_v8 = vadd.f32 %v896_v19, %v779_v47  ;;  %v2727_v47 = vld [vmem:[%s3123_s18 + $0x15a] sm:$0xff] }
 0x17b   : > { %v2631_v19 = vld [vmem:[%s3123_s18 + $0x158] sm:$0xff] }
 0x17c   : > { %v1168_v46 = vadd.f32 %v1090_v24, %v974_v8  ;;  %751 = vmatmul.f32.gmra.mxu2 %v2724_v15  ;;  %1334 = vmatmul.f32.gmra.mxu1 %v2726_v63  ;;  %v1093_v0 = vpop.f32.mrf.mxu0  ;;  %v546_v8 = vadd.f32 %v3662_v21, %v3666_v6 }
 0x17d   : > { %946 = vmatmul.f32.gmra.mxu3 %v2630_v31 }
 0x17e   : > { %v3909_v15 = vadd.f32 %v1284_v9, %v1168_v46  ;;  %v2876_v9 = vld [vmem:[%s4312_s1 + $0x400] sm:$0xff] }
 0x17f   : > { %v704_v24 = vpop.f32.mrf.mxu2  ;;  %1140 = vmatmul.f32.gmra.mxu0 %v2678_v25  ;;  %v2141_v25 = vld [vmem:[%s4313_s2] sm:$0xff] }
 0x180   : > { %v780_v28 = vadd.f32 %v704_v24, %v543_v11  ;;  %v899_v18 = vpop.f32.mrf.mxu3  ;;  %1838 = vmatpush.msra.mxu0 %v2876_v9  ;;  %2172 = vmatpush.msra.mxu1 %v2141_v25  ;;  %v2632_v24 = vld [vmem:[%s3123_s18 + $0x168] sm:$0xff] }
 0x181   : > { %v1290_v5 = vpop.f32.mrf.mxu1 }
 0x182   : > { %v975_v56 = vadd.f32 %v899_v18, %v780_v28  ;;  %v549_v28 = vadd.f32 %v3677_v20, %v3681_v22  ;;  %v552_v20 = vadd.f32 %v3692_v40, %v3696_v23  ;;  %v555_v40 = vadd.f32 %v3707_v48, %v3711_v60 }
 0x183   : > { %v558_v48 = vadd.f32 %v3722_v7, %v3726_v35  ;;  %v2844_v35 = vld [vmem:[%s3123_s18 + $0x32] sm:$0xff] }
 0x184   : > { %v1169_v44 = vadd.f32 %v1093_v0, %v975_v56  ;;  %754 = vmatmul.f32.gmra.mxu2 %v2725_v38  ;;  %1337 = vmatmul.f32.gmra.mxu1 %v2727_v47  ;;  %v1096_v54 = vpop.f32.mrf.mxu0 }
 0x185   : > { %949 = vmatmul.f32.gmra.mxu3 %v2631_v19 }
 0x186   : > { %v3919_v31 = vadd.f32 %v1287_v62, %v1169_v44  ;;  %v2680_v62 = vld [vmem:[%s3123_s18 + $0x169] sm:$0xff] }
 0x187   : > { %v707_v46 = vpop.f32.mrf.mxu2  ;;  %1143 = vmatmul.f32.gmra.mxu0 %v2679_v58 }
 0x188   : > { %v781_v0 = vadd.f32 %v707_v46, %v546_v8  ;;  %v902_v38 = vpop.f32.mrf.mxu3  ;;  %v2729_v8 = vld [vmem:[%s3123_s18 + $0x172] sm:$0xff] }
 0x189   : > { %v1293_v11 = vpop.f32.mrf.mxu1 }
 0x18a   : > { %v976_v32 = vadd.f32 %v902_v38, %v781_v0  ;;  %v2681_v0 = vld [vmem:[%s3123_s18 + $0x171] sm:$0xff] }
 0x18c   : > { %v1170_v21 = vadd.f32 %v1096_v54, %v976_v32  ;;  %757 = vmatmul.f32.gmra.mxu2 %v2726_v63  ;;  %1340 = vmatmul.f32.gmra.mxu1 %v2728_v55  ;;  %v1099_v6 = vpop.f32.mrf.mxu0  ;;  %v2633_v54 = vld [vmem:[%s3123_s18 + $0x170] sm:$0xff] }
 0x18d   : > { %952 = vmatmul.f32.gmra.mxu3 %v2632_v24 }
 0x18e   : > { %v3929_v18 = vadd.f32 %v1290_v5, %v1170_v21  ;;  %v2730_v21 = vld [vmem:[%s3123_s18 + $0x182] sm:$0xff] }
 0x18f   : > { %v710_v56 = vpop.f32.mrf.mxu2  ;;  %1146 = vmatmul.f32.gmra.mxu0 %v2680_v62 }
 0x190   : > { %v782_v19 = vadd.f32 %v710_v56, %v549_v28  ;;  %v905_v44 = vpop.f32.mrf.mxu3  ;;  %v2682_v28 = vld [vmem:[%s3123_s18 + $0x181] sm:$0xff] }
 0x191   : > { %v1296_v9 = vpop.f32.mrf.mxu1 }
 0x192   : > { %v977_v58 = vadd.f32 %v905_v44, %v782_v19 }
 0x194   : > { %v1171_v63 = vadd.f32 %v1099_v6, %v977_v58  ;;  %760 = vmatmul.f32.gmra.mxu2 %v2727_v47  ;;  %1343 = vmatmul.f32.gmra.mxu1 %v2729_v8  ;;  %v1102_v46 = vpop.f32.mrf.mxu0  ;;  %v2634_v6 = vld [vmem:[%s3123_s18 + $0x180] sm:$0xff] }
 0x195   : > { %955 = vmatmul.f32.gmra.mxu3 %v2633_v54  ;;  %v2731_v54 = vld [vmem:[%s3123_s18 + $0x18a] sm:$0xff] }
 0x196   : > { %v3936_v22 = vadd.f32 %v1293_v11, %v1171_v63  ;;  %v2635_v63 = vld [vmem:[%s3123_s18 + $0x188] sm:$0xff] }
 0x197   : > { %v713_v5 = vpop.f32.mrf.mxu2  ;;  %1149 = vmatmul.f32.gmra.mxu0 %v2681_v0  ;;  %v2683_v0 = vld [vmem:[%s3123_s18 + $0x189] sm:$0xff] }
 0x198   : > { %v783_v38 = vadd.f32 %v713_v5, %v552_v20  ;;  %v908_v25 = vpop.f32.mrf.mxu3 }
 0x199   : > { %v1299_v24 = vpop.f32.mrf.mxu1 }
 0x19a   : > { %v978_v32 = vadd.f32 %v908_v25, %v783_v38  ;;  %v2748_v38 = vld [vmem:[%s3123_s18 + $0x30] sm:$0xff] }
 0x19c   : > { %v1172_v47 = vadd.f32 %v1102_v46, %v978_v32  ;;  %763 = vmatmul.f32.gmra.mxu2 %v2728_v55  ;;  %1346 = vmatmul.f32.gmra.mxu1 %v2730_v21  ;;  %v1105_v62 = vpop.f32.mrf.mxu0  ;;  %v2892_v21 = vld [vmem:[%s3123_s18 + $0x19] sm:$0xff] }
 0x19d   : > { %958 = vmatmul.f32.gmra.mxu3 %v2634_v6 }
 0x19e   : > { %v3943_v23 = vadd.f32 %v1296_v9, %v1172_v47 }
 0x19f   : > { %v716_v11 = vpop.f32.mrf.mxu2  ;;  %1152 = vmatmul.f32.gmra.mxu0 %v2682_v28 }
 0x1a0   : > { %v784_v56 = vadd.f32 %v716_v11, %v555_v40  ;;  %v911_v19 = vpop.f32.mrf.mxu3  ;;  %v2749_v40 = vld [vmem:[%s3123_s18 + $0x38] sm:$0xff] }
 0x1a1   : > { %v1302_v58 = vpop.f32.mrf.mxu1 }
 0x1a2   : > { %v979_v44 = vadd.f32 %v911_v19, %v784_v56  ;;  %v2893_v19 = vld [vmem:[%s3123_s18 + $0x21] sm:$0xff] }
 0x1a4   : > { %v1173_v55 = vadd.f32 %v1105_v62, %v979_v44  ;;  %766 = vmatmul.f32.gmra.mxu2 %v2729_v8  ;;  %1349 = vmatmul.f32.gmra.mxu1 %v2731_v54  ;;  %v1108_v46 = vpop.f32.mrf.mxu0  ;;  %v2796_v8 = vld [vmem:[%s3123_s18 + $0x31] sm:$0xff]  ;;  %v2797_v44 = vld [vmem:[%s3123_s18 + $0x39] sm:$0xff] }
 0x1a5   : > { %961 = vmatmul.f32.gmra.mxu3 %v2635_v63 }
 0x1a6   : > { %v3950_v60 = vadd.f32 %v1299_v24, %v1173_v55 }
 0x1a7   : > { %v719_v9 = vpop.f32.mrf.mxu2  ;;  %1155 = vmatmul.f32.gmra.mxu0 %v2683_v0 }
 0x1a8   : > { %v785_v20 = vadd.f32 %v719_v9, %v558_v48  ;;  %v914_v5 = vpop.f32.mrf.mxu3  ;;  %v2750_v48 = vld [vmem:[%s3123_s18 + $0x48] sm:$0xff] }
 0x1a9   : > { %v1305_v32 = vpop.f32.mrf.mxu1 }
 0x1aa   : > { %v980_v25 = vadd.f32 %v914_v5, %v785_v20  ;;  %v2798_v5 = vld [vmem:[%s3123_s18 + $0x49] sm:$0xff] }
 0x1ac   : > { %v1174_v6 = vadd.f32 %v1108_v46, %v980_v25  ;;  %1451 = vmatmul.f32.vlgmr.msra.gmra.mxu2 %v2748_v38  ;;  %2173 = vmatmul.f32.vlgmr.msra.gmra.mxu1 %v2892_v21  ;;  %v1111_v7 = vpop.f32.mrf.mxu0  ;;  %v2846_v21 = vld [vmem:[%s3123_s18 + $0x4a] sm:$0xff] }
 0x1ad   : > { %1645 = vmatmul.f32.vlgmr.msra.gmra.mxu3 %v2796_v8 }
 0x1ae   : > { %v3956_v24 = vadd.f32 %v1302_v58, %v1174_v6  ;;  %v2845_v58 = vld [vmem:[%s3123_s18 + $0x3a] sm:$0xff] }
 0x1af   : > { %v722_v47 = vpop.f32.mrf.mxu2  ;;  %1839 = vmatmul.f32.vlgmr.msra.gmra.mxu0 %v2844_v35  ;;  %v2751_v35 = vld [vmem:[%s3123_s18 + $0x50] sm:$0xff] }
 0x1b0   : > { %v786_v62 = vadd.f32 %v722_v47, %v3509_v4  ;;  %v917_v28 = vpop.f32.mrf.mxu3 }
 0x1b1   : > { %v1308_v56 = vpop.f32.mrf.mxu1 }
 0x1b2   : > { %v981_v11 = vadd.f32 %v917_v28, %v786_v62  ;;  %v2799_v28 = vld [vmem:[%s3123_s18 + $0x51] sm:$0xff] }
 0x1b4   : > { %v1175_v54 = vadd.f32 %v1111_v7, %v981_v11  ;;  %1454 = vmatmul.f32.gmra.mxu2 %v2749_v40  ;;  %2176 = vmatmul.f32.gmra.mxu1 %v2893_v19  ;;  %v1114_v63 = vpop.f32.mrf.mxu0  ;;  %v2847_v11 = vld [vmem:[%s3123_s18 + $0x52] sm:$0xff] }
 0x1b5   : > { %1648 = vmatmul.f32.gmra.mxu3 %v2797_v44 }
 0x1b6   : > { %v3963_v55 = vadd.f32 %v1305_v32, %v1175_v54 }
 0x1b7   : > { %v725_v46 = vpop.f32.mrf.mxu2  ;;  %1842 = vmatmul.f32.gmra.mxu0 %v2845_v58 }
 0x1b8   : > { %v787_v4 = vadd.f32 %v725_v46, %v3522_v14  ;;  %v920_v0 = vpop.f32.mrf.mxu3 }
 0x1b9   : > { %v1311_v20 = vpop.f32.mrf.mxu1 }
 0x1ba   : > { %v982_v9 = vadd.f32 %v920_v0, %v787_v4  ;;  %v2800_v4 = vld [vmem:[%s3123_s18 + $0x61] sm:$0xff] }
 0x1bc   : > { %v1176_v38 = vadd.f32 %v1114_v63, %v982_v9  ;;  %1457 = vmatmul.f32.gmra.mxu2 %v2750_v48  ;;  %2179 = vmatmul.f32.gmra.mxu1 %v2796_v8  ;;  %v1117_v25 = vpop.f32.mrf.mxu0  ;;  %v2752_v63 = vld [vmem:[%s3123_s18 + $0x60] sm:$0xff] }
 0x1bd   : > { %1651 = vmatmul.f32.gmra.mxu3 %v2798_v5  ;;  %v2848_v48 = vld [vmem:[%s3123_s18 + $0x62] sm:$0xff] }
 0x1be   : > { %v3969_v32 = vadd.f32 %v1308_v56, %v1176_v38 }
 0x1bf   : > { %v728_v6 = vpop.f32.mrf.mxu2  ;;  %1845 = vmatmul.f32.gmra.mxu0 %v2846_v21 }
 0x1c0   : > { %v788_v14 = vadd.f32 %v728_v6, %v3540_v27  ;;  %v923_v7 = vpop.f32.mrf.mxu3 }
 0x1c1   : > { %v1314_v62 = vpop.f32.mrf.mxu1 }
 0x1c2   : > { %v983_v47 = vadd.f32 %v923_v7, %v788_v14  ;;  %v2801_v14 = vld [vmem:[%s3123_s18 + $0x69] sm:$0xff] }
 0x1c4   : > { %v1177_v40 = vadd.f32 %v1117_v25, %v983_v47  ;;  %1460 = vmatmul.f32.gmra.mxu2 %v2751_v35  ;;  %2182 = vmatmul.f32.gmra.mxu1 %v2797_v44  ;;  %v1120_v8 = vpop.f32.mrf.mxu0  ;;  %v2753_v25 = vld [vmem:[%s3123_s18 + $0x68] sm:$0xff] }
 0x1c5   : > { %1654 = vmatmul.f32.gmra.mxu3 %v2799_v28  ;;  %v2849_v35 = vld [vmem:[%s3123_s18 + $0x6a] sm:$0xff] }
 0x1c6   : > { %v3975_v56 = vadd.f32 %v1311_v20, %v1177_v40 }
 0x1c7   : > { %v731_v19 = vpop.f32.mrf.mxu2  ;;  %1848 = vmatmul.f32.gmra.mxu0 %v2847_v11 }
 0x1c8   : > { %v789_v27 = vadd.f32 %v731_v19, %v3552_v17  ;;  %v926_v54 = vpop.f32.mrf.mxu3 }
 0x1c9   : > { %v1317_v46 = vpop.f32.mrf.mxu1 }
 0x1ca   : > { %v984_v58 = vadd.f32 %v926_v54, %v789_v27  ;;  %v2802_v27 = vld [vmem:[%s3123_s18 + $0x79] sm:$0xff] }
 0x1cc   : > { %v1178_v0 = vadd.f32 %v1120_v8, %v984_v58  ;;  %1463 = vmatmul.f32.gmra.mxu2 %v2752_v63  ;;  %2185 = vmatmul.f32.gmra.mxu1 %v2798_v5  ;;  %v1123_v44 = vpop.f32.mrf.mxu0  ;;  %v2754_v8 = vld [vmem:[%s3123_s18 + $0x78] sm:$0xff] }
 0x1cd   : > { %1657 = vmatmul.f32.gmra.mxu3 %v2800_v4  ;;  %v2850_v63 = vld [vmem:[%s3123_s18 + $0x7a] sm:$0xff] }
 0x1ce   : > { %v3981_v9 = vadd.f32 %v1314_v62, %v1178_v0 }
 0x1cf   : > { %v734_v20 = vpop.f32.mrf.mxu2  ;;  %1851 = vmatmul.f32.gmra.mxu0 %v2848_v48 }
 0x1d0   : > { %v790_v17 = vadd.f32 %v734_v20, %v3570_v50  ;;  %v929_v38 = vpop.f32.mrf.mxu3 }
 0x1d1   : > { %v1320_v6 = vpop.f32.mrf.mxu1 }
 0x1d2   : > { %v985_v21 = vadd.f32 %v929_v38, %v790_v17  ;;  %v2803_v17 = vld [vmem:[%s3123_s18 + $0x81] sm:$0xff] }
 0x1d4   : > { %v1179_v7 = vadd.f32 %v1123_v44, %v985_v21  ;;  %1466 = vmatmul.f32.gmra.mxu2 %v2753_v25  ;;  %2188 = vmatmul.f32.gmra.mxu1 %v2799_v28  ;;  %v1126_v5 = vpop.f32.mrf.mxu0  ;;  %v2755_v44 = vld [vmem:[%s3123_s18 + $0x80] sm:$0xff] }
 0x1d5   : > { %1660 = vmatmul.f32.gmra.mxu3 %v2801_v14  ;;  %v2851_v25 = vld [vmem:[%s3123_s18 + $0x82] sm:$0xff] }
 0x1d6   : > { %v3987_v47 = vadd.f32 %v1317_v46, %v1179_v7 }
 0x1d7   : > { %v737_v62 = vpop.f32.mrf.mxu2  ;;  %1854 = vmatmul.f32.gmra.mxu0 %v2849_v35 }
 0x1d8   : > { %v791_v50 = vadd.f32 %v737_v62, %v3582_v33  ;;  %v932_v40 = vpop.f32.mrf.mxu3 }
 0x1d9   : > { %v1323_v19 = vpop.f32.mrf.mxu1 }
 0x1da   : > { %v986_v11 = vadd.f32 %v932_v40, %v791_v50  ;;  %v2804_v50 = vld [vmem:[%s3123_s18 + $0x91] sm:$0xff] }
 0x1dc   : > { %v1180_v54 = vadd.f32 %v1126_v5, %v986_v11  ;;  %1469 = vmatmul.f32.gmra.mxu2 %v2754_v8  ;;  %2191 = vmatmul.f32.gmra.mxu1 %v2800_v4  ;;  %v1129_v28 = vpop.f32.mrf.mxu0  ;;  %v2756_v5 = vld [vmem:[%s3123_s18 + $0x90] sm:$0xff] }
 0x1dd   : > { %1663 = vmatmul.f32.gmra.mxu3 %v2802_v27  ;;  %v2852_v8 = vld [vmem:[%s3123_s18 + $0x92] sm:$0xff] }
 0x1de   : > { %v3993_v58 = vadd.f32 %v1320_v6, %v1180_v54 }
 0x1df   : > { %v740_v46 = vpop.f32.mrf.mxu2  ;;  %1857 = vmatmul.f32.gmra.mxu0 %v2850_v63 }
 0x1e0   : > { %v792_v33 = vadd.f32 %v740_v46, %v3600_v12  ;;  %v935_v0 = vpop.f32.mrf.mxu3 }
 0x1e1   : > { %v1326_v20 = vpop.f32.mrf.mxu1 }
 0x1e2   : > { %v987_v48 = vadd.f32 %v935_v0, %v792_v33  ;;  %v2805_v33 = vld [vmem:[%s3123_s18 + $0x99] sm:$0xff] }
 0x1e4   : > { %v1181_v38 = vadd.f32 %v1129_v28, %v987_v48  ;;  %1472 = vmatmul.f32.gmra.mxu2 %v2755_v44  ;;  %2194 = vmatmul.f32.gmra.mxu1 %v2801_v14  ;;  %v1132_v4 = vpop.f32.mrf.mxu0  ;;  %v2757_v28 = vld [vmem:[%s3123_s18 + $0x98] sm:$0xff] }
 0x1e5   : > { %1666 = vmatmul.f32.gmra.mxu3 %v2803_v17  ;;  %v2853_v44 = vld [vmem:[%s3123_s18 + $0x9a] sm:$0xff] }
 0x1e6   : > { %v3999_v21 = vadd.f32 %v1323_v19, %v1181_v38 }
 0x1e7   : > { %v743_v6 = vpop.f32.mrf.mxu2  ;;  %1860 = vmatmul.f32.gmra.mxu0 %v2851_v25 }
 0x1e8   : > { %v793_v12 = vadd.f32 %v743_v6, %v3612_v49  ;;  %v938_v7 = vpop.f32.mrf.mxu3 }
 0x1e9   : > { %v1329_v62 = vpop.f32.mrf.mxu1 }
 0x1ea   : > { %v988_v35 = vadd.f32 %v938_v7, %v793_v12  ;;  %v2806_v12 = vld [vmem:[%s3123_s18 + $0xa9] sm:$0xff] }
 0x1ec   : > { %v1182_v40 = vadd.f32 %v1132_v4, %v988_v35  ;;  %1475 = vmatmul.f32.gmra.mxu2 %v2756_v5  ;;  %2197 = vmatmul.f32.gmra.mxu1 %v2802_v27  ;;  %v1135_v14 = vpop.f32.mrf.mxu0  ;;  %v2758_v4 = vld [vmem:[%s3123_s18 + $0xa8] sm:$0xff] }
 0x1ed   : > { %1669 = vmatmul.f32.gmra.mxu3 %v2804_v50  ;;  %v2854_v5 = vld [vmem:[%s3123_s18 + $0xaa] sm:$0xff] }
 0x1ee   : > { %v4005_v11 = vadd.f32 %v1326_v20, %v1182_v40 }
 0x1ef   : > { %v746_v19 = vpop.f32.mrf.mxu2  ;;  %1863 = vmatmul.f32.gmra.mxu0 %v2852_v8 }
 0x1f0   : > { %v794_v49 = vadd.f32 %v746_v19, %v3630_v37  ;;  %v941_v54 = vpop.f32.mrf.mxu3 }
 0x1f1   : > { %v1332_v46 = vpop.f32.mrf.mxu1 }
 0x1f2   : > { %v989_v63 = vadd.f32 %v941_v54, %v794_v49  ;;  %v2807_v49 = vld [vmem:[%s3123_s18 + $0xb1] sm:$0xff] }
 0x1f4   : > { %v1183_v0 = vadd.f32 %v1135_v14, %v989_v63  ;;  %1478 = vmatmul.f32.gmra.mxu2 %v2757_v28  ;;  %2200 = vmatmul.f32.gmra.mxu1 %v2803_v17  ;;  %v1138_v27 = vpop.f32.mrf.mxu0  ;;  %v2759_v14 = vld [vmem:[%s3123_s18 + $0xb0] sm:$0xff] }
 0x1f5   : > { %1672 = vmatmul.f32.gmra.mxu3 %v2805_v33  ;;  %v2855_v28 = vld [vmem:[%s3123_s18 + $0xb2] sm:$0xff] }
 0x1f6   : > { %v4011_v48 = vadd.f32 %v1329_v62, %v1183_v0 }
 0x1f7   : > { %v749_v20 = vpop.f32.mrf.mxu2  ;;  %1866 = vmatmul.f32.gmra.mxu0 %v2853_v44 }
 0x1f8   : > { %v795_v37 = vadd.f32 %v749_v20, %v3642_v3  ;;  %v944_v38 = vpop.f32.mrf.mxu3 }
 0x1f9   : > { %v1335_v6 = vpop.f32.mrf.mxu1 }
 0x1fa   : > { %v990_v25 = vadd.f32 %v944_v38, %v795_v37 }
 0x1fc   : > { %v1184_v7 = vadd.f32 %v1138_v27, %v990_v25  ;;  %1481 = vmatmul.f32.gmra.mxu2 %v2758_v4  ;;  %2203 = vmatmul.f32.gmra.mxu1 %v2804_v50  ;;  %v1141_v17 = vpop.f32.mrf.mxu0  ;;  %v2760_v27 = vld [vmem:[%s3123_s18 + $0xc0] sm:$0xff] }
 0x1fd   : > { %1675 = vmatmul.f32.gmra.mxu3 %v2806_v12  ;;  %v2856_v4 = vld [vmem:[%s3123_s18 + $0xc2] sm:$0xff] }
 0x1fe   : > { %v4017_v35 = vadd.f32 %v1332_v46, %v1184_v7 }
 0x1ff   : > { %v752_v62 = vpop.f32.mrf.mxu2  ;;  %1869 = vmatmul.f32.gmra.mxu0 %v2854_v5 }
 0x200   : > { %v796_v3 = vadd.f32 %v752_v62, %v3660_v41  ;;  %v947_v40 = vpop.f32.mrf.mxu3 }
 0x201   : > { %v1338_v19 = vpop.f32.mrf.mxu1 }
 0x202   : > { %v991_v8 = vadd.f32 %v947_v40, %v796_v3 }
 0x204   : > { %v1185_v54 = vadd.f32 %v1141_v17, %v991_v8  ;;  %1484 = vmatmul.f32.gmra.mxu2 %v2759_v14  ;;  %2206 = vmatmul.f32.gmra.mxu1 %v2805_v33  ;;  %v1144_v50 = vpop.f32.mrf.mxu0  ;;  %v2969_v33 = vld [vmem:[%s3123_s18 + $0xc1] sm:$0xff]  ;;  %v2857_v14 = vld [vmem:[%s3123_s18 + $0xca] sm:$0xff] }
 0x205   : > { %1678 = vmatmul.f32.gmra.mxu3 %v2807_v49  ;;  %v2761_v17 = vld [vmem:[%s3123_s18 + $0xc8] sm:$0xff] }
 0x206   : > { %v4023_v63 = vadd.f32 %v1335_v6, %v1185_v54 }
 0x207   : > { %v755_v46 = vpop.f32.mrf.mxu2  ;;  %1872 = vmatmul.f32.gmra.mxu0 %v2855_v28 }
 0x208   : > { %v797_v41 = vadd.f32 %v755_v46, %v3672_v26  ;;  %v950_v0 = vpop.f32.mrf.mxu3  ;;  %v2906_v46 = vld [vmem:[%s3123_s18 + $0xc1] sm:$0xff] }
 0x209   : > { %v1341_v20 = vpop.f32.mrf.mxu1 }
 0x20a   : > { %v992_v44 = vadd.f32 %v950_v0, %v797_v41  ;;  %v2971_v0 = vld [vmem:[%s3123_s18 + $0xd8] sm:$0xff] }
 0x20c   : > { %v1186_v37 = vadd.f32 %v1144_v50, %v992_v44  ;;  %1487 = vmatmul.f32.gmra.mxu2 %v2760_v27  ;;  %2209 = vmatmul.f32.gmra.mxu1 %v2806_v12  ;;  %v1147_v38 = vpop.f32.mrf.mxu0  ;;  %v2970_v12 = vld [vmem:[%s3123_s18 + $0xc9] sm:$0xff]  ;;  %v2858_v27 = vld [vmem:[%s3123_s18 + $0xda] sm:$0xff] }
 0x20d   : > { %1681 = vmatmul.f32.gmra.mxu3 %v2969_v33 }
 0x20e   : > { %v4029_v25 = vadd.f32 %v1338_v19, %v1186_v37 }
 0x20f   : > { %v758_v6 = vpop.f32.mrf.mxu2  ;;  %1875 = vmatmul.f32.gmra.mxu0 %v2856_v4  ;;  %v2907_v4 = vld [vmem:[%s3123_s18 + $0xc9] sm:$0xff] }
 0x210   : > { %v798_v26 = vadd.f32 %v758_v6, %v3690_v34  ;;  %v953_v7 = vpop.f32.mrf.mxu3 }
 0x211   : > { %v1344_v62 = vpop.f32.mrf.mxu1 }
 0x212   : > { %v993_v5 = vadd.f32 %v953_v7, %v798_v26  ;;  %v4325_v26 = vld [vmem:[#allocation3_spill] sm:$0xff] }
 0x213   : > { %v2859_v7 = vld [vmem:[%s3123_s18 + $0xe2] sm:$0xff] }
 0x214   : > { %v1187_v3 = vadd.f32 %v1147_v38, %v993_v5  ;;  %1490 = vmatmul.f32.gmra.mxu2 %v2761_v17  ;;  %2212 = vmatmul.f32.gmra.mxu1 %v2807_v49  ;;  %v1150_v40 = vpop.f32.mrf.mxu0 }
 0x215   : > { %1684 = vmatmul.f32.gmra.mxu3 %v2970_v12 }
 0x216   : > { %v4035_v8 = vadd.f32 %v1341_v20, %v1187_v3 }
 0x217   : > { %v761_v19 = vpop.f32.mrf.mxu2  ;;  %1878 = vmatmul.f32.gmra.mxu0 %v2857_v14 }
 0x218   : > { %v799_v34 = vadd.f32 %v761_v19, %v3705_v52  ;;  %v956_v54 = vpop.f32.mrf.mxu3 }
 0x219   : > { %v1347_v28 = vpop.f32.mrf.mxu1 }
 0x21a   : > { %v994_v50 = vadd.f32 %v956_v54, %v799_v34  ;;  %v2860_v34 = vld [vmem:[%s3123_s18 + $0xf2] sm:$0xff] }
 0x21c   : > { %v1188_v41 = vadd.f32 %v1150_v40, %v994_v50  ;;  %1493 = vmatmul.f32.gmra.mxu2 %v2971_v0  ;;  %2215 = vmatmul.f32.gmra.mxu1 %v2906_v46  ;;  %v1153_v49 = vpop.f32.mrf.mxu0 }
 0x21d   : > { %1687 = vmatmul.f32.gmra.mxu3 %v3740_v51 }
 0x21e   : > { %v4042_v44 = vadd.f32 %v1344_v62, %v1188_v41 }
 0x21f   : > { %v764_v20 = vpop.f32.mrf.mxu2  ;;  %1881 = vmatmul.f32.gmra.mxu0 %v2858_v27  ;;  %v2909_v27 = vld [vmem:[%s3123_s18 + $0xe1] sm:$0xff] }
 0x220   : > { %v800_v52 = vadd.f32 %v764_v20, %v3720_v1  ;;  %v959_v37 = vpop.f32.mrf.mxu3  ;;  %v4326_v1 = vld [vmem:[#allocation2_spill] sm:$0xff] }
 0x221   : > { %v1350_v38 = vpop.f32.mrf.mxu1 }
 0x222   : > { %v995_v33 = vadd.f32 %v959_v37, %v800_v52  ;;  %v2861_v52 = vld [vmem:[%s3123_s18 + $0xfa] sm:$0xff] }
 0x224   : > { %v1189_v6 = vadd.f32 %v1153_v49, %v995_v33  ;;  %1496 = vmatmul.f32.gmra.mxu2 %v4325_v26  ;;  %2218 = vmatmul.f32.gmra.mxu1 %v2907_v4  ;;  %v1156_v51 = vpop.f32.mrf.mxu0  ;;  %v4329_v33 = vld [vmem:[#allocation5_spill] sm:$0xff] }
 0x225   : > { %1690 = vmatmul.f32.gmra.mxu3 %v3757_v59  ;;  %v2908_v59 = vld [vmem:[%s3123_s18 + $0xd9] sm:$0xff] }
 0x226   : > { %v4050_v17 = vadd.f32 %v1347_v28, %v1189_v6  ;;  %v4327_v28 = vld [vmem:[#allocation4_spill] sm:$0xff]  ;;  %v2766_v6 = vld [vmem:[%s3123_s18 + $0x108] sm:$0xff] }
 0x227   : > { %v767_v5 = vpop.f32.mrf.mxu2  ;;  %1884 = vmatmul.f32.gmra.mxu0 %v2859_v7  ;;  %v2910_v7 = vld [vmem:[%s3123_s18 + $0xf1] sm:$0xff] }
 0x228   : > { %v801_v62 = vadd.f32 %v767_v5, %v4326_v1  ;;  %v962_v3 = vpop.f32.mrf.mxu3  ;;  %v2862_v1 = vld [vmem:[%s3123_s18 + $0x10a] sm:$0xff] }
 0x229   : > { %v4058_v40 = vpop.f32.mrf.mxu1 }
 0x22a   : > { %v996_v12 = vadd.f32 %v962_v3, %v801_v62  ;;  %2270 = vst [vmem:[%s4056_s8] sm:$0xff] %v4058_v40 }
 0x22c   : > { %v1190_v14 = vadd.f32 %v1156_v51, %v996_v12  ;;  %1499 = vmatmul.f32.gmra.mxu2 %v3772_v43  ;;  %2221 = vmatmul.f32.gmra.mxu1 %v2908_v59  ;;  %v1840_v19 = vpop.f32.mrf.mxu0 }
 0x22d   : > { %1693 = vmatmul.f32.gmra.mxu3 %v3776_v36  ;;  %v4328_v36 = vld [vmem:[#allocation6_spill] sm:$0xff] }
 0x22e   : > { %v4066_v54 = vadd.f32 %v1350_v38, %v1190_v14 }
 0x22f   : > { %v1452_v50 = vpop.f32.mrf.mxu2  ;;  %1887 = vmatmul.f32.gmra.mxu0 %v2860_v34 }
 0x230   : > { %v1548_v46 = vadd.f32 %v1452_v50, %v4327_v28  ;;  %v1646_v41 = vpop.f32.mrf.mxu3  ;;  %v2767_v50 = vld [vmem:[%s3123_s18 + $0x110] sm:$0xff] }
 0x231   : > { %v4069_v49 = vpop.f32.mrf.mxu1 }
 0x232   : > { %v1742_v0 = vadd.f32 %v1646_v41, %v1548_v46  ;;  %2271 = vst [vmem:[%s4056_s8 + $0x8] sm:$0xff] %v4069_v49 }
 0x234   : > { %v1936_v43 = vadd.f32 %v1840_v19, %v1742_v0  ;;  %1502 = vmatmul.f32.gmra.mxu2 %v4328_v36  ;;  %2224 = vmatmul.f32.gmra.mxu1 %v2909_v27  ;;  %v1843_v20 = vpop.f32.mrf.mxu0  ;;  %v2863_v27 = vld [vmem:[%s3123_s18 + $0x112] sm:$0xff] }
 0x235   : > { %1696 = vmatmul.f32.gmra.mxu3 %v3795_v30 }
 0x236   : > { %1968 = vst [vmem:[%s4077_s11] sm:$0xff] %v1936_v43  ;;  %v2037_v62 = vmul.f32 %v1936_v43, %v1936_v43 }
 0x237   : > { %v1455_v37 = vpop.f32.mrf.mxu2  ;;  %1890 = vmatmul.f32.gmra.mxu0 %v2861_v52 }
 0x238   : > { %v1549_v38 = vadd.f32 %v1455_v37, %v4329_v33  ;;  %v1649_v4 = vpop.f32.mrf.mxu3  ;;  %v2768_v33 = vld [vmem:[%s3123_s18 + $0x120] sm:$0xff] }
 0x239   : > { %v4085_v51 = vpop.f32.mrf.mxu1 }
 0x23a   : > { %v1743_v26 = vadd.f32 %v1649_v4, %v1549_v38  ;;  %2272 = vst [vmem:[%s4056_s8 + $0x10] sm:$0xff] %v4085_v51 }
 0x23c   : > { %v1937_v5 = vadd.f32 %v1843_v20, %v1743_v26  ;;  %1505 = vmatmul.f32.gmra.mxu2 %v2766_v6  ;;  %2227 = vmatmul.f32.gmra.mxu1 %v2910_v7  ;;  %v1846_v30 = vpop.f32.mrf.mxu0  ;;  %v2912_v6 = vld [vmem:[%s3123_s18 + $0x109] sm:$0xff] }
 0x23d   : > { %1699 = vmatmul.f32.gmra.mxu3 %v3811_v29  ;;  %v2911_v29 = vld [vmem:[%s3123_s18 + $0xf9] sm:$0xff]  ;;  %v2864_v7 = vld [vmem:[%s3123_s18 + $0x122] sm:$0xff] }
 0x23e   : > { %1969 = vst [vmem:[%s4077_s11 + $0x8] sm:$0xff] %v1937_v5  ;;  %v2000_v3 = vadd.f32 %v1937_v5, %v1936_v43  ;;  %v2038_v12 = vmul.f32 %v1937_v5, %v1937_v5 }
 0x23f   : > { %v1458_v59 = vpop.f32.mrf.mxu2  ;;  %1893 = vmatmul.f32.gmra.mxu0 %v2862_v1 }
 0x240   : > { %v2069_v14 = vadd.f32 %v2038_v12, %v2037_v62  ;;  %v1550_v19 = vadd.f32 %v1458_v59, %v3802_v39  ;;  %v1652_v34 = vpop.f32.mrf.mxu3  ;;  %v2769_v12 = vld [vmem:[%s3123_s18 + $0x128] sm:$0xff] }
 0x241   : > { %v4095_v46 = vpop.f32.mrf.mxu1 }
 0x242   : > { %v1744_v28 = vadd.f32 %v1652_v34, %v1550_v19  ;;  %2273 = vst [vmem:[%s4056_s8 + $0x18] sm:$0xff] %v4095_v46  ;;  %v2913_v19 = vld [vmem:[%s3123_s18 + $0x111] sm:$0xff] }
 0x244   : > { %v1938_v41 = vadd.f32 %v1846_v30, %v1744_v28  ;;  %1508 = vmatmul.f32.gmra.mxu2 %v2767_v50  ;;  %2230 = vmatmul.f32.gmra.mxu1 %v2911_v29  ;;  %v1849_v0 = vpop.f32.mrf.mxu0 }
 0x245   : > { %1702 = vmatmul.f32.gmra.mxu3 %v3827_v42 }
 0x246   : > { %1970 = vst [vmem:[%s4077_s11 + $0x10] sm:$0xff] %v1938_v41  ;;  %v2001_v39 = vadd.f32 %v2000_v3, %v1938_v41  ;;  %v2039_v43 = vmul.f32 %v1938_v41, %v1938_v41 }
 0x247   : > { %v1461_v36 = vpop.f32.mrf.mxu2  ;;  %1896 = vmatmul.f32.gmra.mxu0 %v2863_v27 }
 0x248   : > { %v2070_v20 = vadd.f32 %v2069_v14, %v2039_v43  ;;  %v1551_v52 = vadd.f32 %v1461_v36, %v3821_v45  ;;  %v1655_v37 = vpop.f32.mrf.mxu3 }
 0x249   : > { %v4105_v4 = vpop.f32.mrf.mxu1 }
 0x24a   : > { %v1745_v38 = vadd.f32 %v1655_v37, %v1551_v52  ;;  %2274 = vst [vmem:[%s4056_s8 + $0x20] sm:$0xff] %v4105_v4  ;;  %v2818_v52 = vld [vmem:[%s3123_s18 + $0x139] sm:$0xff] }
 0x24c   : > { %v1939_v42 = vadd.f32 %v1849_v0, %v1745_v38  ;;  %1511 = vmatmul.f32.gmra.mxu2 %v2768_v33  ;;  %2233 = vmatmul.f32.gmra.mxu1 %v2912_v6  ;;  %v1852_v26 = vpop.f32.mrf.mxu0  ;;  %v2866_v33 = vld [vmem:[%s3123_s18 + $0x13a] sm:$0xff] }
 0x24d   : > { %1705 = vmatmul.f32.gmra.mxu3 %v3843_v53 }
 0x24e   : > { %1971 = vst [vmem:[%s4077_s11 + $0x18] sm:$0xff] %v1939_v42  ;;  %v2002_v45 = vadd.f32 %v2001_v39, %v1939_v42  ;;  %v2040_v5 = vmul.f32 %v1939_v42, %v1939_v42  ;;  %v2770_v39 = vld [vmem:[%s3123_s18 + $0x138] sm:$0xff] }
 0x24f   : > { %v1464_v30 = vpop.f32.mrf.mxu2  ;;  %1899 = vmatmul.f32.gmra.mxu0 %v2864_v7 }
 0x250   : > { %v2071_v1 = vadd.f32 %v2070_v20, %v2040_v5  ;;  %v1552_v62 = vadd.f32 %v1464_v30, %v3834_v57  ;;  %v1658_v3 = vpop.f32.mrf.mxu3  ;;  %v2865_v57 = vld [vmem:[%s3123_s18 + $0x12a] sm:$0xff]  ;;  %v2914_v20 = vld [vmem:[%s3123_s18 + $0x121] sm:$0xff]  ;;  %v2340_v5 = vmul.f32 %v4069_v49, %v4069_v49 }
 0x251   : > { %v4115_v14 = vpop.f32.mrf.mxu1  ;;  %v2771_v30 = vld [vmem:[%s3123_s18 + $0x140] sm:$0xff] }
 0x252   : > { %v1746_v59 = vadd.f32 %v1658_v3, %v1552_v62  ;;  %2275 = vst [vmem:[%s4056_s8 + $0x28] sm:$0xff] %v4115_v14  ;;  %v2915_v3 = vld [vmem:[%s3123_s18 + $0x129] sm:$0xff] }
 0x254   : > { %v1940_v53 = vadd.f32 %v1852_v26, %v1746_v59  ;;  %1514 = vmatmul.f32.gmra.mxu2 %v2769_v12  ;;  %2236 = vmatmul.f32.gmra.mxu1 %v2913_v19  ;;  %v1855_v34 = vpop.f32.mrf.mxu0  ;;  %v4138_v12 = vld [vmem:[%s3123_s18 + $0x141] sm:$0xff]  ;;  %v2302_v59 = vadd.f32 %v4069_v49, %v4058_v40 }
 0x255   : > { %1708 = vmatmul.f32.gmra.mxu3 %v3859_v2 }
 0x256   : > { %1972 = vst [vmem:[%s4077_s11 + $0x20] sm:$0xff] %v1940_v53  ;;  %v2003_v50 = vadd.f32 %v2002_v45, %v1940_v53  ;;  %v2041_v28 = vmul.f32 %v1940_v53, %v1940_v53  ;;  %v2339_v45 = vmul.f32 %v4058_v40, %v4058_v40 }
 0x257   : > { %v1467_v29 = vpop.f32.mrf.mxu2  ;;  %1902 = vmatmul.f32.gmra.mxu0 %v2865_v57  ;;  %v2342_v57 = vmul.f32 %v4095_v46, %v4095_v46 }
 0x258   : > { %v2072_v41 = vadd.f32 %v2071_v1, %v2041_v28  ;;  %v1553_v0 = vadd.f32 %v1467_v29, %v3853_v10  ;;  %v1661_v27 = vpop.f32.mrf.mxu3  ;;  %v2371_v53 = vadd.f32 %v2340_v5, %v2339_v45  ;;  %v2867_v28 = vld [vmem:[%s3123_s18 + $0x142] sm:$0xff] }
 0x259   : > { %v2192_v36 = vpop.f32.mrf.mxu1 }
 0x25a   : > { %v1747_v43 = vadd.f32 %v1661_v27, %v1553_v0  ;;  %2276 = vst [vmem:[%s4056_s8 + $0x30] sm:$0xff] %v2192_v36  ;;  %v2343_v0 = vmul.f32 %v4105_v4, %v4105_v4 }
 0x25c   : > { %v1941_v2 = vadd.f32 %v1855_v34, %v1747_v43  ;;  %1517 = vmatmul.f32.gmra.mxu2 %v2770_v39  ;;  %2239 = vmatmul.f32.gmra.mxu1 %v2914_v20  ;;  %v1858_v37 = vpop.f32.mrf.mxu0  ;;  %v2303_v34 = vadd.f32 %v2302_v59, %v4085_v51 }
 0x25d   : > { %1711 = vmatmul.f32.gmra.mxu3 %v2818_v52 }
 0x25e   : > { %1973 = vst [vmem:[%s4077_s11 + $0x28] sm:$0xff] %v1941_v2  ;;  %v2004_v38 = vadd.f32 %v2003_v50, %v1941_v2  ;;  %v2042_v10 = vmul.f32 %v1941_v2, %v1941_v2 }
 0x25f   : > { %v1470_v6 = vpop.f32.mrf.mxu2  ;;  %1905 = vmatmul.f32.gmra.mxu0 %v2866_v33  ;;  %v2772_v33 = vld [vmem:[%s3123_s18 + $0x150] sm:$0xff] }
 0x260   : > { %v2073_v42 = vadd.f32 %v2072_v41, %v2042_v10  ;;  %v1554_v26 = vadd.f32 %v1470_v6, %v3866_v61  ;;  %v1664_v7 = vpop.f32.mrf.mxu3  ;;  %v2341_v61 = vmul.f32 %v4085_v51, %v4085_v51  ;;  %v2304_v41 = vadd.f32 %v2303_v34, %v4095_v46  ;;  %v2820_v10 = vld [vmem:[%s3123_s18 + $0x151] sm:$0xff] }
 0x261   : > { %v2195_v62 = vpop.f32.mrf.mxu1 }
 0x262   : > { %v1748_v1 = vadd.f32 %v1664_v7, %v1554_v26  ;;  %2277 = vst [vmem:[%s4056_s8 + $0x38] sm:$0xff] %v2195_v62  ;;  %v2372_v29 = vadd.f32 %v2371_v53, %v2341_v61  ;;  %v2305_v2 = vadd.f32 %v2304_v41, %v4105_v4  ;;  %v2346_v5 = vmul.f32 %v2195_v62, %v2195_v62 }
 0x264   : > { %v1942_v19 = vadd.f32 %v1858_v37, %v1748_v1  ;;  %1520 = vmatmul.f32.gmra.mxu2 %v2771_v30  ;;  %2242 = vmatmul.f32.gmra.mxu1 %v2915_v3  ;;  %v1861_v50 = vpop.f32.mrf.mxu0  ;;  %v2373_v20 = vadd.f32 %v2372_v29, %v2342_v57  ;;  %v2344_v37 = vmul.f32 %v4115_v14, %v4115_v14  ;;  %v2868_v30 = vld [vmem:[%s3123_s18 + $0x152] sm:$0xff] }
 0x265   : > { %1714 = vmatmul.f32.gmra.mxu3 %v4138_v12  ;;  %v2306_v26 = vadd.f32 %v2305_v2, %v4115_v14  ;;  %v2821_v29 = vld [vmem:[%s3123_s18 + $0x159] sm:$0xff] }
 0x266   : > { %1974 = vst [vmem:[%s4077_s11 + $0x30] sm:$0xff] %v1942_v19  ;;  %v2005_v40 = vadd.f32 %v2004_v38, %v1942_v19  ;;  %v2043_v49 = vmul.f32 %v1942_v19, %v1942_v19  ;;  %v2374_v6 = vadd.f32 %v2373_v20, %v2343_v0 }
 0x267   : > { %v1473_v51 = vpop.f32.mrf.mxu2  ;;  %1908 = vmatmul.f32.gmra.mxu0 %v2867_v28  ;;  %v2307_v45 = vadd.f32 %v2306_v26, %v2192_v36  ;;  %v2822_v26 = vld [vmem:[%s3123_s18 + $0x169] sm:$0xff] }
 0x268   : > { %v2074_v27 = vadd.f32 %v2073_v42, %v2043_v49  ;;  %v1555_v39 = vadd.f32 %v1473_v51, %v3883_v13  ;;  %v1667_v43 = vpop.f32.mrf.mxu3  ;;  %v2345_v42 = vmul.f32 %v2192_v36, %v2192_v36  ;;  %v2375_v7 = vadd.f32 %v2374_v6, %v2344_v37 }
 0x269   : > { %v2198_v46 = vpop.f32.mrf.mxu1  ;;  %v2308_v61 = vadd.f32 %v2307_v45, %v2195_v62  ;;  %v2870_v45 = vld [vmem:[%s3123_s18 + $0x16a] sm:$0xff] }
 0x26a   : > { %v1749_v38 = vadd.f32 %v1667_v43, %v1555_v39  ;;  %2278 = vst [vmem:[%s4056_s8 + $0x40] sm:$0xff] %v2198_v46  ;;  %v2376_v59 = vadd.f32 %v2375_v7, %v2345_v42  ;;  %v2347_v14 = vmul.f32 %v2198_v46, %v2198_v46 }
 0x26b   : > { %v2309_v36 = vadd.f32 %v2308_v61, %v2198_v46  ;;  %v2775_v61 = vld [vmem:[%s3123_s18 + $0x170] sm:$0xff] }
 0x26c   : > { %v1943_v13 = vadd.f32 %v1861_v50, %v1749_v38  ;;  %1523 = vmatmul.f32.gmra.mxu2 %v2772_v33  ;;  %2245 = vmatmul.f32.gmra.mxu1 %v2818_v52  ;;  %v1864_v4 = vpop.f32.mrf.mxu0  ;;  %v2377_v52 = vadd.f32 %v2376_v59, %v2346_v5  ;;  %v2773_v50 = vld [vmem:[%s3123_s18 + $0x158] sm:$0xff]  ;;  %v2774_v38 = vld [vmem:[%s3123_s18 + $0x168] sm:$0xff] }
 0x26d   : > { %1717 = vmatmul.f32.gmra.mxu3 %v2820_v10 }
 0x26e   : > { %1975 = vst [vmem:[%s4077_s11 + $0x38] sm:$0xff] %v1943_v13  ;;  %v2006_v1 = vadd.f32 %v2005_v40, %v1943_v13  ;;  %v2044_v3 = vmul.f32 %v1943_v13, %v1943_v13  ;;  %v2378_v40 = vadd.f32 %v2377_v52, %v2347_v14  ;;  %v2871_v52 = vld [vmem:[%s3123_s18 + $0x172] sm:$0xff] }
 0x26f   : > { %v1476_v19 = vpop.f32.mrf.mxu2  ;;  %1911 = vmatmul.f32.gmra.mxu0 %v2868_v30 }
 0x270   : > { %v2075_v53 = vadd.f32 %v2074_v27, %v2044_v3  ;;  %v1556_v34 = vadd.f32 %v1476_v19, %v3893_v16  ;;  %v1670_v57 = vpop.f32.mrf.mxu3  ;;  %v2869_v27 = vld [vmem:[%s3123_s18 + $0x15a] sm:$0xff] }
 0x271   : > { %v2201_v49 = vpop.f32.mrf.mxu1 }
 0x272   : > { %v1750_v28 = vadd.f32 %v1670_v57, %v1556_v34  ;;  %2279 = vst [vmem:[%s4056_s8 + $0x48] sm:$0xff] %v2201_v49  ;;  %v2310_v41 = vadd.f32 %v2309_v36, %v2201_v49  ;;  %v2348_v0 = vmul.f32 %v2201_v49, %v2201_v49 }
 0x274   : > { %v1944_v62 = vadd.f32 %v1864_v4, %v1750_v28  ;;  %1526 = vmatmul.f32.gmra.mxu2 %v2773_v50  ;;  %v2379_v51 = vadd.f32 %v2378_v40, %v2348_v0  ;;  %2248 = vmatmul.f32.gmra.mxu1 %v4138_v12  ;;  %v1867_v16 = vpop.f32.mrf.mxu0 }
 0x275   : > { %1720 = vmatmul.f32.gmra.mxu3 %v2821_v29 }
 0x276   : > { %1976 = vst [vmem:[%s4077_s11 + $0x40] sm:$0xff] %v1944_v62  ;;  %v2007_v39 = vadd.f32 %v2006_v1, %v1944_v62  ;;  %v2045_v43 = vmul.f32 %v1944_v62, %v1944_v62  ;;  %v2776_v62 = vld [vmem:[%s3123_s18 + $0x180] sm:$0xff] }
 0x277   : > { %v1479_v20 = vpop.f32.mrf.mxu2  ;;  %1914 = vmatmul.f32.gmra.mxu0 %v2869_v27  ;;  %v2824_v27 = vld [vmem:[%s3123_s18 + $0x181] sm:$0xff] }
 0x278   : > { %v2076_v2 = vadd.f32 %v2075_v53, %v2045_v43  ;;  %v1557_v37 = vadd.f32 %v1479_v20, %v3909_v15  ;;  %v1673_v33 = vpop.f32.mrf.mxu3  ;;  %v2823_v53 = vld [vmem:[%s3123_s18 + $0x171] sm:$0xff] }
 0x279   : > { %v2204_v6 = vpop.f32.mrf.mxu1 }
 0x27a   : > { %v1751_v46 = vadd.f32 %v1673_v33, %v1557_v37  ;;  %2280 = vst [vmem:[%s4056_s8 + $0x50] sm:$0xff] %v2204_v6  ;;  %v2311_v12 = vadd.f32 %v2310_v41, %v2204_v6  ;;  %v2349_v42 = vmul.f32 %v2204_v6, %v2204_v6 }
 0x27c   : > { %v1945_v13 = vadd.f32 %v1867_v16, %v1751_v46  ;;  %1529 = vmatmul.f32.gmra.mxu2 %v2774_v38  ;;  %v2380_v7 = vadd.f32 %v2379_v51, %v2349_v42  ;;  %2251 = vmatmul.f32.gmra.mxu1 %v2820_v10  ;;  %v1870_v15 = vpop.f32.mrf.mxu0  ;;  %v2777_v42 = vld [vmem:[%s3123_s18 + $0x188] sm:$0xff] }
 0x27d   : > { %1723 = vmatmul.f32.gmra.mxu3 %v2822_v26 }
 0x27e   : > { %1977 = vst [vmem:[%s4077_s11 + $0x48] sm:$0xff] %v1945_v13  ;;  %v2008_v5 = vadd.f32 %v2007_v39, %v1945_v13  ;;  %v2046_v4 = vmul.f32 %v1945_v13, %v1945_v13 }
 0x27f   : > { %v1482_v30 = vpop.f32.mrf.mxu2  ;;  %1917 = vmatmul.f32.gmra.mxu0 %v2870_v45 }
 0x280   : > { %v2077_v1 = vadd.f32 %v2076_v2, %v2046_v4  ;;  %v1558_v3 = vadd.f32 %v1482_v30, %v3919_v31  ;;  %v1676_v59 = vpop.f32.mrf.mxu3  ;;  %v2872_v2 = vld [vmem:[%s3123_s18 + $0x182] sm:$0xff]  ;;  %v2873_v30 = vld [vmem:[%s3123_s18 + $0x18a] sm:$0xff] }
 0x281   : > { %v2207_v19 = vpop.f32.mrf.mxu1 }
 0x282   : > { %v1752_v14 = vadd.f32 %v1676_v59, %v1558_v3  ;;  %2281 = vst [vmem:[%s4056_s8 + $0x58] sm:$0xff] %v2207_v19  ;;  %v2312_v10 = vadd.f32 %v2311_v12, %v2207_v19  ;;  %v2350_v34 = vmul.f32 %v2207_v19, %v2207_v19 }
 0x284   : > { %v1946_v57 = vadd.f32 %v1870_v15, %v1752_v14  ;;  %1532 = vmatmul.f32.gmra.mxu2 %v2775_v61  ;;  %v2381_v36 = vadd.f32 %v2380_v7, %v2350_v34  ;;  %2254 = vmatmul.f32.gmra.mxu1 %v2821_v29  ;;  %v1873_v31 = vpop.f32.mrf.mxu0  ;;  %v2825_v15 = vld [vmem:[%s3123_s18 + $0x189] sm:$0xff] }
 0x285   : > { %1726 = vmatmul.f32.gmra.mxu3 %v2823_v53 }
 0x286   : > { %1978 = vst [vmem:[%s4077_s11 + $0x50] sm:$0xff] %v1946_v57  ;;  %v2009_v50 = vadd.f32 %v2008_v5, %v1946_v57  ;;  %v2047_v28 = vmul.f32 %v1946_v57, %v1946_v57 }
 0x287   : > { %v1485_v49 = vpop.f32.mrf.mxu2  ;;  %1920 = vmatmul.f32.gmra.mxu0 %v2871_v52 }
 0x288   : > { %v2078_v40 = vadd.f32 %v2077_v1, %v2047_v28  ;;  %v1559_v41 = vadd.f32 %v1485_v49, %v3929_v18  ;;  %v1679_v0 = vpop.f32.mrf.mxu3  ;;  %v2874_v28 = vld [vmem:[%s3123_s18 + $0x19a] sm:$0xff] }
 0x289   : > { %v2210_v16 = vpop.f32.mrf.mxu1 }
 0x28a   : > { %v1753_v51 = vadd.f32 %v1679_v0, %v1559_v41  ;;  %2282 = vst [vmem:[%s4056_s8 + $0x60] sm:$0xff] %v2210_v16  ;;  %v2313_v29 = vadd.f32 %v2312_v10, %v2210_v16  ;;  %v2351_v39 = vmul.f32 %v2210_v16, %v2210_v16  ;;  %v2778_v10 = vld [vmem:[%s3123_s18 + $0x198] sm:$0xff]  ;;  %v2779_v16 = vld [vmem:[%s3123_s18 + $0x1a0] sm:$0xff] }
 0x28c   : > { %v1947_v43 = vadd.f32 %v1873_v31, %v1753_v51  ;;  %1535 = vmatmul.f32.gmra.mxu2 %v2776_v62  ;;  %v2382_v20 = vadd.f32 %v2381_v36, %v2351_v39  ;;  %2257 = vmatmul.f32.gmra.mxu1 %v2822_v26  ;;  %v1876_v18 = vpop.f32.mrf.mxu0  ;;  %v2826_v36 = vld [vmem:[%s3123_s18 + $0x199] sm:$0xff] }
 0x28d   : > { %1729 = vmatmul.f32.gmra.mxu3 %v2824_v27 }
 0x28e   : > { %1979 = vst [vmem:[%s4077_s11 + $0x58] sm:$0xff] %v1947_v43  ;;  %v2010_v37 = vadd.f32 %v2009_v50, %v1947_v43  ;;  %v2048_v33 = vmul.f32 %v1947_v43, %v1947_v43  ;;  %v2827_v43 = vld [vmem:[%s3123_s18 + $0x1a1] sm:$0xff] }
 0x28f   : > { %v1488_v38 = vpop.f32.mrf.mxu2  ;;  %1923 = vmatmul.f32.gmra.mxu0 %v2872_v2 }
 0x290   : > { %v2079_v46 = vadd.f32 %v2078_v40, %v2048_v33  ;;  %v1560_v6 = vadd.f32 %v1488_v38, %v3936_v22  ;;  %v1682_v12 = vpop.f32.mrf.mxu3  ;;  %v2875_v33 = vld [vmem:[%s3123_s18 + $0x1a2] sm:$0xff]  ;;  %s2570_s18 = sshll.u32 %s4331_s22, 1 }
 0x291   : > { %v2213_v7 = vpop.f32.mrf.mxu1  ;;  %s284_s14 = scalar_lea.vmem %s4317_s6, %s2570_s18  ;;  %s280_s16 = scalar_lea.vmem %s4316_s5, %s2570_s18 }
 0x292   : > { %v1754_v13 = vadd.f32 %v1682_v12, %v1560_v6  ;;  %2283 = vst [vmem:[%s4056_s8 + $0x68] sm:$0xff] %v2213_v7  ;;  %v2314_v26 = vadd.f32 %v2313_v29, %v2213_v7  ;;  %v2352_v45 = vmul.f32 %v2213_v7, %v2213_v7 }
 0x294   : > { %v1948_v5 = vadd.f32 %v1876_v18, %v1754_v13  ;;  %1538 = vmatmul.f32.gmra.mxu2 %v2777_v42  ;;  %v2383_v4 = vadd.f32 %v2382_v20, %v2352_v45  ;;  %2260 = vmatmul.f32.gmra.mxu1 %v2823_v53  ;;  %v1879_v22 = vpop.f32.mrf.mxu0 }
 0x295   : > { %1732 = vmatmul.f32.gmra.mxu3 %v2825_v15 }
 0x296   : > { %1980 = vst [vmem:[%s4077_s11 + $0x60] sm:$0xff] %v1948_v5  ;;  %v2011_v1 = vadd.f32 %v2010_v37, %v1948_v5  ;;  %v2049_v3 = vmul.f32 %v1948_v5, %v1948_v5 }
 0x297   : > { %v1491_v59 = vpop.f32.mrf.mxu2  ;;  %1926 = vmatmul.f32.gmra.mxu0 %v2873_v30 }
 0x298   : > { %v2080_v61 = vadd.f32 %v2079_v46, %v2049_v3  ;;  %v1561_v14 = vadd.f32 %v1491_v59, %v3943_v23  ;;  %v1685_v19 = vpop.f32.mrf.mxu3 }
 0x299   : > { %v2216_v57 = vpop.f32.mrf.mxu1 }
 0x29a   : > { %v1755_v34 = vadd.f32 %v1685_v19, %v1561_v14  ;;  %2284 = vst [vmem:[%s4056_s8 + $0x70] sm:$0xff] %v2216_v57  ;;  %v2315_v53 = vadd.f32 %v2314_v26, %v2216_v57  ;;  %v2353_v31 = vmul.f32 %v2216_v57, %v2216_v57 }
 0x29c   : > { %v1949_v52 = vadd.f32 %v1879_v22, %v1755_v34  ;;  %1541 = vmatmul.f32.gmra.mxu2 %v2778_v10  ;;  %v2384_v50 = vadd.f32 %v2383_v4, %v2353_v31  ;;  %2263 = vmatmul.f32.gmra.mxu1 %v2824_v27  ;;  %v1882_v23 = vpop.f32.mrf.mxu0 }
 0x29d   : > { %1735 = vmatmul.f32.gmra.mxu3 %v2826_v36 }
 0x29e   : > { %1981 = vst [vmem:[%s4077_s11 + $0x68] sm:$0xff] %v1949_v52  ;;  %v2012_v49 = vadd.f32 %v2011_v1, %v1949_v52  ;;  %v2050_v40 = vmul.f32 %v1949_v52, %v1949_v52 }
 0x29f   : > { %v1494_v41 = vpop.f32.mrf.mxu2  ;;  %1929 = vmatmul.f32.gmra.mxu0 %v2874_v28 }
 0x2a0   : > { %v2081_v0 = vadd.f32 %v2080_v61, %v2050_v40  ;;  %v1562_v62 = vadd.f32 %v1494_v41, %v3950_v60  ;;  %v1688_v51 = vpop.f32.mrf.mxu3 }
 0x2a1   : > { %v2219_v39 = vpop.f32.mrf.mxu1 }
 0x2a2   : > { %v1756_v29 = vadd.f32 %v1688_v51, %v1562_v62  ;;  %2285 = vst [vmem:[%s4056_s8 + $0x78] sm:$0xff] %v2219_v39  ;;  %v2316_v27 = vadd.f32 %v2315_v53, %v2219_v39  ;;  %v2354_v20 = vmul.f32 %v2219_v39, %v2219_v39 }
 0x2a4   : > { %v1950_v18 = vadd.f32 %v1882_v23, %v1756_v29  ;;  %1544 = vmatmul.f32.gmra.mxu2 %v2779_v16  ;;  %v2385_v2 = vadd.f32 %v2384_v50, %v2354_v20  ;;  %2266 = vmatmul.f32.gmra.mxu1 %v2825_v15  ;;  %v1885_v37 = vpop.f32.mrf.mxu0 }
 0x2a5   : > { %1738 = vmatmul.f32.gmra.mxu3 %v2827_v43 }
 0x2a6   : > { %1982 = vst [vmem:[%s4077_s11 + $0x70] sm:$0xff] %v1950_v18  ;;  %v2013_v60 = vadd.f32 %v2012_v49, %v1950_v18  ;;  %v2051_v38 = vmul.f32 %v1950_v18, %v1950_v18 }
 0x2a7   : > { %v1497_v46 = vpop.f32.mrf.mxu2  ;;  %1932 = vmatmul.f32.gmra.mxu0 %v2875_v33 }
 0x2a8   : > { %v2082_v6 = vadd.f32 %v2081_v0, %v2051_v38  ;;  %v1563_v12 = vadd.f32 %v1497_v46, %v3956_v24  ;;  %v1691_v42 = vpop.f32.mrf.mxu3 }
 0x2a9   : > { %v2222_v7 = vpop.f32.mrf.mxu1 }
 0x2aa   : > { %v1757_v13 = vadd.f32 %v1691_v42, %v1563_v12  ;;  %2286 = vst [vmem:[%s4056_s8 + $0x80] sm:$0xff] %v2222_v7  ;;  %v2317_v26 = vadd.f32 %v2316_v27, %v2222_v7  ;;  %v2355_v45 = vmul.f32 %v2222_v7, %v2222_v7 }
 0x2ac   : > { %v1951_v15 = vadd.f32 %v1885_v37, %v1757_v13  ;;  %v2386_v5 = vadd.f32 %v2385_v2, %v2355_v45  ;;  %v1888_v4 = vpop.f32.mrf.mxu0 }
 0x2ae   : > { %1983 = vst [vmem:[%s4077_s11 + $0x78] sm:$0xff] %v1951_v15  ;;  %v2014_v22 = vadd.f32 %v2013_v60, %v1951_v15  ;;  %v2052_v30 = vmul.f32 %v1951_v15, %v1951_v15 }
 0x2af   : > { %v1500_v1 = vpop.f32.mrf.mxu2 }
 0x2b0   : > { %v2083_v3 = vadd.f32 %v2082_v6, %v2052_v30  ;;  %v1564_v59 = vadd.f32 %v1500_v1, %v3963_v55  ;;  %v1694_v24 = vpop.f32.mrf.mxu3 }
 0x2b1   : > { %v2225_v14 = vpop.f32.mrf.mxu1 }
 0x2b2   : > { %v1758_v61 = vadd.f32 %v1694_v24, %v1564_v59  ;;  %2287 = vst [vmem:[%s4056_s8 + $0x88] sm:$0xff] %v2225_v14  ;;  %v2318_v19 = vadd.f32 %v2317_v26, %v2225_v14  ;;  %v2356_v10 = vmul.f32 %v2225_v14, %v2225_v14 }
 0x2b4   : > { %v1952_v34 = vadd.f32 %v1888_v4, %v1758_v61  ;;  %v2387_v57 = vadd.f32 %v2386_v5, %v2356_v10  ;;  %v1891_v36 = vpop.f32.mrf.mxu0 }
 0x2b6   : > { %1984 = vst [vmem:[%s4077_s11 + $0x80] sm:$0xff] %v1952_v34  ;;  %v2015_v53 = vadd.f32 %v2014_v22, %v1952_v34  ;;  %v2053_v31 = vmul.f32 %v1952_v34, %v1952_v34 }
 0x2b7   : > { %v1503_v52 = vpop.f32.mrf.mxu2 }
 0x2b8   : > { %v2084_v50 = vadd.f32 %v2083_v3, %v2053_v31  ;;  %v1565_v23 = vadd.f32 %v1503_v52, %v3969_v32  ;;  %v1697_v28 = vpop.f32.mrf.mxu3 }
 0x2b9   : > { %v2228_v49 = vpop.f32.mrf.mxu1 }
 0x2ba   : > { %v1759_v55 = vadd.f32 %v1697_v28, %v1565_v23  ;;  %2288 = vst [vmem:[%s4056_s8 + $0x90] sm:$0xff] %v2228_v49  ;;  %v2319_v40 = vadd.f32 %v2318_v19, %v2228_v49  ;;  %v2357_v41 = vmul.f32 %v2228_v49, %v2228_v49 }
 0x2bc   : > { %v1953_v0 = vadd.f32 %v1891_v36, %v1759_v55  ;;  %v2388_v62 = vadd.f32 %v2387_v57, %v2357_v41  ;;  %v1894_v51 = vpop.f32.mrf.mxu0 }
 0x2be   : > { %1985 = vst [vmem:[%s4077_s11 + $0x88] sm:$0xff] %v1953_v0  ;;  %v2016_v16 = vadd.f32 %v2015_v53, %v1953_v0  ;;  %v2054_v29 = vmul.f32 %v1953_v0, %v1953_v0 }
 0x2bf   : > { %v1506_v39 = vpop.f32.mrf.mxu2 }
 0x2c0   : > { %v2085_v43 = vadd.f32 %v2084_v50, %v2054_v29  ;;  %v1566_v27 = vadd.f32 %v1506_v39, %v3975_v56  ;;  %v1700_v20 = vpop.f32.mrf.mxu3 }
 0x2c1   : > { %v2231_v18 = vpop.f32.mrf.mxu1 }
 0x2c2   : > { %v1760_v32 = vadd.f32 %v1700_v20, %v1566_v27  ;;  %2289 = vst [vmem:[%s4056_s8 + $0x98] sm:$0xff] %v2231_v18  ;;  %v2320_v2 = vadd.f32 %v2319_v40, %v2231_v18  ;;  %v2358_v37 = vmul.f32 %v2231_v18, %v2231_v18 }
 0x2c4   : > { %v1954_v33 = vadd.f32 %v1894_v51, %v1760_v32  ;;  %v2389_v60 = vadd.f32 %v2388_v62, %v2358_v37  ;;  %v1897_v38 = vpop.f32.mrf.mxu0 }
 0x2c6   : > { %1986 = vst [vmem:[%s4077_s11 + $0x90] sm:$0xff] %v1954_v33  ;;  %v2017_v46 = vadd.f32 %v2016_v16, %v1954_v33  ;;  %v2055_v6 = vmul.f32 %v1954_v33, %v1954_v33 }
 0x2c7   : > { %v1509_v12 = vpop.f32.mrf.mxu2 }
 0x2c8   : > { %v2086_v42 = vadd.f32 %v2085_v43, %v2055_v6  ;;  %v1567_v13 = vadd.f32 %v1509_v12, %v3981_v9  ;;  %v1703_v7 = vpop.f32.mrf.mxu3 }
 0x2c9   : > { %v2234_v26 = vpop.f32.mrf.mxu1 }
 0x2ca   : > { %v1761_v56 = vadd.f32 %v1703_v7, %v1567_v13  ;;  %2290 = vst [vmem:[%s4056_s8 + $0xa0] sm:$0xff] %v2234_v26  ;;  %v4221_v45 = vadd.f32 %v2320_v2, %v2234_v26  ;;  %v2359_v15 = vmul.f32 %v2234_v26, %v2234_v26 }
 0x2cc   : > { %v1955_v5 = vadd.f32 %v1897_v38, %v1761_v56  ;;  %v4223_v4 = vadd.f32 %v2389_v60, %v2359_v15  ;;  %v1900_v22 = vpop.f32.mrf.mxu0 }
 0x2ce   : > { %1987 = vst [vmem:[%s4077_s11 + $0x98] sm:$0xff] %v1955_v5  ;;  %v2018_v30 = vadd.f32 %v2017_v46, %v1955_v5  ;;  %v2056_v1 = vmul.f32 %v1955_v5, %v1955_v5 }
 0x2cf   : > { %v1512_v3 = vpop.f32.mrf.mxu2 }
 0x2d0   : > { %v2087_v59 = vadd.f32 %v2086_v42, %v2056_v1  ;;  %v1568_v9 = vadd.f32 %v1512_v3, %v3987_v47  ;;  %v1706_v24 = vpop.f32.mrf.mxu3 }
 0x2d1   : > { %v4227_v14 = vpop.f32.mrf.mxu1 }
 0x2d2   : > { %v1762_v61 = vadd.f32 %v1706_v24, %v1568_v9  ;;  %2291 = vst [vmem:[%s4056_s8 + $0xa8] sm:$0xff] %v4227_v14 }
 0x2d4   : > { %v1956_v19 = vadd.f32 %v1900_v22, %v1762_v61  ;;  %v1903_v10 = vpop.f32.mrf.mxu0 }
 0x2d6   : > { %1988 = vst [vmem:[%s4077_s11 + $0xa0] sm:$0xff] %v1956_v19  ;;  %v2019_v34 = vadd.f32 %v2018_v30, %v1956_v19  ;;  %v2057_v57 = vmul.f32 %v1956_v19, %v1956_v19 }
 0x2d7   : > { %v1515_v36 = vpop.f32.mrf.mxu2 }
 0x2d8   : > { %v2088_v53 = vadd.f32 %v2087_v59, %v2057_v57  ;;  %v1569_v31 = vadd.f32 %v1515_v36, %v3993_v58  ;;  %v1709_v52 = vpop.f32.mrf.mxu3 }
 0x2d9   : > { %v4233_v50 = vpop.f32.mrf.mxu1 }
 0x2da   : > { %v1763_v47 = vadd.f32 %v1709_v52, %v1569_v31  ;;  %2292 = vst [vmem:[%s4056_s8 + $0xb0] sm:$0xff] %v4233_v50 }
 0x2dc   : > { %v1957_v23 = vadd.f32 %v1903_v10, %v1763_v47  ;;  %v1906_v28 = vpop.f32.mrf.mxu0 }
 0x2de   : > { %1989 = vst [vmem:[%s4077_s11 + $0xa8] sm:$0xff] %v1957_v23  ;;  %v2020_v55 = vadd.f32 %v2019_v34, %v1957_v23  ;;  %v2058_v49 = vmul.f32 %v1957_v23, %v1957_v23 }
 0x2df   : > { %v1518_v40 = vpop.f32.mrf.mxu2 }
 0x2e0   : > { %v2089_v41 = vadd.f32 %v2088_v53, %v2058_v49  ;;  %v1570_v0 = vadd.f32 %v1518_v40, %v3999_v21  ;;  %v1712_v62 = vpop.f32.mrf.mxu3 }
 0x2e1   : > { %v4239_v51 = vpop.f32.mrf.mxu1 }
 0x2e2   : > { %v1764_v58 = vadd.f32 %v1712_v62, %v1570_v0  ;;  %2293 = vst [vmem:[%s4056_s8 + $0xb8] sm:$0xff] %v4239_v51  ;;  %v2360_v0 = vmul.f32 %v4227_v14, %v4227_v14 }
 0x2e4   : > { %v1958_v16 = vadd.f32 %v1906_v28, %v1764_v58  ;;  %v1909_v29 = vpop.f32.mrf.mxu0 }
 0x2e6   : > { %1990 = vst [vmem:[%s4077_s11 + $0xb0] sm:$0xff] %v1958_v16  ;;  %v2021_v39 = vadd.f32 %v2020_v55, %v1958_v16  ;;  %v2059_v43 = vmul.f32 %v1958_v16, %v1958_v16 }
 0x2e7   : > { %v1521_v27 = vpop.f32.mrf.mxu2 }
 0x2e8   : > { %v2090_v20 = vadd.f32 %v2089_v41, %v2059_v43  ;;  %v1571_v32 = vadd.f32 %v1521_v27, %v4005_v11  ;;  %v1715_v18 = vpop.f32.mrf.mxu3 }
 0x2e9   : > { %v4245_v2 = vpop.f32.mrf.mxu1 }
 0x2ea   : > { %v1765_v21 = vadd.f32 %v1715_v18, %v1571_v32  ;;  %2294 = vst [vmem:[%s4056_s8 + $0xc0] sm:$0xff] %v4245_v2  ;;  %v2391_v32 = vadd.f32 %v4223_v4, %v2360_v0 }
 0x2ec   : > { %v1959_v37 = vadd.f32 %v1909_v29, %v1765_v21  ;;  %v1912_v33 = vpop.f32.mrf.mxu0  ;;  %v2322_v29 = vadd.f32 %v4221_v45, %v4227_v14  ;;  %v2362_v21 = vmul.f32 %v4239_v51, %v4239_v51  ;;  %v2363_v14 = vmul.f32 %v4245_v2, %v4245_v2 }
 0x2ee   : > { %1991 = vst [vmem:[%s4077_s11 + $0xb8] sm:$0xff] %v1959_v37  ;;  %v2022_v60 = vadd.f32 %v2021_v39, %v1959_v37  ;;  %v2060_v38 = vmul.f32 %v1959_v37, %v1959_v37  ;;  %v2361_v39 = vmul.f32 %v4233_v50, %v4233_v50  ;;  %v2323_v18 = vadd.f32 %v2322_v29, %v4233_v50 }
 0x2ef   : > { %v1524_v46 = vpop.f32.mrf.mxu2 }
 0x2f0   : > { %v2091_v6 = vadd.f32 %v2090_v20, %v2060_v38  ;;  %v1572_v12 = vadd.f32 %v1524_v46, %v4011_v48  ;;  %v1718_v42 = vpop.f32.mrf.mxu3  ;;  %v2324_v45 = vadd.f32 %v2323_v18, %v4239_v51 }
 0x2f1   : > { %v4251_v13 = vpop.f32.mrf.mxu1 }
 0x2f2   : > { %v1766_v11 = vadd.f32 %v1718_v42, %v1572_v12  ;;  %2295 = vst [vmem:[%s4056_s8 + $0xc8] sm:$0xff] %v4251_v13  ;;  %v2325_v46 = vadd.f32 %v2324_v45, %v4245_v2  ;;  %v2364_v4 = vmul.f32 %v4251_v13, %v4251_v13 }
 0x2f4   : > { %v1960_v7 = vadd.f32 %v1912_v33, %v1766_v11  ;;  %v1915_v56 = vpop.f32.mrf.mxu0  ;;  %v2326_v11 = vadd.f32 %v2325_v46, %v4251_v13 }
 0x2f6   : > { %1992 = vst [vmem:[%s4077_s11 + $0xc0] sm:$0xff] %v1960_v7  ;;  %v2023_v26 = vadd.f32 %v2022_v60, %v1960_v7  ;;  %v2061_v15 = vmul.f32 %v1960_v7, %v1960_v7  ;;  %v2392_v60 = vadd.f32 %v2391_v32, %v2361_v39 }
 0x2f7   : > { %v1527_v5 = vpop.f32.mrf.mxu2 }
 0x2f8   : > { %v2092_v22 = vadd.f32 %v2091_v6, %v2061_v15  ;;  %v1573_v30 = vadd.f32 %v1527_v5, %v4017_v35  ;;  %v1721_v1 = vpop.f32.mrf.mxu3 }
 0x2f9   : > { %v4257_v3 = vpop.f32.mrf.mxu1 }
 0x2fa   : > { %v1767_v48 = vadd.f32 %v1721_v1, %v1573_v30  ;;  %2296 = vst [vmem:[%s4056_s8 + $0xd0] sm:$0xff] %v4257_v3  ;;  %v2365_v51 = vmul.f32 %v4257_v3, %v4257_v3  ;;  %v2327_v5 = vadd.f32 %v2326_v11, %v4257_v3 }
 0x2fc   : > { %v1961_v59 = vadd.f32 %v1915_v56, %v1767_v48  ;;  %v1918_v9 = vpop.f32.mrf.mxu0 }
 0x2fe   : > { %1993 = vst [vmem:[%s4077_s11 + $0xc8] sm:$0xff] %v1961_v59  ;;  %v2024_v24 = vadd.f32 %v2023_v26, %v1961_v59  ;;  %v2062_v61 = vmul.f32 %v1961_v59, %v1961_v59 }
 0x2ff   : > { %v1530_v19 = vpop.f32.mrf.mxu2 }
 0x300   : > { %v2093_v10 = vadd.f32 %v2092_v22, %v2062_v61  ;;  %v1574_v34 = vadd.f32 %v1530_v19, %v4023_v63  ;;  %v1724_v57 = vpop.f32.mrf.mxu3 }
 0x301   : > { %v2255_v36 = vpop.f32.mrf.mxu1 }
 0x302   : > { %v1768_v35 = vadd.f32 %v1724_v57, %v1574_v34  ;;  %2297 = vst [vmem:[%s4056_s8 + $0xd8] sm:$0xff] %v2255_v36  ;;  %v2366_v22 = vmul.f32 %v2255_v36, %v2255_v36  ;;  %v2328_v59 = vadd.f32 %v2327_v5, %v2255_v36 }
 0x304   : > { %v1962_v53 = vadd.f32 %v1918_v9, %v1768_v35  ;;  %v1921_v31 = vpop.f32.mrf.mxu0 }
 0x306   : > { %1994 = vst [vmem:[%s4077_s11 + $0xd0] sm:$0xff] %v1962_v53  ;;  %v2025_v52 = vadd.f32 %v2024_v24, %v1962_v53  ;;  %v2063_v47 = vmul.f32 %v1962_v53, %v1962_v53 }
 0x307   : > { %v1533_v23 = vpop.f32.mrf.mxu2 }
 0x308   : > { %v2094_v28 = vadd.f32 %v2093_v10, %v2063_v47  ;;  %v1575_v55 = vadd.f32 %v1533_v23, %v4029_v25  ;;  %v1727_v49 = vpop.f32.mrf.mxu3 }
 0x309   : > { %v2258_v41 = vpop.f32.mrf.mxu1 }
 0x30a   : > { %v1769_v40 = vadd.f32 %v1727_v49, %v1575_v55  ;;  %2298 = vst [vmem:[%s4056_s8 + $0xe0] sm:$0xff] %v2258_v41  ;;  %v2367_v9 = vmul.f32 %v2258_v41, %v2258_v41  ;;  %v2329_v61 = vadd.f32 %v2328_v59, %v2258_v41 }
 0x30c   : > { %v1963_v63 = vadd.f32 %v1921_v31, %v1769_v40  ;;  %v1924_v62 = vpop.f32.mrf.mxu0 }
 0x30e   : > { %1995 = vst [vmem:[%s4077_s11 + $0xd8] sm:$0xff] %v1963_v63  ;;  %v2026_v58 = vadd.f32 %v2025_v52, %v1963_v63  ;;  %v2064_v16 = vmul.f32 %v1963_v63, %v1963_v63 }
 0x30f   : > { %v1536_v25 = vpop.f32.mrf.mxu2 }
 0x310   : > { %v2095_v43 = vadd.f32 %v2094_v28, %v2064_v16  ;;  %v1576_v27 = vadd.f32 %v1536_v25, %v4035_v8  ;;  %v1730_v20 = vpop.f32.mrf.mxu3  ;;  %v2393_v8 = vadd.f32 %v2392_v60, %v2362_v21 }
 0x311   : > { %v2261_v33 = vpop.f32.mrf.mxu1 }
 0x312   : > { %v1770_v37 = vadd.f32 %v1730_v20, %v1576_v27  ;;  %2299 = vst [vmem:[%s4056_s8 + $0xe8] sm:$0xff] %v2261_v33  ;;  %v2394_v42 = vadd.f32 %v2393_v8, %v2363_v14  ;;  %v2368_v19 = vmul.f32 %v2261_v33, %v2261_v33  ;;  %v2330_v57 = vadd.f32 %v2329_v61, %v2261_v33 }
 0x314   : > { %v1964_v38 = vadd.f32 %v1924_v62, %v1770_v37  ;;  %v1927_v50 = vpop.f32.mrf.mxu0  ;;  %v2395_v15 = vadd.f32 %v2394_v42, %v2364_v4 }
 0x316   : > { %1996 = vst [vmem:[%s4077_s11 + $0xe0] sm:$0xff] %v1964_v38  ;;  %v2027_v6 = vadd.f32 %v2026_v58, %v1964_v38  ;;  %v2065_v12 = vmul.f32 %v1964_v38, %v1964_v38  ;;  %v2396_v48 = vadd.f32 %v2395_v15, %v2365_v51 }
 0x317   : > { %v1539_v7 = vpop.f32.mrf.mxu2 }
 0x318   : > { %v2096_v56 = vadd.f32 %v2095_v43, %v2065_v12  ;;  %v1577_v26 = vadd.f32 %v1539_v7, %v4042_v44  ;;  %v1733_v2 = vpop.f32.mrf.mxu3  ;;  %v2397_v24 = vadd.f32 %v2396_v48, %v2366_v22 }
 0x319   : > { %v2264_v1 = vpop.f32.mrf.mxu1 }
 0x31a   : > { %v1771_v30 = vadd.f32 %v1733_v2, %v1577_v26  ;;  %2300 = vst [vmem:[%s4056_s8 + $0xf0] sm:$0xff] %v2264_v1  ;;  %v2398_v44 = vadd.f32 %v2397_v24, %v2367_v9  ;;  %v2369_v35 = vmul.f32 %v2264_v1, %v2264_v1  ;;  %v2331_v23 = vadd.f32 %v2330_v57, %v2264_v1 }
 0x31c   : > { %v1965_v13 = vadd.f32 %v1927_v50, %v1771_v30  ;;  %v1930_v3 = vpop.f32.mrf.mxu0  ;;  %v2399_v47 = vadd.f32 %v2398_v44, %v2368_v19 }
 0x31e   : > { %1997 = vst [vmem:[%s4077_s11 + $0xe8] sm:$0xff] %v1965_v13  ;;  %v2028_v10 = vadd.f32 %v2027_v6, %v1965_v13  ;;  %v2066_v34 = vmul.f32 %v1965_v13, %v1965_v13  ;;  %v2400_v49 = vadd.f32 %v2399_v47, %v2369_v35 }
 0x31f   : > { %v1542_v53 = vpop.f32.mrf.mxu2 }
 0x320   : > { %v2097_v31 = vadd.f32 %v2096_v56, %v2066_v34  ;;  %v1578_v52 = vadd.f32 %v1542_v53, %v4050_v17  ;;  %v1736_v36 = vpop.f32.mrf.mxu3 }
 0x321   : > { %v2267_v55 = vpop.f32.mrf.mxu1 }
 0x322   : > { %v1772_v28 = vadd.f32 %v1736_v36, %v1578_v52  ;;  %2301 = vst [vmem:[%s4056_s8 + $0xf8] sm:$0xff] %v2267_v55  ;;  %v2332_v40 = vadd.f32 %v2331_v23, %v2267_v55  ;;  %v2370_v41 = vmul.f32 %v2267_v55, %v2267_v55 }
 0x324   : > { %v1966_v63 = vadd.f32 %v1930_v3, %v1772_v28  ;;  %v2333_v0 = vrot.slane %v2332_v40, 4  ;;  %v2401_v62 = vadd.f32 %v2400_v49, %v2370_v41  ;;  %v1933_v18 = vpop.f32.mrf.mxu0 }
 0x326   : > { %1998 = vst [vmem:[%s4077_s11 + $0xf0] sm:$0xff] %v1966_v63  ;;  %v2029_v58 = vadd.f32 %v2028_v10, %v1966_v63  ;;  %v2067_v16 = vmul.f32 %v1966_v63, %v1966_v63  ;;  %v2334_v29 = vadd.f32 %v2333_v0, %v2332_v40  ;;  %v2402_v39 = vrot.slane %v2401_v62, 4 }
 0x327   : > { %v1545_v17 = vpop.f32.mrf.mxu2 }
 0x328   : > { %v2098_v25 = vadd.f32 %v2097_v31, %v2067_v16  ;;  %v1579_v43 = vadd.f32 %v1545_v17, %v4066_v54  ;;  %v1739_v27 = vpop.f32.mrf.mxu3  ;;  %v2335_v20 = vrot.slane %v2334_v29, 2  ;;  %v2403_v32 = vadd.f32 %v2402_v39, %v2401_v62 }
 0x32a   : > { %v1773_v21 = vadd.f32 %v1739_v27, %v1579_v43  ;;  %v2336_v37 = vadd.f32 %v2335_v20, %v2334_v29  ;;  %v2404_v33 = vrot.slane %v2403_v32, 2 }
 0x32c   : > { %v1967_v60 = vadd.f32 %v1933_v18, %v1773_v21  ;;  %v2337_v45 = vrot.slane %v2336_v37, 1  ;;  %v2405_v14 = vadd.f32 %v2404_v33, %v2403_v32 }
 0x32e   : > { %1999 = vst [vmem:[%s4077_s11 + $0xf8] sm:$0xff] %v1967_v60  ;;  %v2030_v38 = vadd.f32 %v2029_v58, %v1967_v60  ;;  %v2068_v8 = vmul.f32 %v1967_v60, %v1967_v60  ;;  %v2406_v46 = vrot.slane %v2405_v14, 1  ;;  %v2338_v54 = vadd.f32 %v2337_v45, %v2336_v37 }
 0x330   : > { %v2031_v4 = vrot.slane %v2030_v38, 4  ;;  %v2099_v50 = vadd.f32 %v2098_v25, %v2068_v8  ;;  %v2407_v6 = vadd.f32 %v2406_v46, %v2405_v14 }
 0x332   : > { %v2032_v12 = vadd.f32 %v2031_v4, %v2030_v38  ;;  %v2100_v42 = vrot.slane %v2099_v50, 4  ;;  %v2408_v11 = vsel %vm2106_vm0, %v2338_v54, %v2407_v6 }
 0x333   : > { %2409 = vst [vmem:[%s284_s14] sm:$0x3] %v2408_v11 }
 0x334   : > { %v2033_v51 = vrot.slane %v2032_v12, 2  ;;  %v2101_v7 = vadd.f32 %v2100_v42, %v2099_v50 }
 0x336   : > { %v2034_v56 = vadd.f32 %v2033_v51, %v2032_v12  ;;  %v2102_v26 = vrot.slane %v2101_v7, 2 }
 0x338   : > { %v2035_v2 = vrot.slane %v2034_v56, 1  ;;  %v2103_v15 = vadd.f32 %v2102_v26, %v2101_v7 }
 0x33a   : > { %v2104_v5 = vrot.slane %v2103_v15, 1  ;;  %v2036_v22 = vadd.f32 %v2035_v2, %v2034_v56 }
 0x33c   : > { %v2105_v30 = vadd.f32 %v2104_v5, %v2103_v15 }
 0x33e   : > { %v2107_v1 = vsel %vm2106_vm0, %v2036_v22, %v2105_v30 }
 0x33f   : > { %2108 = vst [vmem:[%s280_s16] sm:$0x3] %v2107_v1 }
 0x340 PF: > { %s17_s21 = sadd.s32 1, %s2978_s21  }
 0x341   : > { %p14_p4 = scmp.ge.s32.totalorder %s17_s21, 4  }
 0x343   :  { %16 = sbr.rel (!%p14_p4) target bundleno = 1 (0x1), region = 108 }

// kernel: residual_block_forward.4
= control target key start
LH: loop header
LB: loop body
LE: loop exit
PB: predicated region body
PF: predicated region fallthrough
CT: control target
= control target key end

     0   :  { %s2575_s15 = smov 0   ;;  %s3591_s0 = inlined_call_operand.vmem [shape: f32[2,16,16,128], index: 0, kind: input, shape index: {}]   ;;  %s3592_s1 = inlined_call_operand.vmem [shape: f32[9,128,128], index: 1, kind: input, shape index: {}]   ;;  %s3593_s2 = inlined_call_operand.vmem [shape: f32[2,128], index: 2, kind: input, shape index: {}]   ;;  %s3594_s3 = inlined_call_operand.vmem [shape: f32[2,16,16,128], index: 3, kind: output, shape index: {0}]   ;;  %s3595_s4 = inlined_call_operand.vmem [shape: f32[2,2,128], index: 4, kind: output, shape index: {1}]  }
   0x1 LB: > { %s2337_s16 = sadd.s32 4294967295, %s2547_s15   ;;  %p2341_p0 = scmp.ge.s32.totalorder %s2547_s15, 1  ;;  %s2547_s15 = sphi %s2575_s15, %s15_s15  }
   0x2   : > { %p165_p1 = scmp.lt.s32.totalorder %s2547_s15, 3 }
   0x4   : > { %p166_p2 = pnand %p2341_p0, %p165_p1 }
   0x5   : > { %p195_p3 = scmp.lt.s32.totalorder (!%p166_p2), %s2337_s16, 1 }
   0x6   : > { %169 = sbr.rel (%p166_p2) target bundleno = 767 (0x2ff), region = 32 }
   0xb   : > { %v2362_v0 = vld [vmem:[%s3592_s1 + $0xf8] sm:$0xff]  ;;  %v2361_v1 = vld [vmem:[%s3592_s1 + $0xf0] sm:$0xff]  ;;  %v2549_v2 = vmov 0.0   ;;  %v2360_v3 = vld [vmem:[%s3592_s1 + $0xe8] sm:$0xff]  ;;  %s3597_s16 = smov (!%p195_p3, %s2337_s16), 1  ;;  %vm2248_vm0 = vcmask 1040384  }
   0xc   : > { %2479 = vmatpush.msra.mxu1 %v2362_v0  ;;  %2480 = vmatpush.msra.mxu2 %v2362_v0  ;;  %353 = vst [vmem:[#allocation2 + $0x60] sm:$0xff] %v2549_v2  ;;  %v2359_v4 = vld [vmem:[%s3592_s1 + $0xe0] sm:$0xff]  ;;  %s2477_s25 = sshll.u32 %s3597_s16, 8  ;;  %v2358_v5 = vld [vmem:[%s3592_s1 + $0xd8] sm:$0xff]  ;;  %v2357_v9 = vld [vmem:[%s3592_s1 + $0xd0] sm:$0xff] }
   0xd   : > { %2481 = vmatpush.msra.mxu3 %v2362_v0  ;;  %525 = vmatpush.msra.mxu0 %v2362_v0  ;;  %354 = vst [vmem:[#allocation2 + $0x68] sm:$0xff] %v2549_v2  ;;  %s2610_s30 = scalar_lea.vmem %s3591_s0, %s2477_s25  ;;  %v2617_v7 = vld [vmem:[%s3593_s2] ss:$0 sm:$0xff]  ;;  %v2622_v8 = vld [vmem:[%s3593_s2 + $0x1] ss:$0 sm:$0xff]  ;;  %v2356_v11 = vld [vmem:[%s3592_s1 + $0xc8] sm:$0xff]  ;;  %s3519_s6 = scalar_lea.vmem %s3594_s3, %s2477_s25 }
   0xe   : > { %2482 = vmatpush.msra.mxu1 %v2361_v1  ;;  %2483 = vmatpush.msra.mxu2 %v2361_v1  ;;  %341 = vst [vmem:[#allocation2] sm:$0xff] %v2549_v2  ;;  %v217_v6 = vld [vmem:[%s2610_s30 + $0x30] sm:$0xff]  ;;  %v2355_v13 = vld [vmem:[%s3592_s1 + $0xc0] sm:$0xff]  ;;  %v2354_v15 = vld [vmem:[%s3592_s1 + $0xb8] sm:$0xff]  ;;  %s2346_s25 = sshll.u32 %s3597_s16, 1 }
   0xf   : > { %2484 = vmatpush.msra.mxu3 %v2361_v1  ;;  %526 = vmatpush.msra.mxu0 %v2361_v1  ;;  %342 = vst [vmem:[#allocation2 + $0x8] sm:$0xff] %v2549_v2  ;;  %v250_v10 = vmul.f32 %v2617_v7, %v217_v6  ;;  %v2353_v16 = vld [vmem:[%s3592_s1 + $0xb0] sm:$0xff]  ;;  %v2352_v18 = vld [vmem:[%s3592_s1 + $0xa8] sm:$0xff]  ;;  %v2351_v20 = vld [vmem:[%s3592_s1 + $0xa0] sm:$0xff]  ;;  %s208_s9 = scalar_lea.vmem %s3595_s4, %s2346_s25 }
  0x10   : > { %2485 = vmatpush.msra.mxu1 %v2360_v3  ;;  %2486 = vmatpush.msra.mxu2 %v2360_v3  ;;  %344 = vst [vmem:[#allocation2 + $0x18] sm:$0xff] %v2549_v2  ;;  %v225_v17 = vld [vmem:[%s2610_s30 + $0x70] sm:$0xff]  ;;  %v2350_v22 = vld [vmem:[%s3592_s1 + $0x98] sm:$0xff]  ;;  %v2348_v28 = vld [vmem:[%s3592_s1 + $0x88] sm:$0xff] }
  0x11   : > { %2487 = vmatpush.msra.mxu3 %v2360_v3  ;;  %527 = vmatpush.msra.mxu0 %v2360_v3  ;;  %345 = vst [vmem:[#allocation2 + $0x20] sm:$0xff] %v2549_v2  ;;  %v283_v12 = vadd.f32 %v2622_v8, %v250_v10  ;;  %v233_v19 = vld [vmem:[%s2610_s30 + $0xb0] sm:$0xff]  ;;  %v258_v21 = vmul.f32 %v2617_v7, %v225_v17  ;;  %v218_v26 = vld [vmem:[%s2610_s30 + $0x38] sm:$0xff]  ;;  %v2347_v31 = vld [vmem:[%s3592_s1 + $0x80] sm:$0xff] }
  0x12   : > { %2488 = vmatpush.msra.mxu1 %v2359_v4  ;;  %2489 = vmatpush.msra.mxu2 %v2359_v4  ;;  %343 = vst [vmem:[#allocation2 + $0x10] sm:$0x3] %v2549_v2  ;;  %v266_v23 = vmul.f32 %v2617_v7, %v233_v19  ;;  %v2349_v24 = vld [vmem:[%s3592_s1 + $0x90] sm:$0xff]  ;;  %v226_v27 = vld [vmem:[%s2610_s30 + $0x78] sm:$0xff]  ;;  %v251_v33 = vmul.f32 %v2617_v7, %v218_v26  ;;  %v219_v44 = vld [vmem:[%s2610_s30 + $0x40] sm:$0xff] }
  0x13   : > { %2490 = vmatpush.msra.mxu3 %v2359_v4  ;;  %528 = vmatpush.msra.mxu0 %v2359_v4  ;;  %346 = vst [vmem:[#allocation2 + $0x28] sm:$0x3] %v2549_v2  ;;  %v2641_v14 = vmax.f32 %v283_v12, 0.0  ;;  %v2679_v25 = vadd.f32 %v2622_v8, %v258_v21  ;;  %v234_v30 = vld [vmem:[%s2610_s30 + $0xb8] sm:$0xff]  ;;  %v259_v34 = vmul.f32 %v2617_v7, %v226_v27  ;;  %v2377_v40 = vld [vmem:[%s3592_s1 + $0x170] sm:$0xff]  ;;  %v227_v45 = vld [vmem:[%s2610_s30 + $0x80] sm:$0xff] }
  0x14   : > { %2491 = vmatpush.msra.mxu1 %v2358_v5  ;;  %2492 = vmatpush.msra.mxu2 %v2358_v5  ;;  %347 = vst [vmem:[#allocation2 + $0x30] sm:$0xff] %v2549_v2  ;;  %v2689_v29 = vadd.f32 %v2622_v8, %v266_v23  ;;  %v2378_v35 = vld [vmem:[%s3592_s1 + $0x178] sm:$0xff]  ;;  %v267_v37 = vmul.f32 %v2617_v7, %v234_v30  ;;  %v474_v43 = vld [vmem:[%s3592_s1 + $0x70] sm:$0xff]  ;;  %v2376_v47 = vld [vmem:[%s3592_s1 + $0x168] sm:$0xff] }
  0x15   : > { %2493 = vmatpush.msra.mxu3 %v2358_v5  ;;  %529 = vmatpush.msra.mxu0 %v2358_v5  ;;  %348 = vst [vmem:[#allocation2 + $0x38] sm:$0xff] %v2549_v2  ;;  %v323_v32 = vmax.f32 %v2679_v25, 0.0  ;;  %v475_v38 = vld [vmem:[%s3592_s1 + $0x78] sm:$0xff]  ;;  %v284_v41 = vadd.f32 %v2622_v8, %v251_v33  ;;  %v2723_v42 = vadd.f32 %v2622_v8, %v259_v34  ;;  %v2393_v46 = vld [vmem:[%s3592_s1 + $0x1f0] sm:$0xff]  ;;  %v473_v50 = vld [vmem:[%s3592_s1 + $0x68] sm:$0xff] }
  0x16   : > { %2494 = vmatpush.msra.mxu1 %v2357_v9  ;;  %2495 = vmatpush.msra.mxu2 %v2357_v9  ;;  %349 = vst [vmem:[#allocation2 + $0x40] sm:$0x3] %v2549_v2  ;;  %v331_v36 = vmax.f32 %v2689_v29, 0.0  ;;  %v2394_v39 = vld [vmem:[%s3592_s1 + $0x1f8] sm:$0xff]  ;;  %v2741_v48 = vadd.f32 %v2622_v8, %v267_v37  ;;  %v476_v49 = vld [vmem:[#allocation2 + $0x1] sm:$0xff]  ;;  %v252_v56 = vmul.f32 %v2617_v7, %v219_v44  ;;  %v2409_v62 = vld [vmem:[%s3592_s1 + $0x270] sm:$0xff] }
  0x17   : > { %2496 = vmatpush.msra.mxu3 %v2357_v9  ;;  %530 = vmatpush.msra.mxu0 %v2357_v9  ;;  %350 = vst [vmem:[#allocation2 + $0x48] sm:$0xff] %v2549_v2  ;;  %v235_v51 = vld [vmem:[%s2610_s30 + $0xc0] sm:$0xff]  ;;  %v2749_v52 = vmax.f32 %v284_v41, 0.0  ;;  %v324_v53 = vmax.f32 %v2723_v42, 0.0  ;;  %v2392_v54 = vld [vmem:[%s3592_s1 + $0x1e8] sm:$0xff]  ;;  %v2410_v55 = vld [vmem:[%s3592_s1 + $0x278] sm:$0xff]  ;;  %v260_v57 = vmul.f32 %v2617_v7, %v227_v45 }
  0x18   : > { %2497 = vmatpush.msra.mxu1 %v2356_v11  ;;  %2498 = vmatpush.msra.mxu2 %v2356_v11  ;;  %351 = vst [vmem:[#allocation2 + $0x50] sm:$0xff] %v2549_v2  ;;  %v332_v58 = vmax.f32 %v2741_v48, 0.0  ;;  %v2375_v59 = vld [vmem:[%s3592_s1 + $0x160] sm:$0xff]  ;;  %v268_v61 = vmul.f32 %v2617_v7, %v235_v51  ;;  %v285_v0 = vadd.f32 %v2622_v8, %v252_v56  ;;  %v2374_v4 = vld [vmem:[%s3592_s1 + $0x158] sm:$0xff]  ;;  %v220_v5 = vld [vmem:[%s2610_s30 + $0x48] sm:$0xff] }
  0x19   : > { %2499 = vmatpush.msra.mxu3 %v2356_v11  ;;  %531 = vmatpush.msra.mxu0 %v2356_v11  ;;  %402 = vst [vmem:[#allocation2 + $0x61] sm:$0xff] %v2641_v14  ;;  %v2391_v60 = vld [vmem:[%s3592_s1 + $0x1e0] sm:$0xff]  ;;  %v2781_v1 = vadd.f32 %v2622_v8, %v260_v57  ;;  %v2390_v6 = vld [vmem:[%s3592_s1 + $0x1d8] sm:$0xff]  ;;  %v2408_v9 = vld [vmem:[%s3592_s1 + $0x268] sm:$0xff] }
  0x1a   : > { %2500 = vmatpush.msra.mxu1 %v2355_v13  ;;  %2501 = vmatpush.msra.mxu2 %v2355_v13  ;;  %352 = vst [vmem:[#allocation2 + $0x58] sm:$0x3] %v2549_v2  ;;  %v211_v63 = vld [vmem:[%s2610_s30] sm:$0xff]  ;;  %v228_v10 = vld [vmem:[%s2610_s30 + $0x88] sm:$0xff]  ;;  %v2802_v11 = vadd.f32 %v2622_v8, %v268_v61  ;;  %v471_v12 = vld [vmem:[%s3592_s1 + $0x58] sm:$0xff]  ;;  %v2817_v19 = vmax.f32 %v285_v0, 0.0 }
  0x1b   : > { %2502 = vmatpush.msra.mxu3 %v2355_v13  ;;  %532 = vmatpush.msra.mxu0 %v2355_v13  ;;  %355 = vst [vmem:[#allocation2 + $0x70] sm:$0x3] %v2549_v2  ;;  %v472_v3 = vld [vmem:[%s3592_s1 + $0x60] sm:$0xff]  ;;  %v2373_v13 = vld [vmem:[%s3592_s1 + $0x150] sm:$0xff]  ;;  %v261_v23 = vmul.f32 %v2617_v7, %v228_v10  ;;  %v2372_v27 = vld [vmem:[%s3592_s1 + $0x148] sm:$0xff] }
  0x1c   : > { %2503 = vmatpush.msra.mxu1 %v2354_v15  ;;  %2504 = vmatpush.msra.mxu2 %v2354_v15  ;;  %356 = vst [vmem:[#allocation2 + $0x78] sm:$0xff] %v2549_v2  ;;  %v2389_v17 = vld [vmem:[%s3592_s1 + $0x1d0] sm:$0xff]  ;;  %v2407_v21 = vld [vmem:[%s3592_s1 + $0x260] sm:$0xff]  ;;  %v333_v26 = vmax.f32 %v2802_v11, 0.0  ;;  %v2406_v33 = vld [vmem:[%s3592_s1 + $0x258] sm:$0xff] }
  0x1d   : > { %2505 = vmatpush.msra.mxu3 %v2354_v15  ;;  %533 = vmatpush.msra.mxu0 %v2354_v15  ;;  %357 = vst [vmem:[#allocation2 + $0x80] sm:$0xff] %v2549_v2  ;;  %v244_v15 = vmul.f32 %v2617_v7, %v211_v63  ;;  %v212_v34 = vld [vmem:[%s2610_s30 + $0x8] sm:$0xff]  ;;  %v294_v37 = vadd.f32 %v2622_v8, %v261_v23  ;;  %v2387_v41 = vld [vmem:[%s3592_s1 + $0x1c0] sm:$0xff]  ;;  %v229_v44 = vld [vmem:[%s2610_s30 + $0x90] sm:$0xff] }
  0x1e   : > { %2506 = vmatpush.msra.mxu1 %v2353_v16  ;;  %2507 = vmatpush.msra.mxu2 %v2353_v16  ;;  %358 = vst [vmem:[#allocation2 + $0x88] sm:$0x3] %v2549_v2  ;;  %v237_v51 = vld [vmem:[%s2610_s30 + $0xd0] sm:$0xff]  ;;  %v467_v61 = vld [vmem:[%s3592_s1 + $0x38] sm:$0xff]  ;;  %v2383_v23 = vld [vmem:[%s3592_s1 + $0x1a0] sm:$0xff] }
  0x1f   : > { %2508 = vmatpush.msra.mxu3 %v2353_v16  ;;  %534 = vmatpush.msra.mxu0 %v2353_v16  ;;  %359 = vst [vmem:[#allocation2 + $0x90] sm:$0xff] %v2549_v2  ;;  %v477_v16 = vld [vmem:[#allocation2 + $0x9] sm:$0xff]  ;;  %v2888_v56 = vmax.f32 %v294_v37, 0.0  ;;  %v270_v0 = vmul.f32 %v2617_v7, %v237_v51  ;;  %v230_v25 = vld [vmem:[%s2610_s30 + $0x98] sm:$0xff]  ;;  %v464_v48 = vld [vmem:[%s3592_s1 + $0x20] sm:$0xff] }
  0x20   : > { %2509 = vmatpush.msra.mxu1 %v2352_v18  ;;  %2510 = vmatpush.msra.mxu2 %v2352_v18  ;;  %360 = vst [vmem:[#allocation2 + $0x98] sm:$0xff] %v2549_v2  ;;  %v2401_v42 = vld [vmem:[%s3592_s1 + $0x230] sm:$0xff] }
  0x21   : > { %2511 = vmatpush.msra.mxu3 %v2352_v18  ;;  %535 = vmatpush.msra.mxu0 %v2352_v18  ;;  %361 = vst [vmem:[#allocation2 + $0xa0] sm:$0x3] %v2549_v2  ;;  %v236_v18 = vld [vmem:[%s2610_s30 + $0xc8] sm:$0xff]  ;;  %v2943_v29 = vadd.f32 %v2622_v8, %v270_v0  ;;  %v462_v51 = vld [vmem:[%s3592_s1 + $0x10] sm:$0xff] }
  0x22   : > { %2512 = vmatpush.msra.mxu1 %v2351_v20  ;;  %2513 = vmatpush.msra.mxu2 %v2351_v20  ;;  %362 = vst [vmem:[#allocation2 + $0xa8] sm:$0xff] %v2549_v2  ;;  %v269_v30 = vmul.f32 %v2617_v7, %v236_v18  ;;  %v238_v18 = vld [vmem:[%s2610_s30 + $0xd8] sm:$0xff]  ;;  %v461_v0 = vld [vmem:[%s3592_s1 + $0x8] sm:$0xff] }
  0x23   : > { %2514 = vmatpush.msra.mxu3 %v2351_v20  ;;  %363 = vst [vmem:[#allocation2 + $0xb0] sm:$0xff] %v2549_v2  ;;  %536 = vmatpush.msra.mxu0 %v2351_v20  ;;  %v325_v20 = vmax.f32 %v2781_v1, 0.0  ;;  %v223_v1 = vld [vmem:[%s2610_s30 + $0x60] sm:$0xff] }
  0x24   : > { %2515 = vmatpush.msra.mxu1 %v2350_v22  ;;  %2516 = vmatpush.msra.mxu2 %v2350_v22  ;;  %364 = vst [vmem:[#allocation2 + $0xb8] sm:$0x3] %v2549_v2 }
  0x25   : > { %2517 = vmatpush.msra.mxu3 %v2350_v22  ;;  %365 = vst [vmem:[#allocation2 + $0xc0] sm:$0xff] %v2549_v2  ;;  %537 = vmatpush.msra.mxu0 %v2350_v22  ;;  %v253_v22 = vmul.f32 %v2617_v7, %v220_v5  ;;  %v2403_v5 = vld [vmem:[%s3592_s1 + $0x240] sm:$0xff] }
  0x26   : > { %2518 = vmatpush.msra.mxu1 %v2349_v24  ;;  %2519 = vmatpush.msra.mxu2 %v2349_v24  ;;  %366 = vst [vmem:[#allocation2 + $0xc8] sm:$0xff] %v2549_v2 }
  0x27   : > { %2520 = vmatpush.msra.mxu3 %v2349_v24  ;;  %367 = vst [vmem:[#allocation2 + $0xd0] sm:$0x3] %v2549_v2  ;;  %538 = vmatpush.msra.mxu0 %v2349_v24  ;;  %v470_v24 = vld [vmem:[%s3592_s1 + $0x50] sm:$0xff] }
  0x28   : > { %2521 = vmatpush.msra.mxu1 %v2348_v28  ;;  %2522 = vmatpush.msra.mxu2 %v2348_v28  ;;  %368 = vst [vmem:[#allocation2 + $0xd8] sm:$0xff] %v2549_v2 }
  0x29   : > { %2523 = vmatpush.msra.mxu3 %v2348_v28  ;;  %369 = vst [vmem:[#allocation2 + $0xe0] sm:$0xff] %v2549_v2  ;;  %539 = vmatpush.msra.mxu0 %v2348_v28  ;;  %v277_v28 = vadd.f32 %v2622_v8, %v244_v15  ;;  %v2368_v15 = vld [vmem:[%s3592_s1 + $0x128] sm:$0xff] }
  0x2a   : > { %2524 = vmatpush.msra.mxu1 %v2347_v31  ;;  %2525 = vmatpush.msra.mxu2 %v2347_v31  ;;  %370 = vst [vmem:[#allocation2 + $0xe8] sm:$0x3] %v2549_v2 }
  0x2b   : > { %565 = vmatmul.f32.vlgmr.msra.gmra.mxu1 %v2641_v14  ;;  %371 = vst [vmem:[#allocation2 + $0xf0] sm:$0xff] %v2549_v2  ;;  %589 = vmatmul.f32.vlgmr.msra.gmra.mxu2 %v323_v32  ;;  %v2868_v45 = vmax.f32 %v277_v28, 0.0 }
  0x2c   : > { %372 = vst [vmem:[#allocation2 + $0xf8] sm:$0xff] %v2549_v2  ;;  %800 = vmatpush.msrb.mxu2 %v2378_v35  ;;  %2526 = vmatpush.msra.mxu3 %v2347_v31  ;;  %v286_v35 = vadd.f32 %v2622_v8, %v253_v22  ;;  %v2367_v22 = vld [vmem:[%s3592_s1 + $0x120] sm:$0xff] }
  0x2d   : > { %373 = vst [vmem:[#allocation2 + $0x100] sm:$0x3] %v2549_v2  ;;  %613 = vmatmul.f32.vlgmr.msra.gmra.mxu3 %v331_v36  ;;  %638 = vmatpush.msrb.mxu1 %v475_v38  ;;  %v469_v38 = vld [vmem:[%s3592_s1 + $0x48] sm:$0xff] }
  0x2e   : > { %374 = vst [vmem:[#allocation2 + $0x108] sm:$0xff] %v2549_v2  ;;  %994 = vmatpush.msrb.mxu3 %v2394_v39  ;;  %801 = vmatpush.msrb.mxu2 %v2377_v40  ;;  %v2371_v39 = vld [vmem:[%s3592_s1 + $0x140] sm:$0xff]  ;;  %v221_v40 = vld [vmem:[%s2610_s30 + $0x50] sm:$0xff] }
  0x2f   : > { %375 = vst [vmem:[#allocation2 + $0x110] sm:$0xff] %v2549_v2  ;;  %639 = vmatpush.msrb.mxu1 %v474_v43  ;;  %540 = vmatpush.msra.mxu0 %v2347_v31  ;;  %v2388_v31 = vld [vmem:[%s3592_s1 + $0x1c8] sm:$0xff]  ;;  %v2405_v43 = vld [vmem:[%s3592_s1 + $0x250] sm:$0xff]  ;;  %v254_v57 = vmul.f32 %v2617_v7, %v221_v40 }
  0x30   : > { %376 = vst [vmem:[#allocation2 + $0x118] sm:$0x3] %v2549_v2  ;;  %995 = vmatpush.msrb.mxu3 %v2393_v46  ;;  %802 = vmatpush.msrb.mxu2 %v2376_v47  ;;  %v2871_v46 = vadd.f32 %v2622_v8, %v269_v30  ;;  %v468_v47 = vld [vmem:[%s3592_s1 + $0x40] sm:$0xff]  ;;  %v263_v30 = vmul.f32 %v2617_v7, %v230_v25 }
  0x31   : > { %377 = vst [vmem:[#allocation2 + $0x120] sm:$0xff] %v2549_v2  ;;  %541 = vmatmul.f32.vlgmr.msra.gmra.mxu0 %v476_v49  ;;  %640 = vmatpush.msrb.mxu1 %v473_v50  ;;  %v2370_v49 = vld [vmem:[%s3592_s1 + $0x138] sm:$0xff]  ;;  %v245_v50 = vmul.f32 %v2617_v7, %v212_v34 }
  0x32   : > { %378 = vst [vmem:[#allocation2 + $0x128] sm:$0xff] %v2549_v2  ;;  %996 = vmatpush.msrb.mxu3 %v2392_v54  ;;  %1188 = vmatpush.msrb.mxu0 %v2410_v55  ;;  %v2386_v54 = vld [vmem:[%s3592_s1 + $0x1b8] sm:$0xff]  ;;  %v2886_v55 = vmax.f32 %v286_v35, 0.0  ;;  %v2400_v35 = vld [vmem:[%s3592_s1 + $0x228] sm:$0xff]  ;;  %v296_v11 = vadd.f32 %v2622_v8, %v263_v30 }
  0x33   : > { %379 = vst [vmem:[#allocation2 + $0x130] sm:$0x3] %v2549_v2  ;;  %568 = vmatmul.f32.gmra.mxu1 %v2749_v52  ;;  %592 = vmatmul.f32.gmra.mxu2 %v324_v53  ;;  %v278_v63 = vadd.f32 %v2622_v8, %v245_v50  ;;  %v2382_v34 = vld [vmem:[%s3592_s1 + $0x198] sm:$0xff]  ;;  %v239_v50 = vld [vmem:[%s2610_s30 + $0xe0] sm:$0xff] }
  0x34   : > { %380 = vst [vmem:[#allocation2 + $0x138] sm:$0xff] %v2549_v2  ;;  %803 = vmatpush.msrb.mxu2 %v2375_v59  ;;  %997 = vmatpush.msrb.mxu3 %v2391_v60  ;;  %v262_v59 = vmul.f32 %v2617_v7, %v229_v44  ;;  %v2404_v60 = vld [vmem:[%s3592_s1 + $0x248] sm:$0xff]  ;;  %v2458_v30 = vld [vmem:[%s3592_s1 + $0x3f8] sm:$0xff] }
  0x35   : > { %381 = vst [vmem:[#allocation2 + $0x140] sm:$0xff] %v2549_v2  ;;  %616 = vmatmul.f32.gmra.mxu3 %v332_v58  ;;  %1189 = vmatpush.msrb.mxu0 %v2409_v62  ;;  %v334_v62 = vmax.f32 %v2871_v46, 0.0  ;;  %v232_v46 = vld [vmem:[%s2610_s30 + $0xa8] sm:$0xff] }
  0x36   : > { %382 = vst [vmem:[#allocation2 + $0x148] sm:$0x3] %v2549_v2  ;;  %641 = vmatpush.msrb.mxu1 %v472_v3  ;;  %804 = vmatpush.msrb.mxu2 %v2374_v4  ;;  %v2369_v3 = vld [vmem:[%s3592_s1 + $0x130] sm:$0xff]  ;;  %v295_v10 = vadd.f32 %v2622_v8, %v262_v59  ;;  %v224_v59 = vld [vmem:[%s2610_s30 + $0x68] sm:$0xff] }
  0x37   : > { %383 = vst [vmem:[#allocation2 + $0x150] sm:$0xff] %v2549_v2  ;;  %998 = vmatpush.msrb.mxu3 %v2390_v6  ;;  %1190 = vmatpush.msrb.mxu0 %v2408_v9  ;;  %v2385_v4 = vld [vmem:[%s3592_s1 + $0x1b0] sm:$0xff]  ;;  %v287_v9 = vadd.f32 %v2622_v8, %v254_v57 }
  0x38   : > { %384 = vst [vmem:[#allocation2 + $0x158] sm:$0xff] %v2549_v2  ;;  %642 = vmatpush.msrb.mxu1 %v471_v12  ;;  %805 = vmatpush.msrb.mxu2 %v2373_v13  ;;  %v213_v6 = vld [vmem:[%s2610_s30 + $0x10] sm:$0xff]  ;;  %v222_v12 = vld [vmem:[%s2610_s30 + $0x58] sm:$0xff] }
  0x39   : > { %385 = vst [vmem:[#allocation2 + $0x160] sm:$0x3] %v2549_v2  ;;  %544 = vmatmul.f32.gmra.mxu0 %v477_v16  ;;  %999 = vmatpush.msrb.mxu3 %v2389_v17  ;;  %v466_v13 = vld [vmem:[%s3592_s1 + $0x30] sm:$0xff]  ;;  %v2402_v16 = vld [vmem:[%s3592_s1 + $0x238] sm:$0xff]  ;;  %v2940_v17 = vmax.f32 %v278_v63, 0.0  ;;  %v255_v28 = vmul.f32 %v2617_v7, %v222_v12  ;;  %v3036_v63 = vmax.f32 %v296_v11, 0.0 }
  0x3a   : > { %386 = vst [vmem:[#allocation2 + $0x168] sm:$0xff] %v2549_v2  ;;  %1191 = vmatpush.msrb.mxu0 %v2407_v21  ;;  %643 = vmatpush.msrb.mxu1 %v470_v24  ;;  %v465_v21 = vld [vmem:[%s3592_s1 + $0x28] sm:$0xff]  ;;  %v2960_v24 = vmax.f32 %v287_v9, 0.0 }
  0x3b   : > { %387 = vst [vmem:[#allocation2 + $0x170] sm:$0xff] %v2549_v2  ;;  %571 = vmatmul.f32.gmra.mxu1 %v2817_v19  ;;  %595 = vmatmul.f32.gmra.mxu2 %v325_v20  ;;  %v288_v37 = vadd.f32 %v2622_v8, %v255_v28  ;;  %v240_v12 = vld [vmem:[%s2610_s30 + $0xe8] sm:$0xff] }
  0x3c   : > { %388 = vst [vmem:[#allocation2 + $0x178] sm:$0x3] %v2549_v2  ;;  %806 = vmatpush.msrb.mxu2 %v2372_v27  ;;  %1000 = vmatpush.msrb.mxu3 %v2388_v31  ;;  %v2962_v27 = vmax.f32 %v295_v10, 0.0  ;;  %v257_v10 = vmul.f32 %v2617_v7, %v224_v59  ;;  %v2396_v28 = vld [vmem:[%s3592_s1 + $0x208] sm:$0xff] }
  0x3d   : > { %389 = vst [vmem:[#allocation2 + $0x180] sm:$0xff] %v2549_v2  ;;  %619 = vmatmul.f32.gmra.mxu3 %v333_v26  ;;  %1192 = vmatpush.msrb.mxu0 %v2406_v33  ;;  %v2366_v33 = vld [vmem:[%s3592_s1 + $0x118] sm:$0xff]  ;;  %v2424_v59 = vld [vmem:[%s3592_s1 + $0x2e8] sm:$0xff] }
  0x3e   : > { %390 = vst [vmem:[#allocation2 + $0x188] sm:$0xff] %v2549_v2  ;;  %644 = vmatpush.msrb.mxu1 %v469_v38  ;;  %807 = vmatpush.msrb.mxu2 %v2371_v39  ;;  %v463_v38 = vld [vmem:[%s3592_s1 + $0x18] sm:$0xff]  ;;  %v2365_v39 = vld [vmem:[%s3592_s1 + $0x110] sm:$0xff] }
  0x3f   : > { %391 = vst [vmem:[#allocation2 + $0x190] sm:$0x3] %v2549_v2  ;;  %1001 = vmatpush.msrb.mxu3 %v2387_v41  ;;  %1193 = vmatpush.msrb.mxu0 %v2405_v43  ;;  %v2381_v41 = vld [vmem:[%s3592_s1 + $0x190] sm:$0xff]  ;;  %v2399_v43 = vld [vmem:[%s3592_s1 + $0x220] sm:$0xff] }
  0x40   : > { %392 = vst [vmem:[#allocation2 + $0x198] sm:$0xff] %v2549_v2  ;;  %645 = vmatpush.msrb.mxu1 %v468_v47  ;;  %808 = vmatpush.msrb.mxu2 %v2370_v49  ;;  %v256_v47 = vmul.f32 %v2617_v7, %v223_v1 }
  0x41   : > { %393 = vst [vmem:[#allocation2 + $0x1a0] sm:$0xff] %v2549_v2  ;;  %547 = vmatmul.f32.gmra.mxu0 %v2868_v45  ;;  %1002 = vmatpush.msrb.mxu3 %v2386_v54  ;;  %v2364_v54 = vld [vmem:[%s3592_s1 + $0x108] sm:$0xff] }
  0x42   : > { %394 = vst [vmem:[#allocation2 + $0x1a8] sm:$0x3] %v2549_v2  ;;  %1194 = vmatpush.msrb.mxu0 %v2404_v60  ;;  %646 = vmatpush.msrb.mxu1 %v467_v61  ;;  %v2380_v60 = vld [vmem:[%s3592_s1 + $0x188] sm:$0xff]  ;;  %v3034_v61 = vmax.f32 %v288_v37, 0.0 }
  0x43   : > { %410 = vst [vmem:[#allocation2 + $0xc1] sm:$0xff] %v323_v32  ;;  %574 = vmatmul.f32.gmra.mxu1 %v2886_v55  ;;  %598 = vmatmul.f32.gmra.mxu2 %v2888_v56  ;;  %v2384_v32 = vld [vmem:[%s3592_s1 + $0x1a8] sm:$0xff] }
  0x44   : > { %418 = vst [vmem:[#allocation2 + $0x121] sm:$0xff] %v331_v36  ;;  %809 = vmatpush.msrb.mxu2 %v2369_v3  ;;  %1003 = vmatpush.msrb.mxu3 %v2385_v4  ;;  %v246_v36 = vmul.f32 %v2617_v7, %v213_v6  ;;  %v272_v4 = vmul.f32 %v2617_v7, %v239_v50  ;;  %v751_v50 = vld [vmem:[#allocation2 + $0x2] sm:$0xff] }
  0x45   : > { %403 = vst [vmem:[#allocation2 + $0x69] sm:$0xff] %v2749_v52  ;;  %622 = vmatmul.f32.gmra.mxu3 %v334_v62  ;;  %1195 = vmatpush.msrb.mxu0 %v2403_v5  ;;  %v215_v5 = vld [vmem:[%s2610_s30 + $0x20] sm:$0xff]  ;;  %v289_v6 = vadd.f32 %v2622_v8, %v256_v47  ;;  %v2425_v47 = vld [vmem:[%s3592_s1 + $0x2f0] sm:$0xff] }
  0x46   : > { %411 = vst [vmem:[#allocation2 + $0xc9] sm:$0xff] %v324_v53  ;;  %647 = vmatpush.msrb.mxu1 %v466_v13  ;;  %810 = vmatpush.msrb.mxu2 %v2368_v15  ;;  %v271_v53 = vmul.f32 %v2617_v7, %v238_v18  ;;  %v279_v31 = vadd.f32 %v2622_v8, %v246_v36  ;;  %v2363_v13 = vld [vmem:[%s3592_s1 + $0x100] sm:$0xff] }
  0x47   : > { %419 = vst [vmem:[#allocation2 + $0x129] sm:$0xff] %v332_v58  ;;  %1004 = vmatpush.msrb.mxu3 %v2384_v32  ;;  %1196 = vmatpush.msrb.mxu0 %v2402_v16  ;;  %v335_v58 = vmax.f32 %v2943_v29, 0.0  ;;  %v2379_v15 = vld [vmem:[%s3592_s1 + $0x180] sm:$0xff]  ;;  %v265_v32 = vmul.f32 %v2617_v7, %v232_v46  ;;  %v2397_v16 = vld [vmem:[%s3592_s1 + $0x210] sm:$0xff]  ;;  %v216_v29 = vld [vmem:[%s2610_s30 + $0x28] sm:$0xff]  ;;  %v248_v36 = vmul.f32 %v2617_v7, %v215_v5 }
  0x48   : > { %404 = vst [vmem:[#allocation2 + $0x79] sm:$0xff] %v2817_v19  ;;  %648 = vmatpush.msrb.mxu1 %v465_v21  ;;  %811 = vmatpush.msrb.mxu2 %v2367_v22  ;;  %v3006_v40 = vadd.f32 %v2622_v8, %v271_v53  ;;  %v3015_v44 = vmax.f32 %v279_v31, 0.0  ;;  %v460_v18 = vld [vmem:[%s3592_s1] sm:$0xff]  ;;  %v2442_v21 = vld [vmem:[%s3592_s1 + $0x378] sm:$0xff]  ;;  %v305_v22 = vadd.f32 %v2622_v8, %v272_v4 }
  0x49   : > { %412 = vst [vmem:[#allocation2 + $0xd9] sm:$0xff] %v325_v20  ;;  %550 = vmatmul.f32.gmra.mxu0 %v2940_v17  ;;  %1005 = vmatpush.msrb.mxu3 %v2383_v23  ;;  %v214_v20 = vld [vmem:[%s2610_s30 + $0x18] sm:$0xff]  ;;  %v273_v23 = vmul.f32 %v2617_v7, %v240_v12  ;;  %v290_v53 = vadd.f32 %v2622_v8, %v257_v10  ;;  %v2423_v4 = vld [vmem:[%s3592_s1 + $0x2e0] sm:$0xff] }
  0x4a   : > { %420 = vst [vmem:[#allocation2 + $0x139] sm:$0xff] %v333_v26  ;;  %1197 = vmatpush.msrb.mxu0 %v2401_v42  ;;  %649 = vmatpush.msrb.mxu1 %v464_v48  ;;  %v231_v26 = vld [vmem:[%s2610_s30 + $0xa0] sm:$0xff]  ;;  %v247_v49 = vmul.f32 %v2617_v7, %v214_v20  ;;  %v336_v3 = vmax.f32 %v3006_v40, 0.0  ;;  %v3087_v42 = vmax.f32 %v289_v6, 0.0  ;;  %v2426_v31 = vld [vmem:[%s3592_s1 + $0x2f8] sm:$0xff]  ;;  %v281_v1 = vadd.f32 %v2622_v8, %v248_v36  ;;  %v2437_v36 = vld [vmem:[%s3592_s1 + $0x350] sm:$0xff] }
  0x4b   : > { %405 = vst [vmem:[#allocation2 + $0x81] sm:$0xff] %v2886_v55  ;;  %577 = vmatmul.f32.gmra.mxu1 %v2960_v24  ;;  %601 = vmatmul.f32.gmra.mxu2 %v2962_v27  ;;  %v264_v57 = vmul.f32 %v2617_v7, %v231_v26  ;;  %v337_v20 = vmax.f32 %v305_v22, 0.0  ;;  %v3108_v37 = vmax.f32 %v290_v53, 0.0  ;;  %v2474_v26 = vld [vmem:[%s3592_s1 + $0x478] sm:$0xff]  ;;  %v2471_v6 = vld [vmem:[%s3592_s1 + $0x460] sm:$0xff] }
  0x4c   : > { %413 = vst [vmem:[#allocation2 + $0xe1] sm:$0xff] %v2888_v56  ;;  %812 = vmatpush.msrb.mxu2 %v2366_v33  ;;  %1006 = vmatpush.msrb.mxu3 %v2382_v34  ;;  %v280_v9 = vadd.f32 %v2622_v8, %v247_v49  ;;  %v298_v34 = vadd.f32 %v2622_v8, %v265_v32  ;;  %v2473_v49 = vld [vmem:[%s3592_s1 + $0x470] sm:$0xff]  ;;  %v2438_v12 = vld [vmem:[%s3592_s1 + $0x358] sm:$0xff] }
  0x4d   : > { %396 = vst [vmem:[#allocation2 + $0x19] sm:$0xff] %v2868_v45  ;;  %625 = vmatmul.f32.gmra.mxu3 %v335_v58  ;;  %1198 = vmatpush.msrb.mxu0 %v2400_v35  ;;  %v297_v25 = vadd.f32 %v2622_v8, %v264_v57  ;;  %v306_v35 = vadd.f32 %v2622_v8, %v273_v23  ;;  %v2456_v57 = vld [vmem:[%s3592_s1 + $0x3e8] sm:$0xff]  ;;  %v2470_v32 = vld [vmem:[%s3592_s1 + $0x458] sm:$0xff] }
  0x4e   : > { %421 = vst [vmem:[#allocation2 + $0x141] sm:$0xff] %v334_v62  ;;  %650 = vmatpush.msrb.mxu1 %v463_v38  ;;  %813 = vmatpush.msrb.mxu2 %v2365_v39  ;;  %v2398_v62 = vld [vmem:[%s3592_s1 + $0x218] sm:$0xff]  ;;  %v3089_v48 = vmax.f32 %v280_v9, 0.0  ;;  %v3114_v38 = vmax.f32 %v298_v34, 0.0  ;;  %v3119_v39 = vmax.f32 %v281_v1, 0.0  ;;  %v952_v23 = vld [vmem:[#allocation2 + $0x68] sm:$0xff] }
  0x4f   : > { %406 = vst [vmem:[#allocation2 + $0x91] sm:$0xff] %v2960_v24  ;;  %1007 = vmatpush.msrb.mxu3 %v2381_v41  ;;  %1199 = vmatpush.msrb.mxu0 %v2399_v43  ;;  %v3096_v33 = vmax.f32 %v297_v25, 0.0  ;;  %v338_v40 = vmax.f32 %v306_v35, 0.0  ;;  %v2457_v43 = vld [vmem:[%s3592_s1 + $0x3f0] sm:$0xff]  ;;  %v953_v53 = vld [vmem:[#allocation2 + $0x78] sm:$0xff] }
  0x50   : > { %414 = vst [vmem:[#allocation2 + $0xf1] sm:$0xff] %v2962_v27  ;;  %651 = vmatpush.msrb.mxu1 %v462_v51  ;;  %814 = vmatpush.msrb.mxu2 %v2364_v54  ;;  %v2440_v54 = vld [vmem:[%s3592_s1 + $0x368] sm:$0xff] }
  0x51   : > { %397 = vst [vmem:[#allocation2 + $0x21] sm:$0xff] %v2940_v17  ;;  %553 = vmatmul.f32.gmra.mxu0 %v3015_v44  ;;  %1008 = vmatpush.msrb.mxu3 %v2380_v60  ;;  %v752_v60 = vld [vmem:[#allocation2 + $0xa] sm:$0xff] }
  0x52   : > { %422 = vst [vmem:[#allocation2 + $0x151] sm:$0xff] %v335_v58  ;;  %1200 = vmatpush.msrb.mxu0 %v2398_v62  ;;  %652 = vmatpush.msrb.mxu1 %v461_v0  ;;  %v249_v58 = vmul.f32 %v2617_v7, %v216_v29  ;;  %v2395_v7 = vld [vmem:[%s3592_s1 + $0x200] sm:$0xff]  ;;  %v2472_v62 = vld [vmem:[%s3592_s1 + $0x468] sm:$0xff] }
  0x53   : > { %407 = vst [vmem:[#allocation2 + $0x99] sm:$0xff] %v3034_v61  ;;  %580 = vmatmul.f32.gmra.mxu1 %v3034_v61  ;;  %604 = vmatmul.f32.gmra.mxu2 %v3036_v63  ;;  %v951_v29 = vld [vmem:[#allocation2 + $0x60] sm:$0xff] }
  0x54   : > { %415 = vst [vmem:[#allocation2 + $0xf9] sm:$0xff] %v3036_v63  ;;  %815 = vmatpush.msrb.mxu2 %v2363_v13  ;;  %1009 = vmatpush.msrb.mxu3 %v2379_v15  ;;  %v282_v11 = vadd.f32 %v2622_v8, %v249_v58  ;;  %v2441_v8 = vld [vmem:[%s3592_s1 + $0x370] sm:$0xff]  ;;  %v945_v51 = vld [vmem:[#allocation2 + $0x18] sm:$0xff]  ;;  %v2452_v58 = vld [vmem:[%s3592_s1 + $0x3c8] sm:$0xff] }
  0x55   : > { %398 = vst [vmem:[#allocation2 + $0x31] sm:$0xff] %v3015_v44  ;;  %628 = vmatmul.f32.gmra.mxu3 %v336_v3  ;;  %1201 = vmatpush.msrb.mxu0 %v2397_v16  ;;  %v2422_v13 = vld [vmem:[%s3592_s1 + $0x2d8] sm:$0xff]  ;;  %v954_v35 = vld [vmem:[#allocation2 + $0x80] sm:$0xff] }
  0x56   : > { %423 = vst [vmem:[#allocation2 + $0x159] sm:$0xff] %v336_v3  ;;  %653 = vmatpush.msrb.mxu1 %v460_v18  ;;  %1577 = vmatpush.msra.mxu2 %v2442_v21  ;;  %v3126_v41 = vmax.f32 %v282_v11, 0.0  ;;  %v2453_v18 = vld [vmem:[%s3592_s1 + $0x3d0] sm:$0xff]  ;;  %v2468_v11 = vld [vmem:[%s3592_s1 + $0x448] sm:$0xff] }
  0x57   : > { %408 = vst [vmem:[#allocation2 + $0xa9] sm:$0xff] %v3087_v42  ;;  %1202 = vmatpush.msrb.mxu0 %v2396_v28  ;;  %1771 = vmatpush.msra.mxu3 %v2458_v30  ;;  %v2421_v21 = vld [vmem:[%s3592_s1 + $0x2d0] sm:$0xff] }
  0x58   : > { %416 = vst [vmem:[#allocation2 + $0x109] sm:$0xff] %v3096_v33  ;;  %1382 = vmatpush.msra.mxu1 %v2426_v31  ;;  %1578 = vmatpush.msra.mxu2 %v2441_v8  ;;  %v946_v46 = vld [vmem:[#allocation2 + $0x20] sm:$0xff]  ;;  %v2469_v28 = vld [vmem:[%s3592_s1 + $0x450] sm:$0xff] }
  0x59   : > { %399 = vst [vmem:[#allocation2 + $0x39] sm:$0xff] %v3089_v48  ;;  %556 = vmatmul.f32.gmra.mxu0 %v3089_v48  ;;  %1772 = vmatpush.msra.mxu3 %v2457_v43  ;;  %v753_v0 = vld [vmem:[#allocation2 + $0x1a] sm:$0xff] }
  0x5a   : > { %424 = vst [vmem:[#allocation2 + $0x169] sm:$0xff] %v337_v20  ;;  %1203 = vmatpush.msrb.mxu0 %v2395_v7  ;;  %1383 = vmatpush.msra.mxu1 %v2425_v47  ;;  %v2435_v43 = vld [vmem:[%s3592_s1 + $0x340] sm:$0xff] }
  0x5b   : > { %583 = vmatmul.f32.gmra.mxu1 %v3087_v42  ;;  %607 = vmatmul.f32.gmra.mxu2 %v3096_v33  ;;  %409 = vst [vmem:[#allocation2 + $0xb1] sm:$0xff] %v3108_v37  ;;  %v2451_v47 = vld [vmem:[%s3592_s1 + $0x3c0] sm:$0xff] }
  0x5c   : > { %417 = vst [vmem:[#allocation2 + $0x111] sm:$0xff] %v3114_v38  ;;  %1965 = vmatpush.msra.mxu0 %v2474_v26  ;;  %1579 = vmatpush.msra.mxu2 %v2440_v54  ;;  %v947_v3 = vld [vmem:[#allocation2 + $0x30] sm:$0xff] }
  0x5d   : > { %631 = vmatmul.f32.gmra.mxu3 %v337_v20  ;;  %400 = vst [vmem:[#allocation2 + $0x49] sm:$0xff] %v3119_v39  ;;  %1384 = vmatpush.msra.mxu1 %v2424_v59  ;;  %v760_v20 = vld [vmem:[#allocation2 + $0x6a] sm:$0xff]  ;;  %v956_v59 = vld [vmem:[#allocation2 + $0x98] sm:$0xff] }
  0x5e   : > { %425 = vst [vmem:[#allocation2 + $0x171] sm:$0xff] %v338_v40  ;;  %1966 = vmatpush.msra.mxu0 %v2473_v49  ;;  %1773 = vmatpush.msra.mxu3 %v2456_v57  ;;  %v762_v57 = vld [vmem:[#allocation2 + $0x82] sm:$0xff] }
  0x5f   : > { %401 = vst [vmem:[#allocation2 + $0x51] sm:$0xff] %v3126_v41  ;;  %1385 = vmatpush.msra.mxu1 %v2423_v4  ;;  %v2450_v4 = vld [vmem:[%s3592_s1 + $0x3b8] sm:$0xff] }
  0x60   : > { %1967 = vmatpush.msra.mxu0 %v2472_v62  ;;  %v948_v5 = vld [vmem:[#allocation2 + $0x38] sm:$0xff] }
  0x61   : > { %559 = vmatmul.f32.gmra.mxu0 %v3119_v39  ;;  %v755_v9 = vld [vmem:[#allocation2 + $0x32] sm:$0xff]  ;;  %1386 = vmatpush.msra.mxu1 %v2422_v13  ;;  %v756_v15 = vld [vmem:[#allocation2 + $0x3a] sm:$0xff] }
  0x62   : > { %1968 = vmatpush.msra.mxu0 %v2471_v6 }
  0x63   : > { %586 = vmatmul.f32.gmra.mxu1 %v3108_v37  ;;  %610 = vmatmul.f32.gmra.mxu2 %v3114_v38 }
  0x64   : > { %v949_v10 = vld [vmem:[#allocation2 + $0x48] sm:$0xff]  ;;  %1969 = vmatpush.msra.mxu0 %v2470_v32  ;;  %1387 = vmatpush.msra.mxu1 %v2421_v21 }
  0x65   : > { %634 = vmatmul.f32.gmra.mxu3 %v338_v40 }
  0x66   : > { %v950_v25 = vld [vmem:[#allocation2 + $0x50] sm:$0xff]  ;;  %1970 = vmatpush.msra.mxu0 %v2469_v28 }
  0x67   : > { %v757_v16 = vld [vmem:[#allocation2 + $0x4a] sm:$0xff]  ;;  %v758_v22 = vld [vmem:[#allocation2 + $0x52] sm:$0xff] }
  0x68   : > { %1971 = vmatpush.msra.mxu0 %v2468_v11 }
  0x69   : > { %562 = vmatmul.f32.gmra.mxu0 %v3126_v41 }
  0x6b   : > { %654 = vmatmul.f32.vlgmr.msrb.gmra.mxu1 %v2549_v2  ;;  %816 = vmatmul.f32.vlgmr.msrb.gmra.mxu2 %v751_v50 }
  0x6d   : > { %1010 = vmatmul.f32.vlgmr.msrb.gmra.mxu3 %v945_v51 }
  0x71   : > { %1204 = vmatmul.f32.vlgmr.msrb.gmra.mxu0 %v2868_v45  ;;  %v2439_v45 = vld [vmem:[%s3592_s1 + $0x360] sm:$0xff] }
  0x72   : > { %1580 = vmatpush.msra.mxu2 %v2439_v45  ;;  %v763_v45 = vld [vmem:[#allocation2 + $0x92] sm:$0xff] }
  0x73   : > { %657 = vmatmul.f32.gmra.mxu1 %v2549_v2  ;;  %819 = vmatmul.f32.gmra.mxu2 %v752_v60  ;;  %v2455_v2 = vld [vmem:[%s3592_s1 + $0x3e0] sm:$0xff] }
  0x74   : > { %1774 = vmatpush.msra.mxu3 %v2455_v2  ;;  %1581 = vmatpush.msra.mxu2 %v2438_v12  ;;  %v2467_v60 = vld [vmem:[%s3592_s1 + $0x440] sm:$0xff]  ;;  %v2434_v2 = vld [vmem:[%s3592_s1 + $0x338] sm:$0xff]  ;;  %v958_v12 = vld [vmem:[#allocation2 + $0xb0] sm:$0xff] }
  0x75   : > { %1013 = vmatmul.f32.gmra.mxu3 %v946_v46  ;;  %1972 = vmatpush.msra.mxu0 %v2467_v60  ;;  %v1155_v60 = vld [vmem:[#allocation2 + $0xd9] sm:$0xff] }
  0x76   : > { %1582 = vmatpush.msra.mxu2 %v2437_v36  ;;  %v2449_v36 = vld [vmem:[%s3592_s1 + $0x3b0] sm:$0xff] }
  0x79   : > { %1207 = vmatmul.f32.gmra.mxu0 %v2940_v17  ;;  %v754_v17 = vld [vmem:[#allocation2 + $0x22] sm:$0xff] }
  0x7b   : > { %660 = vmatmul.f32.gmra.mxu1 %v945_v51  ;;  %822 = vmatmul.f32.gmra.mxu2 %v753_v0 }
  0x7d   : > { %1016 = vmatmul.f32.gmra.mxu3 %v947_v3 }
  0x81   : > { %1210 = vmatmul.f32.gmra.mxu0 %v3015_v44  ;;  %v2454_v44 = vld [vmem:[%s3592_s1 + $0x3d8] sm:$0xff] }
  0x82   : > { %1775 = vmatpush.msra.mxu3 %v2454_v44  ;;  %v2466_v44 = vld [vmem:[%s3592_s1 + $0x438] sm:$0xff] }
  0x83   : > { %663 = vmatmul.f32.gmra.mxu1 %v946_v46  ;;  %825 = vmatmul.f32.gmra.mxu2 %v754_v17 }
  0x84   : > { %1776 = vmatpush.msra.mxu3 %v2453_v18  ;;  %1973 = vmatpush.msra.mxu0 %v2466_v44 }
  0x85   : > { %1019 = vmatmul.f32.gmra.mxu3 %v948_v5 }
  0x86   : > { %1777 = vmatpush.msra.mxu3 %v2452_v58 }
  0x88   : > { %1778 = vmatpush.msra.mxu3 %v2451_v47 }
  0x89   : > { %1213 = vmatmul.f32.gmra.mxu0 %v3089_v48  ;;  %v759_v48 = vld [vmem:[#allocation2 + $0x62] sm:$0xff] }
  0x8a   : > { %1779 = vmatpush.msra.mxu3 %v2450_v4 }
  0x8b   : > { %666 = vmatmul.f32.gmra.mxu1 %v947_v3  ;;  %828 = vmatmul.f32.gmra.mxu2 %v755_v9 }
  0x8c   : > { %1780 = vmatpush.msra.mxu3 %v2449_v36 }
  0x8d   : > { %1022 = vmatmul.f32.gmra.mxu3 %v949_v10 }
  0x91   : > { %1216 = vmatmul.f32.gmra.mxu0 %v3119_v39 }
  0x93   : > { %669 = vmatmul.f32.gmra.mxu1 %v948_v5  ;;  %831 = vmatmul.f32.gmra.mxu2 %v756_v15 }
  0x95   : > { %1025 = vmatmul.f32.gmra.mxu3 %v950_v25 }
  0x99   : > { %1219 = vmatmul.f32.gmra.mxu0 %v3126_v41  ;;  %v761_v41 = vld [vmem:[#allocation2 + $0x7a] sm:$0xff] }
  0x9b   : > { %672 = vmatmul.f32.gmra.mxu1 %v949_v10  ;;  %834 = vmatmul.f32.gmra.mxu2 %v757_v16  ;;  %v764_v10 = vld [vmem:[#allocation2 + $0x9a] sm:$0xff]  ;;  %v765_v16 = vld [vmem:[#allocation2 + $0xaa] sm:$0xff] }
  0x9d   : > { %1028 = vmatmul.f32.gmra.mxu3 %v951_v29 }
  0xa1   : > { %1222 = vmatmul.f32.gmra.mxu0 %v2641_v14  ;;  %v2436_v14 = vld [vmem:[%s3592_s1 + $0x348] sm:$0xff] }
  0xa2   : > { %1583 = vmatpush.msra.mxu2 %v2436_v14  ;;  %v2465_v14 = vld [vmem:[%s3592_s1 + $0x430] sm:$0xff] }
  0xa3   : > { %675 = vmatmul.f32.gmra.mxu1 %v950_v25  ;;  %837 = vmatmul.f32.gmra.mxu2 %v758_v22  ;;  %v1153_v22 = vld [vmem:[#allocation2 + $0xc1] sm:$0xff] }
  0xa4   : > { %1584 = vmatpush.msra.mxu2 %v2435_v43  ;;  %1974 = vmatpush.msra.mxu0 %v2465_v14  ;;  %v2432_v43 = vld [vmem:[%s3592_s1 + $0x328] sm:$0xff] }
  0xa5   : > { %1031 = vmatmul.f32.gmra.mxu3 %v952_v23 }
  0xa6   : > { %1585 = vmatpush.msra.mxu2 %v2434_v2 }
  0xa8   : > { %v3199_v30 = vpop.f32.mrf.mxu1 }
  0xa9   : > { %1225 = vmatmul.f32.gmra.mxu0 %v2749_v52  ;;  %v2420_v52 = vld [vmem:[%s3592_s1 + $0x2c8] sm:$0xff] }
  0xaa   : > { %1388 = vmatpush.msra.mxu1 %v2420_v52 }
  0xab   : > { %678 = vmatmul.f32.gmra.mxu1 %v951_v29  ;;  %840 = vmatmul.f32.gmra.mxu2 %v759_v48  ;;  %v2433_v29 = vld [vmem:[%s3592_s1 + $0x330] sm:$0xff] }
  0xac   : > { %1586 = vmatpush.msra.mxu2 %v2433_v29  ;;  %v766_v48 = vld [vmem:[#allocation2 + $0xb2] sm:$0xff] }
  0xad   : > { %1034 = vmatmul.f32.gmra.mxu3 %v953_v53 }
  0xae   : > { %v3208_v31 = vpop.f32.mrf.mxu2  ;;  %v3210_v34 = vpop.f32.mrf.mxu0  ;;  %1587 = vmatpush.msra.mxu2 %v2432_v43 }
  0xb0   : > { %v3215_v1 = vpop.f32.mrf.mxu1  ;;  %v3217_v7 = vpop.f32.mrf.mxu3 }
  0xb1   : > { %1228 = vmatmul.f32.gmra.mxu0 %v2817_v19  ;;  %v955_v19 = vld [vmem:[#allocation2 + $0x90] sm:$0xff] }
  0xb3   : > { %681 = vmatmul.f32.gmra.mxu1 %v952_v23  ;;  %843 = vmatmul.f32.gmra.mxu2 %v760_v20  ;;  %v1154_v20 = vld [vmem:[#allocation2 + $0xc9] sm:$0xff] }
  0xb5   : > { %1037 = vmatmul.f32.gmra.mxu3 %v954_v35 }
  0xb6   : > { %v3223_v26 = vpop.f32.mrf.mxu2  ;;  %v3225_v39 = vpop.f32.mrf.mxu0 }
  0xb8   : > { %v3227_v8 = vpop.f32.mrf.mxu1  ;;  %v3229_v40 = vpop.f32.mrf.mxu3 }
  0xb9   : > { %1231 = vmatmul.f32.gmra.mxu0 %v2886_v55  ;;  %v2419_v55 = vld [vmem:[%s3592_s1 + $0x2c0] sm:$0xff] }
  0xba   : > { %1389 = vmatpush.msra.mxu1 %v2419_v55  ;;  %v2448_v55 = vld [vmem:[%s3592_s1 + $0x3a8] sm:$0xff] }
  0xbb   : > { %684 = vmatmul.f32.gmra.mxu1 %v953_v53  ;;  %846 = vmatmul.f32.gmra.mxu2 %v761_v41  ;;  %v960_v53 = vld [vmem:[#allocation2 + $0xc8] sm:$0xff] }
  0xbc   : > { %v767_v41 = vld [vmem:[#allocation2 + $0xc2] sm:$0xff]  ;;  %1781 = vmatpush.msra.mxu3 %v2448_v55 }
  0xbd   : > { %1040 = vmatmul.f32.gmra.mxu3 %v955_v19 }
  0xbe   : > { %v3238_v49 = vpop.f32.mrf.mxu2  ;;  %v3240_v50 = vpop.f32.mrf.mxu0 }
  0xc0   : > { %v3245_v51 = vpop.f32.mrf.mxu1  ;;  %v3247_v54 = vpop.f32.mrf.mxu3 }
  0xc1   : > { %1234 = vmatmul.f32.gmra.mxu0 %v2960_v24  ;;  %v957_v24 = vld [vmem:[#allocation2 + $0xa8] sm:$0xff] }
  0xc3   : > { %687 = vmatmul.f32.gmra.mxu1 %v954_v35  ;;  %849 = vmatmul.f32.gmra.mxu2 %v762_v57 }
  0xc5   : > { %1043 = vmatmul.f32.gmra.mxu3 %v956_v59 }
  0xc6   : > { %v3253_v46 = vpop.f32.mrf.mxu2  ;;  %v3255_v62 = vpop.f32.mrf.mxu0 }
  0xc8   : > { %v3257_v0 = vpop.f32.mrf.mxu1  ;;  %v3259_v3 = vpop.f32.mrf.mxu3 }
  0xc9   : > { %1237 = vmatmul.f32.gmra.mxu0 %v3034_v61  ;;  %v2418_v61 = vld [vmem:[%s3592_s1 + $0x2b8] sm:$0xff] }
  0xca   : > { %1390 = vmatpush.msra.mxu1 %v2418_v61  ;;  %v768_v61 = vld [vmem:[#allocation2 + $0xca] sm:$0xff] }
  0xcb   : > { %690 = vmatmul.f32.gmra.mxu1 %v955_v19  ;;  %852 = vmatmul.f32.gmra.mxu2 %v763_v45  ;;  %v961_v19 = vld [vmem:[#allocation2 + $0xd8] sm:$0xff] }
  0xcd   : > { %1046 = vmatmul.f32.gmra.mxu3 %v957_v24 }
  0xce   : > { %v3268_v17 = vpop.f32.mrf.mxu2  ;;  %v3270_v5 = vpop.f32.mrf.mxu0 }
  0xd0   : > { %v3275_v6 = vpop.f32.mrf.mxu1  ;;  %v3277_v9 = vpop.f32.mrf.mxu3 }
  0xd1   : > { %1240 = vmatmul.f32.gmra.mxu0 %v3087_v42  ;;  %v959_v42 = vld [vmem:[#allocation2 + $0xc0] sm:$0xff] }
  0xd3   : > { %693 = vmatmul.f32.gmra.mxu1 %v956_v59  ;;  %855 = vmatmul.f32.gmra.mxu2 %v764_v10 }
  0xd5   : > { %1049 = vmatmul.f32.gmra.mxu3 %v958_v12 }
  0xd6   : > { %v3283_v13 = vpop.f32.mrf.mxu2  ;;  %v3285_v15 = vpop.f32.mrf.mxu0 }
  0xd8   : > { %v3287_v25 = vpop.f32.mrf.mxu1  ;;  %v3289_v32 = vpop.f32.mrf.mxu3 }
  0xd9   : > { %1243 = vmatmul.f32.gmra.mxu0 %v3108_v37  ;;  %v2417_v37 = vld [vmem:[%s3592_s1 + $0x2b0] sm:$0xff] }
  0xda   : > { %1391 = vmatpush.msra.mxu1 %v2417_v37 }
  0xdb   : > { %696 = vmatmul.f32.gmra.mxu1 %v957_v24  ;;  %858 = vmatmul.f32.gmra.mxu2 %v765_v16  ;;  %v2416_v24 = vld [vmem:[%s3592_s1 + $0x2a8] sm:$0xff] }
  0xdc   : > { %1392 = vmatpush.msra.mxu1 %v2416_v24  ;;  %v2464_v16 = vld [vmem:[%s3592_s1 + $0x428] sm:$0xff] }
  0xdd   : > { %1052 = vmatmul.f32.gmra.mxu3 %v959_v42  ;;  %1975 = vmatpush.msra.mxu0 %v2464_v16 }
  0xde   : > { %v3298_v18 = vpop.f32.mrf.mxu2  ;;  %v3300_v21 = vpop.f32.mrf.mxu0 }
  0xe0   : > { %v3305_v23 = vpop.f32.mrf.mxu1  ;;  %v3307_v28 = vpop.f32.mrf.mxu3 }
  0xe1   : > { %1246 = vmatmul.f32.gmra.mxu0 %v1153_v22 }
  0xe3   : > { %699 = vmatmul.f32.gmra.mxu1 %v958_v12  ;;  %861 = vmatmul.f32.gmra.mxu2 %v766_v48  ;;  %v769_v48 = vld [vmem:[#allocation2 + $0xda] sm:$0xff] }
  0xe5   : > { %1055 = vmatmul.f32.gmra.mxu3 %v960_v53 }
  0xe6   : > { %v3312_v58 = vpop.f32.mrf.mxu2  ;;  %v3314_v52 = vpop.f32.mrf.mxu0 }
  0xe8   : > { %v3316_v35 = vpop.f32.mrf.mxu3  ;;  %v655_v11 = vpop.f32.mrf.mxu1 }
  0xe9   : > { %1249 = vmatmul.f32.gmra.mxu0 %v1154_v20  ;;  %v656_v47 = vadd.f32 %v655_v11, %v3210_v34  ;;  %v962_v34 = vld [vmem:[#allocation2 + $0xe0] sm:$0xff]  ;;  %v963_v20 = vld [vmem:[#allocation2 + $0xf0] sm:$0xff] }
  0xeb   : > { %702 = vmatmul.f32.gmra.mxu1 %v959_v42  ;;  %864 = vmatmul.f32.gmra.mxu2 %v767_v41  ;;  %v2447_v41 = vld [vmem:[%s3592_s1 + $0x3a0] sm:$0xff] }
  0xec   : > { %1782 = vmatpush.msra.mxu3 %v2447_v41 }
  0xed   : > { %1058 = vmatmul.f32.gmra.mxu3 %v961_v19 }
  0xee   : > { %v817_v57 = vpop.f32.mrf.mxu2  ;;  %v1205_v59 = vpop.f32.mrf.mxu0 }
  0xef   : > { %v913_v45 = vadd.f32 %v817_v57, %v656_v47 }
  0xf0   : > { %v658_v2 = vpop.f32.mrf.mxu1  ;;  %v1011_v4 = vpop.f32.mrf.mxu3 }
  0xf1   : > { %v1107_v10 = vadd.f32 %v1011_v4, %v913_v45  ;;  %1252 = vmatmul.f32.gmra.mxu0 %v1155_v60  ;;  %v659_v44 = vadd.f32 %v658_v2, %v3225_v39  ;;  %v2431_v39 = vld [vmem:[%s3592_s1 + $0x320] sm:$0xff] }
  0xf2   : > { %1588 = vmatpush.msra.mxu2 %v2431_v39  ;;  %v2463_v2 = vld [vmem:[%s3592_s1 + $0x420] sm:$0xff] }
  0xf3   : > { %v3328_v12 = vadd.f32 %v1205_v59, %v1107_v10  ;;  %705 = vmatmul.f32.gmra.mxu1 %v960_v53  ;;  %867 = vmatmul.f32.gmra.mxu2 %v768_v61  ;;  %v770_v59 = vld [vmem:[#allocation2 + $0xe2] sm:$0xff] }
  0xf4   : > { %1976 = vmatpush.msra.mxu0 %v2463_v2  ;;  %v967_v2 = vld [vmem:[#allocation2 + $0x120] sm:$0xff] }
  0xf5   : > { %1061 = vmatmul.f32.gmra.mxu3 %v962_v34 }
  0xf6   : > { %v820_v42 = vpop.f32.mrf.mxu2  ;;  %v1208_v29 = vpop.f32.mrf.mxu0 }
  0xf7   : > { %v914_v36 = vadd.f32 %v820_v42, %v659_v44  ;;  %v771_v42 = vld [vmem:[#allocation2 + $0xf2] sm:$0xff] }
  0xf8   : > { %v661_v22 = vpop.f32.mrf.mxu1  ;;  %v1014_v37 = vpop.f32.mrf.mxu3 }
  0xf9   : > { %v1108_v14 = vadd.f32 %v1014_v37, %v914_v36  ;;  %1255 = vmatmul.f32.gmra.mxu0 %v2888_v56  ;;  %v662_v11 = vadd.f32 %v661_v22, %v3240_v50  ;;  %v964_v50 = vld [vmem:[#allocation2 + $0xf8] sm:$0xff] }
  0xfa   : > { %v2446_v22 = vld [vmem:[%s3592_s1 + $0x398] sm:$0xff] }
  0xfb   : > { %v3335_v53 = vadd.f32 %v1208_v29, %v1108_v14  ;;  %708 = vmatmul.f32.gmra.mxu1 %v961_v19  ;;  %870 = vmatmul.f32.gmra.mxu2 %v769_v48  ;;  %v2415_v19 = vld [vmem:[%s3592_s1 + $0x2a0] sm:$0xff]  ;;  %v965_v29 = vld [vmem:[#allocation2 + $0x108] sm:$0xff]  ;;  %v2414_v14 = vld [vmem:[%s3592_s1 + $0x298] sm:$0xff] }
  0xfc   : > { %1393 = vmatpush.msra.mxu1 %v2415_v19  ;;  %1783 = vmatpush.msra.mxu3 %v2446_v22 }
  0xfd   : > { %1064 = vmatmul.f32.gmra.mxu3 %v963_v20 }
  0xfe   : > { %v823_v43 = vpop.f32.mrf.mxu2  ;;  %v1211_v47 = vpop.f32.mrf.mxu0  ;;  %1394 = vmatpush.msra.mxu1 %v2414_v14 }
  0xff   : > { %v915_v56 = vadd.f32 %v823_v43, %v662_v11  ;;  %v772_v11 = vld [vmem:[#allocation2 + $0xfa] sm:$0xff] }
 0x100   : > { %v664_v55 = vpop.f32.mrf.mxu1  ;;  %v1017_v57 = vpop.f32.mrf.mxu3 }
 0x101   : > { %v1109_v60 = vadd.f32 %v1017_v57, %v915_v56  ;;  %1258 = vmatmul.f32.gmra.mxu0 %v2962_v27  ;;  %v665_v24 = vadd.f32 %v664_v55, %v3255_v62  ;;  %v2430_v62 = vld [vmem:[%s3592_s1 + $0x318] sm:$0xff] }
 0x102   : > { %1589 = vmatpush.msra.mxu2 %v2430_v62  ;;  %v2462_v56 = vld [vmem:[%s3592_s1 + $0x418] sm:$0xff] }
 0x103   : > { %v3348_v45 = vadd.f32 %v1211_v47, %v1109_v60  ;;  %711 = vmatmul.f32.gmra.mxu1 %v962_v34  ;;  %873 = vmatmul.f32.gmra.mxu2 %v770_v59  ;;  %v774_v62 = vld [vmem:[#allocation2 + $0x112] sm:$0xff] }
 0x104   : > { %1977 = vmatpush.msra.mxu0 %v2462_v56 }
 0x105   : > { %1067 = vmatmul.f32.gmra.mxu3 %v964_v50 }
 0x106   : > { %v826_v4 = vpop.f32.mrf.mxu2  ;;  %v1214_v61 = vpop.f32.mrf.mxu0 }
 0x107   : > { %v916_v10 = vadd.f32 %v826_v4, %v665_v24  ;;  %v773_v24 = vld [vmem:[#allocation2 + $0x10a] sm:$0xff] }
 0x108   : > { %v667_v44 = vpop.f32.mrf.mxu1  ;;  %v1020_v16 = vpop.f32.mrf.mxu3 }
 0x109   : > { %v1110_v27 = vadd.f32 %v1020_v16, %v916_v10  ;;  %1261 = vmatmul.f32.gmra.mxu0 %v3036_v63  ;;  %v668_v36 = vadd.f32 %v667_v44, %v3270_v5  ;;  %v966_v5 = vld [vmem:[#allocation2 + $0x110] sm:$0xff] }
 0x10b   : > { %v3355_v34 = vadd.f32 %v1214_v61, %v1110_v27  ;;  %714 = vmatmul.f32.gmra.mxu1 %v963_v20  ;;  %876 = vmatmul.f32.gmra.mxu2 %v771_v42  ;;  %v2445_v61 = vld [vmem:[%s3592_s1 + $0x390] sm:$0xff] }
 0x10c   : > { %1784 = vmatpush.msra.mxu3 %v2445_v61  ;;  %v2413_v42 = vld [vmem:[%s3592_s1 + $0x290] sm:$0xff] }
 0x10d   : > { %1070 = vmatmul.f32.gmra.mxu3 %v965_v29  ;;  %1395 = vmatpush.msra.mxu1 %v2413_v42 }
 0x10e   : > { %v829_v37 = vpop.f32.mrf.mxu2  ;;  %v1217_v48 = vpop.f32.mrf.mxu0 }
 0x10f   : > { %v917_v63 = vadd.f32 %v829_v37, %v668_v36 }
 0x110   : > { %v670_v20 = vpop.f32.mrf.mxu1  ;;  %v1023_v39 = vpop.f32.mrf.mxu3 }
 0x111   : > { %v1111_v41 = vadd.f32 %v1023_v39, %v917_v63  ;;  %1264 = vmatmul.f32.gmra.mxu0 %v3096_v33  ;;  %v671_v47 = vadd.f32 %v670_v20, %v3285_v15  ;;  %v2429_v15 = vld [vmem:[%s3592_s1 + $0x310] sm:$0xff] }
 0x112   : > { %1590 = vmatpush.msra.mxu2 %v2429_v15  ;;  %v1162_v20 = vld [vmem:[#allocation2 + $0x129] sm:$0xff] }
 0x113   : > { %v3368_v43 = vadd.f32 %v1217_v48, %v1111_v41  ;;  %717 = vmatmul.f32.gmra.mxu1 %v964_v50  ;;  %879 = vmatmul.f32.gmra.mxu2 %v772_v11  ;;  %v2461_v48 = vld [vmem:[%s3592_s1 + $0x410] sm:$0xff] }
 0x114   : > { %1978 = vmatpush.msra.mxu0 %v2461_v48 }
 0x115   : > { %1073 = vmatmul.f32.gmra.mxu3 %v966_v5 }
 0x116   : > { %v832_v19 = vpop.f32.mrf.mxu2  ;;  %v1220_v55 = vpop.f32.mrf.mxu0 }
 0x117   : > { %v918_v57 = vadd.f32 %v832_v19, %v671_v47  ;;  %v775_v47 = vld [vmem:[#allocation2 + $0x122] sm:$0xff] }
 0x118   : > { %v673_v59 = vpop.f32.mrf.mxu1  ;;  %v1026_v60 = vpop.f32.mrf.mxu3 }
 0x119   : > { %v1112_v33 = vadd.f32 %v1026_v60, %v918_v57  ;;  %1267 = vmatmul.f32.gmra.mxu0 %v3114_v38  ;;  %v674_v4 = vadd.f32 %v673_v59, %v3300_v21  ;;  %v1161_v38 = vld [vmem:[#allocation2 + $0x121] sm:$0xff] }
 0x11a   : > { %v968_v21 = vld [vmem:[#allocation2 + $0x128] sm:$0xff] }
 0x11b   : > { %v3375_v50 = vadd.f32 %v1220_v55, %v1112_v33  ;;  %720 = vmatmul.f32.gmra.mxu1 %v965_v29  ;;  %882 = vmatmul.f32.gmra.mxu2 %v773_v24  ;;  %v2444_v57 = vld [vmem:[%s3592_s1 + $0x388] sm:$0xff]  ;;  %v1163_v24 = vld [vmem:[#allocation2 + $0x139] sm:$0xff]  ;;  %v241_v33 = vld [vmem:[%s2610_s30 + $0xf0] sm:$0xff] }
 0x11c   : > { %1785 = vmatpush.msra.mxu3 %v2444_v57  ;;  %v2427_v57 = vld [vmem:[%s3592_s1 + $0x300] sm:$0xff] }
 0x11d   : > { %1076 = vmatmul.f32.gmra.mxu3 %v967_v2 }
 0x11e   : > { %v835_v10 = vpop.f32.mrf.mxu2  ;;  %v1223_v44 = vpop.f32.mrf.mxu0 }
 0x11f   : > { %v919_v16 = vadd.f32 %v835_v10, %v674_v4  ;;  %v2538_v4 = vld [vmem:[%s3593_s2] ss:$0 sm:$0xff] }
 0x120   : > { %v676_v27 = vpop.f32.mrf.mxu1  ;;  %v1029_v29 = vpop.f32.mrf.mxu3 }
 0x121   : > { %v1113_v36 = vadd.f32 %v1029_v29, %v919_v16  ;;  %1270 = vmatmul.f32.gmra.mxu0 %v1161_v38  ;;  %v677_v37 = vadd.f32 %v676_v27, %v3314_v52  ;;  %v2428_v52 = vld [vmem:[%s3592_s1 + $0x308] sm:$0xff]  ;;  %v2539_v16 = vld [vmem:[%s3593_s2 + $0x1] ss:$0 sm:$0xff] }
 0x122   : > { %1591 = vmatpush.msra.mxu2 %v2428_v52  ;;  %v970_v27 = vld [vmem:[#allocation2 + $0x140] sm:$0xff]  ;;  %v971_v52 = vld [vmem:[#allocation2 + $0x150] sm:$0xff] }
 0x123   : > { %v3387_v22 = vadd.f32 %v1223_v44, %v1113_v36  ;;  %723 = vmatmul.f32.gmra.mxu1 %v966_v5  ;;  %885 = vmatmul.f32.gmra.mxu2 %v774_v62  ;;  %v969_v5 = vld [vmem:[#allocation2 + $0x138] sm:$0xff]  ;;  %v776_v44 = vld [vmem:[#allocation2 + $0x12a] sm:$0xff] }
 0x124   : > { %1592 = vmatpush.msra.mxu2 %v2427_v57  ;;  %v1167_v57 = vld [vmem:[#allocation2 + $0x169] sm:$0xff] }
 0x125   : > { %1079 = vmatmul.f32.gmra.mxu3 %v968_v21 }
 0x126   : > { %v838_v63 = vpop.f32.mrf.mxu2  ;;  %v1226_v14 = vpop.f32.mrf.mxu0 }
 0x127   : > { %v920_v39 = vadd.f32 %v838_v63, %v677_v37  ;;  %v2460_v37 = vld [vmem:[%s3592_s1 + $0x408] sm:$0xff] }
 0x128   : > { %v679_v11 = vpop.f32.mrf.mxu1  ;;  %v1032_v41 = vpop.f32.mrf.mxu3  ;;  %1979 = vmatpush.msra.mxu0 %v2460_v37 }
 0x129   : > { %v1114_v56 = vadd.f32 %v1032_v41, %v920_v39  ;;  %1273 = vmatmul.f32.gmra.mxu0 %v1162_v20  ;;  %v680_v55 = vadd.f32 %v679_v11, %v3199_v30  ;;  %v274_v30 = vmul.f32 %v2538_v4, %v241_v33  ;;  %v242_v20 = vld [vmem:[%s2610_s30 + $0xf8] sm:$0xff] }
 0x12b   : > { %v3393_v19 = vadd.f32 %v1226_v14, %v1114_v56  ;;  %726 = vmatmul.f32.gmra.mxu1 %v967_v2  ;;  %888 = vmatmul.f32.gmra.mxu2 %v775_v47  ;;  %v2412_v2 = vld [vmem:[%s3592_s1 + $0x288] sm:$0xff]  ;;  %v3412_v42 = vadd.f32 %v2539_v16, %v274_v30  ;;  %v777_v47 = vld [vmem:[#allocation2 + $0x13a] sm:$0xff] }
 0x12c   : > { %1396 = vmatpush.msra.mxu1 %v2412_v2  ;;  %v1164_v14 = vld [vmem:[#allocation2 + $0x141] sm:$0xff] }
 0x12d   : > { %1082 = vmatmul.f32.gmra.mxu3 %v969_v5  ;;  %v339_v62 = vmax.f32 %v3412_v42, 0.0  ;;  %v1722_v42 = vld [vmem:[#allocation2 + $0x31] sm:$0xff] }
 0x12e   : > { %v841_v59 = vpop.f32.mrf.mxu2  ;;  %v1229_v60 = vpop.f32.mrf.mxu0 }
 0x12f   : > { %v921_v15 = vadd.f32 %v841_v59, %v680_v55  ;;  %426 = vst [vmem:[#allocation2 + $0x181] sm:$0xff] %v339_v62 }
 0x130   : > { %v682_v61 = vpop.f32.mrf.mxu1  ;;  %v1035_v10 = vpop.f32.mrf.mxu3 }
 0x131   : > { %v1115_v38 = vadd.f32 %v1035_v10, %v921_v15  ;;  %1276 = vmatmul.f32.gmra.mxu0 %v1163_v24  ;;  %v683_v36 = vadd.f32 %v682_v61, %v3215_v1  ;;  %v2443_v24 = vld [vmem:[%s3592_s1 + $0x380] sm:$0xff]  ;;  %v1165_v15 = vld [vmem:[#allocation2 + $0x151] sm:$0xff] }
 0x132   : > { %1786 = vmatpush.msra.mxu3 %v2443_v24 }
 0x133   : > { %v3414_v29 = vadd.f32 %v1229_v60, %v1115_v38  ;;  %729 = vmatmul.f32.gmra.mxu1 %v968_v21  ;;  %891 = vmatmul.f32.gmra.mxu2 %v776_v44  ;;  %v275_v21 = vmul.f32 %v2538_v4, %v242_v20  ;;  %v2411_v4 = vld [vmem:[%s3592_s1 + $0x280] sm:$0xff]  ;;  %v972_v44 = vld [vmem:[#allocation2 + $0x158] sm:$0xff] }
 0x134   : > { %1397 = vmatpush.msra.mxu1 %v2411_v4 }
 0x135   : > { %1085 = vmatmul.f32.gmra.mxu3 %v970_v27  ;;  %v3424_v1 = vadd.f32 %v2539_v16, %v275_v21  ;;  %v779_v21 = vld [vmem:[#allocation2 + $0x152] sm:$0xff] }
 0x136   : > { %v844_v48 = vpop.f32.mrf.mxu2  ;;  %v1232_v63 = vpop.f32.mrf.mxu0 }
 0x137   : > { %v922_v39 = vadd.f32 %v844_v48, %v683_v36  ;;  %v340_v59 = vmax.f32 %v3424_v1, 0.0  ;;  %v2459_v36 = vld [vmem:[%s3592_s1 + $0x400] sm:$0xff] }
 0x138   : > { %v685_v11 = vpop.f32.mrf.mxu1  ;;  %v1038_v41 = vpop.f32.mrf.mxu3  ;;  %1980 = vmatpush.msra.mxu0 %v2459_v36  ;;  %v781_v36 = vld [vmem:[#allocation2 + $0x16a] sm:$0xff]  ;;  %v1723_v1 = vld [vmem:[#allocation2 + $0x39] sm:$0xff] }
 0x139   : > { %v1116_v56 = vadd.f32 %v1038_v41, %v922_v39  ;;  %1279 = vmatmul.f32.gmra.mxu0 %v1164_v14  ;;  %v686_v60 = vadd.f32 %v685_v11, %v3227_v8  ;;  %427 = vst [vmem:[#allocation2 + $0x189] sm:$0xff] %v340_v59  ;;  %v778_v8 = vld [vmem:[#allocation2 + $0x142] sm:$0xff] }
 0x13a   : > { %v973_v41 = vld [vmem:[#allocation2 + $0x168] sm:$0xff] }
 0x13b   : > { %v3426_v55 = vadd.f32 %v1232_v63, %v1116_v56  ;;  %732 = vmatmul.f32.gmra.mxu1 %v969_v5  ;;  %894 = vmatmul.f32.gmra.mxu2 %v777_v47  ;;  %v1166_v63 = vld [vmem:[#allocation2 + $0x159] sm:$0xff] }
 0x13d   : > { %1088 = vmatmul.f32.gmra.mxu3 %v971_v52 }
 0x13e   : > { %v847_v33 = vpop.f32.mrf.mxu2  ;;  %v1235_v5 = vpop.f32.mrf.mxu0 }
 0x13f   : > { %v923_v2 = vadd.f32 %v847_v33, %v686_v60 }
 0x140   : > { %v688_v30 = vpop.f32.mrf.mxu1  ;;  %v1041_v61 = vpop.f32.mrf.mxu3 }
 0x141   : > { %v1117_v10 = vadd.f32 %v1041_v61, %v923_v2  ;;  %1282 = vmatmul.f32.gmra.mxu0 %v1165_v15  ;;  %v689_v16 = vadd.f32 %v688_v30, %v3245_v51  ;;  %v974_v2 = vld [vmem:[#allocation2 + $0x170] sm:$0xff] }
 0x142   : > { %v1168_v61 = vld [vmem:[#allocation2 + $0x171] sm:$0xff] }
 0x143   : > { %v3441_v38 = vadd.f32 %v1235_v5, %v1117_v10  ;;  %735 = vmatmul.f32.gmra.mxu1 %v970_v27  ;;  %897 = vmatmul.f32.gmra.mxu2 %v778_v8  ;;  %v780_v5 = vld [vmem:[#allocation2 + $0x15a] sm:$0xff] }
 0x145   : > { %1091 = vmatmul.f32.gmra.mxu3 %v972_v44 }
 0x146   : > { %v850_v37 = vpop.f32.mrf.mxu2  ;;  %v1238_v48 = vpop.f32.mrf.mxu0 }
 0x147   : > { %v924_v14 = vadd.f32 %v850_v37, %v689_v16 }
 0x148   : > { %v691_v20 = vpop.f32.mrf.mxu1  ;;  %v1044_v39 = vpop.f32.mrf.mxu3 }
 0x149   : > { %v1118_v11 = vadd.f32 %v1044_v39, %v924_v14  ;;  %1285 = vmatmul.f32.gmra.mxu0 %v1166_v63  ;;  %v692_v51 = vadd.f32 %v691_v20, %v3257_v0 }
 0x14b   : > { %v3447_v27 = vadd.f32 %v1238_v48, %v1118_v11  ;;  %738 = vmatmul.f32.gmra.mxu1 %v971_v52  ;;  %900 = vmatmul.f32.gmra.mxu2 %v779_v21  ;;  %v975_v48 = vld [vmem:[#allocation2 + $0x180] sm:$0xff]  ;;  %v782_v11 = vld [vmem:[#allocation2 + $0x172] sm:$0xff] }
 0x14d   : > { %1094 = vmatmul.f32.gmra.mxu3 %v973_v41 }
 0x14e   : > { %v853_v47 = vpop.f32.mrf.mxu2  ;;  %v1241_v56 = vpop.f32.mrf.mxu0 }
 0x14f   : > { %v925_v60 = vadd.f32 %v853_v47, %v692_v51  ;;  %v976_v47 = vld [vmem:[#allocation2 + $0x188] sm:$0xff] }
 0x150   : > { %v694_v24 = vpop.f32.mrf.mxu1  ;;  %v1047_v33 = vpop.f32.mrf.mxu3 }
 0x151   : > { %v1119_v15 = vadd.f32 %v1047_v33, %v925_v60  ;;  %1288 = vmatmul.f32.gmra.mxu0 %v1167_v57  ;;  %v695_v52 = vadd.f32 %v694_v24, %v3275_v6 }
 0x153   : > { %v3450_v4 = vadd.f32 %v1241_v56, %v1119_v15  ;;  %741 = vmatmul.f32.gmra.mxu1 %v972_v44  ;;  %903 = vmatmul.f32.gmra.mxu2 %v780_v5  ;;  %v1333_v5 = vld [vmem:[#allocation2 + $0x1a] sm:$0xff]  ;;  %v1528_v15 = vld [vmem:[#allocation2 + $0x30] sm:$0xff] }
 0x155   : > { %1097 = vmatmul.f32.gmra.mxu3 %v974_v2 }
 0x156   : > { %v856_v30 = vpop.f32.mrf.mxu2  ;;  %v1244_v0 = vpop.f32.mrf.mxu0 }
 0x157   : > { %v926_v8 = vadd.f32 %v856_v30, %v695_v52 }
 0x158   : > { %v697_v10 = vpop.f32.mrf.mxu1  ;;  %v1050_v16 = vpop.f32.mrf.mxu3 }
 0x159   : > { %v1120_v37 = vadd.f32 %v1050_v16, %v926_v8  ;;  %1291 = vmatmul.f32.gmra.mxu0 %v1168_v61  ;;  %v698_v44 = vadd.f32 %v697_v10, %v3287_v25  ;;  %v1334_v16 = vld [vmem:[#allocation2 + $0x22] sm:$0xff] }
 0x15b   : > { %v3453_v63 = vadd.f32 %v1244_v0, %v1120_v37  ;;  %744 = vmatmul.f32.gmra.mxu1 %v973_v41  ;;  %906 = vmatmul.f32.gmra.mxu2 %v781_v36  ;;  %v1916_v0 = vld [vmem:[#allocation2 + $0x32] sm:$0xff] }
 0x15c   : > { %v1529_v36 = vld [vmem:[#allocation2 + $0x38] sm:$0xff] }
 0x15d   : > { %1100 = vmatmul.f32.gmra.mxu3 %v975_v48 }
 0x15e   : > { %v859_v14 = vpop.f32.mrf.mxu2  ;;  %v1247_v6 = vpop.f32.mrf.mxu0 }
 0x15f   : > { %v927_v20 = vadd.f32 %v859_v14, %v698_v44  ;;  %v1917_v14 = vld [vmem:[#allocation2 + $0x3a] sm:$0xff] }
 0x160   : > { %v700_v39 = vpop.f32.mrf.mxu1  ;;  %v1053_v21 = vpop.f32.mrf.mxu3 }
 0x161   : > { %v1121_v51 = vadd.f32 %v1053_v21, %v927_v20  ;;  %1294 = vmatmul.f32.gmra.mxu0 %v339_v62  ;;  %v701_v41 = vadd.f32 %v700_v39, %v3305_v23  ;;  %v1530_v21 = vld [vmem:[#allocation2 + $0x48] sm:$0xff] }
 0x163   : > { %v3458_v56 = vadd.f32 %v1247_v6, %v1121_v51  ;;  %747 = vmatmul.f32.gmra.mxu1 %v974_v2  ;;  %909 = vmatmul.f32.gmra.mxu2 %v782_v11  ;;  %v1724_v51 = vld [vmem:[#allocation2 + $0x49] sm:$0xff] }
 0x165   : > { %1103 = vmatmul.f32.gmra.mxu3 %v976_v47 }
 0x166   : > { %v862_v25 = vpop.f32.mrf.mxu2  ;;  %v1250_v57 = vpop.f32.mrf.mxu0 }
 0x167   : > { %v928_v60 = vadd.f32 %v862_v25, %v701_v41 }
 0x168   : > { %v703_v24 = vpop.f32.mrf.mxu1  ;;  %v1056_v33 = vpop.f32.mrf.mxu3 }
 0x169   : > { %v1122_v52 = vadd.f32 %v1056_v33, %v928_v60  ;;  %1297 = vmatmul.f32.gmra.mxu0 %v340_v59  ;;  %v704_v2 = vadd.f32 %v703_v24, %v3208_v31 }
 0x16b   : > { %v3463_v62 = vadd.f32 %v1250_v57, %v1122_v52  ;;  %1398 = vmatmul.f32.vlgmr.msra.gmra.mxu1 %v1333_v5  ;;  %1593 = vmatmul.f32.vlgmr.msra.gmra.mxu2 %v1528_v15  ;;  %v1918_v57 = vld [vmem:[#allocation2 + $0x4a] sm:$0xff] }
 0x16c   : > { %v1531_v5 = vld [vmem:[#allocation2 + $0x50] sm:$0xff] }
 0x16d   : > { %1787 = vmatmul.f32.vlgmr.msra.gmra.mxu3 %v1722_v42  ;;  %v1725_v52 = vld [vmem:[#allocation2 + $0x51] sm:$0xff] }
 0x16e   : > { %v865_v23 = vpop.f32.mrf.mxu2  ;;  %v1253_v30 = vpop.f32.mrf.mxu0 }
 0x16f   : > { %v929_v61 = vadd.f32 %v865_v23, %v704_v2 }
 0x170   : > { %v706_v8 = vpop.f32.mrf.mxu1  ;;  %v1059_v10 = vpop.f32.mrf.mxu3 }
 0x171   : > { %v1123_v37 = vadd.f32 %v1059_v10, %v929_v61  ;;  %1981 = vmatmul.f32.vlgmr.msra.gmra.mxu0 %v1916_v0  ;;  %v707_v48 = vadd.f32 %v706_v8, %v3223_v26  ;;  %v1532_v10 = vld [vmem:[#allocation2 + $0x60] sm:$0xff] }
 0x173   : > { %v3466_v59 = vadd.f32 %v1253_v30, %v1123_v37  ;;  %1401 = vmatmul.f32.gmra.mxu1 %v1334_v16  ;;  %1596 = vmatmul.f32.gmra.mxu2 %v1529_v36  ;;  %v1919_v30 = vld [vmem:[#allocation2 + $0x52] sm:$0xff]  ;;  %v1726_v36 = vld [vmem:[#allocation2 + $0x61] sm:$0xff] }
 0x175   : > { %1790 = vmatmul.f32.gmra.mxu3 %v1723_v1 }
 0x176   : > { %v868_v31 = vpop.f32.mrf.mxu2  ;;  %v1256_v44 = vpop.f32.mrf.mxu0 }
 0x177   : > { %v930_v6 = vadd.f32 %v868_v31, %v707_v48  ;;  %v1920_v31 = vld [vmem:[#allocation2 + $0x62] sm:$0xff] }
 0x178   : > { %v709_v20 = vpop.f32.mrf.mxu1  ;;  %v1062_v39 = vpop.f32.mrf.mxu3 }
 0x179   : > { %v1124_v11 = vadd.f32 %v1062_v39, %v930_v6  ;;  %1984 = vmatmul.f32.gmra.mxu0 %v1917_v14  ;;  %v710_v41 = vadd.f32 %v709_v20, %v3238_v49  ;;  %v1533_v20 = vld [vmem:[#allocation2 + $0x68] sm:$0xff] }
 0x17b   : > { %v3469_v47 = vadd.f32 %v1256_v44, %v1124_v11  ;;  %1404 = vmatmul.f32.gmra.mxu1 %v1916_v0  ;;  %1599 = vmatmul.f32.gmra.mxu2 %v1530_v21  ;;  %v1727_v21 = vld [vmem:[#allocation2 + $0x69] sm:$0xff] }
 0x17d   : > { %1793 = vmatmul.f32.gmra.mxu3 %v1724_v51 }
 0x17e   : > { %v871_v25 = vpop.f32.mrf.mxu2  ;;  %v1259_v26 = vpop.f32.mrf.mxu0 }
 0x17f   : > { %v931_v60 = vadd.f32 %v871_v25, %v710_v41  ;;  %v1921_v25 = vld [vmem:[#allocation2 + $0x6a] sm:$0xff] }
 0x180   : > { %v712_v24 = vpop.f32.mrf.mxu1  ;;  %v1065_v33 = vpop.f32.mrf.mxu3 }
 0x181   : > { %v1125_v15 = vadd.f32 %v1065_v33, %v931_v60  ;;  %1987 = vmatmul.f32.gmra.mxu0 %v1918_v57  ;;  %v713_v2 = vadd.f32 %v712_v24, %v3253_v46  ;;  %v1534_v24 = vld [vmem:[#allocation2 + $0x78] sm:$0xff] }
 0x183   : > { %v3472_v42 = vadd.f32 %v1259_v26, %v1125_v15  ;;  %1407 = vmatmul.f32.gmra.mxu1 %v1917_v14  ;;  %1602 = vmatmul.f32.gmra.mxu2 %v1531_v5  ;;  %v1728_v5 = vld [vmem:[#allocation2 + $0x79] sm:$0xff] }
 0x185   : > { %1796 = vmatmul.f32.gmra.mxu3 %v1725_v52 }
 0x186   : > { %v874_v23 = vpop.f32.mrf.mxu2  ;;  %v1262_v49 = vpop.f32.mrf.mxu0 }
 0x187   : > { %v932_v0 = vadd.f32 %v874_v23, %v713_v2  ;;  %v1922_v23 = vld [vmem:[#allocation2 + $0x7a] sm:$0xff] }
 0x188   : > { %v715_v61 = vpop.f32.mrf.mxu1  ;;  %v1068_v8 = vpop.f32.mrf.mxu3 }
 0x189   : > { %v1126_v16 = vadd.f32 %v1068_v8, %v932_v0  ;;  %1990 = vmatmul.f32.gmra.mxu0 %v1919_v30  ;;  %v716_v1 = vadd.f32 %v715_v61, %v3268_v17  ;;  %v1535_v61 = vld [vmem:[#allocation2 + $0x80] sm:$0xff] }
 0x18b   : > { %v3475_v37 = vadd.f32 %v1262_v49, %v1126_v16  ;;  %1410 = vmatmul.f32.gmra.mxu1 %v1918_v57  ;;  %1605 = vmatmul.f32.gmra.mxu2 %v1532_v10  ;;  %v1729_v10 = vld [vmem:[#allocation2 + $0x81] sm:$0xff] }
 0x18d   : > { %1799 = vmatmul.f32.gmra.mxu3 %v1726_v36 }
 0x18e   : > { %v877_v48 = vpop.f32.mrf.mxu2  ;;  %v1265_v46 = vpop.f32.mrf.mxu0 }
 0x18f   : > { %v933_v44 = vadd.f32 %v877_v48, %v716_v1  ;;  %v1923_v48 = vld [vmem:[#allocation2 + $0x82] sm:$0xff] }
 0x190   : > { %v718_v14 = vpop.f32.mrf.mxu1  ;;  %v1071_v6 = vpop.f32.mrf.mxu3 }
 0x191   : > { %v1127_v39 = vadd.f32 %v1071_v6, %v933_v44  ;;  %1993 = vmatmul.f32.gmra.mxu0 %v1920_v31  ;;  %v719_v51 = vadd.f32 %v718_v14, %v3283_v13  ;;  %v1536_v14 = vld [vmem:[#allocation2 + $0x90] sm:$0xff] }
 0x193   : > { %v3478_v11 = vadd.f32 %v1265_v46, %v1127_v39  ;;  %1413 = vmatmul.f32.gmra.mxu1 %v1919_v30  ;;  %1608 = vmatmul.f32.gmra.mxu2 %v1533_v20  ;;  %v1730_v20 = vld [vmem:[#allocation2 + $0x91] sm:$0xff] }
 0x195   : > { %1802 = vmatmul.f32.gmra.mxu3 %v1727_v21 }
 0x196   : > { %v880_v41 = vpop.f32.mrf.mxu2  ;;  %v1268_v17 = vpop.f32.mrf.mxu0 }
 0x197   : > { %v934_v26 = vadd.f32 %v880_v41, %v719_v51  ;;  %v1924_v41 = vld [vmem:[#allocation2 + $0x92] sm:$0xff] }
 0x198   : > { %v721_v57 = vpop.f32.mrf.mxu1  ;;  %v1074_v60 = vpop.f32.mrf.mxu3 }
 0x199   : > { %v1128_v33 = vadd.f32 %v1074_v60, %v934_v26  ;;  %1996 = vmatmul.f32.gmra.mxu0 %v1921_v25  ;;  %v722_v52 = vadd.f32 %v721_v57, %v3298_v18  ;;  %v1537_v57 = vld [vmem:[#allocation2 + $0x98] sm:$0xff] }
 0x19b   : > { %v3481_v15 = vadd.f32 %v1268_v17, %v1128_v33  ;;  %1416 = vmatmul.f32.gmra.mxu1 %v1920_v31  ;;  %1611 = vmatmul.f32.gmra.mxu2 %v1534_v24  ;;  %v1731_v24 = vld [vmem:[#allocation2 + $0x99] sm:$0xff] }
 0x19d   : > { %1805 = vmatmul.f32.gmra.mxu3 %v1728_v5 }
 0x19e   : > { %v883_v2 = vpop.f32.mrf.mxu2  ;;  %v1271_v13 = vpop.f32.mrf.mxu0 }
 0x19f   : > { %v935_v49 = vadd.f32 %v883_v2, %v722_v52  ;;  %v1925_v2 = vld [vmem:[#allocation2 + $0x9a] sm:$0xff] }
 0x1a0   : > { %v724_v30 = vpop.f32.mrf.mxu1  ;;  %v1077_v0 = vpop.f32.mrf.mxu3 }
 0x1a1   : > { %v1129_v8 = vadd.f32 %v1077_v0, %v935_v49  ;;  %1999 = vmatmul.f32.gmra.mxu0 %v1922_v23  ;;  %v725_v36 = vadd.f32 %v724_v30, %v3312_v58  ;;  %v1538_v30 = vld [vmem:[#allocation2 + $0xa8] sm:$0xff] }
 0x1a3   : > { %v3484_v16 = vadd.f32 %v1271_v13, %v1129_v8  ;;  %1419 = vmatmul.f32.gmra.mxu1 %v1921_v25  ;;  %1614 = vmatmul.f32.gmra.mxu2 %v1535_v61  ;;  %v1732_v61 = vld [vmem:[#allocation2 + $0xa9] sm:$0xff] }
 0x1a5   : > { %1808 = vmatmul.f32.gmra.mxu3 %v1729_v10 }
 0x1a6   : > { %v886_v1 = vpop.f32.mrf.mxu2  ;;  %v1274_v18 = vpop.f32.mrf.mxu0 }
 0x1a7   : > { %v936_v46 = vadd.f32 %v886_v1, %v725_v36  ;;  %v1926_v1 = vld [vmem:[#allocation2 + $0xaa] sm:$0xff] }
 0x1a8   : > { %v727_v31 = vpop.f32.mrf.mxu1  ;;  %v1080_v44 = vpop.f32.mrf.mxu3 }
 0x1a9   : > { %v1130_v6 = vadd.f32 %v1080_v44, %v936_v46  ;;  %2002 = vmatmul.f32.gmra.mxu0 %v1923_v48  ;;  %v728_v21 = vadd.f32 %v727_v31, %v3217_v7  ;;  %v1539_v31 = vld [vmem:[#allocation2 + $0xb0] sm:$0xff] }
 0x1ab   : > { %v3487_v39 = vadd.f32 %v1274_v18, %v1130_v6  ;;  %1422 = vmatmul.f32.gmra.mxu1 %v1922_v23  ;;  %1617 = vmatmul.f32.gmra.mxu2 %v1536_v14  ;;  %v1733_v14 = vld [vmem:[#allocation2 + $0xb1] sm:$0xff] }
 0x1ad   : > { %1811 = vmatmul.f32.gmra.mxu3 %v1730_v20 }
 0x1ae   : > { %v889_v51 = vpop.f32.mrf.mxu2  ;;  %v1277_v58 = vpop.f32.mrf.mxu0 }
 0x1af   : > { %v937_v17 = vadd.f32 %v889_v51, %v728_v21  ;;  %v1927_v51 = vld [vmem:[#allocation2 + $0xb2] sm:$0xff] }
 0x1b0   : > { %v730_v25 = vpop.f32.mrf.mxu1  ;;  %v1083_v26 = vpop.f32.mrf.mxu3 }
 0x1b1   : > { %v1131_v60 = vadd.f32 %v1083_v26, %v937_v17  ;;  %2005 = vmatmul.f32.gmra.mxu0 %v1924_v41  ;;  %v731_v5 = vadd.f32 %v730_v25, %v3229_v40  ;;  %v1540_v25 = vld [vmem:[#allocation2 + $0xc0] sm:$0xff] }
 0x1b3   : > { %v3490_v33 = vadd.f32 %v1277_v58, %v1131_v60  ;;  %1425 = vmatmul.f32.gmra.mxu1 %v1923_v48  ;;  %1620 = vmatmul.f32.gmra.mxu2 %v1537_v57  ;;  %v1734_v57 = vld [vmem:[#allocation2 + $0xc1] sm:$0xff] }
 0x1b5   : > { %1814 = vmatmul.f32.gmra.mxu3 %v1731_v24 }
 0x1b6   : > { %v892_v52 = vpop.f32.mrf.mxu2  ;;  %v1280_v7 = vpop.f32.mrf.mxu0 }
 0x1b7   : > { %v938_v13 = vadd.f32 %v892_v52, %v731_v5  ;;  %v1928_v52 = vld [vmem:[#allocation2 + $0xc2] sm:$0xff] }
 0x1b8   : > { %v733_v23 = vpop.f32.mrf.mxu1  ;;  %v1086_v49 = vpop.f32.mrf.mxu3 }
 0x1b9   : > { %v1132_v0 = vadd.f32 %v1086_v49, %v938_v13  ;;  %2008 = vmatmul.f32.gmra.mxu0 %v1925_v2  ;;  %v734_v10 = vadd.f32 %v733_v23, %v3247_v54  ;;  %v1541_v23 = vld [vmem:[#allocation2 + $0xc8] sm:$0xff] }
 0x1bb   : > { %v3493_v8 = vadd.f32 %v1280_v7, %v1132_v0  ;;  %1428 = vmatmul.f32.gmra.mxu1 %v1924_v41  ;;  %1623 = vmatmul.f32.gmra.mxu2 %v1538_v30  ;;  %v1735_v30 = vld [vmem:[#allocation2 + $0xc9] sm:$0xff] }
 0x1bd   : > { %1817 = vmatmul.f32.gmra.mxu3 %v1732_v61 }
 0x1be   : > { %v895_v36 = vpop.f32.mrf.mxu2  ;;  %v1283_v40 = vpop.f32.mrf.mxu0 }
 0x1bf   : > { %v939_v18 = vadd.f32 %v895_v36, %v734_v10  ;;  %v1929_v36 = vld [vmem:[#allocation2 + $0xca] sm:$0xff] }
 0x1c0   : > { %v736_v48 = vpop.f32.mrf.mxu1  ;;  %v1089_v46 = vpop.f32.mrf.mxu3 }
 0x1c1   : > { %v1133_v44 = vadd.f32 %v1089_v46, %v939_v18  ;;  %2011 = vmatmul.f32.gmra.mxu0 %v1926_v1  ;;  %v737_v20 = vadd.f32 %v736_v48, %v3259_v3  ;;  %v1542_v48 = vld [vmem:[#allocation2 + $0xd8] sm:$0xff] }
 0x1c3   : > { %v3496_v6 = vadd.f32 %v1283_v40, %v1133_v44  ;;  %1431 = vmatmul.f32.gmra.mxu1 %v1925_v2  ;;  %1626 = vmatmul.f32.gmra.mxu2 %v1539_v31  ;;  %v1736_v31 = vld [vmem:[#allocation2 + $0xd9] sm:$0xff] }
 0x1c5   : > { %1820 = vmatmul.f32.gmra.mxu3 %v1733_v14 }
 0x1c6   : > { %v898_v21 = vpop.f32.mrf.mxu2  ;;  %v1286_v54 = vpop.f32.mrf.mxu0 }
 0x1c7   : > { %v940_v58 = vadd.f32 %v898_v21, %v737_v20  ;;  %v1930_v21 = vld [vmem:[#allocation2 + $0xda] sm:$0xff] }
 0x1c8   : > { %v739_v41 = vpop.f32.mrf.mxu1  ;;  %v1092_v17 = vpop.f32.mrf.mxu3 }
 0x1c9   : > { %v1134_v26 = vadd.f32 %v1092_v17, %v940_v58  ;;  %2014 = vmatmul.f32.gmra.mxu0 %v1927_v51  ;;  %v740_v24 = vadd.f32 %v739_v41, %v3277_v9  ;;  %v1543_v41 = vld [vmem:[#allocation2 + $0xe0] sm:$0xff] }
 0x1cb   : > { %v3499_v60 = vadd.f32 %v1286_v54, %v1134_v26  ;;  %1434 = vmatmul.f32.gmra.mxu1 %v1926_v1  ;;  %1629 = vmatmul.f32.gmra.mxu2 %v1540_v25  ;;  %v1737_v25 = vld [vmem:[#allocation2 + $0xe1] sm:$0xff] }
 0x1cd   : > { %1823 = vmatmul.f32.gmra.mxu3 %v1734_v57 }
 0x1ce   : > { %v901_v5 = vpop.f32.mrf.mxu2  ;;  %v1289_v3 = vpop.f32.mrf.mxu0 }
 0x1cf   : > { %v941_v7 = vadd.f32 %v901_v5, %v740_v24  ;;  %v1931_v5 = vld [vmem:[#allocation2 + $0xe2] sm:$0xff] }
 0x1d0   : > { %v742_v2 = vpop.f32.mrf.mxu1  ;;  %v1095_v13 = vpop.f32.mrf.mxu3 }
 0x1d1   : > { %v1135_v49 = vadd.f32 %v1095_v13, %v941_v7  ;;  %2017 = vmatmul.f32.gmra.mxu0 %v1928_v52  ;;  %v743_v61 = vadd.f32 %v742_v2, %v3289_v32  ;;  %v1544_v2 = vld [vmem:[#allocation2 + $0xf0] sm:$0xff] }
 0x1d3   : > { %v3502_v0 = vadd.f32 %v1289_v3, %v1135_v49  ;;  %1437 = vmatmul.f32.gmra.mxu1 %v1927_v51  ;;  %1632 = vmatmul.f32.gmra.mxu2 %v1541_v23  ;;  %v1738_v23 = vld [vmem:[#allocation2 + $0xf1] sm:$0xff] }
 0x1d5   : > { %1826 = vmatmul.f32.gmra.mxu3 %v1735_v30 }
 0x1d6   : > { %v904_v10 = vpop.f32.mrf.mxu2  ;;  %v1292_v9 = vpop.f32.mrf.mxu0 }
 0x1d7   : > { %v942_v40 = vadd.f32 %v904_v10, %v743_v61  ;;  %v1932_v10 = vld [vmem:[#allocation2 + $0xf2] sm:$0xff] }
 0x1d8   : > { %v745_v1 = vpop.f32.mrf.mxu1  ;;  %v1098_v18 = vpop.f32.mrf.mxu3 }
 0x1d9   : > { %v1136_v46 = vadd.f32 %v1098_v18, %v942_v40  ;;  %2020 = vmatmul.f32.gmra.mxu0 %v1929_v36  ;;  %v746_v14 = vadd.f32 %v745_v1, %v3307_v28  ;;  %v1545_v1 = vld [vmem:[#allocation2 + $0xf8] sm:$0xff] }
 0x1db   : > { %v3505_v44 = vadd.f32 %v1292_v9, %v1136_v46  ;;  %1440 = vmatmul.f32.gmra.mxu1 %v1928_v52  ;;  %1635 = vmatmul.f32.gmra.mxu2 %v1542_v48  ;;  %v1739_v48 = vld [vmem:[#allocation2 + $0xf9] sm:$0xff] }
 0x1dd   : > { %1829 = vmatmul.f32.gmra.mxu3 %v1736_v31 }
 0x1de   : > { %v907_v20 = vpop.f32.mrf.mxu2  ;;  %v1295_v32 = vpop.f32.mrf.mxu0 }
 0x1df   : > { %v943_v54 = vadd.f32 %v907_v20, %v746_v14  ;;  %v1933_v20 = vld [vmem:[#allocation2 + $0xfa] sm:$0xff] }
 0x1e0   : > { %v748_v51 = vpop.f32.mrf.mxu1  ;;  %v1101_v58 = vpop.f32.mrf.mxu3 }
 0x1e1   : > { %v1137_v17 = vadd.f32 %v1101_v58, %v943_v54  ;;  %2023 = vmatmul.f32.gmra.mxu0 %v1930_v21  ;;  %v749_v57 = vadd.f32 %v748_v51, %v3316_v35  ;;  %v1546_v51 = vld [vmem:[#allocation2 + $0x108] sm:$0xff] }
 0x1e3   : > { %v3508_v26 = vadd.f32 %v1295_v32, %v1137_v17  ;;  %1443 = vmatmul.f32.gmra.mxu1 %v1929_v36  ;;  %1638 = vmatmul.f32.gmra.mxu2 %v1543_v41  ;;  %v1740_v41 = vld [vmem:[#allocation2 + $0x109] sm:$0xff] }
 0x1e5   : > { %1832 = vmatmul.f32.gmra.mxu3 %v1737_v25 }
 0x1e6   : > { %v910_v24 = vpop.f32.mrf.mxu2  ;;  %v1298_v28 = vpop.f32.mrf.mxu0 }
 0x1e7   : > { %v944_v3 = vadd.f32 %v910_v24, %v749_v57 }
 0x1e8   : > { %v1104_v52 = vpop.f32.mrf.mxu3  ;;  %v1399_v7 = vpop.f32.mrf.mxu1 }
 0x1e9   : > { %v1138_v13 = vadd.f32 %v1104_v52, %v944_v3  ;;  %2026 = vmatmul.f32.gmra.mxu0 %v1931_v5  ;;  %v1495_v30 = vadd.f32 %v1399_v7, %v3328_v12  ;;  %v1934_v3 = vld [vmem:[#allocation2 + $0x10a] sm:$0xff] }
 0x1eb   : > { %v3511_v49 = vadd.f32 %v1298_v28, %v1138_v13  ;;  %1446 = vmatmul.f32.gmra.mxu1 %v1930_v21  ;;  %1641 = vmatmul.f32.gmra.mxu2 %v1544_v2 }
 0x1ed   : > { %1835 = vmatmul.f32.gmra.mxu3 %v1738_v23  ;;  %v1547_v23 = vld [vmem:[#allocation2 + $0x110] sm:$0xff] }
 0x1ee   : > { %v1594_v35 = vpop.f32.mrf.mxu2  ;;  %v1982_v61 = vpop.f32.mrf.mxu0 }
 0x1ef   : > { %v1690_v9 = vadd.f32 %v1594_v35, %v1495_v30  ;;  %v1741_v35 = vld [vmem:[#allocation2 + $0x111] sm:$0xff] }
 0x1f0   : > { %v1402_v36 = vpop.f32.mrf.mxu1  ;;  %v1788_v40 = vpop.f32.mrf.mxu3 }
 0x1f1   : > { %v1884_v18 = vadd.f32 %v1788_v40, %v1690_v9  ;;  %2029 = vmatmul.f32.gmra.mxu0 %v1932_v10  ;;  %v1496_v12 = vadd.f32 %v1402_v36, %v3335_v53 }
 0x1f3   : > { %v2078_v46 = vadd.f32 %v1982_v61, %v1884_v18  ;;  %1449 = vmatmul.f32.gmra.mxu1 %v1931_v5  ;;  %1644 = vmatmul.f32.gmra.mxu2 %v1545_v1  ;;  %v1935_v1 = vld [vmem:[#allocation2 + $0x112] sm:$0xff] }
 0x1f5   : > { %2110 = vst [vmem:[%s3519_s6] sm:$0xff] %v2078_v46  ;;  %1838 = vmatmul.f32.gmra.mxu3 %v1739_v48  ;;  %v2179_v25 = vmul.f32 %v2078_v46, %v2078_v46 }
 0x1f6   : > { %v1597_v31 = vpop.f32.mrf.mxu2  ;;  %v1985_v14 = vpop.f32.mrf.mxu0 }
 0x1f7   : > { %v1691_v32 = vadd.f32 %v1597_v31, %v1496_v12  ;;  %v1548_v31 = vld [vmem:[#allocation2 + $0x120] sm:$0xff] }
 0x1f8   : > { %v1405_v21 = vpop.f32.mrf.mxu1  ;;  %v1791_v54 = vpop.f32.mrf.mxu3 }
 0x1f9   : > { %v1885_v58 = vadd.f32 %v1791_v54, %v1691_v32  ;;  %2032 = vmatmul.f32.gmra.mxu0 %v1933_v20  ;;  %v1497_v57 = vadd.f32 %v1405_v21, %v3348_v45  ;;  %v1742_v32 = vld [vmem:[#allocation2 + $0x121] sm:$0xff] }
 0x1fb   : > { %v2079_v17 = vadd.f32 %v1985_v14, %v1885_v58  ;;  %1452 = vmatmul.f32.gmra.mxu1 %v1932_v10  ;;  %1647 = vmatmul.f32.gmra.mxu2 %v1546_v51 }
 0x1fd   : > { %2111 = vst [vmem:[%s3519_s6 + $0x8] sm:$0xff] %v2079_v17  ;;  %v2142_v53 = vadd.f32 %v2079_v17, %v2078_v46  ;;  %v2180_v24 = vmul.f32 %v2079_v17, %v2079_v17  ;;  %1841 = vmatmul.f32.gmra.mxu3 %v1740_v41  ;;  %v1936_v41 = vld [vmem:[#allocation2 + $0x122] sm:$0xff] }
 0x1fe   : > { %v1600_v28 = vpop.f32.mrf.mxu2  ;;  %v1988_v5 = vpop.f32.mrf.mxu0 }
 0x1ff   : > { %v2211_v52 = vadd.f32 %v2180_v24, %v2179_v25  ;;  %v1692_v7 = vadd.f32 %v1600_v28, %v1497_v57  ;;  %v1549_v24 = vld [vmem:[#allocation2 + $0x128] sm:$0xff] }
 0x200   : > { %v1408_v2 = vpop.f32.mrf.mxu1  ;;  %v1794_v13 = vpop.f32.mrf.mxu3 }
 0x201   : > { %v1886_v30 = vadd.f32 %v1794_v13, %v1692_v7  ;;  %2035 = vmatmul.f32.gmra.mxu0 %v1934_v3  ;;  %v1498_v45 = vadd.f32 %v1408_v2, %v3355_v34 }
 0x203   : > { %v2080_v61 = vadd.f32 %v1988_v5, %v1886_v30  ;;  %1455 = vmatmul.f32.gmra.mxu1 %v1933_v20  ;;  %1650 = vmatmul.f32.gmra.mxu2 %v1547_v23  ;;  %v1743_v5 = vld [vmem:[#allocation2 + $0x129] sm:$0xff] }
 0x204   : > { %v1937_v23 = vld [vmem:[#allocation2 + $0x12a] sm:$0xff] }
 0x205   : > { %2112 = vst [vmem:[%s3519_s6 + $0x10] sm:$0xff] %v2080_v61  ;;  %v2143_v10 = vadd.f32 %v2142_v53, %v2080_v61  ;;  %v2181_v9 = vmul.f32 %v2080_v61, %v2080_v61  ;;  %1844 = vmatmul.f32.gmra.mxu3 %v1741_v35 }
 0x206   : > { %v1603_v36 = vpop.f32.mrf.mxu2  ;;  %v1991_v40 = vpop.f32.mrf.mxu0 }
 0x207   : > { %v2212_v18 = vadd.f32 %v2211_v52, %v2181_v9  ;;  %v1693_v48 = vadd.f32 %v1603_v36, %v1498_v45  ;;  %v1744_v36 = vld [vmem:[#allocation2 + $0x139] sm:$0xff] }
 0x208   : > { %v1411_v46 = vpop.f32.mrf.mxu1  ;;  %v1797_v12 = vpop.f32.mrf.mxu3 }
 0x209   : > { %v1887_v14 = vadd.f32 %v1797_v12, %v1693_v48  ;;  %2038 = vmatmul.f32.gmra.mxu0 %v1935_v1  ;;  %v1499_v34 = vadd.f32 %v1411_v46, %v3368_v43  ;;  %v1938_v12 = vld [vmem:[#allocation2 + $0x13a] sm:$0xff] }
 0x20b   : > { %v2081_v20 = vadd.f32 %v1991_v40, %v1887_v14  ;;  %1458 = vmatmul.f32.gmra.mxu1 %v1934_v3  ;;  %1653 = vmatmul.f32.gmra.mxu2 %v1548_v31 }
 0x20d   : > { %2113 = vst [vmem:[%s3519_s6 + $0x18] sm:$0xff] %v2081_v20  ;;  %v2144_v21 = vadd.f32 %v2143_v10, %v2081_v20  ;;  %v2182_v54 = vmul.f32 %v2081_v20, %v2081_v20  ;;  %1847 = vmatmul.f32.gmra.mxu3 %v1742_v32  ;;  %v1550_v10 = vld [vmem:[#allocation2 + $0x138] sm:$0xff] }
 0x20e   : > { %v1606_v51 = vpop.f32.mrf.mxu2  ;;  %v1994_v58 = vpop.f32.mrf.mxu0 }
 0x20f   : > { %v2213_v17 = vadd.f32 %v2212_v18, %v2182_v54  ;;  %v1694_v25 = vadd.f32 %v1606_v51, %v1499_v34  ;;  %v1551_v34 = vld [vmem:[#allocation2 + $0x140] sm:$0xff] }
 0x210   : > { %v1414_v57 = vpop.f32.mrf.mxu1  ;;  %v1800_v53 = vpop.f32.mrf.mxu3  ;;  %v1745_v54 = vld [vmem:[#allocation2 + $0x141] sm:$0xff] }
 0x211   : > { %v1888_v28 = vadd.f32 %v1800_v53, %v1694_v25  ;;  %2041 = vmatmul.f32.gmra.mxu0 %v1936_v41  ;;  %v1500_v43 = vadd.f32 %v1414_v57, %v3375_v50  ;;  %v1939_v57 = vld [vmem:[#allocation2 + $0x142] sm:$0xff] }
 0x213   : > { %v2082_v3 = vadd.f32 %v1994_v58, %v1888_v28  ;;  %1461 = vmatmul.f32.gmra.mxu1 %v1935_v1  ;;  %1656 = vmatmul.f32.gmra.mxu2 %v1549_v24 }
 0x215   : > { %2114 = vst [vmem:[%s3519_s6 + $0x20] sm:$0xff] %v2082_v3  ;;  %v2145_v52 = vadd.f32 %v2144_v21, %v2082_v3  ;;  %v2183_v7 = vmul.f32 %v2082_v3, %v2082_v3  ;;  %1850 = vmatmul.f32.gmra.mxu3 %v1743_v5  ;;  %v1552_v3 = vld [vmem:[#allocation2 + $0x150] sm:$0xff] }
 0x216   : > { %v1609_v2 = vpop.f32.mrf.mxu2  ;;  %v1997_v13 = vpop.f32.mrf.mxu0 }
 0x217   : > { %v2214_v30 = vadd.f32 %v2213_v17, %v2183_v7  ;;  %v1695_v35 = vadd.f32 %v1609_v2, %v1500_v43 }
 0x218   : > { %v1417_v61 = vpop.f32.mrf.mxu1  ;;  %v1803_v45 = vpop.f32.mrf.mxu3 }
 0x219   : > { %v1889_v9 = vadd.f32 %v1803_v45, %v1695_v35  ;;  %2044 = vmatmul.f32.gmra.mxu0 %v1937_v23  ;;  %v1501_v50 = vadd.f32 %v1417_v61, %v3387_v22  ;;  %v1940_v35 = vld [vmem:[#allocation2 + $0x152] sm:$0xff] }
 0x21b   : > { %v2083_v40 = vadd.f32 %v1997_v13, %v1889_v9  ;;  %1464 = vmatmul.f32.gmra.mxu1 %v1936_v41  ;;  %1659 = vmatmul.f32.gmra.mxu2 %v1550_v10 }
 0x21d   : > { %2115 = vst [vmem:[%s3519_s6 + $0x28] sm:$0xff] %v2083_v40  ;;  %v2146_v1 = vadd.f32 %v2145_v52, %v2083_v40  ;;  %v2184_v18 = vmul.f32 %v2083_v40, %v2083_v40  ;;  %1853 = vmatmul.f32.gmra.mxu3 %v1744_v36  ;;  %v1746_v52 = vld [vmem:[#allocation2 + $0x151] sm:$0xff] }
 0x21e   : > { %v1612_v48 = vpop.f32.mrf.mxu2  ;;  %v2000_v46 = vpop.f32.mrf.mxu0  ;;  %v1553_v36 = vld [vmem:[#allocation2 + $0x158] sm:$0xff] }
 0x21f   : > { %v2215_v31 = vadd.f32 %v2214_v30, %v2184_v18  ;;  %v1696_v14 = vadd.f32 %v1612_v48, %v1501_v50  ;;  %v1747_v50 = vld [vmem:[#allocation2 + $0x159] sm:$0xff] }
 0x220   : > { %v1420_v32 = vpop.f32.mrf.mxu1  ;;  %v1806_v20 = vpop.f32.mrf.mxu3 }
 0x221   : > { %v1890_v21 = vadd.f32 %v1806_v20, %v1696_v14  ;;  %2047 = vmatmul.f32.gmra.mxu0 %v1938_v12  ;;  %v1502_v22 = vadd.f32 %v1420_v32, %v3393_v19 }
 0x223   : > { %v2084_v51 = vadd.f32 %v2000_v46, %v1890_v21  ;;  %1467 = vmatmul.f32.gmra.mxu1 %v1937_v23  ;;  %1662 = vmatmul.f32.gmra.mxu2 %v1551_v34  ;;  %v1554_v21 = vld [vmem:[#allocation2 + $0x168] sm:$0xff] }
 0x225   : > { %2116 = vst [vmem:[%s3519_s6 + $0x30] sm:$0xff] %v2084_v51  ;;  %v2147_v58 = vadd.f32 %v2146_v1, %v2084_v51  ;;  %v2185_v41 = vmul.f32 %v2084_v51, %v2084_v51  ;;  %1856 = vmatmul.f32.gmra.mxu3 %v1745_v54  ;;  %v1748_v51 = vld [vmem:[#allocation2 + $0x169] sm:$0xff] }
 0x226   : > { %v1615_v17 = vpop.f32.mrf.mxu2  ;;  %v2003_v25 = vpop.f32.mrf.mxu0 }
 0x227   : > { %v2216_v53 = vadd.f32 %v2215_v31, %v2185_v41  ;;  %v1697_v24 = vadd.f32 %v1615_v17, %v1502_v22  ;;  %v1941_v31 = vld [vmem:[#allocation2 + $0x15a] sm:$0xff] }
 0x228   : > { %v1423_v28 = vpop.f32.mrf.mxu1  ;;  %v1809_v5 = vpop.f32.mrf.mxu3 }
 0x229   : > { %v1891_v43 = vadd.f32 %v1809_v5, %v1697_v24  ;;  %2050 = vmatmul.f32.gmra.mxu0 %v1939_v57  ;;  %v1503_v19 = vadd.f32 %v1423_v28, %v3414_v29 }
 0x22b   : > { %v2085_v7 = vadd.f32 %v2003_v25, %v1891_v43  ;;  %1470 = vmatmul.f32.gmra.mxu1 %v1938_v12  ;;  %1665 = vmatmul.f32.gmra.mxu2 %v1552_v3  ;;  %v1555_v3 = vld [vmem:[#allocation2 + $0x170] sm:$0xff] }
 0x22d   : > { %2117 = vst [vmem:[%s3519_s6 + $0x38] sm:$0xff] %v2085_v7  ;;  %v2148_v2 = vadd.f32 %v2147_v58, %v2085_v7  ;;  %v2186_v13 = vmul.f32 %v2085_v7, %v2085_v7  ;;  %1859 = vmatmul.f32.gmra.mxu3 %v1746_v52  ;;  %v1749_v52 = vld [vmem:[#allocation2 + $0x171] sm:$0xff] }
 0x22e   : > { %v1618_v23 = vpop.f32.mrf.mxu2  ;;  %v2006_v30 = vpop.f32.mrf.mxu0 }
 0x22f   : > { %v2217_v61 = vadd.f32 %v2216_v53, %v2186_v13  ;;  %v1698_v45 = vadd.f32 %v1618_v23, %v1503_v19 }
 0x230   : > { %v1426_v10 = vpop.f32.mrf.mxu1  ;;  %v1812_v9 = vpop.f32.mrf.mxu3 }
 0x231   : > { %v1892_v40 = vadd.f32 %v1812_v9, %v1698_v45  ;;  %2053 = vmatmul.f32.gmra.mxu0 %v1940_v35  ;;  %v1504_v29 = vadd.f32 %v1426_v10, %v3426_v55  ;;  %v1556_v9 = vld [vmem:[#allocation2 + $0x180] sm:$0xff] }
 0x233   : > { %v2086_v1 = vadd.f32 %v2006_v30, %v1892_v40  ;;  %1473 = vmatmul.f32.gmra.mxu1 %v1939_v57  ;;  %1668 = vmatmul.f32.gmra.mxu2 %v1553_v36  ;;  %v1942_v57 = vld [vmem:[#allocation2 + $0x16a] sm:$0xff]  ;;  %v1943_v30 = vld [vmem:[#allocation2 + $0x172] sm:$0xff]  ;;  %v1750_v40 = vld [vmem:[#allocation2 + $0x181] sm:$0xff] }
 0x235   : > { %2118 = vst [vmem:[%s3519_s6 + $0x40] sm:$0xff] %v2086_v1  ;;  %v2149_v18 = vadd.f32 %v2148_v2, %v2086_v1  ;;  %v2187_v48 = vmul.f32 %v2086_v1, %v2086_v1  ;;  %1862 = vmatmul.f32.gmra.mxu3 %v1747_v50 }
 0x236   : > { %v1621_v46 = vpop.f32.mrf.mxu2  ;;  %v2009_v12 = vpop.f32.mrf.mxu0 }
 0x237   : > { %v2218_v14 = vadd.f32 %v2217_v61, %v2187_v48  ;;  %v1699_v32 = vadd.f32 %v1621_v46, %v1504_v29  ;;  %v1944_v46 = vld [vmem:[#allocation2 + $0x182] sm:$0xff] }
 0x238   : > { %v1429_v20 = vpop.f32.mrf.mxu1  ;;  %v1815_v34 = vpop.f32.mrf.mxu3 }
 0x239   : > { %v1893_v54 = vadd.f32 %v1815_v34, %v1699_v32  ;;  %2056 = vmatmul.f32.gmra.mxu0 %v1941_v31  ;;  %v1505_v55 = vadd.f32 %v1429_v20, %v3441_v38  ;;  %v1557_v20 = vld [vmem:[#allocation2 + $0x188] sm:$0xff] }
 0x23b   : > { %v2087_v22 = vadd.f32 %v2009_v12, %v1893_v54  ;;  %1476 = vmatmul.f32.gmra.mxu1 %v1940_v35  ;;  %1671 = vmatmul.f32.gmra.mxu2 %v1554_v21  ;;  %v1751_v21 = vld [vmem:[#allocation2 + $0x189] sm:$0xff] }
 0x23d   : > { %2119 = vst [vmem:[%s3519_s6 + $0x48] sm:$0xff] %v2087_v22  ;;  %v2150_v58 = vadd.f32 %v2149_v18, %v2087_v22  ;;  %v2188_v41 = vmul.f32 %v2087_v22, %v2087_v22  ;;  %1865 = vmatmul.f32.gmra.mxu3 %v1748_v51 }
 0x23e   : > { %v1624_v17 = vpop.f32.mrf.mxu2  ;;  %v2012_v25 = vpop.f32.mrf.mxu0 }
 0x23f   : > { %v2219_v53 = vadd.f32 %v2218_v14, %v2188_v41  ;;  %v1700_v24 = vadd.f32 %v1624_v17, %v1505_v55  ;;  %v1945_v41 = vld [vmem:[#allocation2 + $0x18a] sm:$0xff] }
 0x240   : > { %v1432_v28 = vpop.f32.mrf.mxu1  ;;  %v1818_v5 = vpop.f32.mrf.mxu3 }
 0x241   : > { %v1894_v43 = vadd.f32 %v1818_v5, %v1700_v24  ;;  %2059 = vmatmul.f32.gmra.mxu0 %v1942_v57  ;;  %v1506_v38 = vadd.f32 %v1432_v28, %v3447_v27  ;;  %v1752_v28 = vld [vmem:[#allocation2 + $0x199] sm:$0xff] }
 0x243   : > { %v2088_v7 = vadd.f32 %v2012_v25, %v1894_v43  ;;  %1479 = vmatmul.f32.gmra.mxu1 %v1941_v31  ;;  %1674 = vmatmul.f32.gmra.mxu2 %v1555_v3  ;;  %v2540_v3 = vld [vmem:[#allocation2] sm:$0xff] }
 0x245   : > { %2120 = vst [vmem:[%s3519_s6 + $0x50] sm:$0xff] %v2088_v7  ;;  %v2151_v19 = vadd.f32 %v2150_v58, %v2088_v7  ;;  %v2189_v2 = vmul.f32 %v2088_v7, %v2088_v7  ;;  %1868 = vmatmul.f32.gmra.mxu3 %v1749_v52 }
 0x246   : > { %v1627_v13 = vpop.f32.mrf.mxu2  ;;  %v2015_v23 = vpop.f32.mrf.mxu0 }
 0x247   : > { %v2220_v35 = vadd.f32 %v2219_v53, %v2189_v2  ;;  %v1701_v61 = vadd.f32 %v1627_v13, %v1506_v38 }
 0x248   : > { %v1435_v45 = vpop.f32.mrf.mxu1  ;;  %v1821_v10 = vpop.f32.mrf.mxu3 }
 0x249   : > { %v1895_v36 = vadd.f32 %v1821_v10, %v1701_v61  ;;  %2062 = vmatmul.f32.gmra.mxu0 %v1943_v30  ;;  %v1507_v27 = vadd.f32 %v1435_v45, %v3450_v4  ;;  %v1753_v61 = vld [vmem:[#allocation2 + $0x1a1] sm:$0xff] }
 0x24b   : > { %v2089_v50 = vadd.f32 %v2015_v23, %v1895_v36  ;;  %1482 = vmatmul.f32.gmra.mxu1 %v1942_v57  ;;  %1677 = vmatmul.f32.gmra.mxu2 %v1556_v9 }
 0x24d   : > { %2121 = vst [vmem:[%s3519_s6 + $0x58] sm:$0xff] %v2089_v50  ;;  %v2152_v1 = vadd.f32 %v2151_v19, %v2089_v50  ;;  %v2190_v29 = vmul.f32 %v2089_v50, %v2089_v50  ;;  %1871 = vmatmul.f32.gmra.mxu3 %v1750_v40  ;;  %v1946_v19 = vld [vmem:[#allocation2 + $0x19a] sm:$0xff]  ;;  %v1947_v50 = vld [vmem:[#allocation2 + $0x1a2] sm:$0xff] }
 0x24e   : > { %v1630_v18 = vpop.f32.mrf.mxu2  ;;  %v2018_v48 = vpop.f32.mrf.mxu0 }
 0x24f   : > { %v2221_v12 = vadd.f32 %v2220_v35, %v2190_v29  ;;  %v1702_v31 = vadd.f32 %v1630_v18, %v1507_v27 }
 0x250   : > { %v1438_v14 = vpop.f32.mrf.mxu1  ;;  %v1824_v32 = vpop.f32.mrf.mxu3 }
 0x251   : > { %v1896_v34 = vadd.f32 %v1824_v32, %v1702_v31  ;;  %2065 = vmatmul.f32.gmra.mxu0 %v1944_v46  ;;  %v1508_v4 = vadd.f32 %v1438_v14, %v3453_v63 }
 0x253   : > { %v2090_v54 = vadd.f32 %v2018_v48, %v1896_v34  ;;  %1485 = vmatmul.f32.gmra.mxu1 %v1943_v30  ;;  %1680 = vmatmul.f32.gmra.mxu2 %v1557_v20 }
 0x255   : > { %2122 = vst [vmem:[%s3519_s6 + $0x60] sm:$0xff] %v2090_v54  ;;  %v2153_v51 = vadd.f32 %v2152_v1, %v2090_v54  ;;  %v2191_v22 = vmul.f32 %v2090_v54, %v2090_v54  ;;  %1874 = vmatmul.f32.gmra.mxu3 %v1751_v21 }
 0x256   : > { %v1633_v55 = vpop.f32.mrf.mxu2  ;;  %v2021_v58 = vpop.f32.mrf.mxu0 }
 0x257   : > { %v2222_v17 = vadd.f32 %v2221_v12, %v2191_v22  ;;  %v1703_v25 = vadd.f32 %v1633_v55, %v1508_v4 }
 0x258   : > { %v1441_v57 = vpop.f32.mrf.mxu1  ;;  %v1827_v53 = vpop.f32.mrf.mxu3 }
 0x259   : > { %v1897_v24 = vadd.f32 %v1827_v53, %v1703_v25  ;;  %2068 = vmatmul.f32.gmra.mxu0 %v1945_v41  ;;  %v1509_v63 = vadd.f32 %v1441_v57, %v3458_v56 }
 0x25b   : > { %v2091_v5 = vadd.f32 %v2021_v58, %v1897_v24  ;;  %1488 = vmatmul.f32.gmra.mxu1 %v1944_v46  ;;  %1683 = vmatmul.f32.gmra.mxu2 %v2540_v3 }
 0x25d   : > { %2123 = vst [vmem:[%s3519_s6 + $0x68] sm:$0xff] %v2091_v5  ;;  %v2154_v43 = vadd.f32 %v2153_v51, %v2091_v5  ;;  %v2192_v52 = vmul.f32 %v2091_v5, %v2091_v5  ;;  %1877 = vmatmul.f32.gmra.mxu3 %v1752_v28 }
 0x25e   : > { %v1636_v7 = vpop.f32.mrf.mxu2  ;;  %v2024_v38 = vpop.f32.mrf.mxu0 }
 0x25f   : > { %v2223_v2 = vadd.f32 %v2222_v17, %v2192_v52  ;;  %v1704_v13 = vadd.f32 %v1636_v7, %v1509_v63 }
 0x260   : > { %v1444_v23 = vpop.f32.mrf.mxu1  ;;  %v1830_v30 = vpop.f32.mrf.mxu3 }
 0x261   : > { %v1898_v35 = vadd.f32 %v1830_v30, %v1704_v13  ;;  %2071 = vmatmul.f32.gmra.mxu0 %v1946_v19  ;;  %v1510_v56 = vadd.f32 %v1444_v23, %v3463_v62 }
 0x263   : > { %v2092_v45 = vadd.f32 %v2024_v38, %v1898_v35  ;;  %1491 = vmatmul.f32.gmra.mxu1 %v1945_v41  ;;  %1686 = vmatmul.f32.gmra.mxu2 %v2540_v3 }
 0x265   : > { %2124 = vst [vmem:[%s3519_s6 + $0x70] sm:$0xff] %v2092_v45  ;;  %v2155_v10 = vadd.f32 %v2154_v43, %v2092_v45  ;;  %v2193_v9 = vmul.f32 %v2092_v45, %v2092_v45  ;;  %1880 = vmatmul.f32.gmra.mxu3 %v1753_v61 }
 0x266   : > { %v1639_v36 = vpop.f32.mrf.mxu2  ;;  %v2027_v40 = vpop.f32.mrf.mxu0 }
 0x267   : > { %v2224_v27 = vadd.f32 %v2223_v2, %v2193_v9  ;;  %v1705_v1 = vadd.f32 %v1639_v36, %v1510_v56 }
 0x268   : > { %v1447_v29 = vpop.f32.mrf.mxu1  ;;  %v1833_v18 = vpop.f32.mrf.mxu3 }
 0x269   : > { %v1899_v48 = vadd.f32 %v1833_v18, %v1705_v1  ;;  %2074 = vmatmul.f32.gmra.mxu0 %v1947_v50  ;;  %v1511_v12 = vadd.f32 %v1447_v29, %v3466_v59 }
 0x26b   : > { %v2093_v46 = vadd.f32 %v2027_v40, %v1899_v48 }
 0x26d   : > { %2125 = vst [vmem:[%s3519_s6 + $0x78] sm:$0xff] %v2093_v46  ;;  %v2156_v62 = vadd.f32 %v2155_v10, %v2093_v46  ;;  %v2194_v31 = vmul.f32 %v2093_v46, %v2093_v46 }
 0x26e   : > { %v1642_v14 = vpop.f32.mrf.mxu2  ;;  %v2030_v32 = vpop.f32.mrf.mxu0 }
 0x26f   : > { %v2225_v20 = vadd.f32 %v2224_v27, %v2194_v31  ;;  %v1706_v34 = vadd.f32 %v1642_v14, %v1511_v12 }
 0x270   : > { %v1450_v21 = vpop.f32.mrf.mxu1  ;;  %v1836_v54 = vpop.f32.mrf.mxu3 }
 0x271   : > { %v1900_v4 = vadd.f32 %v1836_v54, %v1706_v34  ;;  %v1512_v22 = vadd.f32 %v1450_v21, %v3469_v47 }
 0x273   : > { %v2094_v51 = vadd.f32 %v2030_v32, %v1900_v4 }
 0x275   : > { %2126 = vst [vmem:[%s3519_s6 + $0x80] sm:$0xff] %v2094_v51  ;;  %v2157_v55 = vadd.f32 %v2156_v62, %v2094_v51  ;;  %v2195_v58 = vmul.f32 %v2094_v51, %v2094_v51 }
 0x276   : > { %v1645_v41 = vpop.f32.mrf.mxu2  ;;  %v2033_v17 = vpop.f32.mrf.mxu0 }
 0x277   : > { %v2226_v59 = vadd.f32 %v2225_v20, %v2195_v58  ;;  %v1707_v25 = vadd.f32 %v1645_v41, %v1512_v22 }
 0x278   : > { %v1453_v57 = vpop.f32.mrf.mxu1  ;;  %v1839_v53 = vpop.f32.mrf.mxu3 }
 0x279   : > { %v1901_v24 = vadd.f32 %v1839_v53, %v1707_v25  ;;  %v1513_v5 = vadd.f32 %v1453_v57, %v3472_v42 }
 0x27b   : > { %v2095_v28 = vadd.f32 %v2033_v17, %v1901_v24 }
 0x27d   : > { %2127 = vst [vmem:[%s3519_s6 + $0x88] sm:$0xff] %v2095_v28  ;;  %v2158_v3 = vadd.f32 %v2157_v55, %v2095_v28  ;;  %v2196_v63 = vmul.f32 %v2095_v28, %v2095_v28 }
 0x27e   : > { %v1648_v43 = vpop.f32.mrf.mxu2  ;;  %v2036_v52 = vpop.f32.mrf.mxu0 }
 0x27f   : > { %v2227_v47 = vadd.f32 %v2226_v59, %v2196_v63  ;;  %v1708_v7 = vadd.f32 %v1648_v43, %v1513_v5 }
 0x280   : > { %v1456_v38 = vpop.f32.mrf.mxu1  ;;  %v1842_v19 = vpop.f32.mrf.mxu3 }
 0x281   : > { %v1902_v2 = vadd.f32 %v1842_v19, %v1708_v7  ;;  %v1514_v23 = vadd.f32 %v1456_v38, %v3475_v37 }
 0x283   : > { %v2096_v13 = vadd.f32 %v2036_v52, %v1902_v2 }
 0x285   : > { %2128 = vst [vmem:[%s3519_s6 + $0x90] sm:$0xff] %v2096_v13  ;;  %v2159_v30 = vadd.f32 %v2158_v3, %v2096_v13  ;;  %v2197_v35 = vmul.f32 %v2096_v13, %v2096_v13 }
 0x286   : > { %v1651_v61 = vpop.f32.mrf.mxu2  ;;  %v2039_v45 = vpop.f32.mrf.mxu0 }
 0x287   : > { %v2228_v42 = vadd.f32 %v2227_v47, %v2197_v35  ;;  %v1709_v56 = vadd.f32 %v1651_v61, %v1514_v23 }
 0x288   : > { %v1459_v10 = vpop.f32.mrf.mxu1  ;;  %v1845_v9 = vpop.f32.mrf.mxu3 }
 0x289   : > { %v1903_v36 = vadd.f32 %v1845_v9, %v1709_v56  ;;  %v1515_v50 = vadd.f32 %v1459_v10, %v3478_v11 }
 0x28b   : > { %v2097_v40 = vadd.f32 %v2039_v45, %v1903_v36 }
 0x28d   : > { %2129 = vst [vmem:[%s3519_s6 + $0x98] sm:$0xff] %v2097_v40  ;;  %v2160_v27 = vadd.f32 %v2159_v30, %v2097_v40  ;;  %v2198_v1 = vmul.f32 %v2097_v40, %v2097_v40 }
 0x28e   : > { %v1654_v29 = vpop.f32.mrf.mxu2  ;;  %v2042_v18 = vpop.f32.mrf.mxu0 }
 0x28f   : > { %v2229_v37 = vadd.f32 %v2228_v42, %v2198_v1  ;;  %v1710_v48 = vadd.f32 %v1654_v29, %v1515_v50 }
 0x290   : > { %v1462_v46 = vpop.f32.mrf.mxu1  ;;  %v1848_v12 = vpop.f32.mrf.mxu3 }
 0x291   : > { %v1904_v62 = vadd.f32 %v1848_v12, %v1710_v48  ;;  %v1516_v14 = vadd.f32 %v1462_v46, %v3481_v15 }
 0x293   : > { %v2098_v31 = vadd.f32 %v2042_v18, %v1904_v62 }
 0x295   : > { %2130 = vst [vmem:[%s3519_s6 + $0xa0] sm:$0xff] %v2098_v31  ;;  %v2161_v32 = vadd.f32 %v2160_v27, %v2098_v31  ;;  %v2199_v20 = vmul.f32 %v2098_v31, %v2098_v31 }
 0x296   : > { %v1657_v34 = vpop.f32.mrf.mxu2  ;;  %v2045_v21 = vpop.f32.mrf.mxu0 }
 0x297   : > { %v2230_v11 = vadd.f32 %v2229_v37, %v2199_v20  ;;  %v1711_v54 = vadd.f32 %v1657_v34, %v1516_v14 }
 0x298   : > { %v1465_v4 = vpop.f32.mrf.mxu1  ;;  %v1851_v51 = vpop.f32.mrf.mxu3 }
 0x299   : > { %v1905_v22 = vadd.f32 %v1851_v51, %v1711_v54  ;;  %v1517_v58 = vadd.f32 %v1465_v4, %v3484_v16 }
 0x29b   : > { %v2099_v55 = vadd.f32 %v2045_v21, %v1905_v22 }
 0x29d   : > { %2131 = vst [vmem:[%s3519_s6 + $0xa8] sm:$0xff] %v2099_v55  ;;  %v2162_v41 = vadd.f32 %v2161_v32, %v2099_v55  ;;  %v2200_v17 = vmul.f32 %v2099_v55, %v2099_v55 }
 0x29e   : > { %v1660_v59 = vpop.f32.mrf.mxu2  ;;  %v2048_v25 = vpop.f32.mrf.mxu0 }
 0x29f   : > { %v2231_v15 = vadd.f32 %v2230_v11, %v2200_v17  ;;  %v1712_v57 = vadd.f32 %v1660_v59, %v1517_v58 }
 0x2a0   : > { %v1468_v53 = vpop.f32.mrf.mxu1  ;;  %v1854_v24 = vpop.f32.mrf.mxu3 }
 0x2a1   : > { %v1906_v28 = vadd.f32 %v1854_v24, %v1712_v57  ;;  %v1518_v3 = vadd.f32 %v1468_v53, %v3487_v39 }
 0x2a3   : > { %v2100_v5 = vadd.f32 %v2048_v25, %v1906_v28 }
 0x2a5   : > { %2132 = vst [vmem:[%s3519_s6 + $0xb0] sm:$0xff] %v2100_v5  ;;  %v2163_v63 = vadd.f32 %v2162_v41, %v2100_v5  ;;  %v2201_v43 = vmul.f32 %v2100_v5, %v2100_v5 }
 0x2a6   : > { %v1663_v52 = vpop.f32.mrf.mxu2  ;;  %v2051_v47 = vpop.f32.mrf.mxu0 }
 0x2a7   : > { %v2232_v16 = vadd.f32 %v2231_v15, %v2201_v43  ;;  %v1713_v7 = vadd.f32 %v1663_v52, %v1518_v3 }
 0x2a8   : > { %v1471_v38 = vpop.f32.mrf.mxu1  ;;  %v1857_v19 = vpop.f32.mrf.mxu3 }
 0x2a9   : > { %v1907_v2 = vadd.f32 %v1857_v19, %v1713_v7  ;;  %v1519_v23 = vadd.f32 %v1471_v38, %v3490_v33 }
 0x2ab   : > { %v2101_v13 = vadd.f32 %v2051_v47, %v1907_v2 }
 0x2ad   : > { %2133 = vst [vmem:[%s3519_s6 + $0xb8] sm:$0xff] %v2101_v13  ;;  %v2164_v30 = vadd.f32 %v2163_v63, %v2101_v13  ;;  %v2202_v35 = vmul.f32 %v2101_v13, %v2101_v13 }
 0x2ae   : > { %v1666_v61 = vpop.f32.mrf.mxu2  ;;  %v2054_v45 = vpop.f32.mrf.mxu0 }
 0x2af   : > { %v2233_v39 = vadd.f32 %v2232_v16, %v2202_v35  ;;  %v1714_v42 = vadd.f32 %v1666_v61, %v1519_v23 }
 0x2b0   : > { %v1474_v56 = vpop.f32.mrf.mxu1  ;;  %v1860_v10 = vpop.f32.mrf.mxu3 }
 0x2b1   : > { %v1908_v9 = vadd.f32 %v1860_v10, %v1714_v42  ;;  %v1520_v40 = vadd.f32 %v1474_v56, %v3493_v8 }
 0x2b3   : > { %v2102_v36 = vadd.f32 %v2054_v45, %v1908_v9 }
 0x2b5   : > { %2134 = vst [vmem:[%s3519_s6 + $0xc0] sm:$0xff] %v2102_v36  ;;  %v2165_v50 = vadd.f32 %v2164_v30, %v2102_v36  ;;  %v2203_v27 = vmul.f32 %v2102_v36, %v2102_v36 }
 0x2b6   : > { %v1669_v1 = vpop.f32.mrf.mxu2  ;;  %v2057_v29 = vpop.f32.mrf.mxu0 }
 0x2b7   : > { %v2234_v33 = vadd.f32 %v2233_v39, %v2203_v27  ;;  %v1715_v18 = vadd.f32 %v1669_v1, %v1520_v40 }
 0x2b8   : > { %v1477_v37 = vpop.f32.mrf.mxu1  ;;  %v1863_v48 = vpop.f32.mrf.mxu3 }
 0x2b9   : > { %v1909_v46 = vadd.f32 %v1863_v48, %v1715_v18  ;;  %v1521_v62 = vadd.f32 %v1477_v37, %v3496_v6 }
 0x2bb   : > { %v2103_v12 = vadd.f32 %v2057_v29, %v1909_v46 }
 0x2bd   : > { %2135 = vst [vmem:[%s3519_s6 + $0xc8] sm:$0xff] %v2103_v12  ;;  %v2166_v31 = vadd.f32 %v2165_v50, %v2103_v12  ;;  %v2204_v14 = vmul.f32 %v2103_v12, %v2103_v12 }
 0x2be   : > { %v1672_v32 = vpop.f32.mrf.mxu2  ;;  %v2060_v20 = vpop.f32.mrf.mxu0 }
 0x2bf   : > { %v2235_v8 = vadd.f32 %v2234_v33, %v2204_v14  ;;  %v1716_v34 = vadd.f32 %v1672_v32, %v1521_v62 }
 0x2c0   : > { %v1480_v21 = vpop.f32.mrf.mxu1  ;;  %v1866_v11 = vpop.f32.mrf.mxu3 }
 0x2c1   : > { %v1910_v54 = vadd.f32 %v1866_v11, %v1716_v34  ;;  %v1522_v51 = vadd.f32 %v1480_v21, %v3499_v60 }
 0x2c3   : > { %v2104_v4 = vadd.f32 %v2060_v20, %v1910_v54 }
 0x2c5   : > { %2136 = vst [vmem:[%s3519_s6 + $0xd0] sm:$0xff] %v2104_v4  ;;  %v2167_v22 = vadd.f32 %v2166_v31, %v2104_v4  ;;  %v2205_v55 = vmul.f32 %v2104_v4, %v2104_v4 }
 0x2c6   : > { %v1675_v58 = vpop.f32.mrf.mxu2  ;;  %v2063_v41 = vpop.f32.mrf.mxu0 }
 0x2c7   : > { %v2236_v6 = vadd.f32 %v2235_v8, %v2205_v55  ;;  %v1717_v17 = vadd.f32 %v1675_v58, %v1522_v51 }
 0x2c8   : > { %v1483_v59 = vpop.f32.mrf.mxu1  ;;  %v1869_v25 = vpop.f32.mrf.mxu3 }
 0x2c9   : > { %v1911_v15 = vadd.f32 %v1869_v25, %v1717_v17  ;;  %v1523_v53 = vadd.f32 %v1483_v59, %v3502_v0 }
 0x2cb   : > { %v2105_v57 = vadd.f32 %v2063_v41, %v1911_v15 }
 0x2cd   : > { %2137 = vst [vmem:[%s3519_s6 + $0xd8] sm:$0xff] %v2105_v57  ;;  %v2168_v24 = vadd.f32 %v2167_v22, %v2105_v57  ;;  %v2206_v28 = vmul.f32 %v2105_v57, %v2105_v57 }
 0x2ce   : > { %v1678_v5 = vpop.f32.mrf.mxu2  ;;  %v2066_v3 = vpop.f32.mrf.mxu0 }
 0x2cf   : > { %v2237_v60 = vadd.f32 %v2236_v6, %v2206_v28  ;;  %v1718_v63 = vadd.f32 %v1678_v5, %v1523_v53 }
 0x2d0   : > { %v1486_v43 = vpop.f32.mrf.mxu1  ;;  %v1872_v52 = vpop.f32.mrf.mxu3 }
 0x2d1   : > { %v1912_v47 = vadd.f32 %v1872_v52, %v1718_v63  ;;  %v1524_v7 = vadd.f32 %v1486_v43, %v3505_v44 }
 0x2d3   : > { %v2106_v16 = vadd.f32 %v2066_v3, %v1912_v47 }
 0x2d5   : > { %2138 = vst [vmem:[%s3519_s6 + $0xe0] sm:$0xff] %v2106_v16  ;;  %v2169_v38 = vadd.f32 %v2168_v24, %v2106_v16  ;;  %v2207_v19 = vmul.f32 %v2106_v16, %v2106_v16 }
 0x2d6   : > { %v1681_v2 = vpop.f32.mrf.mxu2  ;;  %v2069_v13 = vpop.f32.mrf.mxu0 }
 0x2d7   : > { %v2238_v0 = vadd.f32 %v2237_v60, %v2207_v19  ;;  %v1719_v23 = vadd.f32 %v1681_v2, %v1524_v7 }
 0x2d8   : > { %v1489_v30 = vpop.f32.mrf.mxu1  ;;  %v1875_v35 = vpop.f32.mrf.mxu3 }
 0x2d9   : > { %v1913_v61 = vadd.f32 %v1875_v35, %v1719_v23  ;;  %v1525_v39 = vadd.f32 %v1489_v30, %v3508_v26 }
 0x2db   : > { %v2107_v45 = vadd.f32 %v2069_v13, %v1913_v61 }
 0x2dd   : > { %2139 = vst [vmem:[%s3519_s6 + $0xe8] sm:$0xff] %v2107_v45  ;;  %v2170_v42 = vadd.f32 %v2169_v38, %v2107_v45  ;;  %v2208_v56 = vmul.f32 %v2107_v45, %v2107_v45 }
 0x2de   : > { %v1684_v10 = vpop.f32.mrf.mxu2  ;;  %v2072_v9 = vpop.f32.mrf.mxu0 }
 0x2df   : > { %v2239_v44 = vadd.f32 %v2238_v0, %v2208_v56  ;;  %v1720_v36 = vadd.f32 %v1684_v10, %v1525_v39 }
 0x2e0   : > { %v1878_v40 = vpop.f32.mrf.mxu3  ;;  %v1492_v27 = vpop.f32.mrf.mxu1 }
 0x2e1   : > { %v1914_v50 = vadd.f32 %v1878_v40, %v1720_v36  ;;  %v1526_v29 = vadd.f32 %v1492_v27, %v3511_v49 }
 0x2e3   : > { %v2108_v1 = vadd.f32 %v2072_v9, %v1914_v50 }
 0x2e5   : > { %2140 = vst [vmem:[%s3519_s6 + $0xf0] sm:$0xff] %v2108_v1  ;;  %v2171_v33 = vadd.f32 %v2170_v42, %v2108_v1  ;;  %v2209_v18 = vmul.f32 %v2108_v1, %v2108_v1 }
 0x2e6   : > { %v1687_v37 = vpop.f32.mrf.mxu2  ;;  %v2075_v12 = vpop.f32.mrf.mxu0 }
 0x2e7   : > { %v2240_v48 = vadd.f32 %v2239_v44, %v2209_v18  ;;  %v1721_v26 = vadd.f32 %v1687_v37, %v1526_v29 }
 0x2e8   : > { %v1881_v46 = vpop.f32.mrf.mxu3 }
 0x2e9   : > { %v1915_v62 = vadd.f32 %v1881_v46, %v1721_v26 }
 0x2eb   : > { %v2109_v31 = vadd.f32 %v2075_v12, %v1915_v62 }
 0x2ed   : > { %2141 = vst [vmem:[%s3519_s6 + $0xf8] sm:$0xff] %v2109_v31  ;;  %v2172_v14 = vadd.f32 %v2171_v33, %v2109_v31  ;;  %v2210_v32 = vmul.f32 %v2109_v31, %v2109_v31 }
 0x2ef   : > { %v2173_v20 = vrot.slane %v2172_v14, 4  ;;  %v2241_v8 = vadd.f32 %v2240_v48, %v2210_v32 }
 0x2f1   : > { %v2174_v34 = vadd.f32 %v2173_v20, %v2172_v14  ;;  %v2242_v21 = vrot.slane %v2241_v8, 4 }
 0x2f3   : > { %v2175_v11 = vrot.slane %v2174_v34, 2  ;;  %v2243_v49 = vadd.f32 %v2242_v21, %v2241_v8 }
 0x2f5   : > { %v2176_v54 = vadd.f32 %v2175_v11, %v2174_v34  ;;  %v2244_v4 = vrot.slane %v2243_v49, 2 }
 0x2f7   : > { %v2177_v51 = vrot.slane %v2176_v54, 1  ;;  %v2245_v22 = vadd.f32 %v2244_v4, %v2243_v49 }
 0x2f9   : > { %v2246_v55 = vrot.slane %v2245_v22, 1  ;;  %v2178_v58 = vadd.f32 %v2177_v51, %v2176_v54 }
 0x2fb   : > { %v2247_v41 = vadd.f32 %v2246_v55, %v2245_v22 }
 0x2fd   : > { %v2249_v6 = vsel %vm2248_vm0, %v2178_v58, %v2247_v41 }
 0x2fe   : > { %2250 = vst [vmem:[%s208_s9] sm:$0x3] %v2249_v6 }
 0x2ff PF: > { %s15_s15 = sadd.s32 1, %s2547_s15  }
 0x300   : > { %p12_p4 = scmp.ge.s32.totalorder %s15_s15, 4  }
 0x302   :  { %14 = sbr.rel (!%p12_p4) target bundleno = 1 (0x1), region = 84 }

</bundles_post_ra>
